<compile_context>
chip_gen: v7x
topology: tpu7x:2x2x1
jax: 0.10.0
libtpu: 0.0.40
codegen_flags: <defaults>
</compile_context>

<pallas_src>
import functools
import math

import jax
import jax.numpy as jnp
from jax.experimental import pallas as pl
from jax.experimental.pallas import tpu as pltpu

BN_EPS = 1e-3
_VMEM_LIMIT = 32 * 1024 * 1024  # explicit scoped-VMEM budget, safe on v5e/v6e/v7x


def _round_up(x, m):
    return ((x + m - 1) // m) * m


# ----------------------------------------------------------------------------
# Pallas kernels
# ----------------------------------------------------------------------------
def _fused_matmul_kernel(x_ref, w_ref, b_ref, *rest, act, has_res):
    """One (TM, TN) output tile: K-tiled bf16 matmul -> f32 acc -> bias -> act (-> + residual)."""
    if has_res:
        r_ref, o_ref, acc_ref = rest
    else:
        o_ref, acc_ref = rest
        r_ref = None

    k = pl.program_id(2)

    @pl.when(k == 0)
    def _init():
        acc_ref[...] = jnp.zeros_like(acc_ref)

    acc_ref[...] += jnp.dot(x_ref[...], w_ref[...],
                            preferred_element_type=jnp.float32)

    @pl.when(k == pl.num_programs(2) - 1)
    def _finalize():
        y = acc_ref[...] + b_ref[...]
        if act == "silu":
            # sigmoid(y) = 0.5*(tanh(0.5*y)+1): transcendental goes to the EUP slot
            y = y * (0.5 * (jnp.tanh(0.5 * y) + 1.0))
        # act == "none": identity
        if has_res:
            y = y + r_ref[...]
        o_ref[...] = y.astype(o_ref.dtype)


def _blurpool_kernel(a_ref, b_ref, c_ref, d_ref, e_ref, f_ref, o_ref, *, ho):
    # Six polyphase slabs of the reflect-padded map, each (1, ho+1, Wo, C):
    #   a/b/c = even rows with column taps j=0/1/2 ; d/e/f = odd rows with taps j=0/1/2.
    # out[y, x] = (1/16) * sum_{i,j} f[i] f[j] xpad[2y+i, 2x+j],  f = [1, 2, 1].
    even = a_ref[...] + 2.0 * b_ref[...] + c_ref[...]   # rows 2y (i = 0) and 2y+2 (i = 2)
    odd = d_ref[...] + 2.0 * e_ref[...] + f_ref[...]    # rows 2y+1 (i = 1)
    o_ref[...] = (even[:, 0:ho] + 2.0 * odd[:, 0:ho] + even[:, 1:ho + 1]) * (1.0 / 16.0)


# ----------------------------------------------------------------------------
# Pallas wrappers
# ----------------------------------------------------------------------------
def fused_matmul(x2d, w, bias, act, residual=None):
    """(M,K) @ (K,N) + bias -> act (-> + residual); bf16 MXU matmul with f32 accumulation."""
    M, K = x2d.shape
    N = w.shape[1]

    # Tiling: lane-dense N (multiple of 128), K tiled to <=~512 with an accumulator, large TM.
    TN = 128
    Np = _round_up(N, TN)
    TM = 256 if M >= 256 else _round_up(max(M, 1), 16)
    Mp = _round_up(M, TM)
    if K <= 640:
        TK, nk = K, 1
    else:
        nk = -(-K // 512)
        TK = _round_up(-(-K // nk), 128)
    Kp = TK * nk

    xb = x2d.astype(jnp.bfloat16)
    if (Mp, Kp) != (M, K):
        xb = jnp.pad(xb, ((0, Mp - M), (0, Kp - K)))
    wb = w.astype(jnp.bfloat16)
    if (Kp, Np) != (K, N):
        wb = jnp.pad(wb, ((0, Kp - K), (0, Np - N)))
    bp = bias if Np == N else jnp.pad(bias, (0, Np - N))
    bp = bp.reshape(1, Np).astype(jnp.float32)

    in_arrays = [xb, wb, bp]
    in_specs = [
        pl.BlockSpec((TM, TK), lambda i, j, k: (i, k)),
        pl.BlockSpec((TK, TN), lambda i, j, k: (k, j)),
        pl.BlockSpec((1, TN), lambda i, j, k: (0, j)),
    ]
    has_res = residual is not None
    if has_res:
        r = residual.astype(jnp.float32)
        if (Mp, Np) != (M, N):
            r = jnp.pad(r, ((0, Mp - M), (0, Np - N)))
        in_arrays.append(r)
        in_specs.append(pl.BlockSpec((TM, TN), lambda i, j, k: (i, j)))

    out = pl.pallas_call(
        functools.partial(_fused_matmul_kernel, act=act, has_res=has_res),
        out_shape=jax.ShapeDtypeStruct((Mp, Np), jnp.float32),
        grid=(Mp // TM, Np // TN, nk),
        in_specs=in_specs,
        out_specs=pl.BlockSpec((TM, TN), lambda i, j, k: (i, j)),
        scratch_shapes=[pltpu.VMEM((TM, TN), jnp.float32)],
        compiler_params=pltpu.CompilerParams(
            dimension_semantics=("parallel", "parallel", "arbitrary"),
            vmem_limit_bytes=_VMEM_LIMIT,
        ),
    )(*in_arrays)
    if (Mp, Np) != (M, N):
        out = out[:M, :N]
    return out


def blurpool(x):
    """Anti-aliased downsample: reflect pad 1, depthwise 3x3 binomial blur, stride 2."""
    # TODO(synk): BlurPool assumed to use the filt_size=3 binomial filter ([1,2,1]x[1,2,1]/16)
    #             with reflect padding and stride 2 (the standard anti-aliased-CNN config).
    B, H, W, C = x.shape
    Ho, Wo = H // 2, W // 2
    xp = jnp.pad(x, ((0, 0), (1, 1), (1, 1), (0, 0)), mode="reflect")
    # Polyphase split (plain-JAX layout glue): six slabs so the Pallas kernel only needs
    # unstrided slices on the leading (row) axis.
    a = xp[:, 0::2, 0:2 * Wo:2, :]
    b = xp[:, 0::2, 1:2 * Wo:2, :]
    c = xp[:, 0::2, 2:2 * Wo + 2:2, :]
    d = xp[:, 1::2, 0:2 * Wo:2, :]
    e = xp[:, 1::2, 1:2 * Wo:2, :]
    f = xp[:, 1::2, 2:2 * Wo + 2:2, :]
    in_spec = pl.BlockSpec((1, Ho + 1, Wo, C), lambda i: (i, 0, 0, 0))
    return pl.pallas_call(
        functools.partial(_blurpool_kernel, ho=Ho),
        out_shape=jax.ShapeDtypeStruct((B, Ho, Wo, C), jnp.float32),
        grid=(B,),
        in_specs=[in_spec] * 6,
        out_specs=pl.BlockSpec((1, Ho, Wo, C), lambda i: (i, 0, 0, 0)),
        compiler_params=pltpu.CompilerParams(
            dimension_semantics=("parallel",),
            vmem_limit_bytes=_VMEM_LIMIT,
        ),
    )(a, b, c, d, e, f)


# ----------------------------------------------------------------------------
# Plain-JAX glue (im2col, SPP maxpool)
# ----------------------------------------------------------------------------
def extract_patches(x, k, stride):
    """NHWC im2col with zero pad=(k-1)//2. Returns ([B,Ho,Wo,k*k*C], Ho, Wo)."""
    # TODO(synk): 3x3 patch extraction is still plain-JAX glue (in bf16 to halve HBM bytes);
    #             in-kernel halo loading is not implemented.
    pad = (k - 1) // 2
    xp = jnp.pad(x, ((0, 0), (pad, pad), (pad, pad), (0, 0)))
    B, Hp, Wp, C = xp.shape
    Ho = (Hp - k) // stride + 1
    Wo = (Wp - k) // stride + 1
    cols = []
    for i in range(k):
        for j in range(k):
            cols.append(xp[:, i:i + stride * (Ho - 1) + 1:stride,
                           j:j + stride * (Wo - 1) + 1:stride, :])
    return jnp.concatenate(cols, axis=-1), Ho, Wo


def maxpool_same(x, k):  # stride-1 maxpool, pad=k//2 (SPP)
    pad = k // 2
    return jax.lax.reduce_window(
        x, -jnp.inf, jax.lax.max,
        (1, k, k, 1), (1, 1, 1, 1),
        [(0, 0), (pad, pad), (pad, pad), (0, 0)])


# ----------------------------------------------------------------------------
# Parameter construction (deterministic, BN folded into weights)
# ----------------------------------------------------------------------------
class ParamGen:
    def __init__(self, key):
        self._key = key
        self._n = 0

    def weight(self, fan_in, fan_out):
        self._n += 1
        k = jax.random.fold_in(self._key, self._n)
        return jax.random.normal(k, (fan_in, fan_out), jnp.float32) * (1.0 / math.sqrt(fan_in))


def make_base_conv(gen, cin, cout, k, s, act="silu"):
    # Fold BN (gamma=1, beta=0, mean=0, var=1, eps) into the conv weight on the host.
    bn_scale = 1.0 / math.sqrt(1.0 + BN_EPS)
    w = (gen.weight(k * k * cin, cout) * bn_scale).astype(jnp.bfloat16)
    return {"w": w, "bias": jnp.zeros((cout,), jnp.float32), "k": k, "s": s, "act": act}


def make_bottleneck(gen, cin, cout, shortcut, expansion):
    hidden = int(cout * expansion)
    return {"conv1": make_base_conv(gen, cin, hidden, 1, 1),
            "conv2": make_base_conv(gen, hidden, cout, 3, 1),
            "add": bool(shortcut and cin == cout)}


def make_csp(gen, cin, cout, n, shortcut, expansion=0.5):
    hidden = int(cout * expansion)
    return {"conv1": make_base_conv(gen, cin, hidden, 1, 1),
            "conv2": make_base_conv(gen, cin, hidden, 1, 1),
            "conv3": make_base_conv(gen, 2 * hidden, cout, 1, 1),
            "m": [make_bottleneck(gen, hidden, hidden, shortcut, 1.0) for _ in range(n)]}


def make_spp(gen, cin, cout, ks=(5, 9, 13)):
    hidden = cin // 2
    return {"conv1": make_base_conv(gen, cin, hidden, 1, 1),
            "conv2": make_base_conv(gen, hidden * (len(ks) + 1), cout, 1, 1),
            "ks": ks}


def make_model(key, depth, width):
    gen = ParamGen(key)
    bc = int(64 * width)
    bd = max(round(depth * 3), 1)
    p = {}
    p["stem"] = make_base_conv(gen, 3 * 4, bc, 3, 1)                 # Focus conv
    # dark2/dark3 convs are stride 1 (downsampling is done by BlurPool); dark4/dark5 stride 2.
    p["dark2_conv"] = make_base_conv(gen, bc, bc * 2, 3, 1)
    p["dark2_csp"] = make_csp(gen, bc * 2, bc * 2, bd, True)
    p["dark3_conv"] = make_base_conv(gen, bc * 2, bc * 4, 3, 1)
    p["dark3_csp"] = make_csp(gen, bc * 4, bc * 4, bd * 3, True)
    p["dark4_conv"] = make_base_conv(gen, bc * 4, bc * 8, 3, 2)
    p["dark4_csp"] = make_csp(gen, bc * 8, bc * 8, bd * 3, True)
    p["dark5_conv"] = make_base_conv(gen, bc * 8, bc * 16, 3, 2)
    p["dark5_spp"] = make_spp(gen, bc * 16, bc * 16)
    p["dark5_csp"] = make_csp(gen, bc * 16, bc * 16, bd, False)
    return p


# ----------------------------------------------------------------------------
# Forward passes (NHWC internally)
# ----------------------------------------------------------------------------
def base_conv(p, x, residual=None):
    B, H, W, C = x.shape
    k, s = p["k"], p["s"]
    if k == 1 and s == 1:
        patches, Ho, Wo = x.reshape(B * H * W, C), H, W
    else:
        pt, Ho, Wo = extract_patches(x.astype(jnp.bfloat16), k, s)
        patches = pt.reshape(B * Ho * Wo, k * k * C)
    res2d = residual.reshape(B * Ho * Wo, -1) if residual is not None else None
    y = fused_matmul(patches, p["w"], p["bias"], p["act"], residual=res2d)
    return y.reshape(B, Ho, Wo, -1)


def bottleneck_forward(p, x):
    y = base_conv(p["conv1"], x)
    # residual add is fused into the second conv's Pallas epilogue
    return base_conv(p["conv2"], y, residual=x if p["add"] else None)


def csp_forward(p, x):
    x1 = base_conv(p["conv1"], x)
    x2 = base_conv(p["conv2"], x)
    for m in p["m"]:
        x1 = bottleneck_forward(m, x1)
    return base_conv(p["conv3"], jnp.concatenate([x1, x2], axis=-1))


def spp_forward(p, x):
    x = base_conv(p["conv1"], x)
    pools = [x] + [maxpool_same(x, k) for k in p["ks"]]
    return base_conv(p["conv2"], jnp.concatenate(pools, axis=-1))


def focus_forward(p, x):
    tl = x[:, ::2, ::2, :]
    bl = x[:, 1::2, ::2, :]
    tr = x[:, ::2, 1::2, :]
    br = x[:, 1::2, 1::2, :]
    return base_conv(p, jnp.concatenate([tl, bl, tr, br], axis=-1))


def backbone_forward(p, x):
    outputs = {}
    x = focus_forward(p["stem"], x)
    outputs["stem"] = x
    x = base_conv(p["dark2_conv"], x)
    x = blurpool(x)
    x = csp_forward(p["dark2_csp"], x)
    outputs["dark2"] = x
    x = base_conv(p["dark3_conv"], x)
    x = blurpool(x)
    x = csp_forward(p["dark3_csp"], x)
    outputs["dark3"] = x
    x = base_conv(p["dark4_conv"], x)
    x = csp_forward(p["dark4_csp"], x)
    outputs["dark4"] = x
    x = base_conv(p["dark5_conv"], x)
    x = spp_forward(p["dark5_spp"], x)
    x = csp_forward(p["dark5_csp"], x)
    outputs["dark5"] = x
    return outputs


def model_forward(p, x_nchw, out_features=("dark3", "dark4", "dark5")):
    # layout: input NCHW -> internal NHWC -> output dict of NCHW (matching PyTorch).
    x = jnp.transpose(x_nchw, (0, 2, 3, 1)).astype(jnp.float32)
    outs = backbone_forward(p, x)
    return {k: jnp.transpose(v, (0, 3, 1, 2)) for k, v in outs.items() if k in out_features}


# ----------------------------------------------------------------------------
if __name__ == "__main__":
    key = jax.random.PRNGKey(0)
    # small synthetic config: depth=1/3 (base_depth=1), width=1/4 (base_channels=16)
    params = make_model(jax.random.fold_in(key, 1), depth=1.0 / 3.0, width=0.25)
    x = jax.random.normal(jax.random.fold_in(key, 2), (2, 3, 64, 64), jnp.float32)

    fwd = jax.jit(lambda inp: model_forward(params, inp))
    outs = fwd(x)
    jax.block_until_ready(outs)

    assert set(outs.keys()) == {"dark3", "dark4", "dark5"}
    assert outs["dark3"].shape == (2, 64, 8, 8)
    assert outs["dark4"].shape == (2, 128, 4, 4)
    assert outs["dark5"].shape == (2, 256, 2, 2)
    assert all(bool(jnp.all(jnp.isfinite(v))) for v in outs.values())
    print("KERNEL_OK")
</pallas_src>

<mosaic_0001>
module attributes {stable_mosaic.version = 11 : i64} {
  func.func @_fused_matmul_kernel(%arg0: i32, %arg1: i32, %arg2: i32, %arg3: memref<256x108xbf16, #tpu.memory_space<vmem>>, %arg4: memref<108x128xbf16, #tpu.memory_space<vmem>>, %arg5: memref<1x128xf32, #tpu.memory_space<vmem>>, %arg6: memref<256x128xf32, #tpu.memory_space<vmem>>, %arg7: memref<256x128xf32, #tpu.memory_space<vmem>>) attributes {dimension_semantics = [#tpu.dimension_semantics<parallel>, #tpu.dimension_semantics<parallel>, #tpu.dimension_semantics<arbitrary>], iteration_bounds = array<i64: 8, 1, 1>, scalar_prefetch = 0 : i64, scratch_operands = 1 : i64, tpu.core_type = #tpu.core_type<tc>, window_params = [{transform_indices = @transform_0, window_bounds = array<i64: 256, 108>}, {transform_indices = @transform_1, window_bounds = array<i64: 108, 128>}, {transform_indices = @transform_2, window_bounds = array<i64: 1, 128>}, {transform_indices = @transform_3, window_bounds = array<i64: 256, 128>}]} {
    %c0_i32 = arith.constant 0 : i32
    %0 = arith.cmpi eq, %arg2, %c0_i32 : i32
    %1 = arith.extui %0 : i1 to i32
    %c0_i32_0 = arith.constant 0 : i32
    %2 = arith.cmpi ne, %1, %c0_i32_0 : i32
    scf.if %2 {
      %cst_10 = arith.constant 0.000000e+00 : f32
      %12 = vector.broadcast %cst_10 : f32 to vector<256x128xf32>
      %c0_11 = arith.constant 0 : index
      %c0_12 = arith.constant 0 : index
      %13 = vector.load %arg7[%c0_11, %c0_12] : memref<256x128xf32, #tpu.memory_space<vmem>>, vector<256x128xf32>
      tpu.vector_store %arg7[%c0_11, %c0_12], %12 {strides = array<i32>} : memref<256x128xf32, #tpu.memory_space<vmem>>, vector<256x128xf32>,
    } else {
    }
    %c0 = arith.constant 0 : index
    %c0_1 = arith.constant 0 : index
    %3 = vector.load %arg7[%c0, %c0_1] : memref<256x128xf32, #tpu.memory_space<vmem>>, vector<256x128xf32>
    %c0_2 = arith.constant 0 : index
    %c0_3 = arith.constant 0 : index
    %4 = vector.load %arg3[%c0_2, %c0_3] : memref<256x108xbf16, #tpu.memory_space<vmem>>, vector<256x108xbf16>
    %c0_4 = arith.constant 0 : index
    %c0_5 = arith.constant 0 : index
    %5 = vector.load %arg4[%c0_4, %c0_5] : memref<108x128xbf16, #tpu.memory_space<vmem>>, vector<108x128xbf16>
    %cst = arith.constant dense<0.000000e+00> : vector<256x128xf32>
    %6 = tpu.matmul %4, %5, %cst {dimension_numbers = #tpu.dot_dimension_numbers<[1], [0], [0], [1], [0, 0, 1, 1], [], []>} : vector<256x108xbf16>, vector<108x128xbf16>, vector<256x128xf32> -> vector<256x128xf32>
    %7 = arith.addf %3, %6 : vector<256x128xf32>
    %c0_6 = arith.constant 0 : index
    %c0_7 = arith.constant 0 : index
    %8 = vector.load %arg7[%c0_6, %c0_7] : memref<256x128xf32, #tpu.memory_space<vmem>>, vector<256x128xf32>
    tpu.vector_store %arg7[%c0_6, %c0_7], %7 {strides = array<i32>} : memref<256x128xf32, #tpu.memory_space<vmem>>, vector<256x128xf32>,
    %c0_i32_8 = arith.constant 0 : i32
    %9 = arith.cmpi eq, %arg2, %c0_i32_8 : i32
    %10 = arith.extui %9 : i1 to i32
    %c0_i32_9 = arith.constant 0 : i32
    %11 = arith.cmpi ne, %10, %c0_i32_9 : i32
    scf.if %11 {
      %c0_10 = arith.constant 0 : index
      %c0_11 = arith.constant 0 : index
      %12 = vector.load %arg7[%c0_10, %c0_11] : memref<256x128xf32, #tpu.memory_space<vmem>>, vector<256x128xf32>
      %c0_12 = arith.constant 0 : index
      %c0_13 = arith.constant 0 : index
      %13 = vector.load %arg5[%c0_12, %c0_13] : memref<1x128xf32, #tpu.memory_space<vmem>>, vector<1x128xf32>
      %14 = vector.broadcast %13 : vector<1x128xf32> to vector<256x128xf32>
      %15 = arith.addf %12, %14 : vector<256x128xf32>
      %cst_14 = arith.constant 5.000000e-01 : f32
      %16 = vector.broadcast %cst_14 : f32 to vector<256x128xf32>
      %17 = arith.mulf %16, %15 : vector<256x128xf32>
      %18 = math.tanh %17 : vector<256x128xf32>
      %cst_15 = arith.constant 1.000000e+00 : f32
      %19 = vector.broadcast %cst_15 : f32 to vector<256x128xf32>
      %20 = arith.addf %18, %19 : vector<256x128xf32>
      %cst_16 = arith.constant 5.000000e-01 : f32
      %21 = vector.broadcast %cst_16 : f32 to vector<256x128xf32>
      %22 = arith.mulf %21, %20 : vector<256x128xf32>
      %23 = arith.mulf %15, %22 : vector<256x128xf32>
      %c0_17 = arith.constant 0 : index
      %c0_18 = arith.constant 0 : index
      %24 = vector.load %arg6[%c0_17, %c0_18] : memref<256x128xf32, #tpu.memory_space<vmem>>, vector<256x128xf32>
      tpu.vector_store %arg6[%c0_17, %c0_18], %23 {strides = array<i32>} : memref<256x128xf32, #tpu.memory_space<vmem>>, vector<256x128xf32>,
    } else {
    }
    return
  }
  func.func @transform_0(%arg0: i32, %arg1: i32, %arg2: i32) -> (i32, i32) {
    %c0_i32 = arith.constant 0 : i32
    return %arg0, %arg2 : i32, i32
  }
  func.func @transform_1(%arg0: i32, %arg1: i32, %arg2: i32) -> (i32, i32) {
    %c0_i32 = arith.constant 0 : i32
    return %arg2, %arg1 : i32, i32
  }
  func.func @transform_2(%arg0: i32, %arg1: i32, %arg2: i32) -> (i32, i32) {
    %c0_i32 = arith.constant 0 : i32
    %c0_i32_0 = arith.constant 0 : i32
    return %c0_i32, %arg1 : i32, i32
  }
  func.func @transform_3(%arg0: i32, %arg1: i32, %arg2: i32) -> (i32, i32) {
    %c0_i32 = arith.constant 0 : i32
    return %arg0, %arg1 : i32, i32
  }
}

module attributes {stable_mosaic.version = 11 : i64} {
  func.func @_fused_matmul_kernel(%arg0: i32, %arg1: i32, %arg2: i32, %arg3: memref<256x144xbf16, #tpu.memory_space<vmem>>, %arg4: memref<144x128xbf16, #tpu.memory_space<vmem>>, %arg5: memref<1x128xf32, #tpu.memory_space<vmem>>, %arg6: memref<256x128xf32, #tpu.memory_space<vmem>>, %arg7: memref<256x128xf32, #tpu.memory_space<vmem>>) attributes {dimension_semantics = [#tpu.dimension_semantics<parallel>, #tpu.dimension_semantics<parallel>, #tpu.dimension_semantics<arbitrary>], iteration_bounds = array<i64: 8, 1, 1>, scalar_prefetch = 0 : i64, scratch_operands = 1 : i64, tpu.core_type = #tpu.core_type<tc>, window_params = [{transform_indices = @transform_0, window_bounds = array<i64: 256, 144>}, {transform_indices = @transform_1, window_bounds = array<i64: 144, 128>}, {transform_indices = @transform_2, window_bounds = array<i64: 1, 128>}, {transform_indices = @transform_3, window_bounds = array<i64: 256, 128>}]} {
    %c0_i32 = arith.constant 0 : i32
    %0 = arith.cmpi eq, %arg2, %c0_i32 : i32
    %1 = arith.extui %0 : i1 to i32
    %c0_i32_0 = arith.constant 0 : i32
    %2 = arith.cmpi ne, %1, %c0_i32_0 : i32
    scf.if %2 {
      %cst_10 = arith.constant 0.000000e+00 : f32
      %12 = vector.broadcast %cst_10 : f32 to vector<256x128xf32>
      %c0_11 = arith.constant 0 : index
      %c0_12 = arith.constant 0 : index
      %13 = vector.load %arg7[%c0_11, %c0_12] : memref<256x128xf32, #tpu.memory_space<vmem>>, vector<256x128xf32>
      tpu.vector_store %arg7[%c0_11, %c0_12], %12 {strides = array<i32>} : memref<256x128xf32, #tpu.memory_space<vmem>>, vector<256x128xf32>,
    } else {
    }
    %c0 = arith.constant 0 : index
    %c0_1 = arith.constant 0 : index
    %3 = vector.load %arg7[%c0, %c0_1] : memref<256x128xf32, #tpu.memory_space<vmem>>, vector<256x128xf32>
    %c0_2 = arith.constant 0 : index
    %c0_3 = arith.constant 0 : index
    %4 = vector.load %arg3[%c0_2, %c0_3] : memref<256x144xbf16, #tpu.memory_space<vmem>>, vector<256x144xbf16>
    %c0_4 = arith.constant 0 : index
    %c0_5 = arith.constant 0 : index
    %5 = vector.load %arg4[%c0_4, %c0_5] : memref<144x128xbf16, #tpu.memory_space<vmem>>, vector<144x128xbf16>
    %cst = arith.constant dense<0.000000e+00> : vector<256x128xf32>
    %6 = tpu.matmul %4, %5, %cst {dimension_numbers = #tpu.dot_dimension_numbers<[1], [0], [0], [1], [0, 0, 1, 1], [], []>} : vector<256x144xbf16>, vector<144x128xbf16>, vector<256x128xf32> -> vector<256x128xf32>
    %7 = arith.addf %3, %6 : vector<256x128xf32>
    %c0_6 = arith.constant 0 : index
    %c0_7 = arith.constant 0 : index
    %8 = vector.load %arg7[%c0_6, %c0_7] : memref<256x128xf32, #tpu.memory_space<vmem>>, vector<256x128xf32>
    tpu.vector_store %arg7[%c0_6, %c0_7], %7 {strides = array<i32>} : memref<256x128xf32, #tpu.memory_space<vmem>>, vector<256x128xf32>,
    %c0_i32_8 = arith.constant 0 : i32
    %9 = arith.cmpi eq, %arg2, %c0_i32_8 : i32
    %10 = arith.extui %9 : i1 to i32
    %c0_i32_9 = arith.constant 0 : i32
    %11 = arith.cmpi ne, %10, %c0_i32_9 : i32
    scf.if %11 {
      %c0_10 = arith.constant 0 : index
      %c0_11 = arith.constant 0 : index
      %12 = vector.load %arg7[%c0_10, %c0_11] : memref<256x128xf32, #tpu.memory_space<vmem>>, vector<256x128xf32>
      %c0_12 = arith.constant 0 : index
      %c0_13 = arith.constant 0 : index
      %13 = vector.load %arg5[%c0_12, %c0_13] : memref<1x128xf32, #tpu.memory_space<vmem>>, vector<1x128xf32>
      %14 = vector.broadcast %13 : vector<1x128xf32> to vector<256x128xf32>
      %15 = arith.addf %12, %14 : vector<256x128xf32>
      %cst_14 = arith.constant 5.000000e-01 : f32
      %16 = vector.broadcast %cst_14 : f32 to vector<256x128xf32>
      %17 = arith.mulf %16, %15 : vector<256x128xf32>
      %18 = math.tanh %17 : vector<256x128xf32>
      %cst_15 = arith.constant 1.000000e+00 : f32
      %19 = vector.broadcast %cst_15 : f32 to vector<256x128xf32>
      %20 = arith.addf %18, %19 : vector<256x128xf32>
      %cst_16 = arith.constant 5.000000e-01 : f32
      %21 = vector.broadcast %cst_16 : f32 to vector<256x128xf32>
      %22 = arith.mulf %21, %20 : vector<256x128xf32>
      %23 = arith.mulf %15, %22 : vector<256x128xf32>
      %c0_17 = arith.constant 0 : index
      %c0_18 = arith.constant 0 : index
      %24 = vector.load %arg6[%c0_17, %c0_18] : memref<256x128xf32, #tpu.memory_space<vmem>>, vector<256x128xf32>
      tpu.vector_store %arg6[%c0_17, %c0_18], %23 {strides = array<i32>} : memref<256x128xf32, #tpu.memory_space<vmem>>, vector<256x128xf32>,
    } else {
    }
    return
  }
  func.func @transform_0(%arg0: i32, %arg1: i32, %arg2: i32) -> (i32, i32) {
    %c0_i32 = arith.constant 0 : i32
    return %arg0, %arg2 : i32, i32
  }
  func.func @transform_1(%arg0: i32, %arg1: i32, %arg2: i32) -> (i32, i32) {
    %c0_i32 = arith.constant 0 : i32
    return %arg2, %arg1 : i32, i32
  }
  func.func @transform_2(%arg0: i32, %arg1: i32, %arg2: i32) -> (i32, i32) {
    %c0_i32 = arith.constant 0 : i32
    %c0_i32_0 = arith.constant 0 : i32
    return %c0_i32, %arg1 : i32, i32
  }
  func.func @transform_3(%arg0: i32, %arg1: i32, %arg2: i32) -> (i32, i32) {
    %c0_i32 = arith.constant 0 : i32
    return %arg0, %arg1 : i32, i32
  }
}

module attributes {stable_mosaic.version = 11 : i64} {
  func.func @_blurpool_kernel(%arg0: i32, %arg1: memref<1x17x16x32xf32, #tpu.memory_space<vmem>>, %arg2: memref<1x17x16x32xf32, #tpu.memory_space<vmem>>, %arg3: memref<1x17x16x32xf32, #tpu.memory_space<vmem>>, %arg4: memref<1x17x16x32xf32, #tpu.memory_space<vmem>>, %arg5: memref<1x17x16x32xf32, #tpu.memory_space<vmem>>, %arg6: memref<1x17x16x32xf32, #tpu.memory_space<vmem>>, %arg7: memref<1x16x16x32xf32, #tpu.memory_space<vmem>>) attributes {dimension_semantics = [#tpu.dimension_semantics<parallel>], iteration_bounds = array<i64: 2>, scalar_prefetch = 0 : i64, scratch_operands = 0 : i64, tpu.core_type = #tpu.core_type<tc>, window_params = [{transform_indices = @transform_0, window_bounds = array<i64: 1, 17, 16, 32>}, {transform_indices = @transform_1, window_bounds = array<i64: 1, 17, 16, 32>}, {transform_indices = @transform_2, window_bounds = array<i64: 1, 17, 16, 32>}, {transform_indices = @transform_3, window_bounds = array<i64: 1, 17, 16, 32>}, {transform_indices = @transform_4, window_bounds = array<i64: 1, 17, 16, 32>}, {transform_indices = @transform_5, window_bounds = array<i64: 1, 17, 16, 32>}, {transform_indices = @transform_6, window_bounds = array<i64: 1, 16, 16, 32>}]} {
    %c0 = arith.constant 0 : index
    %c0_0 = arith.constant 0 : index
    %c0_1 = arith.constant 0 : index
    %c0_2 = arith.constant 0 : index
    %0 = vector.load %arg1[%c0, %c0_0, %c0_1, %c0_2] : memref<1x17x16x32xf32, #tpu.memory_space<vmem>>, vector<1x17x16x32xf32>
    %c0_3 = arith.constant 0 : index
    %c0_4 = arith.constant 0 : index
    %c0_5 = arith.constant 0 : index
    %c0_6 = arith.constant 0 : index
    %1 = vector.load %arg2[%c0_3, %c0_4, %c0_5, %c0_6] : memref<1x17x16x32xf32, #tpu.memory_space<vmem>>, vector<1x17x16x32xf32>
    %cst = arith.constant 2.000000e+00 : f32
    %2 = vector.broadcast %cst : f32 to vector<1x17x16x32xf32>
    %3 = arith.mulf %2, %1 : vector<1x17x16x32xf32>
    %4 = arith.addf %0, %3 : vector<1x17x16x32xf32>
    %c0_7 = arith.constant 0 : index
    %c0_8 = arith.constant 0 : index
    %c0_9 = arith.constant 0 : index
    %c0_10 = arith.constant 0 : index
    %5 = vector.load %arg3[%c0_7, %c0_8, %c0_9, %c0_10] : memref<1x17x16x32xf32, #tpu.memory_space<vmem>>, vector<1x17x16x32xf32>
    %6 = arith.addf %4, %5 : vector<1x17x16x32xf32>
    %c0_11 = arith.constant 0 : index
    %c0_12 = arith.constant 0 : index
    %c0_13 = arith.constant 0 : index
    %c0_14 = arith.constant 0 : index
    %7 = vector.load %arg4[%c0_11, %c0_12, %c0_13, %c0_14] : memref<1x17x16x32xf32, #tpu.memory_space<vmem>>, vector<1x17x16x32xf32>
    %c0_15 = arith.constant 0 : index
    %c0_16 = arith.constant 0 : index
    %c0_17 = arith.constant 0 : index
    %c0_18 = arith.constant 0 : index
    %8 = vector.load %arg5[%c0_15, %c0_16, %c0_17, %c0_18] : memref<1x17x16x32xf32, #tpu.memory_space<vmem>>, vector<1x17x16x32xf32>
    %cst_19 = arith.constant 2.000000e+00 : f32
    %9 = vector.broadcast %cst_19 : f32 to vector<1x17x16x32xf32>
    %10 = arith.mulf %9, %8 : vector<1x17x16x32xf32>
    %11 = arith.addf %7, %10 : vector<1x17x16x32xf32>
    %c0_20 = arith.constant 0 : index
    %c0_21 = arith.constant 0 : index
    %c0_22 = arith.constant 0 : index
    %c0_23 = arith.constant 0 : index
    %12 = vector.load %arg6[%c0_20, %c0_21, %c0_22, %c0_23] : memref<1x17x16x32xf32, #tpu.memory_space<vmem>>, vector<1x17x16x32xf32>
    %13 = arith.addf %11, %12 : vector<1x17x16x32xf32>
    %14 = vector.extract_strided_slice %6 {offsets = [0, 0, 0, 0], sizes = [1, 16, 16, 32], strides = [1, 1, 1, 1]} : vector<1x17x16x32xf32> to vector<1x16x16x32xf32>
    %15 = vector.extract_strided_slice %13 {offsets = [0, 0, 0, 0], sizes = [1, 16, 16, 32], strides = [1, 1, 1, 1]} : vector<1x17x16x32xf32> to vector<1x16x16x32xf32>
    %cst_24 = arith.constant 2.000000e+00 : f32
    %16 = vector.broadcast %cst_24 : f32 to vector<1x16x16x32xf32>
    %17 = arith.mulf %16, %15 : vector<1x16x16x32xf32>
    %18 = arith.addf %14, %17 : vector<1x16x16x32xf32>
    %19 = vector.extract_strided_slice %6 {offsets = [0, 1, 0, 0], sizes = [1, 16, 16, 32], strides = [1, 1, 1, 1]} : vector<1x17x16x32xf32> to vector<1x16x16x32xf32>
    %20 = arith.addf %18, %19 : vector<1x16x16x32xf32>
    %cst_25 = arith.constant 6.250000e-02 : f32
    %21 = vector.broadcast %cst_25 : f32 to vector<1x16x16x32xf32>
    %22 = arith.mulf %20, %21 : vector<1x16x16x32xf32>
    %c0_26 = arith.constant 0 : index
    %c0_27 = arith.constant 0 : index
    %c0_28 = arith.constant 0 : index
    %c0_29 = arith.constant 0 : index
    %23 = vector.load %arg7[%c0_26, %c0_27, %c0_28, %c0_29] : memref<1x16x16x32xf32, #tpu.memory_space<vmem>>, vector<1x16x16x32xf32>
    tpu.vector_store %arg7[%c0_26, %c0_27, %c0_28, %c0_29], %22 {strides = array<i32>} : memref<1x16x16x32xf32, #tpu.memory_space<vmem>>, vector<1x16x16x32xf32>,
    return
  }
  func.func @transform_0(%arg0: i32) -> (i32, i32, i32, i32) {
    %c0_i32 = arith.constant 0 : i32
    %c0_i32_0 = arith.constant 0 : i32
    %c0_i32_1 = arith.constant 0 : i32
    %c0_i32_2 = arith.constant 0 : i32
    return %arg0, %c0_i32, %c0_i32_0, %c0_i32_1 : i32, i32, i32, i32
  }
  func.func @transform_1(%arg0: i32) -> (i32, i32, i32, i32) {
    %c0_i32 = arith.constant 0 : i32
    %c0_i32_0 = arith.constant 0 : i32
    %c0_i32_1 = arith.constant 0 : i32
    %c0_i32_2 = arith.constant 0 : i32
    return %arg0, %c0_i32, %c0_i32_0, %c0_i32_1 : i32, i32, i32, i32
  }
  func.func @transform_2(%arg0: i32) -> (i32, i32, i32, i32) {
    %c0_i32 = arith.constant 0 : i32
    %c0_i32_0 = arith.constant 0 : i32
    %c0_i32_1 = arith.constant 0 : i32
    %c0_i32_2 = arith.constant 0 : i32
    return %arg0, %c0_i32, %c0_i32_0, %c0_i32_1 : i32, i32, i32, i32
  }
  func.func @transform_3(%arg0: i32) -> (i32, i32, i32, i32) {
    %c0_i32 = arith.constant 0 : i32
    %c0_i32_0 = arith.constant 0 : i32
    %c0_i32_1 = arith.constant 0 : i32
    %c0_i32_2 = arith.constant 0 : i32
    return %arg0, %c0_i32, %c0_i32_0, %c0_i32_1 : i32, i32, i32, i32
  }
  func.func @transform_4(%arg0: i32) -> (i32, i32, i32, i32) {
    %c0_i32 = arith.constant 0 : i32
    %c0_i32_0 = arith.constant 0 : i32
    %c0_i32_1 = arith.constant 0 : i32
    %c0_i32_2 = arith.constant 0 : i32
    return %arg0, %c0_i32, %c0_i32_0, %c0_i32_1 : i32, i32, i32, i32
  }
  func.func @transform_5(%arg0: i32) -> (i32, i32, i32, i32) {
    %c0_i32 = arith.constant 0 : i32
    %c0_i32_0 = arith.constant 0 : i32
    %c0_i32_1 = arith.constant 0 : i32
    %c0_i32_2 = arith.constant 0 : i32
    return %arg0, %c0_i32, %c0_i32_0, %c0_i32_1 : i32, i32, i32, i32
  }
  func.func @transform_6(%arg0: i32) -> (i32, i32, i32, i32) {
    %c0_i32 = arith.constant 0 : i32
    %c0_i32_0 = arith.constant 0 : i32
    %c0_i32_1 = arith.constant 0 : i32
    %c0_i32_2 = arith.constant 0 : i32
    return %arg0, %c0_i32, %c0_i32_0, %c0_i32_1 : i32, i32, i32, i32
  }
}

module attributes {stable_mosaic.version = 11 : i64} {
  func.func @_fused_matmul_kernel(%arg0: i32, %arg1: i32, %arg2: i32, %arg3: memref<256x32xbf16, #tpu.memory_space<vmem>>, %arg4: memref<32x128xbf16, #tpu.memory_space<vmem>>, %arg5: memref<1x128xf32, #tpu.memory_space<vmem>>, %arg6: memref<256x128xf32, #tpu.memory_space<vmem>>, %arg7: memref<256x128xf32, #tpu.memory_space<vmem>>) attributes {dimension_semantics = [#tpu.dimension_semantics<parallel>, #tpu.dimension_semantics<parallel>, #tpu.dimension_semantics<arbitrary>], iteration_bounds = array<i64: 2, 1, 1>, scalar_prefetch = 0 : i64, scratch_operands = 1 : i64, tpu.core_type = #tpu.core_type<tc>, window_params = [{transform_indices = @transform_0, window_bounds = array<i64: 256, 32>}, {transform_indices = @transform_1, window_bounds = array<i64: 32, 128>}, {transform_indices = @transform_2, window_bounds = array<i64: 1, 128>}, {transform_indices = @transform_3, window_bounds = array<i64: 256, 128>}]} {
    %c0_i32 = arith.constant 0 : i32
    %0 = arith.cmpi eq, %arg2, %c0_i32 : i32
    %1 = arith.extui %0 : i1 to i32
    %c0_i32_0 = arith.constant 0 : i32
    %2 = arith.cmpi ne, %1, %c0_i32_0 : i32
    scf.if %2 {
      %cst_10 = arith.constant 0.000000e+00 : f32
      %12 = vector.broadcast %cst_10 : f32 to vector<256x128xf32>
      %c0_11 = arith.constant 0 : index
      %c0_12 = arith.constant 0 : index
      %13 = vector.load %arg7[%c0_11, %c0_12] : memref<256x128xf32, #tpu.memory_space<vmem>>, vector<256x128xf32>
      tpu.vector_store %arg7[%c0_11, %c0_12], %12 {strides = array<i32>} : memref<256x128xf32, #tpu.memory_space<vmem>>, vector<256x128xf32>,
    } else {
    }
    %c0 = arith.constant 0 : index
    %c0_1 = arith.constant 0 : index
    %3 = vector.load %arg7[%c0, %c0_1] : memref<256x128xf32, #tpu.memory_space<vmem>>, vector<256x128xf32>
    %c0_2 = arith.constant 0 : index
    %c0_3 = arith.constant 0 : index
    %4 = vector.load %arg3[%c0_2, %c0_3] : memref<256x32xbf16, #tpu.memory_space<vmem>>, vector<256x32xbf16>
    %c0_4 = arith.constant 0 : index
    %c0_5 = arith.constant 0 : index
    %5 = vector.load %arg4[%c0_4, %c0_5] : memref<32x128xbf16, #tpu.memory_space<vmem>>, vector<32x128xbf16>
    %cst = arith.constant dense<0.000000e+00> : vector<256x128xf32>
    %6 = tpu.matmul %4, %5, %cst {dimension_numbers = #tpu.dot_dimension_numbers<[1], [0], [0], [1], [0, 0, 1, 1], [], []>} : vector<256x32xbf16>, vector<32x128xbf16>, vector<256x128xf32> -> vector<256x128xf32>
    %7 = arith.addf %3, %6 : vector<256x128xf32>
    %c0_6 = arith.constant 0 : index
    %c0_7 = arith.constant 0 : index
    %8 = vector.load %arg7[%c0_6, %c0_7] : memref<256x128xf32, #tpu.memory_space<vmem>>, vector<256x128xf32>
    tpu.vector_store %arg7[%c0_6, %c0_7], %7 {strides = array<i32>} : memref<256x128xf32, #tpu.memory_space<vmem>>, vector<256x128xf32>,
    %c0_i32_8 = arith.constant 0 : i32
    %9 = arith.cmpi eq, %arg2, %c0_i32_8 : i32
    %10 = arith.extui %9 : i1 to i32
    %c0_i32_9 = arith.constant 0 : i32
    %11 = arith.cmpi ne, %10, %c0_i32_9 : i32
    scf.if %11 {
      %c0_10 = arith.constant 0 : index
      %c0_11 = arith.constant 0 : index
      %12 = vector.load %arg7[%c0_10, %c0_11] : memref<256x128xf32, #tpu.memory_space<vmem>>, vector<256x128xf32>
      %c0_12 = arith.constant 0 : index
      %c0_13 = arith.constant 0 : index
      %13 = vector.load %arg5[%c0_12, %c0_13] : memref<1x128xf32, #tpu.memory_space<vmem>>, vector<1x128xf32>
      %14 = vector.broadcast %13 : vector<1x128xf32> to vector<256x128xf32>
      %15 = arith.addf %12, %14 : vector<256x128xf32>
      %cst_14 = arith.constant 5.000000e-01 : f32
      %16 = vector.broadcast %cst_14 : f32 to vector<256x128xf32>
      %17 = arith.mulf %16, %15 : vector<256x128xf32>
      %18 = math.tanh %17 : vector<256x128xf32>
      %cst_15 = arith.constant 1.000000e+00 : f32
      %19 = vector.broadcast %cst_15 : f32 to vector<256x128xf32>
      %20 = arith.addf %18, %19 : vector<256x128xf32>
      %cst_16 = arith.constant 5.000000e-01 : f32
      %21 = vector.broadcast %cst_16 : f32 to vector<256x128xf32>
      %22 = arith.mulf %21, %20 : vector<256x128xf32>
      %23 = arith.mulf %15, %22 : vector<256x128xf32>
      %c0_17 = arith.constant 0 : index
      %c0_18 = arith.constant 0 : index
      %24 = vector.load %arg6[%c0_17, %c0_18] : memref<256x128xf32, #tpu.memory_space<vmem>>, vector<256x128xf32>
      tpu.vector_store %arg6[%c0_17, %c0_18], %23 {strides = array<i32>} : memref<256x128xf32, #tpu.memory_space<vmem>>, vector<256x128xf32>,
    } else {
    }
    return
  }
  func.func @transform_0(%arg0: i32, %arg1: i32, %arg2: i32) -> (i32, i32) {
    %c0_i32 = arith.constant 0 : i32
    return %arg0, %arg2 : i32, i32
  }
  func.func @transform_1(%arg0: i32, %arg1: i32, %arg2: i32) -> (i32, i32) {
    %c0_i32 = arith.constant 0 : i32
    return %arg2, %arg1 : i32, i32
  }
  func.func @transform_2(%arg0: i32, %arg1: i32, %arg2: i32) -> (i32, i32) {
    %c0_i32 = arith.constant 0 : i32
    %c0_i32_0 = arith.constant 0 : i32
    return %c0_i32, %arg1 : i32, i32
  }
  func.func @transform_3(%arg0: i32, %arg1: i32, %arg2: i32) -> (i32, i32) {
    %c0_i32 = arith.constant 0 : i32
    return %arg0, %arg1 : i32, i32
  }
}

module attributes {stable_mosaic.version = 11 : i64} {
  func.func @_fused_matmul_kernel(%arg0: i32, %arg1: i32, %arg2: i32, %arg3: memref<256x16xbf16, #tpu.memory_space<vmem>>, %arg4: memref<16x128xbf16, #tpu.memory_space<vmem>>, %arg5: memref<1x128xf32, #tpu.memory_space<vmem>>, %arg6: memref<256x128xf32, #tpu.memory_space<vmem>>, %arg7: memref<256x128xf32, #tpu.memory_space<vmem>>) attributes {dimension_semantics = [#tpu.dimension_semantics<parallel>, #tpu.dimension_semantics<parallel>, #tpu.dimension_semantics<arbitrary>], iteration_bounds = array<i64: 2, 1, 1>, scalar_prefetch = 0 : i64, scratch_operands = 1 : i64, tpu.core_type = #tpu.core_type<tc>, window_params = [{transform_indices = @transform_0, window_bounds = array<i64: 256, 16>}, {transform_indices = @transform_1, window_bounds = array<i64: 16, 128>}, {transform_indices = @transform_2, window_bounds = array<i64: 1, 128>}, {transform_indices = @transform_3, window_bounds = array<i64: 256, 128>}]} {
    %c0_i32 = arith.constant 0 : i32
    %0 = arith.cmpi eq, %arg2, %c0_i32 : i32
    %1 = arith.extui %0 : i1 to i32
    %c0_i32_0 = arith.constant 0 : i32
    %2 = arith.cmpi ne, %1, %c0_i32_0 : i32
    scf.if %2 {
      %cst_10 = arith.constant 0.000000e+00 : f32
      %12 = vector.broadcast %cst_10 : f32 to vector<256x128xf32>
      %c0_11 = arith.constant 0 : index
      %c0_12 = arith.constant 0 : index
      %13 = vector.load %arg7[%c0_11, %c0_12] : memref<256x128xf32, #tpu.memory_space<vmem>>, vector<256x128xf32>
      tpu.vector_store %arg7[%c0_11, %c0_12], %12 {strides = array<i32>} : memref<256x128xf32, #tpu.memory_space<vmem>>, vector<256x128xf32>,
    } else {
    }
    %c0 = arith.constant 0 : index
    %c0_1 = arith.constant 0 : index
    %3 = vector.load %arg7[%c0, %c0_1] : memref<256x128xf32, #tpu.memory_space<vmem>>, vector<256x128xf32>
    %c0_2 = arith.constant 0 : index
    %c0_3 = arith.constant 0 : index
    %4 = vector.load %arg3[%c0_2, %c0_3] : memref<256x16xbf16, #tpu.memory_space<vmem>>, vector<256x16xbf16>
    %c0_4 = arith.constant 0 : index
    %c0_5 = arith.constant 0 : index
    %5 = vector.load %arg4[%c0_4, %c0_5] : memref<16x128xbf16, #tpu.memory_space<vmem>>, vector<16x128xbf16>
    %cst = arith.constant dense<0.000000e+00> : vector<256x128xf32>
    %6 = tpu.matmul %4, %5, %cst {dimension_numbers = #tpu.dot_dimension_numbers<[1], [0], [0], [1], [0, 0, 1, 1], [], []>} : vector<256x16xbf16>, vector<16x128xbf16>, vector<256x128xf32> -> vector<256x128xf32>
    %7 = arith.addf %3, %6 : vector<256x128xf32>
    %c0_6 = arith.constant 0 : index
    %c0_7 = arith.constant 0 : index
    %8 = vector.load %arg7[%c0_6, %c0_7] : memref<256x128xf32, #tpu.memory_space<vmem>>, vector<256x128xf32>
    tpu.vector_store %arg7[%c0_6, %c0_7], %7 {strides = array<i32>} : memref<256x128xf32, #tpu.memory_space<vmem>>, vector<256x128xf32>,
    %c0_i32_8 = arith.constant 0 : i32
    %9 = arith.cmpi eq, %arg2, %c0_i32_8 : i32
    %10 = arith.extui %9 : i1 to i32
    %c0_i32_9 = arith.constant 0 : i32
    %11 = arith.cmpi ne, %10, %c0_i32_9 : i32
    scf.if %11 {
      %c0_10 = arith.constant 0 : index
      %c0_11 = arith.constant 0 : index
      %12 = vector.load %arg7[%c0_10, %c0_11] : memref<256x128xf32, #tpu.memory_space<vmem>>, vector<256x128xf32>
      %c0_12 = arith.constant 0 : index
      %c0_13 = arith.constant 0 : index
      %13 = vector.load %arg5[%c0_12, %c0_13] : memref<1x128xf32, #tpu.memory_space<vmem>>, vector<1x128xf32>
      %14 = vector.broadcast %13 : vector<1x128xf32> to vector<256x128xf32>
      %15 = arith.addf %12, %14 : vector<256x128xf32>
      %cst_14 = arith.constant 5.000000e-01 : f32
      %16 = vector.broadcast %cst_14 : f32 to vector<256x128xf32>
      %17 = arith.mulf %16, %15 : vector<256x128xf32>
      %18 = math.tanh %17 : vector<256x128xf32>
      %cst_15 = arith.constant 1.000000e+00 : f32
      %19 = vector.broadcast %cst_15 : f32 to vector<256x128xf32>
      %20 = arith.addf %18, %19 : vector<256x128xf32>
      %cst_16 = arith.constant 5.000000e-01 : f32
      %21 = vector.broadcast %cst_16 : f32 to vector<256x128xf32>
      %22 = arith.mulf %21, %20 : vector<256x128xf32>
      %23 = arith.mulf %15, %22 : vector<256x128xf32>
      %c0_17 = arith.constant 0 : index
      %c0_18 = arith.constant 0 : index
      %24 = vector.load %arg6[%c0_17, %c0_18] : memref<256x128xf32, #tpu.memory_space<vmem>>, vector<256x128xf32>
      tpu.vector_store %arg6[%c0_17, %c0_18], %23 {strides = array<i32>} : memref<256x128xf32, #tpu.memory_space<vmem>>, vector<256x128xf32>,
    } else {
    }
    return
  }
  func.func @transform_0(%arg0: i32, %arg1: i32, %arg2: i32) -> (i32, i32) {
    %c0_i32 = arith.constant 0 : i32
    return %arg0, %arg2 : i32, i32
  }
  func.func @transform_1(%arg0: i32, %arg1: i32, %arg2: i32) -> (i32, i32) {
    %c0_i32 = arith.constant 0 : i32
    return %arg2, %arg1 : i32, i32
  }
  func.func @transform_2(%arg0: i32, %arg1: i32, %arg2: i32) -> (i32, i32) {
    %c0_i32 = arith.constant 0 : i32
    %c0_i32_0 = arith.constant 0 : i32
    return %c0_i32, %arg1 : i32, i32
  }
  func.func @transform_3(%arg0: i32, %arg1: i32, %arg2: i32) -> (i32, i32) {
    %c0_i32 = arith.constant 0 : i32
    return %arg0, %arg1 : i32, i32
  }
}

module attributes {stable_mosaic.version = 11 : i64} {
  func.func @_fused_matmul_kernel(%arg0: i32, %arg1: i32, %arg2: i32, %arg3: memref<256x144xbf16, #tpu.memory_space<vmem>>, %arg4: memref<144x128xbf16, #tpu.memory_space<vmem>>, %arg5: memref<1x128xf32, #tpu.memory_space<vmem>>, %arg6: memref<256x128xf32, #tpu.memory_space<vmem>>, %arg7: memref<256x128xf32, #tpu.memory_space<vmem>>, %arg8: memref<256x128xf32, #tpu.memory_space<vmem>>) attributes {dimension_semantics = [#tpu.dimension_semantics<parallel>, #tpu.dimension_semantics<parallel>, #tpu.dimension_semantics<arbitrary>], iteration_bounds = array<i64: 2, 1, 1>, scalar_prefetch = 0 : i64, scratch_operands = 1 : i64, tpu.core_type = #tpu.core_type<tc>, window_params = [{transform_indices = @transform_0, window_bounds = array<i64: 256, 144>}, {transform_indices = @transform_1, window_bounds = array<i64: 144, 128>}, {transform_indices = @transform_2, window_bounds = array<i64: 1, 128>}, {transform_indices = @transform_3, window_bounds = array<i64: 256, 128>}, {transform_indices = @transform_4, window_bounds = array<i64: 256, 128>}]} {
    %c0_i32 = arith.constant 0 : i32
    %0 = arith.cmpi eq, %arg2, %c0_i32 : i32
    %1 = arith.extui %0 : i1 to i32
    %c0_i32_0 = arith.constant 0 : i32
    %2 = arith.cmpi ne, %1, %c0_i32_0 : i32
    scf.if %2 {
      %cst_10 = arith.constant 0.000000e+00 : f32
      %12 = vector.broadcast %cst_10 : f32 to vector<256x128xf32>
      %c0_11 = arith.constant 0 : index
      %c0_12 = arith.constant 0 : index
      %13 = vector.load %arg8[%c0_11, %c0_12] : memref<256x128xf32, #tpu.memory_space<vmem>>, vector<256x128xf32>
      tpu.vector_store %arg8[%c0_11, %c0_12], %12 {strides = array<i32>} : memref<256x128xf32, #tpu.memory_space<vmem>>, vector<256x128xf32>,
    } else {
    }
    %c0 = arith.constant 0 : index
    %c0_1 = arith.constant 0 : index
    %3 = vector.load %arg8[%c0, %c0_1] : memref<256x128xf32, #tpu.memory_space<vmem>>, vector<256x128xf32>
    %c0_2 = arith.constant 0 : index
    %c0_3 = arith.constant 0 : index
    %4 = vector.load %arg3[%c0_2, %c0_3] : memref<256x144xbf16, #tpu.memory_space<vmem>>, vector<256x144xbf16>
    %c0_4 = arith.constant 0 : index
    %c0_5 = arith.constant 0 : index
    %5 = vector.load %arg4[%c0_4, %c0_5] : memref<144x128xbf16, #tpu.memory_space<vmem>>, vector<144x128xbf16>
    %cst = arith.constant dense<0.000000e+00> : vector<256x128xf32>
    %6 = tpu.matmul %4, %5, %cst {dimension_numbers = #tpu.dot_dimension_numbers<[1], [0], [0], [1], [0, 0, 1, 1], [], []>} : vector<256x144xbf16>, vector<144x128xbf16>, vector<256x128xf32> -> vector<256x128xf32>
    %7 = arith.addf %3, %6 : vector<256x128xf32>
    %c0_6 = arith.constant 0 : index
    %c0_7 = arith.constant 0 : index
    %8 = vector.load %arg8[%c0_6, %c0_7] : memref<256x128xf32, #tpu.memory_space<vmem>>, vector<256x128xf32>
    tpu.vector_store %arg8[%c0_6, %c0_7], %7 {strides = array<i32>} : memref<256x128xf32, #tpu.memory_space<vmem>>, vector<256x128xf32>,
    %c0_i32_8 = arith.constant 0 : i32
    %9 = arith.cmpi eq, %arg2, %c0_i32_8 : i32
    %10 = arith.extui %9 : i1 to i32
    %c0_i32_9 = arith.constant 0 : i32
    %11 = arith.cmpi ne, %10, %c0_i32_9 : i32
    scf.if %11 {
      %c0_10 = arith.constant 0 : index
      %c0_11 = arith.constant 0 : index
      %12 = vector.load %arg8[%c0_10, %c0_11] : memref<256x128xf32, #tpu.memory_space<vmem>>, vector<256x128xf32>
      %c0_12 = arith.constant 0 : index
      %c0_13 = arith.constant 0 : index
      %13 = vector.load %arg5[%c0_12, %c0_13] : memref<1x128xf32, #tpu.memory_space<vmem>>, vector<1x128xf32>
      %14 = vector.broadcast %13 : vector<1x128xf32> to vector<256x128xf32>
      %15 = arith.addf %12, %14 : vector<256x128xf32>
      %cst_14 = arith.constant 5.000000e-01 : f32
      %16 = vector.broadcast %cst_14 : f32 to vector<256x128xf32>
      %17 = arith.mulf %16, %15 : vector<256x128xf32>
      %18 = math.tanh %17 : vector<256x128xf32>
      %cst_15 = arith.constant 1.000000e+00 : f32
      %19 = vector.broadcast %cst_15 : f32 to vector<256x128xf32>
      %20 = arith.addf %18, %19 : vector<256x128xf32>
      %cst_16 = arith.constant 5.000000e-01 : f32
      %21 = vector.broadcast %cst_16 : f32 to vector<256x128xf32>
      %22 = arith.mulf %21, %20 : vector<256x128xf32>
      %23 = arith.mulf %15, %22 : vector<256x128xf32>
      %c0_17 = arith.constant 0 : index
      %c0_18 = arith.constant 0 : index
      %24 = vector.load %arg6[%c0_17, %c0_18] : memref<256x128xf32, #tpu.memory_space<vmem>>, vector<256x128xf32>
      %25 = arith.addf %23, %24 : vector<256x128xf32>
      %c0_19 = arith.constant 0 : index
      %c0_20 = arith.constant 0 : index
      %26 = vector.load %arg7[%c0_19, %c0_20] : memref<256x128xf32, #tpu.memory_space<vmem>>, vector<256x128xf32>
      tpu.vector_store %arg7[%c0_19, %c0_20], %25 {strides = array<i32>} : memref<256x128xf32, #tpu.memory_space<vmem>>, vector<256x128xf32>,
    } else {
    }
    return
  }
  func.func @transform_0(%arg0: i32, %arg1: i32, %arg2: i32) -> (i32, i32) {
    %c0_i32 = arith.constant 0 : i32
    return %arg0, %arg2 : i32, i32
  }
  func.func @transform_1(%arg0: i32, %arg1: i32, %arg2: i32) -> (i32, i32) {
    %c0_i32 = arith.constant 0 : i32
    return %arg2, %arg1 : i32, i32
  }
  func.func @transform_2(%arg0: i32, %arg1: i32, %arg2: i32) -> (i32, i32) {
    %c0_i32 = arith.constant 0 : i32
    %c0_i32_0 = arith.constant 0 : i32
    return %c0_i32, %arg1 : i32, i32
  }
  func.func @transform_3(%arg0: i32, %arg1: i32, %arg2: i32) -> (i32, i32) {
    %c0_i32 = arith.constant 0 : i32
    return %arg0, %arg1 : i32, i32
  }
  func.func @transform_4(%arg0: i32, %arg1: i32, %arg2: i32) -> (i32, i32) {
    %c0_i32 = arith.constant 0 : i32
    return %arg0, %arg1 : i32, i32
  }
}

module attributes {stable_mosaic.version = 11 : i64} {
  func.func @_fused_matmul_kernel(%arg0: i32, %arg1: i32, %arg2: i32, %arg3: memref<256x288xbf16, #tpu.memory_space<vmem>>, %arg4: memref<288x128xbf16, #tpu.memory_space<vmem>>, %arg5: memref<1x128xf32, #tpu.memory_space<vmem>>, %arg6: memref<256x128xf32, #tpu.memory_space<vmem>>, %arg7: memref<256x128xf32, #tpu.memory_space<vmem>>) attributes {dimension_semantics = [#tpu.dimension_semantics<parallel>, #tpu.dimension_semantics<parallel>, #tpu.dimension_semantics<arbitrary>], iteration_bounds = array<i64: 2, 1, 1>, scalar_prefetch = 0 : i64, scratch_operands = 1 : i64, tpu.core_type = #tpu.core_type<tc>, window_params = [{transform_indices = @transform_0, window_bounds = array<i64: 256, 288>}, {transform_indices = @transform_1, window_bounds = array<i64: 288, 128>}, {transform_indices = @transform_2, window_bounds = array<i64: 1, 128>}, {transform_indices = @transform_3, window_bounds = array<i64: 256, 128>}]} {
    %c0_i32 = arith.constant 0 : i32
    %0 = arith.cmpi eq, %arg2, %c0_i32 : i32
    %1 = arith.extui %0 : i1 to i32
    %c0_i32_0 = arith.constant 0 : i32
    %2 = arith.cmpi ne, %1, %c0_i32_0 : i32
    scf.if %2 {
      %cst_10 = arith.constant 0.000000e+00 : f32
      %12 = vector.broadcast %cst_10 : f32 to vector<256x128xf32>
      %c0_11 = arith.constant 0 : index
      %c0_12 = arith.constant 0 : index
      %13 = vector.load %arg7[%c0_11, %c0_12] : memref<256x128xf32, #tpu.memory_space<vmem>>, vector<256x128xf32>
      tpu.vector_store %arg7[%c0_11, %c0_12], %12 {strides = array<i32>} : memref<256x128xf32, #tpu.memory_space<vmem>>, vector<256x128xf32>,
    } else {
    }
    %c0 = arith.constant 0 : index
    %c0_1 = arith.constant 0 : index
    %3 = vector.load %arg7[%c0, %c0_1] : memref<256x128xf32, #tpu.memory_space<vmem>>, vector<256x128xf32>
    %c0_2 = arith.constant 0 : index
    %c0_3 = arith.constant 0 : index
    %4 = vector.load %arg3[%c0_2, %c0_3] : memref<256x288xbf16, #tpu.memory_space<vmem>>, vector<256x288xbf16>
    %c0_4 = arith.constant 0 : index
    %c0_5 = arith.constant 0 : index
    %5 = vector.load %arg4[%c0_4, %c0_5] : memref<288x128xbf16, #tpu.memory_space<vmem>>, vector<288x128xbf16>
    %cst = arith.constant dense<0.000000e+00> : vector<256x128xf32>
    %6 = tpu.matmul %4, %5, %cst {dimension_numbers = #tpu.dot_dimension_numbers<[1], [0], [0], [1], [0, 0, 1, 1], [], []>} : vector<256x288xbf16>, vector<288x128xbf16>, vector<256x128xf32> -> vector<256x128xf32>
    %7 = arith.addf %3, %6 : vector<256x128xf32>
    %c0_6 = arith.constant 0 : index
    %c0_7 = arith.constant 0 : index
    %8 = vector.load %arg7[%c0_6, %c0_7] : memref<256x128xf32, #tpu.memory_space<vmem>>, vector<256x128xf32>
    tpu.vector_store %arg7[%c0_6, %c0_7], %7 {strides = array<i32>} : memref<256x128xf32, #tpu.memory_space<vmem>>, vector<256x128xf32>,
    %c0_i32_8 = arith.constant 0 : i32
    %9 = arith.cmpi eq, %arg2, %c0_i32_8 : i32
    %10 = arith.extui %9 : i1 to i32
    %c0_i32_9 = arith.constant 0 : i32
    %11 = arith.cmpi ne, %10, %c0_i32_9 : i32
    scf.if %11 {
      %c0_10 = arith.constant 0 : index
      %c0_11 = arith.constant 0 : index
      %12 = vector.load %arg7[%c0_10, %c0_11] : memref<256x128xf32, #tpu.memory_space<vmem>>, vector<256x128xf32>
      %c0_12 = arith.constant 0 : index
      %c0_13 = arith.constant 0 : index
      %13 = vector.load %arg5[%c0_12, %c0_13] : memref<1x128xf32, #tpu.memory_space<vmem>>, vector<1x128xf32>
      %14 = vector.broadcast %13 : vector<1x128xf32> to vector<256x128xf32>
      %15 = arith.addf %12, %14 : vector<256x128xf32>
      %cst_14 = arith.constant 5.000000e-01 : f32
      %16 = vector.broadcast %cst_14 : f32 to vector<256x128xf32>
      %17 = arith.mulf %16, %15 : vector<256x128xf32>
      %18 = math.tanh %17 : vector<256x128xf32>
      %cst_15 = arith.constant 1.000000e+00 : f32
      %19 = vector.broadcast %cst_15 : f32 to vector<256x128xf32>
      %20 = arith.addf %18, %19 : vector<256x128xf32>
      %cst_16 = arith.constant 5.000000e-01 : f32
      %21 = vector.broadcast %cst_16 : f32 to vector<256x128xf32>
      %22 = arith.mulf %21, %20 : vector<256x128xf32>
      %23 = arith.mulf %15, %22 : vector<256x128xf32>
      %c0_17 = arith.constant 0 : index
      %c0_18 = arith.constant 0 : index
      %24 = vector.load %arg6[%c0_17, %c0_18] : memref<256x128xf32, #tpu.memory_space<vmem>>, vector<256x128xf32>
      tpu.vector_store %arg6[%c0_17, %c0_18], %23 {strides = array<i32>} : memref<256x128xf32, #tpu.memory_space<vmem>>, vector<256x128xf32>,
    } else {
    }
    return
  }
  func.func @transform_0(%arg0: i32, %arg1: i32, %arg2: i32) -> (i32, i32) {
    %c0_i32 = arith.constant 0 : i32
    return %arg0, %arg2 : i32, i32
  }
  func.func @transform_1(%arg0: i32, %arg1: i32, %arg2: i32) -> (i32, i32) {
    %c0_i32 = arith.constant 0 : i32
    return %arg2, %arg1 : i32, i32
  }
  func.func @transform_2(%arg0: i32, %arg1: i32, %arg2: i32) -> (i32, i32) {
    %c0_i32 = arith.constant 0 : i32
    %c0_i32_0 = arith.constant 0 : i32
    return %c0_i32, %arg1 : i32, i32
  }
  func.func @transform_3(%arg0: i32, %arg1: i32, %arg2: i32) -> (i32, i32) {
    %c0_i32 = arith.constant 0 : i32
    return %arg0, %arg1 : i32, i32
  }
}

module attributes {stable_mosaic.version = 11 : i64} {
  func.func @_blurpool_kernel(%arg0: i32, %arg1: memref<1x9x8x64xf32, #tpu.memory_space<vmem>>, %arg2: memref<1x9x8x64xf32, #tpu.memory_space<vmem>>, %arg3: memref<1x9x8x64xf32, #tpu.memory_space<vmem>>, %arg4: memref<1x9x8x64xf32, #tpu.memory_space<vmem>>, %arg5: memref<1x9x8x64xf32, #tpu.memory_space<vmem>>, %arg6: memref<1x9x8x64xf32, #tpu.memory_space<vmem>>, %arg7: memref<1x8x8x64xf32, #tpu.memory_space<vmem>>) attributes {dimension_semantics = [#tpu.dimension_semantics<parallel>], iteration_bounds = array<i64: 2>, scalar_prefetch = 0 : i64, scratch_operands = 0 : i64, tpu.core_type = #tpu.core_type<tc>, window_params = [{transform_indices = @transform_0, window_bounds = array<i64: 1, 9, 8, 64>}, {transform_indices = @transform_1, window_bounds = array<i64: 1, 9, 8, 64>}, {transform_indices = @transform_2, window_bounds = array<i64: 1, 9, 8, 64>}, {transform_indices = @transform_3, window_bounds = array<i64: 1, 9, 8, 64>}, {transform_indices = @transform_4, window_bounds = array<i64: 1, 9, 8, 64>}, {transform_indices = @transform_5, window_bounds = array<i64: 1, 9, 8, 64>}, {transform_indices = @transform_6, window_bounds = array<i64: 1, 8, 8, 64>}]} {
    %c0 = arith.constant 0 : index
    %c0_0 = arith.constant 0 : index
    %c0_1 = arith.constant 0 : index
    %c0_2 = arith.constant 0 : index
    %0 = vector.load %arg1[%c0, %c0_0, %c0_1, %c0_2] : memref<1x9x8x64xf32, #tpu.memory_space<vmem>>, vector<1x9x8x64xf32>
    %c0_3 = arith.constant 0 : index
    %c0_4 = arith.constant 0 : index
    %c0_5 = arith.constant 0 : index
    %c0_6 = arith.constant 0 : index
    %1 = vector.load %arg2[%c0_3, %c0_4, %c0_5, %c0_6] : memref<1x9x8x64xf32, #tpu.memory_space<vmem>>, vector<1x9x8x64xf32>
    %cst = arith.constant 2.000000e+00 : f32
    %2 = vector.broadcast %cst : f32 to vector<1x9x8x64xf32>
    %3 = arith.mulf %2, %1 : vector<1x9x8x64xf32>
    %4 = arith.addf %0, %3 : vector<1x9x8x64xf32>
    %c0_7 = arith.constant 0 : index
    %c0_8 = arith.constant 0 : index
    %c0_9 = arith.constant 0 : index
    %c0_10 = arith.constant 0 : index
    %5 = vector.load %arg3[%c0_7, %c0_8, %c0_9, %c0_10] : memref<1x9x8x64xf32, #tpu.memory_space<vmem>>, vector<1x9x8x64xf32>
    %6 = arith.addf %4, %5 : vector<1x9x8x64xf32>
    %c0_11 = arith.constant 0 : index
    %c0_12 = arith.constant 0 : index
    %c0_13 = arith.constant 0 : index
    %c0_14 = arith.constant 0 : index
    %7 = vector.load %arg4[%c0_11, %c0_12, %c0_13, %c0_14] : memref<1x9x8x64xf32, #tpu.memory_space<vmem>>, vector<1x9x8x64xf32>
    %c0_15 = arith.constant 0 : index
    %c0_16 = arith.constant 0 : index
    %c0_17 = arith.constant 0 : index
    %c0_18 = arith.constant 0 : index
    %8 = vector.load %arg5[%c0_15, %c0_16, %c0_17, %c0_18] : memref<1x9x8x64xf32, #tpu.memory_space<vmem>>, vector<1x9x8x64xf32>
    %cst_19 = arith.constant 2.000000e+00 : f32
    %9 = vector.broadcast %cst_19 : f32 to vector<1x9x8x64xf32>
    %10 = arith.mulf %9, %8 : vector<1x9x8x64xf32>
    %11 = arith.addf %7, %10 : vector<1x9x8x64xf32>
    %c0_20 = arith.constant 0 : index
    %c0_21 = arith.constant 0 : index
    %c0_22 = arith.constant 0 : index
    %c0_23 = arith.constant 0 : index
    %12 = vector.load %arg6[%c0_20, %c0_21, %c0_22, %c0_23] : memref<1x9x8x64xf32, #tpu.memory_space<vmem>>, vector<1x9x8x64xf32>
    %13 = arith.addf %11, %12 : vector<1x9x8x64xf32>
    %14 = vector.extract_strided_slice %6 {offsets = [0, 0, 0, 0], sizes = [1, 8, 8, 64], strides = [1, 1, 1, 1]} : vector<1x9x8x64xf32> to vector<1x8x8x64xf32>
    %15 = vector.extract_strided_slice %13 {offsets = [0, 0, 0, 0], sizes = [1, 8, 8, 64], strides = [1, 1, 1, 1]} : vector<1x9x8x64xf32> to vector<1x8x8x64xf32>
    %cst_24 = arith.constant 2.000000e+00 : f32
    %16 = vector.broadcast %cst_24 : f32 to vector<1x8x8x64xf32>
    %17 = arith.mulf %16, %15 : vector<1x8x8x64xf32>
    %18 = arith.addf %14, %17 : vector<1x8x8x64xf32>
    %19 = vector.extract_strided_slice %6 {offsets = [0, 1, 0, 0], sizes = [1, 8, 8, 64], strides = [1, 1, 1, 1]} : vector<1x9x8x64xf32> to vector<1x8x8x64xf32>
    %20 = arith.addf %18, %19 : vector<1x8x8x64xf32>
    %cst_25 = arith.constant 6.250000e-02 : f32
    %21 = vector.broadcast %cst_25 : f32 to vector<1x8x8x64xf32>
    %22 = arith.mulf %20, %21 : vector<1x8x8x64xf32>
    %c0_26 = arith.constant 0 : index
    %c0_27 = arith.constant 0 : index
    %c0_28 = arith.constant 0 : index
    %c0_29 = arith.constant 0 : index
    %23 = vector.load %arg7[%c0_26, %c0_27, %c0_28, %c0_29] : memref<1x8x8x64xf32, #tpu.memory_space<vmem>>, vector<1x8x8x64xf32>
    tpu.vector_store %arg7[%c0_26, %c0_27, %c0_28, %c0_29], %22 {strides = array<i32>} : memref<1x8x8x64xf32, #tpu.memory_space<vmem>>, vector<1x8x8x64xf32>,
    return
  }
  func.func @transform_0(%arg0: i32) -> (i32, i32, i32, i32) {
    %c0_i32 = arith.constant 0 : i32
    %c0_i32_0 = arith.constant 0 : i32
    %c0_i32_1 = arith.constant 0 : i32
    %c0_i32_2 = arith.constant 0 : i32
    return %arg0, %c0_i32, %c0_i32_0, %c0_i32_1 : i32, i32, i32, i32
  }
  func.func @transform_1(%arg0: i32) -> (i32, i32, i32, i32) {
    %c0_i32 = arith.constant 0 : i32
    %c0_i32_0 = arith.constant 0 : i32
    %c0_i32_1 = arith.constant 0 : i32
    %c0_i32_2 = arith.constant 0 : i32
    return %arg0, %c0_i32, %c0_i32_0, %c0_i32_1 : i32, i32, i32, i32
  }
  func.func @transform_2(%arg0: i32) -> (i32, i32, i32, i32) {
    %c0_i32 = arith.constant 0 : i32
    %c0_i32_0 = arith.constant 0 : i32
    %c0_i32_1 = arith.constant 0 : i32
    %c0_i32_2 = arith.constant 0 : i32
    return %arg0, %c0_i32, %c0_i32_0, %c0_i32_1 : i32, i32, i32, i32
  }
  func.func @transform_3(%arg0: i32) -> (i32, i32, i32, i32) {
    %c0_i32 = arith.constant 0 : i32
    %c0_i32_0 = arith.constant 0 : i32
    %c0_i32_1 = arith.constant 0 : i32
    %c0_i32_2 = arith.constant 0 : i32
    return %arg0, %c0_i32, %c0_i32_0, %c0_i32_1 : i32, i32, i32, i32
  }
  func.func @transform_4(%arg0: i32) -> (i32, i32, i32, i32) {
    %c0_i32 = arith.constant 0 : i32
    %c0_i32_0 = arith.constant 0 : i32
    %c0_i32_1 = arith.constant 0 : i32
    %c0_i32_2 = arith.constant 0 : i32
    return %arg0, %c0_i32, %c0_i32_0, %c0_i32_1 : i32, i32, i32, i32
  }
  func.func @transform_5(%arg0: i32) -> (i32, i32, i32, i32) {
    %c0_i32 = arith.constant 0 : i32
    %c0_i32_0 = arith.constant 0 : i32
    %c0_i32_1 = arith.constant 0 : i32
    %c0_i32_2 = arith.constant 0 : i32
    return %arg0, %c0_i32, %c0_i32_0, %c0_i32_1 : i32, i32, i32, i32
  }
  func.func @transform_6(%arg0: i32) -> (i32, i32, i32, i32) {
    %c0_i32 = arith.constant 0 : i32
    %c0_i32_0 = arith.constant 0 : i32
    %c0_i32_1 = arith.constant 0 : i32
    %c0_i32_2 = arith.constant 0 : i32
    return %arg0, %c0_i32, %c0_i32_0, %c0_i32_1 : i32, i32, i32, i32
  }
}

module attributes {stable_mosaic.version = 11 : i64} {
  func.func @_fused_matmul_kernel(%arg0: i32, %arg1: i32, %arg2: i32, %arg3: memref<128x64xbf16, #tpu.memory_space<vmem>>, %arg4: memref<64x128xbf16, #tpu.memory_space<vmem>>, %arg5: memref<1x128xf32, #tpu.memory_space<vmem>>, %arg6: memref<128x128xf32, #tpu.memory_space<vmem>>, %arg7: memref<128x128xf32, #tpu.memory_space<vmem>>) attributes {dimension_semantics = [#tpu.dimension_semantics<parallel>, #tpu.dimension_semantics<parallel>, #tpu.dimension_semantics<arbitrary>], iteration_bounds = array<i64: 1, 1, 1>, scalar_prefetch = 0 : i64, scratch_operands = 1 : i64, tpu.core_type = #tpu.core_type<tc>, window_params = [{transform_indices = @transform_0, window_bounds = array<i64: 128, 64>}, {transform_indices = @transform_1, window_bounds = array<i64: 64, 128>}, {transform_indices = @transform_2, window_bounds = array<i64: 1, 128>}, {transform_indices = @transform_3, window_bounds = array<i64: 128, 128>}]} {
    %c0_i32 = arith.constant 0 : i32
    %0 = arith.cmpi eq, %arg2, %c0_i32 : i32
    %1 = arith.extui %0 : i1 to i32
    %c0_i32_0 = arith.constant 0 : i32
    %2 = arith.cmpi ne, %1, %c0_i32_0 : i32
    scf.if %2 {
      %cst_10 = arith.constant 0.000000e+00 : f32
      %12 = vector.broadcast %cst_10 : f32 to vector<128x128xf32>
      %c0_11 = arith.constant 0 : index
      %c0_12 = arith.constant 0 : index
      %13 = vector.load %arg7[%c0_11, %c0_12] : memref<128x128xf32, #tpu.memory_space<vmem>>, vector<128x128xf32>
      tpu.vector_store %arg7[%c0_11, %c0_12], %12 {strides = array<i32>} : memref<128x128xf32, #tpu.memory_space<vmem>>, vector<128x128xf32>,
    } else {
    }
    %c0 = arith.constant 0 : index
    %c0_1 = arith.constant 0 : index
    %3 = vector.load %arg7[%c0, %c0_1] : memref<128x128xf32, #tpu.memory_space<vmem>>, vector<128x128xf32>
    %c0_2 = arith.constant 0 : index
    %c0_3 = arith.constant 0 : index
    %4 = vector.load %arg3[%c0_2, %c0_3] : memref<128x64xbf16, #tpu.memory_space<vmem>>, vector<128x64xbf16>
    %c0_4 = arith.constant 0 : index
    %c0_5 = arith.constant 0 : index
    %5 = vector.load %arg4[%c0_4, %c0_5] : memref<64x128xbf16, #tpu.memory_space<vmem>>, vector<64x128xbf16>
    %cst = arith.constant dense<0.000000e+00> : vector<128x128xf32>
    %6 = tpu.matmul %4, %5, %cst {dimension_numbers = #tpu.dot_dimension_numbers<[1], [0], [0], [1], [0, 0, 1, 1], [], []>} : vector<128x64xbf16>, vector<64x128xbf16>, vector<128x128xf32> -> vector<128x128xf32>
    %7 = arith.addf %3, %6 : vector<128x128xf32>
    %c0_6 = arith.constant 0 : index
    %c0_7 = arith.constant 0 : index
    %8 = vector.load %arg7[%c0_6, %c0_7] : memref<128x128xf32, #tpu.memory_space<vmem>>, vector<128x128xf32>
    tpu.vector_store %arg7[%c0_6, %c0_7], %7 {strides = array<i32>} : memref<128x128xf32, #tpu.memory_space<vmem>>, vector<128x128xf32>,
    %c0_i32_8 = arith.constant 0 : i32
    %9 = arith.cmpi eq, %arg2, %c0_i32_8 : i32
    %10 = arith.extui %9 : i1 to i32
    %c0_i32_9 = arith.constant 0 : i32
    %11 = arith.cmpi ne, %10, %c0_i32_9 : i32
    scf.if %11 {
      %c0_10 = arith.constant 0 : index
      %c0_11 = arith.constant 0 : index
      %12 = vector.load %arg7[%c0_10, %c0_11] : memref<128x128xf32, #tpu.memory_space<vmem>>, vector<128x128xf32>
      %c0_12 = arith.constant 0 : index
      %c0_13 = arith.constant 0 : index
      %13 = vector.load %arg5[%c0_12, %c0_13] : memref<1x128xf32, #tpu.memory_space<vmem>>, vector<1x128xf32>
      %14 = vector.broadcast %13 : vector<1x128xf32> to vector<128x128xf32>
      %15 = arith.addf %12, %14 : vector<128x128xf32>
      %cst_14 = arith.constant 5.000000e-01 : f32
      %16 = vector.broadcast %cst_14 : f32 to vector<128x128xf32>
      %17 = arith.mulf %16, %15 : vector<128x128xf32>
      %18 = math.tanh %17 : vector<128x128xf32>
      %cst_15 = arith.constant 1.000000e+00 : f32
      %19 = vector.broadcast %cst_15 : f32 to vector<128x128xf32>
      %20 = arith.addf %18, %19 : vector<128x128xf32>
      %cst_16 = arith.constant 5.000000e-01 : f32
      %21 = vector.broadcast %cst_16 : f32 to vector<128x128xf32>
      %22 = arith.mulf %21, %20 : vector<128x128xf32>
      %23 = arith.mulf %15, %22 : vector<128x128xf32>
      %c0_17 = arith.constant 0 : index
      %c0_18 = arith.constant 0 : index
      %24 = vector.load %arg6[%c0_17, %c0_18] : memref<128x128xf32, #tpu.memory_space<vmem>>, vector<128x128xf32>
      tpu.vector_store %arg6[%c0_17, %c0_18], %23 {strides = array<i32>} : memref<128x128xf32, #tpu.memory_space<vmem>>, vector<128x128xf32>,
    } else {
    }
    return
  }
  func.func @transform_0(%arg0: i32, %arg1: i32, %arg2: i32) -> (i32, i32) {
    %c0_i32 = arith.constant 0 : i32
    return %arg0, %arg2 : i32, i32
  }
  func.func @transform_1(%arg0: i32, %arg1: i32, %arg2: i32) -> (i32, i32) {
    %c0_i32 = arith.constant 0 : i32
    return %arg2, %arg1 : i32, i32
  }
  func.func @transform_2(%arg0: i32, %arg1: i32, %arg2: i32) -> (i32, i32) {
    %c0_i32 = arith.constant 0 : i32
    %c0_i32_0 = arith.constant 0 : i32
    return %c0_i32, %arg1 : i32, i32
  }
  func.func @transform_3(%arg0: i32, %arg1: i32, %arg2: i32) -> (i32, i32) {
    %c0_i32 = arith.constant 0 : i32
    return %arg0, %arg1 : i32, i32
  }
}

module attributes {stable_mosaic.version = 11 : i64} {
  func.func @_fused_matmul_kernel(%arg0: i32, %arg1: i32, %arg2: i32, %arg3: memref<128x32xbf16, #tpu.memory_space<vmem>>, %arg4: memref<32x128xbf16, #tpu.memory_space<vmem>>, %arg5: memref<1x128xf32, #tpu.memory_space<vmem>>, %arg6: memref<128x128xf32, #tpu.memory_space<vmem>>, %arg7: memref<128x128xf32, #tpu.memory_space<vmem>>) attributes {dimension_semantics = [#tpu.dimension_semantics<parallel>, #tpu.dimension_semantics<parallel>, #tpu.dimension_semantics<arbitrary>], iteration_bounds = array<i64: 1, 1, 1>, scalar_prefetch = 0 : i64, scratch_operands = 1 : i64, tpu.core_type = #tpu.core_type<tc>, window_params = [{transform_indices = @transform_0, window_bounds = array<i64: 128, 32>}, {transform_indices = @transform_1, window_bounds = array<i64: 32, 128>}, {transform_indices = @transform_2, window_bounds = array<i64: 1, 128>}, {transform_indices = @transform_3, window_bounds = array<i64: 128, 128>}]} {
    %c0_i32 = arith.constant 0 : i32
    %0 = arith.cmpi eq, %arg2, %c0_i32 : i32
    %1 = arith.extui %0 : i1 to i32
    %c0_i32_0 = arith.constant 0 : i32
    %2 = arith.cmpi ne, %1, %c0_i32_0 : i32
    scf.if %2 {
      %cst_10 = arith.constant 0.000000e+00 : f32
      %12 = vector.broadcast %cst_10 : f32 to vector<128x128xf32>
      %c0_11 = arith.constant 0 : index
      %c0_12 = arith.constant 0 : index
      %13 = vector.load %arg7[%c0_11, %c0_12] : memref<128x128xf32, #tpu.memory_space<vmem>>, vector<128x128xf32>
      tpu.vector_store %arg7[%c0_11, %c0_12], %12 {strides = array<i32>} : memref<128x128xf32, #tpu.memory_space<vmem>>, vector<128x128xf32>,
    } else {
    }
    %c0 = arith.constant 0 : index
    %c0_1 = arith.constant 0 : index
    %3 = vector.load %arg7[%c0, %c0_1] : memref<128x128xf32, #tpu.memory_space<vmem>>, vector<128x128xf32>
    %c0_2 = arith.constant 0 : index
    %c0_3 = arith.constant 0 : index
    %4 = vector.load %arg3[%c0_2, %c0_3] : memref<128x32xbf16, #tpu.memory_space<vmem>>, vector<128x32xbf16>
    %c0_4 = arith.constant 0 : index
    %c0_5 = arith.constant 0 : index
    %5 = vector.load %arg4[%c0_4, %c0_5] : memref<32x128xbf16, #tpu.memory_space<vmem>>, vector<32x128xbf16>
    %cst = arith.constant dense<0.000000e+00> : vector<128x128xf32>
    %6 = tpu.matmul %4, %5, %cst {dimension_numbers = #tpu.dot_dimension_numbers<[1], [0], [0], [1], [0, 0, 1, 1], [], []>} : vector<128x32xbf16>, vector<32x128xbf16>, vector<128x128xf32> -> vector<128x128xf32>
    %7 = arith.addf %3, %6 : vector<128x128xf32>
    %c0_6 = arith.constant 0 : index
    %c0_7 = arith.constant 0 : index
    %8 = vector.load %arg7[%c0_6, %c0_7] : memref<128x128xf32, #tpu.memory_space<vmem>>, vector<128x128xf32>
    tpu.vector_store %arg7[%c0_6, %c0_7], %7 {strides = array<i32>} : memref<128x128xf32, #tpu.memory_space<vmem>>, vector<128x128xf32>,
    %c0_i32_8 = arith.constant 0 : i32
    %9 = arith.cmpi eq, %arg2, %c0_i32_8 : i32
    %10 = arith.extui %9 : i1 to i32
    %c0_i32_9 = arith.constant 0 : i32
    %11 = arith.cmpi ne, %10, %c0_i32_9 : i32
    scf.if %11 {
      %c0_10 = arith.constant 0 : index
      %c0_11 = arith.constant 0 : index
      %12 = vector.load %arg7[%c0_10, %c0_11] : memref<128x128xf32, #tpu.memory_space<vmem>>, vector<128x128xf32>
      %c0_12 = arith.constant 0 : index
      %c0_13 = arith.constant 0 : index
      %13 = vector.load %arg5[%c0_12, %c0_13] : memref<1x128xf32, #tpu.memory_space<vmem>>, vector<1x128xf32>
      %14 = vector.broadcast %13 : vector<1x128xf32> to vector<128x128xf32>
      %15 = arith.addf %12, %14 : vector<128x128xf32>
      %cst_14 = arith.constant 5.000000e-01 : f32
      %16 = vector.broadcast %cst_14 : f32 to vector<128x128xf32>
      %17 = arith.mulf %16, %15 : vector<128x128xf32>
      %18 = math.tanh %17 : vector<128x128xf32>
      %cst_15 = arith.constant 1.000000e+00 : f32
      %19 = vector.broadcast %cst_15 : f32 to vector<128x128xf32>
      %20 = arith.addf %18, %19 : vector<128x128xf32>
      %cst_16 = arith.constant 5.000000e-01 : f32
      %21 = vector.broadcast %cst_16 : f32 to vector<128x128xf32>
      %22 = arith.mulf %21, %20 : vector<128x128xf32>
      %23 = arith.mulf %15, %22 : vector<128x128xf32>
      %c0_17 = arith.constant 0 : index
      %c0_18 = arith.constant 0 : index
      %24 = vector.load %arg6[%c0_17, %c0_18] : memref<128x128xf32, #tpu.memory_space<vmem>>, vector<128x128xf32>
      tpu.vector_store %arg6[%c0_17, %c0_18], %23 {strides = array<i32>} : memref<128x128xf32, #tpu.memory_space<vmem>>, vector<128x128xf32>,
    } else {
    }
    return
  }
  func.func @transform_0(%arg0: i32, %arg1: i32, %arg2: i32) -> (i32, i32) {
    %c0_i32 = arith.constant 0 : i32
    return %arg0, %arg2 : i32, i32
  }
  func.func @transform_1(%arg0: i32, %arg1: i32, %arg2: i32) -> (i32, i32) {
    %c0_i32 = arith.constant 0 : i32
    return %arg2, %arg1 : i32, i32
  }
  func.func @transform_2(%arg0: i32, %arg1: i32, %arg2: i32) -> (i32, i32) {
    %c0_i32 = arith.constant 0 : i32
    %c0_i32_0 = arith.constant 0 : i32
    return %c0_i32, %arg1 : i32, i32
  }
  func.func @transform_3(%arg0: i32, %arg1: i32, %arg2: i32) -> (i32, i32) {
    %c0_i32 = arith.constant 0 : i32
    return %arg0, %arg1 : i32, i32
  }
}

module attributes {stable_mosaic.version = 11 : i64} {
  func.func @_fused_matmul_kernel(%arg0: i32, %arg1: i32, %arg2: i32, %arg3: memref<128x288xbf16, #tpu.memory_space<vmem>>, %arg4: memref<288x128xbf16, #tpu.memory_space<vmem>>, %arg5: memref<1x128xf32, #tpu.memory_space<vmem>>, %arg6: memref<128x128xf32, #tpu.memory_space<vmem>>, %arg7: memref<128x128xf32, #tpu.memory_space<vmem>>, %arg8: memref<128x128xf32, #tpu.memory_space<vmem>>) attributes {dimension_semantics = [#tpu.dimension_semantics<parallel>, #tpu.dimension_semantics<parallel>, #tpu.dimension_semantics<arbitrary>], iteration_bounds = array<i64: 1, 1, 1>, scalar_prefetch = 0 : i64, scratch_operands = 1 : i64, tpu.core_type = #tpu.core_type<tc>, window_params = [{transform_indices = @transform_0, window_bounds = array<i64: 128, 288>}, {transform_indices = @transform_1, window_bounds = array<i64: 288, 128>}, {transform_indices = @transform_2, window_bounds = array<i64: 1, 128>}, {transform_indices = @transform_3, window_bounds = array<i64: 128, 128>}, {transform_indices = @transform_4, window_bounds = array<i64: 128, 128>}]} {
    %c0_i32 = arith.constant 0 : i32
    %0 = arith.cmpi eq, %arg2, %c0_i32 : i32
    %1 = arith.extui %0 : i1 to i32
    %c0_i32_0 = arith.constant 0 : i32
    %2 = arith.cmpi ne, %1, %c0_i32_0 : i32
    scf.if %2 {
      %cst_10 = arith.constant 0.000000e+00 : f32
      %12 = vector.broadcast %cst_10 : f32 to vector<128x128xf32>
      %c0_11 = arith.constant 0 : index
      %c0_12 = arith.constant 0 : index
      %13 = vector.load %arg8[%c0_11, %c0_12] : memref<128x128xf32, #tpu.memory_space<vmem>>, vector<128x128xf32>
      tpu.vector_store %arg8[%c0_11, %c0_12], %12 {strides = array<i32>} : memref<128x128xf32, #tpu.memory_space<vmem>>, vector<128x128xf32>,
    } else {
    }
    %c0 = arith.constant 0 : index
    %c0_1 = arith.constant 0 : index
    %3 = vector.load %arg8[%c0, %c0_1] : memref<128x128xf32, #tpu.memory_space<vmem>>, vector<128x128xf32>
    %c0_2 = arith.constant 0 : index
    %c0_3 = arith.constant 0 : index
    %4 = vector.load %arg3[%c0_2, %c0_3] : memref<128x288xbf16, #tpu.memory_space<vmem>>, vector<128x288xbf16>
    %c0_4 = arith.constant 0 : index
    %c0_5 = arith.constant 0 : index
    %5 = vector.load %arg4[%c0_4, %c0_5] : memref<288x128xbf16, #tpu.memory_space<vmem>>, vector<288x128xbf16>
    %cst = arith.constant dense<0.000000e+00> : vector<128x128xf32>
    %6 = tpu.matmul %4, %5, %cst {dimension_numbers = #tpu.dot_dimension_numbers<[1], [0], [0], [1], [0, 0, 1, 1], [], []>} : vector<128x288xbf16>, vector<288x128xbf16>, vector<128x128xf32> -> vector<128x128xf32>
    %7 = arith.addf %3, %6 : vector<128x128xf32>
    %c0_6 = arith.constant 0 : index
    %c0_7 = arith.constant 0 : index
    %8 = vector.load %arg8[%c0_6, %c0_7] : memref<128x128xf32, #tpu.memory_space<vmem>>, vector<128x128xf32>
    tpu.vector_store %arg8[%c0_6, %c0_7], %7 {strides = array<i32>} : memref<128x128xf32, #tpu.memory_space<vmem>>, vector<128x128xf32>,
    %c0_i32_8 = arith.constant 0 : i32
    %9 = arith.cmpi eq, %arg2, %c0_i32_8 : i32
    %10 = arith.extui %9 : i1 to i32
    %c0_i32_9 = arith.constant 0 : i32
    %11 = arith.cmpi ne, %10, %c0_i32_9 : i32
    scf.if %11 {
      %c0_10 = arith.constant 0 : index
      %c0_11 = arith.constant 0 : index
      %12 = vector.load %arg8[%c0_10, %c0_11] : memref<128x128xf32, #tpu.memory_space<vmem>>, vector<128x128xf32>
      %c0_12 = arith.constant 0 : index
      %c0_13 = arith.constant 0 : index
      %13 = vector.load %arg5[%c0_12, %c0_13] : memref<1x128xf32, #tpu.memory_space<vmem>>, vector<1x128xf32>
      %14 = vector.broadcast %13 : vector<1x128xf32> to vector<128x128xf32>
      %15 = arith.addf %12, %14 : vector<128x128xf32>
      %cst_14 = arith.constant 5.000000e-01 : f32
      %16 = vector.broadcast %cst_14 : f32 to vector<128x128xf32>
      %17 = arith.mulf %16, %15 : vector<128x128xf32>
      %18 = math.tanh %17 : vector<128x128xf32>
      %cst_15 = arith.constant 1.000000e+00 : f32
      %19 = vector.broadcast %cst_15 : f32 to vector<128x128xf32>
      %20 = arith.addf %18, %19 : vector<128x128xf32>
      %cst_16 = arith.constant 5.000000e-01 : f32
      %21 = vector.broadcast %cst_16 : f32 to vector<128x128xf32>
      %22 = arith.mulf %21, %20 : vector<128x128xf32>
      %23 = arith.mulf %15, %22 : vector<128x128xf32>
      %c0_17 = arith.constant 0 : index
      %c0_18 = arith.constant 0 : index
      %24 = vector.load %arg6[%c0_17, %c0_18] : memref<128x128xf32, #tpu.memory_space<vmem>>, vector<128x128xf32>
      %25 = arith.addf %23, %24 : vector<128x128xf32>
      %c0_19 = arith.constant 0 : index
      %c0_20 = arith.constant 0 : index
      %26 = vector.load %arg7[%c0_19, %c0_20] : memref<128x128xf32, #tpu.memory_space<vmem>>, vector<128x128xf32>
      tpu.vector_store %arg7[%c0_19, %c0_20], %25 {strides = array<i32>} : memref<128x128xf32, #tpu.memory_space<vmem>>, vector<128x128xf32>,
    } else {
    }
    return
  }
  func.func @transform_0(%arg0: i32, %arg1: i32, %arg2: i32) -> (i32, i32) {
    %c0_i32 = arith.constant 0 : i32
    return %arg0, %arg2 : i32, i32
  }
  func.func @transform_1(%arg0: i32, %arg1: i32, %arg2: i32) -> (i32, i32) {
    %c0_i32 = arith.constant 0 : i32
    return %arg2, %arg1 : i32, i32
  }
  func.func @transform_2(%arg0: i32, %arg1: i32, %arg2: i32) -> (i32, i32) {
    %c0_i32 = arith.constant 0 : i32
    %c0_i32_0 = arith.constant 0 : i32
    return %c0_i32, %arg1 : i32, i32
  }
  func.func @transform_3(%arg0: i32, %arg1: i32, %arg2: i32) -> (i32, i32) {
    %c0_i32 = arith.constant 0 : i32
    return %arg0, %arg1 : i32, i32
  }
  func.func @transform_4(%arg0: i32, %arg1: i32, %arg2: i32) -> (i32, i32) {
    %c0_i32 = arith.constant 0 : i32
    return %arg0, %arg1 : i32, i32
  }
}

module attributes {stable_mosaic.version = 11 : i64} {
  func.func @_fused_matmul_kernel(%arg0: i32, %arg1: i32, %arg2: i32, %arg3: memref<32x576xbf16, #tpu.memory_space<vmem>>, %arg4: memref<576x128xbf16, #tpu.memory_space<vmem>>, %arg5: memref<1x128xf32, #tpu.memory_space<vmem>>, %arg6: memref<32x128xf32, #tpu.memory_space<vmem>>, %arg7: memref<32x128xf32, #tpu.memory_space<vmem>>) attributes {dimension_semantics = [#tpu.dimension_semantics<parallel>, #tpu.dimension_semantics<parallel>, #tpu.dimension_semantics<arbitrary>], iteration_bounds = array<i64: 1, 1, 1>, scalar_prefetch = 0 : i64, scratch_operands = 1 : i64, tpu.core_type = #tpu.core_type<tc>, window_params = [{transform_indices = @transform_0, window_bounds = array<i64: 32, 576>}, {transform_indices = @transform_1, window_bounds = array<i64: 576, 128>}, {transform_indices = @transform_2, window_bounds = array<i64: 1, 128>}, {transform_indices = @transform_3, window_bounds = array<i64: 32, 128>}]} {
    %c0_i32 = arith.constant 0 : i32
    %0 = arith.cmpi eq, %arg2, %c0_i32 : i32
    %1 = arith.extui %0 : i1 to i32
    %c0_i32_0 = arith.constant 0 : i32
    %2 = arith.cmpi ne, %1, %c0_i32_0 : i32
    scf.if %2 {
      %cst_10 = arith.constant 0.000000e+00 : f32
      %12 = vector.broadcast %cst_10 : f32 to vector<32x128xf32>
      %c0_11 = arith.constant 0 : index
      %c0_12 = arith.constant 0 : index
      %13 = vector.load %arg7[%c0_11, %c0_12] : memref<32x128xf32, #tpu.memory_space<vmem>>, vector<32x128xf32>
      tpu.vector_store %arg7[%c0_11, %c0_12], %12 {strides = array<i32>} : memref<32x128xf32, #tpu.memory_space<vmem>>, vector<32x128xf32>,
    } else {
    }
    %c0 = arith.constant 0 : index
    %c0_1 = arith.constant 0 : index
    %3 = vector.load %arg7[%c0, %c0_1] : memref<32x128xf32, #tpu.memory_space<vmem>>, vector<32x128xf32>
    %c0_2 = arith.constant 0 : index
    %c0_3 = arith.constant 0 : index
    %4 = vector.load %arg3[%c0_2, %c0_3] : memref<32x576xbf16, #tpu.memory_space<vmem>>, vector<32x576xbf16>
    %c0_4 = arith.constant 0 : index
    %c0_5 = arith.constant 0 : index
    %5 = vector.load %arg4[%c0_4, %c0_5] : memref<576x128xbf16, #tpu.memory_space<vmem>>, vector<576x128xbf16>
    %cst = arith.constant dense<0.000000e+00> : vector<32x128xf32>
    %6 = tpu.matmul %4, %5, %cst {dimension_numbers = #tpu.dot_dimension_numbers<[1], [0], [0], [1], [0, 0, 1, 1], [], []>} : vector<32x576xbf16>, vector<576x128xbf16>, vector<32x128xf32> -> vector<32x128xf32>
    %7 = arith.addf %3, %6 : vector<32x128xf32>
    %c0_6 = arith.constant 0 : index
    %c0_7 = arith.constant 0 : index
    %8 = vector.load %arg7[%c0_6, %c0_7] : memref<32x128xf32, #tpu.memory_space<vmem>>, vector<32x128xf32>
    tpu.vector_store %arg7[%c0_6, %c0_7], %7 {strides = array<i32>} : memref<32x128xf32, #tpu.memory_space<vmem>>, vector<32x128xf32>,
    %c0_i32_8 = arith.constant 0 : i32
    %9 = arith.cmpi eq, %arg2, %c0_i32_8 : i32
    %10 = arith.extui %9 : i1 to i32
    %c0_i32_9 = arith.constant 0 : i32
    %11 = arith.cmpi ne, %10, %c0_i32_9 : i32
    scf.if %11 {
      %c0_10 = arith.constant 0 : index
      %c0_11 = arith.constant 0 : index
      %12 = vector.load %arg7[%c0_10, %c0_11] : memref<32x128xf32, #tpu.memory_space<vmem>>, vector<32x128xf32>
      %c0_12 = arith.constant 0 : index
      %c0_13 = arith.constant 0 : index
      %13 = vector.load %arg5[%c0_12, %c0_13] : memref<1x128xf32, #tpu.memory_space<vmem>>, vector<1x128xf32>
      %14 = vector.broadcast %13 : vector<1x128xf32> to vector<32x128xf32>
      %15 = arith.addf %12, %14 : vector<32x128xf32>
      %cst_14 = arith.constant 5.000000e-01 : f32
      %16 = vector.broadcast %cst_14 : f32 to vector<32x128xf32>
      %17 = arith.mulf %16, %15 : vector<32x128xf32>
      %18 = math.tanh %17 : vector<32x128xf32>
      %cst_15 = arith.constant 1.000000e+00 : f32
      %19 = vector.broadcast %cst_15 : f32 to vector<32x128xf32>
      %20 = arith.addf %18, %19 : vector<32x128xf32>
      %cst_16 = arith.constant 5.000000e-01 : f32
      %21 = vector.broadcast %cst_16 : f32 to vector<32x128xf32>
      %22 = arith.mulf %21, %20 : vector<32x128xf32>
      %23 = arith.mulf %15, %22 : vector<32x128xf32>
      %c0_17 = arith.constant 0 : index
      %c0_18 = arith.constant 0 : index
      %24 = vector.load %arg6[%c0_17, %c0_18] : memref<32x128xf32, #tpu.memory_space<vmem>>, vector<32x128xf32>
      tpu.vector_store %arg6[%c0_17, %c0_18], %23 {strides = array<i32>} : memref<32x128xf32, #tpu.memory_space<vmem>>, vector<32x128xf32>,
    } else {
    }
    return
  }
  func.func @transform_0(%arg0: i32, %arg1: i32, %arg2: i32) -> (i32, i32) {
    %c0_i32 = arith.constant 0 : i32
    return %arg0, %arg2 : i32, i32
  }
  func.func @transform_1(%arg0: i32, %arg1: i32, %arg2: i32) -> (i32, i32) {
    %c0_i32 = arith.constant 0 : i32
    return %arg2, %arg1 : i32, i32
  }
  func.func @transform_2(%arg0: i32, %arg1: i32, %arg2: i32) -> (i32, i32) {
    %c0_i32 = arith.constant 0 : i32
    %c0_i32_0 = arith.constant 0 : i32
    return %c0_i32, %arg1 : i32, i32
  }
  func.func @transform_3(%arg0: i32, %arg1: i32, %arg2: i32) -> (i32, i32) {
    %c0_i32 = arith.constant 0 : i32
    return %arg0, %arg1 : i32, i32
  }
}

module attributes {stable_mosaic.version = 11 : i64} {
  func.func @_fused_matmul_kernel(%arg0: i32, %arg1: i32, %arg2: i32, %arg3: memref<32x128xbf16, #tpu.memory_space<vmem>>, %arg4: memref<128x128xbf16, #tpu.memory_space<vmem>>, %arg5: memref<1x128xf32, #tpu.memory_space<vmem>>, %arg6: memref<32x128xf32, #tpu.memory_space<vmem>>, %arg7: memref<32x128xf32, #tpu.memory_space<vmem>>) attributes {dimension_semantics = [#tpu.dimension_semantics<parallel>, #tpu.dimension_semantics<parallel>, #tpu.dimension_semantics<arbitrary>], iteration_bounds = array<i64: 1, 1, 1>, scalar_prefetch = 0 : i64, scratch_operands = 1 : i64, tpu.core_type = #tpu.core_type<tc>, window_params = [{transform_indices = @transform_0, window_bounds = array<i64: 32, 128>}, {transform_indices = @transform_1, window_bounds = array<i64: 128, 128>}, {transform_indices = @transform_2, window_bounds = array<i64: 1, 128>}, {transform_indices = @transform_3, window_bounds = array<i64: 32, 128>}]} {
    %c0_i32 = arith.constant 0 : i32
    %0 = arith.cmpi eq, %arg2, %c0_i32 : i32
    %1 = arith.extui %0 : i1 to i32
    %c0_i32_0 = arith.constant 0 : i32
    %2 = arith.cmpi ne, %1, %c0_i32_0 : i32
    scf.if %2 {
      %cst_10 = arith.constant 0.000000e+00 : f32
      %12 = vector.broadcast %cst_10 : f32 to vector<32x128xf32>
      %c0_11 = arith.constant 0 : index
      %c0_12 = arith.constant 0 : index
      %13 = vector.load %arg7[%c0_11, %c0_12] : memref<32x128xf32, #tpu.memory_space<vmem>>, vector<32x128xf32>
      tpu.vector_store %arg7[%c0_11, %c0_12], %12 {strides = array<i32>} : memref<32x128xf32, #tpu.memory_space<vmem>>, vector<32x128xf32>,
    } else {
    }
    %c0 = arith.constant 0 : index
    %c0_1 = arith.constant 0 : index
    %3 = vector.load %arg7[%c0, %c0_1] : memref<32x128xf32, #tpu.memory_space<vmem>>, vector<32x128xf32>
    %c0_2 = arith.constant 0 : index
    %c0_3 = arith.constant 0 : index
    %4 = vector.load %arg3[%c0_2, %c0_3] : memref<32x128xbf16, #tpu.memory_space<vmem>>, vector<32x128xbf16>
    %c0_4 = arith.constant 0 : index
    %c0_5 = arith.constant 0 : index
    %5 = vector.load %arg4[%c0_4, %c0_5] : memref<128x128xbf16, #tpu.memory_space<vmem>>, vector<128x128xbf16>
    %cst = arith.constant dense<0.000000e+00> : vector<32x128xf32>
    %6 = tpu.matmul %4, %5, %cst {dimension_numbers = #tpu.dot_dimension_numbers<[1], [0], [0], [1], [0, 0, 1, 1], [], []>} : vector<32x128xbf16>, vector<128x128xbf16>, vector<32x128xf32> -> vector<32x128xf32>
    %7 = arith.addf %3, %6 : vector<32x128xf32>
    %c0_6 = arith.constant 0 : index
    %c0_7 = arith.constant 0 : index
    %8 = vector.load %arg7[%c0_6, %c0_7] : memref<32x128xf32, #tpu.memory_space<vmem>>, vector<32x128xf32>
    tpu.vector_store %arg7[%c0_6, %c0_7], %7 {strides = array<i32>} : memref<32x128xf32, #tpu.memory_space<vmem>>, vector<32x128xf32>,
    %c0_i32_8 = arith.constant 0 : i32
    %9 = arith.cmpi eq, %arg2, %c0_i32_8 : i32
    %10 = arith.extui %9 : i1 to i32
    %c0_i32_9 = arith.constant 0 : i32
    %11 = arith.cmpi ne, %10, %c0_i32_9 : i32
    scf.if %11 {
      %c0_10 = arith.constant 0 : index
      %c0_11 = arith.constant 0 : index
      %12 = vector.load %arg7[%c0_10, %c0_11] : memref<32x128xf32, #tpu.memory_space<vmem>>, vector<32x128xf32>
      %c0_12 = arith.constant 0 : index
      %c0_13 = arith.constant 0 : index
      %13 = vector.load %arg5[%c0_12, %c0_13] : memref<1x128xf32, #tpu.memory_space<vmem>>, vector<1x128xf32>
      %14 = vector.broadcast %13 : vector<1x128xf32> to vector<32x128xf32>
      %15 = arith.addf %12, %14 : vector<32x128xf32>
      %cst_14 = arith.constant 5.000000e-01 : f32
      %16 = vector.broadcast %cst_14 : f32 to vector<32x128xf32>
      %17 = arith.mulf %16, %15 : vector<32x128xf32>
      %18 = math.tanh %17 : vector<32x128xf32>
      %cst_15 = arith.constant 1.000000e+00 : f32
      %19 = vector.broadcast %cst_15 : f32 to vector<32x128xf32>
      %20 = arith.addf %18, %19 : vector<32x128xf32>
      %cst_16 = arith.constant 5.000000e-01 : f32
      %21 = vector.broadcast %cst_16 : f32 to vector<32x128xf32>
      %22 = arith.mulf %21, %20 : vector<32x128xf32>
      %23 = arith.mulf %15, %22 : vector<32x128xf32>
      %c0_17 = arith.constant 0 : index
      %c0_18 = arith.constant 0 : index
      %24 = vector.load %arg6[%c0_17, %c0_18] : memref<32x128xf32, #tpu.memory_space<vmem>>, vector<32x128xf32>
      tpu.vector_store %arg6[%c0_17, %c0_18], %23 {strides = array<i32>} : memref<32x128xf32, #tpu.memory_space<vmem>>, vector<32x128xf32>,
    } else {
    }
    return
  }
  func.func @transform_0(%arg0: i32, %arg1: i32, %arg2: i32) -> (i32, i32) {
    %c0_i32 = arith.constant 0 : i32
    return %arg0, %arg2 : i32, i32
  }
  func.func @transform_1(%arg0: i32, %arg1: i32, %arg2: i32) -> (i32, i32) {
    %c0_i32 = arith.constant 0 : i32
    return %arg2, %arg1 : i32, i32
  }
  func.func @transform_2(%arg0: i32, %arg1: i32, %arg2: i32) -> (i32, i32) {
    %c0_i32 = arith.constant 0 : i32
    %c0_i32_0 = arith.constant 0 : i32
    return %c0_i32, %arg1 : i32, i32
  }
  func.func @transform_3(%arg0: i32, %arg1: i32, %arg2: i32) -> (i32, i32) {
    %c0_i32 = arith.constant 0 : i32
    return %arg0, %arg1 : i32, i32
  }
}

module attributes {stable_mosaic.version = 11 : i64} {
  func.func @_fused_matmul_kernel(%arg0: i32, %arg1: i32, %arg2: i32, %arg3: memref<32x64xbf16, #tpu.memory_space<vmem>>, %arg4: memref<64x128xbf16, #tpu.memory_space<vmem>>, %arg5: memref<1x128xf32, #tpu.memory_space<vmem>>, %arg6: memref<32x128xf32, #tpu.memory_space<vmem>>, %arg7: memref<32x128xf32, #tpu.memory_space<vmem>>) attributes {dimension_semantics = [#tpu.dimension_semantics<parallel>, #tpu.dimension_semantics<parallel>, #tpu.dimension_semantics<arbitrary>], iteration_bounds = array<i64: 1, 1, 1>, scalar_prefetch = 0 : i64, scratch_operands = 1 : i64, tpu.core_type = #tpu.core_type<tc>, window_params = [{transform_indices = @transform_0, window_bounds = array<i64: 32, 64>}, {transform_indices = @transform_1, window_bounds = array<i64: 64, 128>}, {transform_indices = @transform_2, window_bounds = array<i64: 1, 128>}, {transform_indices = @transform_3, window_bounds = array<i64: 32, 128>}]} {
    %c0_i32 = arith.constant 0 : i32
    %0 = arith.cmpi eq, %arg2, %c0_i32 : i32
    %1 = arith.extui %0 : i1 to i32
    %c0_i32_0 = arith.constant 0 : i32
    %2 = arith.cmpi ne, %1, %c0_i32_0 : i32
    scf.if %2 {
      %cst_10 = arith.constant 0.000000e+00 : f32
      %12 = vector.broadcast %cst_10 : f32 to vector<32x128xf32>
      %c0_11 = arith.constant 0 : index
      %c0_12 = arith.constant 0 : index
      %13 = vector.load %arg7[%c0_11, %c0_12] : memref<32x128xf32, #tpu.memory_space<vmem>>, vector<32x128xf32>
      tpu.vector_store %arg7[%c0_11, %c0_12], %12 {strides = array<i32>} : memref<32x128xf32, #tpu.memory_space<vmem>>, vector<32x128xf32>,
    } else {
    }
    %c0 = arith.constant 0 : index
    %c0_1 = arith.constant 0 : index
    %3 = vector.load %arg7[%c0, %c0_1] : memref<32x128xf32, #tpu.memory_space<vmem>>, vector<32x128xf32>
    %c0_2 = arith.constant 0 : index
    %c0_3 = arith.constant 0 : index
    %4 = vector.load %arg3[%c0_2, %c0_3] : memref<32x64xbf16, #tpu.memory_space<vmem>>, vector<32x64xbf16>
    %c0_4 = arith.constant 0 : index
    %c0_5 = arith.constant 0 : index
    %5 = vector.load %arg4[%c0_4, %c0_5] : memref<64x128xbf16, #tpu.memory_space<vmem>>, vector<64x128xbf16>
    %cst = arith.constant dense<0.000000e+00> : vector<32x128xf32>
    %6 = tpu.matmul %4, %5, %cst {dimension_numbers = #tpu.dot_dimension_numbers<[1], [0], [0], [1], [0, 0, 1, 1], [], []>} : vector<32x64xbf16>, vector<64x128xbf16>, vector<32x128xf32> -> vector<32x128xf32>
    %7 = arith.addf %3, %6 : vector<32x128xf32>
    %c0_6 = arith.constant 0 : index
    %c0_7 = arith.constant 0 : index
    %8 = vector.load %arg7[%c0_6, %c0_7] : memref<32x128xf32, #tpu.memory_space<vmem>>, vector<32x128xf32>
    tpu.vector_store %arg7[%c0_6, %c0_7], %7 {strides = array<i32>} : memref<32x128xf32, #tpu.memory_space<vmem>>, vector<32x128xf32>,
    %c0_i32_8 = arith.constant 0 : i32
    %9 = arith.cmpi eq, %arg2, %c0_i32_8 : i32
    %10 = arith.extui %9 : i1 to i32
    %c0_i32_9 = arith.constant 0 : i32
    %11 = arith.cmpi ne, %10, %c0_i32_9 : i32
    scf.if %11 {
      %c0_10 = arith.constant 0 : index
      %c0_11 = arith.constant 0 : index
      %12 = vector.load %arg7[%c0_10, %c0_11] : memref<32x128xf32, #tpu.memory_space<vmem>>, vector<32x128xf32>
      %c0_12 = arith.constant 0 : index
      %c0_13 = arith.constant 0 : index
      %13 = vector.load %arg5[%c0_12, %c0_13] : memref<1x128xf32, #tpu.memory_space<vmem>>, vector<1x128xf32>
      %14 = vector.broadcast %13 : vector<1x128xf32> to vector<32x128xf32>
      %15 = arith.addf %12, %14 : vector<32x128xf32>
      %cst_14 = arith.constant 5.000000e-01 : f32
      %16 = vector.broadcast %cst_14 : f32 to vector<32x128xf32>
      %17 = arith.mulf %16, %15 : vector<32x128xf32>
      %18 = math.tanh %17 : vector<32x128xf32>
      %cst_15 = arith.constant 1.000000e+00 : f32
      %19 = vector.broadcast %cst_15 : f32 to vector<32x128xf32>
      %20 = arith.addf %18, %19 : vector<32x128xf32>
      %cst_16 = arith.constant 5.000000e-01 : f32
      %21 = vector.broadcast %cst_16 : f32 to vector<32x128xf32>
      %22 = arith.mulf %21, %20 : vector<32x128xf32>
      %23 = arith.mulf %15, %22 : vector<32x128xf32>
      %c0_17 = arith.constant 0 : index
      %c0_18 = arith.constant 0 : index
      %24 = vector.load %arg6[%c0_17, %c0_18] : memref<32x128xf32, #tpu.memory_space<vmem>>, vector<32x128xf32>
      tpu.vector_store %arg6[%c0_17, %c0_18], %23 {strides = array<i32>} : memref<32x128xf32, #tpu.memory_space<vmem>>, vector<32x128xf32>,
    } else {
    }
    return
  }
  func.func @transform_0(%arg0: i32, %arg1: i32, %arg2: i32) -> (i32, i32) {
    %c0_i32 = arith.constant 0 : i32
    return %arg0, %arg2 : i32, i32
  }
  func.func @transform_1(%arg0: i32, %arg1: i32, %arg2: i32) -> (i32, i32) {
    %c0_i32 = arith.constant 0 : i32
    return %arg2, %arg1 : i32, i32
  }
  func.func @transform_2(%arg0: i32, %arg1: i32, %arg2: i32) -> (i32, i32) {
    %c0_i32 = arith.constant 0 : i32
    %c0_i32_0 = arith.constant 0 : i32
    return %c0_i32, %arg1 : i32, i32
  }
  func.func @transform_3(%arg0: i32, %arg1: i32, %arg2: i32) -> (i32, i32) {
    %c0_i32 = arith.constant 0 : i32
    return %arg0, %arg1 : i32, i32
  }
}

module attributes {stable_mosaic.version = 11 : i64} {
  func.func @_fused_matmul_kernel(%arg0: i32, %arg1: i32, %arg2: i32, %arg3: memref<32x576xbf16, #tpu.memory_space<vmem>>, %arg4: memref<576x128xbf16, #tpu.memory_space<vmem>>, %arg5: memref<1x128xf32, #tpu.memory_space<vmem>>, %arg6: memref<32x128xf32, #tpu.memory_space<vmem>>, %arg7: memref<32x128xf32, #tpu.memory_space<vmem>>, %arg8: memref<32x128xf32, #tpu.memory_space<vmem>>) attributes {dimension_semantics = [#tpu.dimension_semantics<parallel>, #tpu.dimension_semantics<parallel>, #tpu.dimension_semantics<arbitrary>], iteration_bounds = array<i64: 1, 1, 1>, scalar_prefetch = 0 : i64, scratch_operands = 1 : i64, tpu.core_type = #tpu.core_type<tc>, window_params = [{transform_indices = @transform_0, window_bounds = array<i64: 32, 576>}, {transform_indices = @transform_1, window_bounds = array<i64: 576, 128>}, {transform_indices = @transform_2, window_bounds = array<i64: 1, 128>}, {transform_indices = @transform_3, window_bounds = array<i64: 32, 128>}, {transform_indices = @transform_4, window_bounds = array<i64: 32, 128>}]} {
    %c0_i32 = arith.constant 0 : i32
    %0 = arith.cmpi eq, %arg2, %c0_i32 : i32
    %1 = arith.extui %0 : i1 to i32
    %c0_i32_0 = arith.constant 0 : i32
    %2 = arith.cmpi ne, %1, %c0_i32_0 : i32
    scf.if %2 {
      %cst_10 = arith.constant 0.000000e+00 : f32
      %12 = vector.broadcast %cst_10 : f32 to vector<32x128xf32>
      %c0_11 = arith.constant 0 : index
      %c0_12 = arith.constant 0 : index
      %13 = vector.load %arg8[%c0_11, %c0_12] : memref<32x128xf32, #tpu.memory_space<vmem>>, vector<32x128xf32>
      tpu.vector_store %arg8[%c0_11, %c0_12], %12 {strides = array<i32>} : memref<32x128xf32, #tpu.memory_space<vmem>>, vector<32x128xf32>,
    } else {
    }
    %c0 = arith.constant 0 : index
    %c0_1 = arith.constant 0 : index
    %3 = vector.load %arg8[%c0, %c0_1] : memref<32x128xf32, #tpu.memory_space<vmem>>, vector<32x128xf32>
    %c0_2 = arith.constant 0 : index
    %c0_3 = arith.constant 0 : index
    %4 = vector.load %arg3[%c0_2, %c0_3] : memref<32x576xbf16, #tpu.memory_space<vmem>>, vector<32x576xbf16>
    %c0_4 = arith.constant 0 : index
    %c0_5 = arith.constant 0 : index
    %5 = vector.load %arg4[%c0_4, %c0_5] : memref<576x128xbf16, #tpu.memory_space<vmem>>, vector<576x128xbf16>
    %cst = arith.constant dense<0.000000e+00> : vector<32x128xf32>
    %6 = tpu.matmul %4, %5, %cst {dimension_numbers = #tpu.dot_dimension_numbers<[1], [0], [0], [1], [0, 0, 1, 1], [], []>} : vector<32x576xbf16>, vector<576x128xbf16>, vector<32x128xf32> -> vector<32x128xf32>
    %7 = arith.addf %3, %6 : vector<32x128xf32>
    %c0_6 = arith.constant 0 : index
    %c0_7 = arith.constant 0 : index
    %8 = vector.load %arg8[%c0_6, %c0_7] : memref<32x128xf32, #tpu.memory_space<vmem>>, vector<32x128xf32>
    tpu.vector_store %arg8[%c0_6, %c0_7], %7 {strides = array<i32>} : memref<32x128xf32, #tpu.memory_space<vmem>>, vector<32x128xf32>,
    %c0_i32_8 = arith.constant 0 : i32
    %9 = arith.cmpi eq, %arg2, %c0_i32_8 : i32
    %10 = arith.extui %9 : i1 to i32
    %c0_i32_9 = arith.constant 0 : i32
    %11 = arith.cmpi ne, %10, %c0_i32_9 : i32
    scf.if %11 {
      %c0_10 = arith.constant 0 : index
      %c0_11 = arith.constant 0 : index
      %12 = vector.load %arg8[%c0_10, %c0_11] : memref<32x128xf32, #tpu.memory_space<vmem>>, vector<32x128xf32>
      %c0_12 = arith.constant 0 : index
      %c0_13 = arith.constant 0 : index
      %13 = vector.load %arg5[%c0_12, %c0_13] : memref<1x128xf32, #tpu.memory_space<vmem>>, vector<1x128xf32>
      %14 = vector.broadcast %13 : vector<1x128xf32> to vector<32x128xf32>
      %15 = arith.addf %12, %14 : vector<32x128xf32>
      %cst_14 = arith.constant 5.000000e-01 : f32
      %16 = vector.broadcast %cst_14 : f32 to vector<32x128xf32>
      %17 = arith.mulf %16, %15 : vector<32x128xf32>
      %18 = math.tanh %17 : vector<32x128xf32>
      %cst_15 = arith.constant 1.000000e+00 : f32
      %19 = vector.broadcast %cst_15 : f32 to vector<32x128xf32>
      %20 = arith.addf %18, %19 : vector<32x128xf32>
      %cst_16 = arith.constant 5.000000e-01 : f32
      %21 = vector.broadcast %cst_16 : f32 to vector<32x128xf32>
      %22 = arith.mulf %21, %20 : vector<32x128xf32>
      %23 = arith.mulf %15, %22 : vector<32x128xf32>
      %c0_17 = arith.constant 0 : index
      %c0_18 = arith.constant 0 : index
      %24 = vector.load %arg6[%c0_17, %c0_18] : memref<32x128xf32, #tpu.memory_space<vmem>>, vector<32x128xf32>
      %25 = arith.addf %23, %24 : vector<32x128xf32>
      %c0_19 = arith.constant 0 : index
      %c0_20 = arith.constant 0 : index
      %26 = vector.load %arg7[%c0_19, %c0_20] : memref<32x128xf32, #tpu.memory_space<vmem>>, vector<32x128xf32>
      tpu.vector_store %arg7[%c0_19, %c0_20], %25 {strides = array<i32>} : memref<32x128xf32, #tpu.memory_space<vmem>>, vector<32x128xf32>,
    } else {
    }
    return
  }
  func.func @transform_0(%arg0: i32, %arg1: i32, %arg2: i32) -> (i32, i32) {
    %c0_i32 = arith.constant 0 : i32
    return %arg0, %arg2 : i32, i32
  }
  func.func @transform_1(%arg0: i32, %arg1: i32, %arg2: i32) -> (i32, i32) {
    %c0_i32 = arith.constant 0 : i32
    return %arg2, %arg1 : i32, i32
  }
  func.func @transform_2(%arg0: i32, %arg1: i32, %arg2: i32) -> (i32, i32) {
    %c0_i32 = arith.constant 0 : i32
    %c0_i32_0 = arith.constant 0 : i32
    return %c0_i32, %arg1 : i32, i32
  }
  func.func @transform_3(%arg0: i32, %arg1: i32, %arg2: i32) -> (i32, i32) {
    %c0_i32 = arith.constant 0 : i32
    return %arg0, %arg1 : i32, i32
  }
  func.func @transform_4(%arg0: i32, %arg1: i32, %arg2: i32) -> (i32, i32) {
    %c0_i32 = arith.constant 0 : i32
    return %arg0, %arg1 : i32, i32
  }
}

module attributes {stable_mosaic.version = 11 : i64} {
  func.func @_fused_matmul_kernel(%arg0: i32, %arg1: i32, %arg2: i32, %arg3: memref<16x384xbf16, #tpu.memory_space<vmem>>, %arg4: memref<384x128xbf16, #tpu.memory_space<vmem>>, %arg5: memref<1x128xf32, #tpu.memory_space<vmem>>, %arg6: memref<16x128xf32, #tpu.memory_space<vmem>>, %arg7: memref<16x128xf32, #tpu.memory_space<vmem>>) attributes {dimension_semantics = [#tpu.dimension_semantics<parallel>, #tpu.dimension_semantics<parallel>, #tpu.dimension_semantics<arbitrary>], iteration_bounds = array<i64: 1, 2, 3>, scalar_prefetch = 0 : i64, scratch_operands = 1 : i64, tpu.core_type = #tpu.core_type<tc>, window_params = [{transform_indices = @transform_0, window_bounds = array<i64: 16, 384>}, {transform_indices = @transform_1, window_bounds = array<i64: 384, 128>}, {transform_indices = @transform_2, window_bounds = array<i64: 1, 128>}, {transform_indices = @transform_3, window_bounds = array<i64: 16, 128>}]} {
    %c0_i32 = arith.constant 0 : i32
    %0 = arith.cmpi eq, %arg2, %c0_i32 : i32
    %1 = arith.extui %0 : i1 to i32
    %c0_i32_0 = arith.constant 0 : i32
    %2 = arith.cmpi ne, %1, %c0_i32_0 : i32
    scf.if %2 {
      %cst_9 = arith.constant 0.000000e+00 : f32
      %12 = vector.broadcast %cst_9 : f32 to vector<16x128xf32>
      %c0_10 = arith.constant 0 : index
      %c0_11 = arith.constant 0 : index
      %13 = vector.load %arg7[%c0_10, %c0_11] : memref<16x128xf32, #tpu.memory_space<vmem>>, vector<16x128xf32>
      tpu.vector_store %arg7[%c0_10, %c0_11], %12 {strides = array<i32>} : memref<16x128xf32, #tpu.memory_space<vmem>>, vector<16x128xf32>,
    } else {
    }
    %c0 = arith.constant 0 : index
    %c0_1 = arith.constant 0 : index
    %3 = vector.load %arg7[%c0, %c0_1] : memref<16x128xf32, #tpu.memory_space<vmem>>, vector<16x128xf32>
    %c0_2 = arith.constant 0 : index
    %c0_3 = arith.constant 0 : index
    %4 = vector.load %arg3[%c0_2, %c0_3] : memref<16x384xbf16, #tpu.memory_space<vmem>>, vector<16x384xbf16>
    %c0_4 = arith.constant 0 : index
    %c0_5 = arith.constant 0 : index
    %5 = vector.load %arg4[%c0_4, %c0_5] : memref<384x128xbf16, #tpu.memory_space<vmem>>, vector<384x128xbf16>
    %cst = arith.constant dense<0.000000e+00> : vector<16x128xf32>
    %6 = tpu.matmul %4, %5, %cst {dimension_numbers = #tpu.dot_dimension_numbers<[1], [0], [0], [1], [0, 0, 1, 1], [], []>} : vector<16x384xbf16>, vector<384x128xbf16>, vector<16x128xf32> -> vector<16x128xf32>
    %7 = arith.addf %3, %6 : vector<16x128xf32>
    %c0_6 = arith.constant 0 : index
    %c0_7 = arith.constant 0 : index
    %8 = vector.load %arg7[%c0_6, %c0_7] : memref<16x128xf32, #tpu.memory_space<vmem>>, vector<16x128xf32>
    tpu.vector_store %arg7[%c0_6, %c0_7], %7 {strides = array<i32>} : memref<16x128xf32, #tpu.memory_space<vmem>>, vector<16x128xf32>,
    %c2_i32 = arith.constant 2 : i32
    %9 = arith.cmpi eq, %arg2, %c2_i32 : i32
    %10 = arith.extui %9 : i1 to i32
    %c0_i32_8 = arith.constant 0 : i32
    %11 = arith.cmpi ne, %10, %c0_i32_8 : i32
    scf.if %11 {
      %c0_9 = arith.constant 0 : index
      %c0_10 = arith.constant 0 : index
      %12 = vector.load %arg7[%c0_9, %c0_10] : memref<16x128xf32, #tpu.memory_space<vmem>>, vector<16x128xf32>
      %c0_11 = arith.constant 0 : index
      %c0_12 = arith.constant 0 : index
      %13 = vector.load %arg5[%c0_11, %c0_12] : memref<1x128xf32, #tpu.memory_space<vmem>>, vector<1x128xf32>
      %14 = vector.broadcast %13 : vector<1x128xf32> to vector<16x128xf32>
      %15 = arith.addf %12, %14 : vector<16x128xf32>
      %cst_13 = arith.constant 5.000000e-01 : f32
      %16 = vector.broadcast %cst_13 : f32 to vector<16x128xf32>
      %17 = arith.mulf %16, %15 : vector<16x128xf32>
      %18 = math.tanh %17 : vector<16x128xf32>
      %cst_14 = arith.constant 1.000000e+00 : f32
      %19 = vector.broadcast %cst_14 : f32 to vector<16x128xf32>
      %20 = arith.addf %18, %19 : vector<16x128xf32>
      %cst_15 = arith.constant 5.000000e-01 : f32
      %21 = vector.broadcast %cst_15 : f32 to vector<16x128xf32>
      %22 = arith.mulf %21, %20 : vector<16x128xf32>
      %23 = arith.mulf %15, %22 : vector<16x128xf32>
      %c0_16 = arith.constant 0 : index
      %c0_17 = arith.constant 0 : index
      %24 = vector.load %arg6[%c0_16, %c0_17] : memref<16x128xf32, #tpu.memory_space<vmem>>, vector<16x128xf32>
      tpu.vector_store %arg6[%c0_16, %c0_17], %23 {strides = array<i32>} : memref<16x128xf32, #tpu.memory_space<vmem>>, vector<16x128xf32>,
    } else {
    }
    return
  }
  func.func @transform_0(%arg0: i32, %arg1: i32, %arg2: i32) -> (i32, i32) {
    %c0_i32 = arith.constant 0 : i32
    return %arg0, %arg2 : i32, i32
  }
  func.func @transform_1(%arg0: i32, %arg1: i32, %arg2: i32) -> (i32, i32) {
    %c0_i32 = arith.constant 0 : i32
    return %arg2, %arg1 : i32, i32
  }
  func.func @transform_2(%arg0: i32, %arg1: i32, %arg2: i32) -> (i32, i32) {
    %c0_i32 = arith.constant 0 : i32
    %c0_i32_0 = arith.constant 0 : i32
    return %c0_i32, %arg1 : i32, i32
  }
  func.func @transform_3(%arg0: i32, %arg1: i32, %arg2: i32) -> (i32, i32) {
    %c0_i32 = arith.constant 0 : i32
    return %arg0, %arg1 : i32, i32
  }
}

module attributes {stable_mosaic.version = 11 : i64} {
  func.func @_fused_matmul_kernel(%arg0: i32, %arg1: i32, %arg2: i32, %arg3: memref<16x256xbf16, #tpu.memory_space<vmem>>, %arg4: memref<256x128xbf16, #tpu.memory_space<vmem>>, %arg5: memref<1x128xf32, #tpu.memory_space<vmem>>, %arg6: memref<16x128xf32, #tpu.memory_space<vmem>>, %arg7: memref<16x128xf32, #tpu.memory_space<vmem>>) attributes {dimension_semantics = [#tpu.dimension_semantics<parallel>, #tpu.dimension_semantics<parallel>, #tpu.dimension_semantics<arbitrary>], iteration_bounds = array<i64: 1, 1, 1>, scalar_prefetch = 0 : i64, scratch_operands = 1 : i64, tpu.core_type = #tpu.core_type<tc>, window_params = [{transform_indices = @transform_0, window_bounds = array<i64: 16, 256>}, {transform_indices = @transform_1, window_bounds = array<i64: 256, 128>}, {transform_indices = @transform_2, window_bounds = array<i64: 1, 128>}, {transform_indices = @transform_3, window_bounds = array<i64: 16, 128>}]} {
    %c0_i32 = arith.constant 0 : i32
    %0 = arith.cmpi eq, %arg2, %c0_i32 : i32
    %1 = arith.extui %0 : i1 to i32
    %c0_i32_0 = arith.constant 0 : i32
    %2 = arith.cmpi ne, %1, %c0_i32_0 : i32
    scf.if %2 {
      %cst_10 = arith.constant 0.000000e+00 : f32
      %12 = vector.broadcast %cst_10 : f32 to vector<16x128xf32>
      %c0_11 = arith.constant 0 : index
      %c0_12 = arith.constant 0 : index
      %13 = vector.load %arg7[%c0_11, %c0_12] : memref<16x128xf32, #tpu.memory_space<vmem>>, vector<16x128xf32>
      tpu.vector_store %arg7[%c0_11, %c0_12], %12 {strides = array<i32>} : memref<16x128xf32, #tpu.memory_space<vmem>>, vector<16x128xf32>,
    } else {
    }
    %c0 = arith.constant 0 : index
    %c0_1 = arith.constant 0 : index
    %3 = vector.load %arg7[%c0, %c0_1] : memref<16x128xf32, #tpu.memory_space<vmem>>, vector<16x128xf32>
    %c0_2 = arith.constant 0 : index
    %c0_3 = arith.constant 0 : index
    %4 = vector.load %arg3[%c0_2, %c0_3] : memref<16x256xbf16, #tpu.memory_space<vmem>>, vector<16x256xbf16>
    %c0_4 = arith.constant 0 : index
    %c0_5 = arith.constant 0 : index
    %5 = vector.load %arg4[%c0_4, %c0_5] : memref<256x128xbf16, #tpu.memory_space<vmem>>, vector<256x128xbf16>
    %cst = arith.constant dense<0.000000e+00> : vector<16x128xf32>
    %6 = tpu.matmul %4, %5, %cst {dimension_numbers = #tpu.dot_dimension_numbers<[1], [0], [0], [1], [0, 0, 1, 1], [], []>} : vector<16x256xbf16>, vector<256x128xbf16>, vector<16x128xf32> -> vector<16x128xf32>
    %7 = arith.addf %3, %6 : vector<16x128xf32>
    %c0_6 = arith.constant 0 : index
    %c0_7 = arith.constant 0 : index
    %8 = vector.load %arg7[%c0_6, %c0_7] : memref<16x128xf32, #tpu.memory_space<vmem>>, vector<16x128xf32>
    tpu.vector_store %arg7[%c0_6, %c0_7], %7 {strides = array<i32>} : memref<16x128xf32, #tpu.memory_space<vmem>>, vector<16x128xf32>,
    %c0_i32_8 = arith.constant 0 : i32
    %9 = arith.cmpi eq, %arg2, %c0_i32_8 : i32
    %10 = arith.extui %9 : i1 to i32
    %c0_i32_9 = arith.constant 0 : i32
    %11 = arith.cmpi ne, %10, %c0_i32_9 : i32
    scf.if %11 {
      %c0_10 = arith.constant 0 : index
      %c0_11 = arith.constant 0 : index
      %12 = vector.load %arg7[%c0_10, %c0_11] : memref<16x128xf32, #tpu.memory_space<vmem>>, vector<16x128xf32>
      %c0_12 = arith.constant 0 : index
      %c0_13 = arith.constant 0 : index
      %13 = vector.load %arg5[%c0_12, %c0_13] : memref<1x128xf32, #tpu.memory_space<vmem>>, vector<1x128xf32>
      %14 = vector.broadcast %13 : vector<1x128xf32> to vector<16x128xf32>
      %15 = arith.addf %12, %14 : vector<16x128xf32>
      %cst_14 = arith.constant 5.000000e-01 : f32
      %16 = vector.broadcast %cst_14 : f32 to vector<16x128xf32>
      %17 = arith.mulf %16, %15 : vector<16x128xf32>
      %18 = math.tanh %17 : vector<16x128xf32>
      %cst_15 = arith.constant 1.000000e+00 : f32
      %19 = vector.broadcast %cst_15 : f32 to vector<16x128xf32>
      %20 = arith.addf %18, %19 : vector<16x128xf32>
      %cst_16 = arith.constant 5.000000e-01 : f32
      %21 = vector.broadcast %cst_16 : f32 to vector<16x128xf32>
      %22 = arith.mulf %21, %20 : vector<16x128xf32>
      %23 = arith.mulf %15, %22 : vector<16x128xf32>
      %c0_17 = arith.constant 0 : index
      %c0_18 = arith.constant 0 : index
      %24 = vector.load %arg6[%c0_17, %c0_18] : memref<16x128xf32, #tpu.memory_space<vmem>>, vector<16x128xf32>
      tpu.vector_store %arg6[%c0_17, %c0_18], %23 {strides = array<i32>} : memref<16x128xf32, #tpu.memory_space<vmem>>, vector<16x128xf32>,
    } else {
    }
    return
  }
  func.func @transform_0(%arg0: i32, %arg1: i32, %arg2: i32) -> (i32, i32) {
    %c0_i32 = arith.constant 0 : i32
    return %arg0, %arg2 : i32, i32
  }
  func.func @transform_1(%arg0: i32, %arg1: i32, %arg2: i32) -> (i32, i32) {
    %c0_i32 = arith.constant 0 : i32
    return %arg2, %arg1 : i32, i32
  }
  func.func @transform_2(%arg0: i32, %arg1: i32, %arg2: i32) -> (i32, i32) {
    %c0_i32 = arith.constant 0 : i32
    %c0_i32_0 = arith.constant 0 : i32
    return %c0_i32, %arg1 : i32, i32
  }
  func.func @transform_3(%arg0: i32, %arg1: i32, %arg2: i32) -> (i32, i32) {
    %c0_i32 = arith.constant 0 : i32
    return %arg0, %arg1 : i32, i32
  }
}

module attributes {stable_mosaic.version = 11 : i64} {
  func.func @_fused_matmul_kernel(%arg0: i32, %arg1: i32, %arg2: i32, %arg3: memref<16x512xbf16, #tpu.memory_space<vmem>>, %arg4: memref<512x128xbf16, #tpu.memory_space<vmem>>, %arg5: memref<1x128xf32, #tpu.memory_space<vmem>>, %arg6: memref<16x128xf32, #tpu.memory_space<vmem>>, %arg7: memref<16x128xf32, #tpu.memory_space<vmem>>) attributes {dimension_semantics = [#tpu.dimension_semantics<parallel>, #tpu.dimension_semantics<parallel>, #tpu.dimension_semantics<arbitrary>], iteration_bounds = array<i64: 1, 2, 1>, scalar_prefetch = 0 : i64, scratch_operands = 1 : i64, tpu.core_type = #tpu.core_type<tc>, window_params = [{transform_indices = @transform_0, window_bounds = array<i64: 16, 512>}, {transform_indices = @transform_1, window_bounds = array<i64: 512, 128>}, {transform_indices = @transform_2, window_bounds = array<i64: 1, 128>}, {transform_indices = @transform_3, window_bounds = array<i64: 16, 128>}]} {
    %c0_i32 = arith.constant 0 : i32
    %0 = arith.cmpi eq, %arg2, %c0_i32 : i32
    %1 = arith.extui %0 : i1 to i32
    %c0_i32_0 = arith.constant 0 : i32
    %2 = arith.cmpi ne, %1, %c0_i32_0 : i32
    scf.if %2 {
      %cst_10 = arith.constant 0.000000e+00 : f32
      %12 = vector.broadcast %cst_10 : f32 to vector<16x128xf32>
      %c0_11 = arith.constant 0 : index
      %c0_12 = arith.constant 0 : index
      %13 = vector.load %arg7[%c0_11, %c0_12] : memref<16x128xf32, #tpu.memory_space<vmem>>, vector<16x128xf32>
      tpu.vector_store %arg7[%c0_11, %c0_12], %12 {strides = array<i32>} : memref<16x128xf32, #tpu.memory_space<vmem>>, vector<16x128xf32>,
    } else {
    }
    %c0 = arith.constant 0 : index
    %c0_1 = arith.constant 0 : index
    %3 = vector.load %arg7[%c0, %c0_1] : memref<16x128xf32, #tpu.memory_space<vmem>>, vector<16x128xf32>
    %c0_2 = arith.constant 0 : index
    %c0_3 = arith.constant 0 : index
    %4 = vector.load %arg3[%c0_2, %c0_3] : memref<16x512xbf16, #tpu.memory_space<vmem>>, vector<16x512xbf16>
    %c0_4 = arith.constant 0 : index
    %c0_5 = arith.constant 0 : index
    %5 = vector.load %arg4[%c0_4, %c0_5] : memref<512x128xbf16, #tpu.memory_space<vmem>>, vector<512x128xbf16>
    %cst = arith.constant dense<0.000000e+00> : vector<16x128xf32>
    %6 = tpu.matmul %4, %5, %cst {dimension_numbers = #tpu.dot_dimension_numbers<[1], [0], [0], [1], [0, 0, 1, 1], [], []>} : vector<16x512xbf16>, vector<512x128xbf16>, vector<16x128xf32> -> vector<16x128xf32>
    %7 = arith.addf %3, %6 : vector<16x128xf32>
    %c0_6 = arith.constant 0 : index
    %c0_7 = arith.constant 0 : index
    %8 = vector.load %arg7[%c0_6, %c0_7] : memref<16x128xf32, #tpu.memory_space<vmem>>, vector<16x128xf32>
    tpu.vector_store %arg7[%c0_6, %c0_7], %7 {strides = array<i32>} : memref<16x128xf32, #tpu.memory_space<vmem>>, vector<16x128xf32>,
    %c0_i32_8 = arith.constant 0 : i32
    %9 = arith.cmpi eq, %arg2, %c0_i32_8 : i32
    %10 = arith.extui %9 : i1 to i32
    %c0_i32_9 = arith.constant 0 : i32
    %11 = arith.cmpi ne, %10, %c0_i32_9 : i32
    scf.if %11 {
      %c0_10 = arith.constant 0 : index
      %c0_11 = arith.constant 0 : index
      %12 = vector.load %arg7[%c0_10, %c0_11] : memref<16x128xf32, #tpu.memory_space<vmem>>, vector<16x128xf32>
      %c0_12 = arith.constant 0 : index
      %c0_13 = arith.constant 0 : index
      %13 = vector.load %arg5[%c0_12, %c0_13] : memref<1x128xf32, #tpu.memory_space<vmem>>, vector<1x128xf32>
      %14 = vector.broadcast %13 : vector<1x128xf32> to vector<16x128xf32>
      %15 = arith.addf %12, %14 : vector<16x128xf32>
      %cst_14 = arith.constant 5.000000e-01 : f32
      %16 = vector.broadcast %cst_14 : f32 to vector<16x128xf32>
      %17 = arith.mulf %16, %15 : vector<16x128xf32>
      %18 = math.tanh %17 : vector<16x128xf32>
      %cst_15 = arith.constant 1.000000e+00 : f32
      %19 = vector.broadcast %cst_15 : f32 to vector<16x128xf32>
      %20 = arith.addf %18, %19 : vector<16x128xf32>
      %cst_16 = arith.constant 5.000000e-01 : f32
      %21 = vector.broadcast %cst_16 : f32 to vector<16x128xf32>
      %22 = arith.mulf %21, %20 : vector<16x128xf32>
      %23 = arith.mulf %15, %22 : vector<16x128xf32>
      %c0_17 = arith.constant 0 : index
      %c0_18 = arith.constant 0 : index
      %24 = vector.load %arg6[%c0_17, %c0_18] : memref<16x128xf32, #tpu.memory_space<vmem>>, vector<16x128xf32>
      tpu.vector_store %arg6[%c0_17, %c0_18], %23 {strides = array<i32>} : memref<16x128xf32, #tpu.memory_space<vmem>>, vector<16x128xf32>,
    } else {
    }
    return
  }
  func.func @transform_0(%arg0: i32, %arg1: i32, %arg2: i32) -> (i32, i32) {
    %c0_i32 = arith.constant 0 : i32
    return %arg0, %arg2 : i32, i32
  }
  func.func @transform_1(%arg0: i32, %arg1: i32, %arg2: i32) -> (i32, i32) {
    %c0_i32 = arith.constant 0 : i32
    return %arg2, %arg1 : i32, i32
  }
  func.func @transform_2(%arg0: i32, %arg1: i32, %arg2: i32) -> (i32, i32) {
    %c0_i32 = arith.constant 0 : i32
    %c0_i32_0 = arith.constant 0 : i32
    return %c0_i32, %arg1 : i32, i32
  }
  func.func @transform_3(%arg0: i32, %arg1: i32, %arg2: i32) -> (i32, i32) {
    %c0_i32 = arith.constant 0 : i32
    return %arg0, %arg1 : i32, i32
  }
}

module attributes {stable_mosaic.version = 11 : i64} {
  func.func @_fused_matmul_kernel(%arg0: i32, %arg1: i32, %arg2: i32, %arg3: memref<16x128xbf16, #tpu.memory_space<vmem>>, %arg4: memref<128x128xbf16, #tpu.memory_space<vmem>>, %arg5: memref<1x128xf32, #tpu.memory_space<vmem>>, %arg6: memref<16x128xf32, #tpu.memory_space<vmem>>, %arg7: memref<16x128xf32, #tpu.memory_space<vmem>>) attributes {dimension_semantics = [#tpu.dimension_semantics<parallel>, #tpu.dimension_semantics<parallel>, #tpu.dimension_semantics<arbitrary>], iteration_bounds = array<i64: 1, 1, 1>, scalar_prefetch = 0 : i64, scratch_operands = 1 : i64, tpu.core_type = #tpu.core_type<tc>, window_params = [{transform_indices = @transform_0, window_bounds = array<i64: 16, 128>}, {transform_indices = @transform_1, window_bounds = array<i64: 128, 128>}, {transform_indices = @transform_2, window_bounds = array<i64: 1, 128>}, {transform_indices = @transform_3, window_bounds = array<i64: 16, 128>}]} {
    %c0_i32 = arith.constant 0 : i32
    %0 = arith.cmpi eq, %arg2, %c0_i32 : i32
    %1 = arith.extui %0 : i1 to i32
    %c0_i32_0 = arith.constant 0 : i32
    %2 = arith.cmpi ne, %1, %c0_i32_0 : i32
    scf.if %2 {
      %cst_10 = arith.constant 0.000000e+00 : f32
      %12 = vector.broadcast %cst_10 : f32 to vector<16x128xf32>
      %c0_11 = arith.constant 0 : index
      %c0_12 = arith.constant 0 : index
      %13 = vector.load %arg7[%c0_11, %c0_12] : memref<16x128xf32, #tpu.memory_space<vmem>>, vector<16x128xf32>
      tpu.vector_store %arg7[%c0_11, %c0_12], %12 {strides = array<i32>} : memref<16x128xf32, #tpu.memory_space<vmem>>, vector<16x128xf32>,
    } else {
    }
    %c0 = arith.constant 0 : index
    %c0_1 = arith.constant 0 : index
    %3 = vector.load %arg7[%c0, %c0_1] : memref<16x128xf32, #tpu.memory_space<vmem>>, vector<16x128xf32>
    %c0_2 = arith.constant 0 : index
    %c0_3 = arith.constant 0 : index
    %4 = vector.load %arg3[%c0_2, %c0_3] : memref<16x128xbf16, #tpu.memory_space<vmem>>, vector<16x128xbf16>
    %c0_4 = arith.constant 0 : index
    %c0_5 = arith.constant 0 : index
    %5 = vector.load %arg4[%c0_4, %c0_5] : memref<128x128xbf16, #tpu.memory_space<vmem>>, vector<128x128xbf16>
    %cst = arith.constant dense<0.000000e+00> : vector<16x128xf32>
    %6 = tpu.matmul %4, %5, %cst {dimension_numbers = #tpu.dot_dimension_numbers<[1], [0], [0], [1], [0, 0, 1, 1], [], []>} : vector<16x128xbf16>, vector<128x128xbf16>, vector<16x128xf32> -> vector<16x128xf32>
    %7 = arith.addf %3, %6 : vector<16x128xf32>
    %c0_6 = arith.constant 0 : index
    %c0_7 = arith.constant 0 : index
    %8 = vector.load %arg7[%c0_6, %c0_7] : memref<16x128xf32, #tpu.memory_space<vmem>>, vector<16x128xf32>
    tpu.vector_store %arg7[%c0_6, %c0_7], %7 {strides = array<i32>} : memref<16x128xf32, #tpu.memory_space<vmem>>, vector<16x128xf32>,
    %c0_i32_8 = arith.constant 0 : i32
    %9 = arith.cmpi eq, %arg2, %c0_i32_8 : i32
    %10 = arith.extui %9 : i1 to i32
    %c0_i32_9 = arith.constant 0 : i32
    %11 = arith.cmpi ne, %10, %c0_i32_9 : i32
    scf.if %11 {
      %c0_10 = arith.constant 0 : index
      %c0_11 = arith.constant 0 : index
      %12 = vector.load %arg7[%c0_10, %c0_11] : memref<16x128xf32, #tpu.memory_space<vmem>>, vector<16x128xf32>
      %c0_12 = arith.constant 0 : index
      %c0_13 = arith.constant 0 : index
      %13 = vector.load %arg5[%c0_12, %c0_13] : memref<1x128xf32, #tpu.memory_space<vmem>>, vector<1x128xf32>
      %14 = vector.broadcast %13 : vector<1x128xf32> to vector<16x128xf32>
      %15 = arith.addf %12, %14 : vector<16x128xf32>
      %cst_14 = arith.constant 5.000000e-01 : f32
      %16 = vector.broadcast %cst_14 : f32 to vector<16x128xf32>
      %17 = arith.mulf %16, %15 : vector<16x128xf32>
      %18 = math.tanh %17 : vector<16x128xf32>
      %cst_15 = arith.constant 1.000000e+00 : f32
      %19 = vector.broadcast %cst_15 : f32 to vector<16x128xf32>
      %20 = arith.addf %18, %19 : vector<16x128xf32>
      %cst_16 = arith.constant 5.000000e-01 : f32
      %21 = vector.broadcast %cst_16 : f32 to vector<16x128xf32>
      %22 = arith.mulf %21, %20 : vector<16x128xf32>
      %23 = arith.mulf %15, %22 : vector<16x128xf32>
      %c0_17 = arith.constant 0 : index
      %c0_18 = arith.constant 0 : index
      %24 = vector.load %arg6[%c0_17, %c0_18] : memref<16x128xf32, #tpu.memory_space<vmem>>, vector<16x128xf32>
      tpu.vector_store %arg6[%c0_17, %c0_18], %23 {strides = array<i32>} : memref<16x128xf32, #tpu.memory_space<vmem>>, vector<16x128xf32>,
    } else {
    }
    return
  }
  func.func @transform_0(%arg0: i32, %arg1: i32, %arg2: i32) -> (i32, i32) {
    %c0_i32 = arith.constant 0 : i32
    return %arg0, %arg2 : i32, i32
  }
  func.func @transform_1(%arg0: i32, %arg1: i32, %arg2: i32) -> (i32, i32) {
    %c0_i32 = arith.constant 0 : i32
    return %arg2, %arg1 : i32, i32
  }
  func.func @transform_2(%arg0: i32, %arg1: i32, %arg2: i32) -> (i32, i32) {
    %c0_i32 = arith.constant 0 : i32
    %c0_i32_0 = arith.constant 0 : i32
    return %c0_i32, %arg1 : i32, i32
  }
  func.func @transform_3(%arg0: i32, %arg1: i32, %arg2: i32) -> (i32, i32) {
    %c0_i32 = arith.constant 0 : i32
    return %arg0, %arg1 : i32, i32
  }
}

module attributes {stable_mosaic.version = 11 : i64} {
  func.func @_fused_matmul_kernel(%arg0: i32, %arg1: i32, %arg2: i32, %arg3: memref<16x384xbf16, #tpu.memory_space<vmem>>, %arg4: memref<384x128xbf16, #tpu.memory_space<vmem>>, %arg5: memref<1x128xf32, #tpu.memory_space<vmem>>, %arg6: memref<16x128xf32, #tpu.memory_space<vmem>>, %arg7: memref<16x128xf32, #tpu.memory_space<vmem>>) attributes {dimension_semantics = [#tpu.dimension_semantics<parallel>, #tpu.dimension_semantics<parallel>, #tpu.dimension_semantics<arbitrary>], iteration_bounds = array<i64: 1, 1, 3>, scalar_prefetch = 0 : i64, scratch_operands = 1 : i64, tpu.core_type = #tpu.core_type<tc>, window_params = [{transform_indices = @transform_0, window_bounds = array<i64: 16, 384>}, {transform_indices = @transform_1, window_bounds = array<i64: 384, 128>}, {transform_indices = @transform_2, window_bounds = array<i64: 1, 128>}, {transform_indices = @transform_3, window_bounds = array<i64: 16, 128>}]} {
    %c0_i32 = arith.constant 0 : i32
    %0 = arith.cmpi eq, %arg2, %c0_i32 : i32
    %1 = arith.extui %0 : i1 to i32
    %c0_i32_0 = arith.constant 0 : i32
    %2 = arith.cmpi ne, %1, %c0_i32_0 : i32
    scf.if %2 {
      %cst_9 = arith.constant 0.000000e+00 : f32
      %12 = vector.broadcast %cst_9 : f32 to vector<16x128xf32>
      %c0_10 = arith.constant 0 : index
      %c0_11 = arith.constant 0 : index
      %13 = vector.load %arg7[%c0_10, %c0_11] : memref<16x128xf32, #tpu.memory_space<vmem>>, vector<16x128xf32>
      tpu.vector_store %arg7[%c0_10, %c0_11], %12 {strides = array<i32>} : memref<16x128xf32, #tpu.memory_space<vmem>>, vector<16x128xf32>,
    } else {
    }
    %c0 = arith.constant 0 : index
    %c0_1 = arith.constant 0 : index
    %3 = vector.load %arg7[%c0, %c0_1] : memref<16x128xf32, #tpu.memory_space<vmem>>, vector<16x128xf32>
    %c0_2 = arith.constant 0 : index
    %c0_3 = arith.constant 0 : index
    %4 = vector.load %arg3[%c0_2, %c0_3] : memref<16x384xbf16, #tpu.memory_space<vmem>>, vector<16x384xbf16>
    %c0_4 = arith.constant 0 : index
    %c0_5 = arith.constant 0 : index
    %5 = vector.load %arg4[%c0_4, %c0_5] : memref<384x128xbf16, #tpu.memory_space<vmem>>, vector<384x128xbf16>
    %cst = arith.constant dense<0.000000e+00> : vector<16x128xf32>
    %6 = tpu.matmul %4, %5, %cst {dimension_numbers = #tpu.dot_dimension_numbers<[1], [0], [0], [1], [0, 0, 1, 1], [], []>} : vector<16x384xbf16>, vector<384x128xbf16>, vector<16x128xf32> -> vector<16x128xf32>
    %7 = arith.addf %3, %6 : vector<16x128xf32>
    %c0_6 = arith.constant 0 : index
    %c0_7 = arith.constant 0 : index
    %8 = vector.load %arg7[%c0_6, %c0_7] : memref<16x128xf32, #tpu.memory_space<vmem>>, vector<16x128xf32>
    tpu.vector_store %arg7[%c0_6, %c0_7], %7 {strides = array<i32>} : memref<16x128xf32, #tpu.memory_space<vmem>>, vector<16x128xf32>,
    %c2_i32 = arith.constant 2 : i32
    %9 = arith.cmpi eq, %arg2, %c2_i32 : i32
    %10 = arith.extui %9 : i1 to i32
    %c0_i32_8 = arith.constant 0 : i32
    %11 = arith.cmpi ne, %10, %c0_i32_8 : i32
    scf.if %11 {
      %c0_9 = arith.constant 0 : index
      %c0_10 = arith.constant 0 : index
      %12 = vector.load %arg7[%c0_9, %c0_10] : memref<16x128xf32, #tpu.memory_space<vmem>>, vector<16x128xf32>
      %c0_11 = arith.constant 0 : index
      %c0_12 = arith.constant 0 : index
      %13 = vector.load %arg5[%c0_11, %c0_12] : memref<1x128xf32, #tpu.memory_space<vmem>>, vector<1x128xf32>
      %14 = vector.broadcast %13 : vector<1x128xf32> to vector<16x128xf32>
      %15 = arith.addf %12, %14 : vector<16x128xf32>
      %cst_13 = arith.constant 5.000000e-01 : f32
      %16 = vector.broadcast %cst_13 : f32 to vector<16x128xf32>
      %17 = arith.mulf %16, %15 : vector<16x128xf32>
      %18 = math.tanh %17 : vector<16x128xf32>
      %cst_14 = arith.constant 1.000000e+00 : f32
      %19 = vector.broadcast %cst_14 : f32 to vector<16x128xf32>
      %20 = arith.addf %18, %19 : vector<16x128xf32>
      %cst_15 = arith.constant 5.000000e-01 : f32
      %21 = vector.broadcast %cst_15 : f32 to vector<16x128xf32>
      %22 = arith.mulf %21, %20 : vector<16x128xf32>
      %23 = arith.mulf %15, %22 : vector<16x128xf32>
      %c0_16 = arith.constant 0 : index
      %c0_17 = arith.constant 0 : index
      %24 = vector.load %arg6[%c0_16, %c0_17] : memref<16x128xf32, #tpu.memory_space<vmem>>, vector<16x128xf32>
      tpu.vector_store %arg6[%c0_16, %c0_17], %23 {strides = array<i32>} : memref<16x128xf32, #tpu.memory_space<vmem>>, vector<16x128xf32>,
    } else {
    }
    return
  }
  func.func @transform_0(%arg0: i32, %arg1: i32, %arg2: i32) -> (i32, i32) {
    %c0_i32 = arith.constant 0 : i32
    return %arg0, %arg2 : i32, i32
  }
  func.func @transform_1(%arg0: i32, %arg1: i32, %arg2: i32) -> (i32, i32) {
    %c0_i32 = arith.constant 0 : i32
    return %arg2, %arg1 : i32, i32
  }
  func.func @transform_2(%arg0: i32, %arg1: i32, %arg2: i32) -> (i32, i32) {
    %c0_i32 = arith.constant 0 : i32
    %c0_i32_0 = arith.constant 0 : i32
    return %c0_i32, %arg1 : i32, i32
  }
  func.func @transform_3(%arg0: i32, %arg1: i32, %arg2: i32) -> (i32, i32) {
    %c0_i32 = arith.constant 0 : i32
    return %arg0, %arg1 : i32, i32
  }
}

module attributes {stable_mosaic.version = 11 : i64} {
  func.func @_fused_matmul_kernel(%arg0: i32, %arg1: i32, %arg2: i32, %arg3: memref<16x256xbf16, #tpu.memory_space<vmem>>, %arg4: memref<256x128xbf16, #tpu.memory_space<vmem>>, %arg5: memref<1x128xf32, #tpu.memory_space<vmem>>, %arg6: memref<16x128xf32, #tpu.memory_space<vmem>>, %arg7: memref<16x128xf32, #tpu.memory_space<vmem>>) attributes {dimension_semantics = [#tpu.dimension_semantics<parallel>, #tpu.dimension_semantics<parallel>, #tpu.dimension_semantics<arbitrary>], iteration_bounds = array<i64: 1, 2, 1>, scalar_prefetch = 0 : i64, scratch_operands = 1 : i64, tpu.core_type = #tpu.core_type<tc>, window_params = [{transform_indices = @transform_0, window_bounds = array<i64: 16, 256>}, {transform_indices = @transform_1, window_bounds = array<i64: 256, 128>}, {transform_indices = @transform_2, window_bounds = array<i64: 1, 128>}, {transform_indices = @transform_3, window_bounds = array<i64: 16, 128>}]} {
    %c0_i32 = arith.constant 0 : i32
    %0 = arith.cmpi eq, %arg2, %c0_i32 : i32
    %1 = arith.extui %0 : i1 to i32
    %c0_i32_0 = arith.constant 0 : i32
    %2 = arith.cmpi ne, %1, %c0_i32_0 : i32
    scf.if %2 {
      %cst_10 = arith.constant 0.000000e+00 : f32
      %12 = vector.broadcast %cst_10 : f32 to vector<16x128xf32>
      %c0_11 = arith.constant 0 : index
      %c0_12 = arith.constant 0 : index
      %13 = vector.load %arg7[%c0_11, %c0_12] : memref<16x128xf32, #tpu.memory_space<vmem>>, vector<16x128xf32>
      tpu.vector_store %arg7[%c0_11, %c0_12], %12 {strides = array<i32>} : memref<16x128xf32, #tpu.memory_space<vmem>>, vector<16x128xf32>,
    } else {
    }
    %c0 = arith.constant 0 : index
    %c0_1 = arith.constant 0 : index
    %3 = vector.load %arg7[%c0, %c0_1] : memref<16x128xf32, #tpu.memory_space<vmem>>, vector<16x128xf32>
    %c0_2 = arith.constant 0 : index
    %c0_3 = arith.constant 0 : index
    %4 = vector.load %arg3[%c0_2, %c0_3] : memref<16x256xbf16, #tpu.memory_space<vmem>>, vector<16x256xbf16>
    %c0_4 = arith.constant 0 : index
    %c0_5 = arith.constant 0 : index
    %5 = vector.load %arg4[%c0_4, %c0_5] : memref<256x128xbf16, #tpu.memory_space<vmem>>, vector<256x128xbf16>
    %cst = arith.constant dense<0.000000e+00> : vector<16x128xf32>
    %6 = tpu.matmul %4, %5, %cst {dimension_numbers = #tpu.dot_dimension_numbers<[1], [0], [0], [1], [0, 0, 1, 1], [], []>} : vector<16x256xbf16>, vector<256x128xbf16>, vector<16x128xf32> -> vector<16x128xf32>
    %7 = arith.addf %3, %6 : vector<16x128xf32>
    %c0_6 = arith.constant 0 : index
    %c0_7 = arith.constant 0 : index
    %8 = vector.load %arg7[%c0_6, %c0_7] : memref<16x128xf32, #tpu.memory_space<vmem>>, vector<16x128xf32>
    tpu.vector_store %arg7[%c0_6, %c0_7], %7 {strides = array<i32>} : memref<16x128xf32, #tpu.memory_space<vmem>>, vector<16x128xf32>,
    %c0_i32_8 = arith.constant 0 : i32
    %9 = arith.cmpi eq, %arg2, %c0_i32_8 : i32
    %10 = arith.extui %9 : i1 to i32
    %c0_i32_9 = arith.constant 0 : i32
    %11 = arith.cmpi ne, %10, %c0_i32_9 : i32
    scf.if %11 {
      %c0_10 = arith.constant 0 : index
      %c0_11 = arith.constant 0 : index
      %12 = vector.load %arg7[%c0_10, %c0_11] : memref<16x128xf32, #tpu.memory_space<vmem>>, vector<16x128xf32>
      %c0_12 = arith.constant 0 : index
      %c0_13 = arith.constant 0 : index
      %13 = vector.load %arg5[%c0_12, %c0_13] : memref<1x128xf32, #tpu.memory_space<vmem>>, vector<1x128xf32>
      %14 = vector.broadcast %13 : vector<1x128xf32> to vector<16x128xf32>
      %15 = arith.addf %12, %14 : vector<16x128xf32>
      %cst_14 = arith.constant 5.000000e-01 : f32
      %16 = vector.broadcast %cst_14 : f32 to vector<16x128xf32>
      %17 = arith.mulf %16, %15 : vector<16x128xf32>
      %18 = math.tanh %17 : vector<16x128xf32>
      %cst_15 = arith.constant 1.000000e+00 : f32
      %19 = vector.broadcast %cst_15 : f32 to vector<16x128xf32>
      %20 = arith.addf %18, %19 : vector<16x128xf32>
      %cst_16 = arith.constant 5.000000e-01 : f32
      %21 = vector.broadcast %cst_16 : f32 to vector<16x128xf32>
      %22 = arith.mulf %21, %20 : vector<16x128xf32>
      %23 = arith.mulf %15, %22 : vector<16x128xf32>
      %c0_17 = arith.constant 0 : index
      %c0_18 = arith.constant 0 : index
      %24 = vector.load %arg6[%c0_17, %c0_18] : memref<16x128xf32, #tpu.memory_space<vmem>>, vector<16x128xf32>
      tpu.vector_store %arg6[%c0_17, %c0_18], %23 {strides = array<i32>} : memref<16x128xf32, #tpu.memory_space<vmem>>, vector<16x128xf32>,
    } else {
    }
    return
  }
  func.func @transform_0(%arg0: i32, %arg1: i32, %arg2: i32) -> (i32, i32) {
    %c0_i32 = arith.constant 0 : i32
    return %arg0, %arg2 : i32, i32
  }
  func.func @transform_1(%arg0: i32, %arg1: i32, %arg2: i32) -> (i32, i32) {
    %c0_i32 = arith.constant 0 : i32
    return %arg2, %arg1 : i32, i32
  }
  func.func @transform_2(%arg0: i32, %arg1: i32, %arg2: i32) -> (i32, i32) {
    %c0_i32 = arith.constant 0 : i32
    %c0_i32_0 = arith.constant 0 : i32
    return %c0_i32, %arg1 : i32, i32
  }
  func.func @transform_3(%arg0: i32, %arg1: i32, %arg2: i32) -> (i32, i32) {
    %c0_i32 = arith.constant 0 : i32
    return %arg0, %arg1 : i32, i32
  }
}

</mosaic_0001>

<bundles_post_ra>
// kernel: _lambda_.37
= control target key start
LH: loop header
LB: loop body
LE: loop exit
PB: predicated region body
PF: predicated region fallthrough
CT: control target
= control target key end

     0   :  { %s1443_s12 = smov 0   ;;  %s1445_s13 = smov 0   ;;  %s1767_s0 = inlined_call_operand.vmem [shape: bf16[2048,108], index: 0, kind: input, shape index: {}]   ;;  %s1768_s1 = inlined_call_operand.vmem [shape: bf16[108,128], index: 1, kind: input, shape index: {}]   ;;  %s1769_s2 = inlined_call_operand.vmem [shape: f32[1,128], index: 2, kind: input, shape index: {}]   ;;  %s1770_s3 = inlined_call_operand.vmem [shape: f32[2048,128], index: 3, kind: output, shape index: {}]  }
   0x1   :  { %s1447_s14 = smov 0  }
   0x2 LB: > { %s32_s15 = sadd.s32 1, %s1417_s13  ;;  %p1156_p0 = scmp.ge.s32.totalorder %s1421_s14, 1  ;;  %s1421_s14 = sphi %s1447_s14, %s13_s14   ;;  %s1417_s13 = sphi %s1445_s13, %s1772_s13   ;;  %s1413_s12 = sphi %s1443_s12, %s1771_s12  }
   0x3   : > { %p34_p1 = scmp.ge.s32.totalorder %s32_s15, 8  ;;  %p188_p2 = scmp.lt.s32.totalorder %s1421_s14, 9 }
   0x5   : > { %s1774_s15 = smov (%p34_p1, %s32_s15), 0  ;;  %p189_p3 = pnand %p1156_p0, %p188_p2 }
   0x6   : > { %v1312_v0 = vld [vmem:[%s1768_s1] sm:$0xff] (!%p189_p3)   ;;  %v1313_v1 = vld [vmem:[%s1768_s1 + $0x8] sm:$0xff] (!%p189_p3)   ;;  %s1157_s20 = sshll.u32 (!%p189_p3), %s1413_s12, 5  ;;  %v1314_v2 = vld [vmem:[%s1768_s1 + $0x10] sm:$0xff] (!%p189_p3)   ;;  %vm495_vm0 = vcmask (!%p189_p3), 883712   ;;  %vm544_vm1 = vcmask (!%p189_p3), 1045504  }
   0x7   : > { %192 = sbr.rel (%p189_p3) target bundleno = 312 (0x138), region = 32  ;;  %1226 = vmatprep.subr.bf16.mxu0 (!%p189_p3), %v1312_v0  ;;  %1272 = vmatprep.subr.bf16.mxu1 (!%p189_p3), %v1312_v0  ;;  %p230_p4 = scmp.lt.s32.totalorder (!%p189_p3), %s1157_s20, 255  ;;  %v1315_v3 = vld [vmem:[%s1768_s1 + $0x18] sm:$0xff] (!%p189_p3)   ;;  %v1316_v6 = vld [vmem:[%s1768_s1 + $0x20] sm:$0xff] (!%p189_p3)   ;;  %v1317_v7 = vld [vmem:[%s1768_s1 + $0x28] sm:$0xff] (!%p189_p3)  }
   0x8   : > { %1227 = vmatpush3.bf16.msra.mxu0 (!%p189_p3), %v1312_v0  ;;  %1279 = vmatpush3.bf16.msra.mxu1 (!%p189_p3), %v1312_v0  ;;  %v1318_v8 = vld [vmem:[%s1768_s1 + $0x30] sm:$0x3f] (!%p189_p3)   ;;  %v1525_v24 = vld [vmem:[%s1769_s2] ss:$0 sm:$0xff] (!%p189_p3) }
   0x9   : > { %1228 = vmatprep.subr.bf16.mxu0 (!%p189_p3), %v1313_v1  ;;  %1273 = vmatprep.subr.bf16.mxu1 (!%p189_p3), %v1313_v1  ;;  %v546_v9 = vsel (!%p189_p3), %vm544_vm1, %v1318_v8, 0 }
   0xc   : > { %1229 = vmatpush3.bf16.msra.mxu0 (!%p189_p3), %v1313_v1  ;;  %1280 = vmatpush3.bf16.msra.mxu1 (!%p189_p3), %v1313_v1 }
   0xd   : > { %1230 = vmatprep.subr.bf16.mxu0 (!%p189_p3), %v1314_v2  ;;  %1274 = vmatprep.subr.bf16.mxu1 (!%p189_p3), %v1314_v2 }
   0xe   : > { %s1776_s20 = smov (!%p230_p4, %s1157_s20), 255 }
   0xf   : > { %s1158_s23 = sshll.u32 %s1776_s20, 2  ;;  %s1160_s10 = sshll.u32 %s1776_s20, 3 }
  0x10   : > { %s1479_s28 = scalar_lea.vmem %s1767_s0, %s1158_s23  ;;  %1231 = vmatpush3.bf16.msra.mxu0 %v1314_v2  ;;  %1281 = vmatpush3.bf16.msra.mxu1 %v1314_v2  ;;  %s1606_s16 = scalar_lea.vmem %s1770_s3, %s1160_s10 }
  0x11   : > { %v1319_v4 = vld [vmem:[%s1479_s28] sm:$0xff]   ;;  %1232 = vmatprep.subr.bf16.mxu0 %v1315_v3  ;;  %1275 = vmatprep.subr.bf16.mxu1 %v1315_v3  ;;  %v1321_v10 = vld [vmem:[%s1479_s28 + $0x8] sm:$0xff]   ;;  %v1323_v12 = vld [vmem:[%s1479_s28 + $0x10] sm:$0xff]  }
  0x12   : > { %v1320_v5 = vld [vmem:[%s1479_s28 + $0x40] sm:$0xff]   ;;  %1240 = vmatprep.mubr.msk.bf16.mxu0 %vm495_vm0, %v1319_v4  ;;  %v1322_v11 = vld [vmem:[%s1479_s28 + $0x48] sm:$0xff]   ;;  %v1324_v13 = vld [vmem:[%s1479_s28 + $0x50] sm:$0xff]  }
  0x13   : > { %1256 = vmatprep.mubr.msk.bf16.mxu1 %vm495_vm0, %v1320_v5  ;;  %v1325_v14 = vld [vmem:[%s1479_s28 + $0x18] sm:$0xff]   ;;  %v1327_v16 = vld [vmem:[%s1479_s28 + $0x20] sm:$0xff]   ;;  %v1329_v18 = vld [vmem:[%s1479_s28 + $0x28] sm:$0xff]  }
  0x14   : > { %1233 = vmatpush3.bf16.msra.mxu0 %v1315_v3  ;;  %1282 = vmatpush3.bf16.msra.mxu1 %v1315_v3  ;;  %v1326_v15 = vld [vmem:[%s1479_s28 + $0x58] sm:$0xff]   ;;  %v1328_v17 = vld [vmem:[%s1479_s28 + $0x60] sm:$0xff]   ;;  %v1330_v19 = vld [vmem:[%s1479_s28 + $0x68] sm:$0xff]  }
  0x15   : > { %1234 = vmatprep.subr.bf16.mxu0 %v1316_v6  ;;  %1276 = vmatprep.subr.bf16.mxu1 %v1316_v6  ;;  %v1331_v20 = vld [vmem:[%s1479_s28 + $0x30] sm:$0xff]   ;;  %v1333_v22 = vld [vmem:[%s1479_s28 + $0x38] sm:$0xff]  }
  0x16   : > { %v1332_v21 = vld [vmem:[%s1479_s28 + $0x70] sm:$0xff]   ;;  %v1334_v23 = vld [vmem:[%s1479_s28 + $0x78] sm:$0xff]  }
  0x18   : > { %1235 = vmatpush3.bf16.msra.mxu0 %v1316_v6  ;;  %1283 = vmatpush3.bf16.msra.mxu1 %v1316_v6 }
  0x19   : > { %1236 = vmatprep.subr.bf16.mxu0 %v1317_v7  ;;  %1277 = vmatprep.subr.bf16.mxu1 %v1317_v7 }
  0x1c   : > { %1237 = vmatpush3.bf16.msra.mxu0 %v1317_v7  ;;  %1284 = vmatpush3.bf16.msra.mxu1 %v1317_v7 }
  0x1d   : > { %1286 = vmatprep.subr.msk.bf16.mxu0 %vm544_vm1, %v1318_v8  ;;  %1287 = vmatprep.subr.msk.bf16.mxu1 %vm544_vm1, %v1318_v8 }
  0x20   : > { %1239 = vmatpush3.bf16.msra.mxu0 %v546_v9  ;;  %1285 = vmatpush3.bf16.msra.mxu1 %v546_v9 }
  0x23   : > { %1241 = vmatmul.mubr.msk.bf16.vlgmr.msra.gmra.mrb[0].mxu0 %vm495_vm0, %v1321_v10  ;;  %1257 = vmatmul.mubr.msk.bf16.vlgmr.msra.gmra.mrb[0].mxu1 %vm495_vm0, %v1322_v11 }
  0x24   : > { %1244 = vmatprep.mubr.msk.bf16.mxu0 %vm495_vm0, %v1323_v12  ;;  %1260 = vmatprep.mubr.msk.bf16.mxu1 %vm495_vm0, %v1324_v13 }
  0x2b   : > { %1245 = vmatmul.mubr.msk.bf16.gmra.mrb[4].mxu0 %vm495_vm0, %v1325_v14  ;;  %1261 = vmatmul.mubr.msk.bf16.gmra.mrb[4].mxu1 %vm495_vm0, %v1326_v15 }
  0x2c   : > { %1248 = vmatprep.mubr.msk.bf16.mxu0 %vm495_vm0, %v1327_v16  ;;  %1264 = vmatprep.mubr.msk.bf16.mxu1 %vm495_vm0, %v1328_v17 }
  0x33   : > { %1249 = vmatmul.mubr.msk.bf16.gmra.mrb[8].mxu0 %vm495_vm0, %v1329_v18  ;;  %1265 = vmatmul.mubr.msk.bf16.gmra.mrb[8].mxu1 %vm495_vm0, %v1330_v19 }
  0x34   : > { %1252 = vmatprep.mubr.msk.bf16.mxu0 %vm495_vm0, %v1331_v20  ;;  %1268 = vmatprep.mubr.msk.bf16.mxu1 %vm495_vm0, %v1332_v21 }
  0x3b   : > { %1253 = vmatmul.mubr.msk.bf16.gmra.mrb[12].mxu0 %vm495_vm0, %v1333_v22  ;;  %1269 = vmatmul.mubr.msk.bf16.gmra.mrb[12].mxu1 %vm495_vm0, %v1334_v23 }
  0xf6   : > { %v1242_v25 = vpop.f32.mrb[0].mxu0  ;;  %v1258_v26 = vpop.f32.mrb[0].mxu1 }
  0xf7   : > { %v1528_v27 = vadd.f32 %v1242_v25, %v1525_v24  ;;  %v1531_v28 = vadd.f32 %v1258_v26, %v1525_v24  ;;  %v582_v29 = vpop.f32.mrb[1].mxu0  ;;  %v646_v30 = vpop.f32.mrb[1].mxu1 }
  0xf8   : > { %v1534_v31 = vadd.f32 %v1525_v24, %v582_v29  ;;  %v1537_v32 = vadd.f32 %v1525_v24, %v646_v30  ;;  %v1243_v33 = vpop.f32.mrb[2].mxu0  ;;  %v1259_v34 = vpop.f32.mrb[2].mxu1 }
  0xf9   : > { %v849_v35 = vmul.f32 0.5, %v1528_v27  ;;  %v865_v36 = vmul.f32 0.5, %v1531_v28  ;;  %v1542_v37 = vadd.f32 %v1243_v33, %v1525_v24  ;;  %v1545_v38 = vadd.f32 %v1259_v34, %v1525_v24  ;;  %v585_v39 = vpop.f32.mrb[3].mxu0  ;;  %v649_v40 = vpop.f32.mrb[3].mxu1 }
  0xfa   : > { %v847_v41 = vmul.f32 0.5, %v1534_v31  ;;  %v863_v42 = vmul.f32 0.5, %v1537_v32  ;;  %v1550_v43 = vadd.f32 %v1525_v24, %v585_v39  ;;  %v1553_v44 = vadd.f32 %v1525_v24, %v649_v40 }
  0xfb   : > { %1335 = vtanh.f32 %v849_v35  ;;  %v850_v45 = vmul.f32 0.5, %v1542_v37  ;;  %v866_v46 = vmul.f32 0.5, %v1545_v38 }
  0xfc   : > { %1337 = vtanh.f32 %v865_v36  ;;  %v848_v47 = vmul.f32 0.5, %v1550_v43  ;;  %v864_v48 = vmul.f32 0.5, %v1553_v44 }
  0xfd   : > { %1339 = vtanh.f32 %v847_v41 }
  0xfe   : > { %1341 = vtanh.f32 %v863_v42  ;;  %v1246_v49 = vpop.f32.mrb[4].mxu0  ;;  %v1262_v50 = vpop.f32.mrb[4].mxu1 }
  0xff   : > { %1343 = vtanh.f32 %v850_v45  ;;  %v1560_v51 = vadd.f32 %v1246_v49, %v1525_v24  ;;  %v1563_v52 = vadd.f32 %v1262_v50, %v1525_v24  ;;  %v598_v53 = vpop.f32.mrb[5].mxu0  ;;  %v662_v54 = vpop.f32.mrb[5].mxu1 }
 0x100   : > { %1345 = vtanh.f32 %v866_v46  ;;  %v1566_v55 = vadd.f32 %v1525_v24, %v598_v53  ;;  %v1569_v56 = vadd.f32 %v1525_v24, %v662_v54  ;;  %v1247_v57 = vpop.f32.mrb[6].mxu0  ;;  %v1263_v58 = vpop.f32.mrb[6].mxu1 }
 0x101   : > { %1347 = vtanh.f32 %v848_v47  ;;  %v853_v59 = vmul.f32 0.5, %v1560_v51  ;;  %v869_v60 = vmul.f32 0.5, %v1563_v52  ;;  %v1574_v61 = vadd.f32 %v1247_v57, %v1525_v24  ;;  %v601_v62 = vpop.f32.mrb[7].mxu0  ;;  %v665_v63 = vpop.f32.mrb[7].mxu1 }
 0x102   : > { %1349 = vtanh.f32 %v864_v48  ;;  %v851_v0 = vmul.f32 0.5, %v1566_v55  ;;  %v867_v1 = vmul.f32 0.5, %v1569_v56  ;;  %v1579_v2 = vadd.f32 %v1263_v58, %v1525_v24 }
 0x103   : > { %1351 = vtanh.f32 %v853_v59  ;;  %v854_v3 = vmul.f32 0.5, %v1574_v61  ;;  %v1583_v4 = vadd.f32 %v1525_v24, %v601_v62  ;;  %v1586_v5 = vadd.f32 %v1525_v24, %v665_v63 }
 0x104   : > { %1353 = vtanh.f32 %v869_v60  ;;  %v870_v6 = vmul.f32 0.5, %v1579_v2 }
 0x105   : > { %v1336_v7 = vpop.eup %1335  ;;  %1355 = vtanh.f32 %v851_v0  ;;  %v852_v8 = vmul.f32 0.5, %v1583_v4  ;;  %v868_v11 = vmul.f32 0.5, %v1586_v5 }
 0x106   : > { %v1338_v9 = vpop.eup %1337  ;;  %v913_v10 = vadd.f32 1.0, %v1336_v7  ;;  %1357 = vtanh.f32 %v867_v1  ;;  %v1250_v12 = vpop.f32.mrb[8].mxu0 }
 0x107   : > { %v1266_v13 = vpop.f32.mrb[8].mxu1  ;;  %v1340_v14 = vpop.eup %1339  ;;  %v929_v15 = vadd.f32 1.0, %v1338_v9  ;;  %1359 = vtanh.f32 %v854_v3  ;;  %v1593_v16 = vadd.f32 %v1250_v12, %v1525_v24 }
 0x108   : > { %v1596_v17 = vadd.f32 %v1266_v13, %v1525_v24  ;;  %v614_v18 = vpop.f32.mrb[9].mxu0  ;;  %v678_v19 = vpop.f32.mrb[9].mxu1  ;;  %v945_v21 = vmul.f32 0.5, %v913_v10  ;;  %v911_v22 = vadd.f32 1.0, %v1340_v14  ;;  %1361 = vtanh.f32 %v870_v6 }
 0x109   : > { %v1342_v20 = vpop.eup %1341  ;;  %v1599_v23 = vadd.f32 %v1525_v24, %v614_v18  ;;  %v1251_v25 = vpop.f32.mrb[10].mxu0  ;;  %v961_v30 = vmul.f32 0.5, %v929_v15  ;;  %1363 = vtanh.f32 %v852_v8  ;;  %v857_v34 = vmul.f32 0.5, %v1593_v16 }
 0x10a   : > { %v1601_v26 = vpop.f32.mrb[10].mxu1  ;;  %v1344_v29 = vpop.eup %1343  ;;  %v927_v33 = vadd.f32 1.0, %v1342_v20  ;;  %v977_v40 = vmul.f32 %v945_v21, %v1528_v27  ;;  %v943_v41 = vmul.f32 0.5, %v911_v22  ;;  %1365 = vtanh.f32 %v868_v11 }
 0x10b   : > { %v1609_v35 = vpop.f32.mrb[11].mxu0  ;;  %v1611_v36 = vpop.f32.mrb[11].mxu1  ;;  %v914_v42 = vadd.f32 1.0, %v1344_v29  ;;  %v993_v46 = vmul.f32 %v961_v30, %v1531_v28  ;;  %1367 = vtanh.f32 %v857_v34  ;;  %v873_v57 = vmul.f32 0.5, %v1596_v17 }
 0x10c   : > { %v1346_v39 = vpop.eup %1345  ;;  %v959_v47 = vmul.f32 0.5, %v927_v33  ;;  %1009 = vst [vmem:[%s1606_s16 + $0x10] sm:$0xff] %v977_v40  ;;  %v975_v50 = vmul.f32 %v943_v41, %v1534_v31  ;;  %v855_v28 = vmul.f32 0.5, %v1599_v23  ;;  %v1636_v14 = vadd.f32 %v1525_v24, %v678_v19 }
 0x10d   : > { %v1348_v45 = vpop.eup %1347  ;;  %v930_v48 = vadd.f32 1.0, %v1346_v39  ;;  %v946_v53 = vmul.f32 0.5, %v914_v42  ;;  %1025 = vst [vmem:[%s1606_s16 + $0x90] sm:$0xff] %v993_v46  ;;  %1369 = vtanh.f32 %v873_v57  ;;  %v1645_v29 = vadd.f32 %v1251_v25, %v1525_v24 }
 0x10e   : > { %v1350_v49 = vpop.eup %1349  ;;  %v912_v54 = vadd.f32 1.0, %v1348_v45  ;;  %v991_v58 = vmul.f32 %v959_v47, %v1537_v32  ;;  %1007 = vst [vmem:[%s1606_s16] sm:$0xff] %v975_v50  ;;  %v1623_v1 = vpop.f32.mrb[12].mxu0  ;;  %1371 = vtanh.f32 %v855_v28  ;;  %v871_v40 = vmul.f32 0.5, %v1636_v14 }
 0x10f   : > { %v1352_v27 = vpop.eup %1351  ;;  %v962_v59 = vmul.f32 0.5, %v930_v48  ;;  %v928_v60 = vadd.f32 1.0, %v1350_v49  ;;  %v978_v63 = vmul.f32 %v946_v53, %v1542_v37  ;;  %v1625_v3 = vpop.f32.mrb[12].mxu1  ;;  %v858_v45 = vmul.f32 0.5, %v1645_v29 }
 0x110   : > { %v1354_v62 = vpop.eup %1353  ;;  %v944_v0 = vmul.f32 0.5, %v912_v54  ;;  %v917_v31 = vadd.f32 1.0, %v1352_v27  ;;  %1023 = vst [vmem:[%s1606_s16 + $0x80] sm:$0xff] %v991_v58  ;;  %v1629_v9 = vpop.f32.mrb[13].mxu0  ;;  %1373 = vtanh.f32 %v871_v40 }
 0x111   : > { %v1356_v6 = vpop.eup %1355  ;;  %v994_v32 = vmul.f32 %v962_v59, %v1545_v38  ;;  %v960_v7 = vmul.f32 0.5, %v928_v60  ;;  %v933_v8 = vadd.f32 1.0, %v1354_v62  ;;  %v1631_v10 = vpop.f32.mrb[13].mxu1  ;;  %1010 = vst [vmem:[%s1606_s16 + $0x18] sm:$0xff] %v978_v63  ;;  %1375 = vtanh.f32 %v858_v45 }
 0x112   : > { %v1358_v37 = vpop.eup %1357  ;;  %v976_v11 = vmul.f32 %v944_v0, %v1550_v43  ;;  %v949_v12 = vmul.f32 0.5, %v917_v31  ;;  %v915_v13 = vadd.f32 1.0, %v1356_v6  ;;  %v1638_v15 = vpop.f32.mrb[14].mxu0  ;;  %v1675_v60 = vadd.f32 %v1525_v24, %v1611_v36 }
 0x113   : > { %v1640_v38 = vpop.f32.mrb[14].mxu1  ;;  %v1360_v18 = vpop.eup %1359  ;;  %1026 = vst [vmem:[%s1606_s16 + $0x98] sm:$0xff] %v994_v32  ;;  %v992_v20 = vmul.f32 %v960_v7, %v1553_v44  ;;  %v965_v21 = vmul.f32 0.5, %v933_v8  ;;  %v931_v22 = vadd.f32 1.0, %v1358_v37  ;;  %v1694_v7 = vadd.f32 %v1625_v3, %v1525_v24 }
 0x114   : > { %v1647_v43 = vpop.f32.mrb[15].mxu0  ;;  %v1649_v30 = vpop.f32.mrb[15].mxu1  ;;  %1008 = vst [vmem:[%s1606_s16 + $0x8] sm:$0xff] %v976_v11  ;;  %v981_v33 = vmul.f32 %v949_v12, %v1560_v51  ;;  %v947_v34 = vmul.f32 0.5, %v915_v13  ;;  %v918_v39 = vadd.f32 1.0, %v1360_v18  ;;  %v872_v31 = vmul.f32 0.5, %v1675_v60 }
 0x115   : > { %v1362_v19 = vpop.eup %1361  ;;  %1024 = vst [vmem:[%s1606_s16 + $0x88] sm:$0xff] %v992_v20  ;;  %v997_v41 = vmul.f32 %v965_v21, %v1563_v52  ;;  %v963_v25 = vmul.f32 0.5, %v931_v22  ;;  %v1707_v37 = vadd.f32 %v1638_v15, %v1525_v24  ;;  %v877_v11 = vmul.f32 0.5, %v1694_v7 }
 0x116   : > { %v1364_v44 = vpop.eup %1363  ;;  %v934_v42 = vadd.f32 1.0, %v1362_v19  ;;  %1013 = vst [vmem:[%s1606_s16 + $0x30] sm:$0xff] %v981_v33  ;;  %v979_v47 = vmul.f32 %v947_v34, %v1566_v55  ;;  %v950_v51 = vmul.f32 0.5, %v918_v39  ;;  %v1665_v55 = vadd.f32 %v1601_v26, %v1525_v24 }
 0x117   : > { %v1366_v46 = vpop.eup %1365  ;;  %v916_v48 = vadd.f32 1.0, %v1364_v44  ;;  %1029 = vst [vmem:[%s1606_s16 + $0xb0] sm:$0xff] %v997_v41  ;;  %v995_v50 = vmul.f32 %v963_v25, %v1569_v56  ;;  %v1671_v56 = vadd.f32 %v1525_v24, %v1609_v35  ;;  %v1717_v20 = vadd.f32 %v1640_v38, %v1525_v24 }
 0x118   : > { %v1368_v49 = vpop.eup %1367  ;;  %v966_v53 = vmul.f32 0.5, %v934_v42  ;;  %v932_v52 = vadd.f32 1.0, %v1366_v46  ;;  %1011 = vst [vmem:[%s1606_s16 + $0x20] sm:$0xff] %v979_v47  ;;  %v982_v54 = vmul.f32 %v950_v51, %v1574_v61  ;;  %v874_v62 = vmul.f32 0.5, %v1665_v55 }
 0x119   : > { %v948_v57 = vmul.f32 0.5, %v916_v48  ;;  %v921_v27 = vadd.f32 1.0, %v1368_v49  ;;  %1027 = vst [vmem:[%s1606_s16 + $0xa0] sm:$0xff] %v995_v50  ;;  %v1370_v61 = vpop.eup %1369  ;;  %v856_v36 = vmul.f32 0.5, %v1671_v56  ;;  %v1726_v22 = vadd.f32 %v1525_v24, %v1649_v30 }
 0x11a   : > { %v998_v58 = vmul.f32 %v966_v53, %v1579_v2  ;;  %v964_v59 = vmul.f32 0.5, %v932_v52  ;;  %1014 = vst [vmem:[%s1606_s16 + $0x38] sm:$0xff] %v982_v54  ;;  %v1682_v2 = vadd.f32 %v1623_v1, %v1525_v24  ;;  %v1372_v63 = vpop.eup %1371  ;;  %v937_v0 = vadd.f32 1.0, %v1370_v61 }
 0x11b   : > { %v980_v28 = vmul.f32 %v948_v57, %v1583_v4  ;;  %v953_v26 = vmul.f32 0.5, %v921_v27  ;;  %v919_v6 = vadd.f32 1.0, %v1372_v63  ;;  %1377 = vtanh.f32 %v874_v62  ;;  %v1374_v12 = vpop.eup %1373 }
 0x11c   : > { %1030 = vst [vmem:[%s1606_s16 + $0xb8] sm:$0xff] %v998_v58  ;;  %v996_v35 = vmul.f32 %v964_v59, %v1586_v5  ;;  %v861_v32 = vmul.f32 0.5, %v1682_v2  ;;  %v969_v1 = vmul.f32 0.5, %v937_v0  ;;  %1379 = vtanh.f32 %v856_v36  ;;  %v1376_v15 = vpop.eup %1375 }
 0x11d   : > { %1012 = vst [vmem:[%s1606_s16 + $0x28] sm:$0xff] %v980_v28  ;;  %v985_v4 = vmul.f32 %v953_v26, %v1593_v16  ;;  %v1698_v5 = vadd.f32 %v1525_v24, %v1629_v9  ;;  %v951_v8 = vmul.f32 0.5, %v919_v6  ;;  %1381 = vtanh.f32 %v872_v31 }
 0x11e   : > { %1028 = vst [vmem:[%s1606_s16 + $0xa8] sm:$0xff] %v996_v35  ;;  %v1703_v16 = vadd.f32 %v1525_v24, %v1631_v10  ;;  %v1001_v3 = vmul.f32 %v969_v1, %v1596_v17  ;;  %1383 = vtanh.f32 %v861_v32  ;;  %v862_v10 = vmul.f32 0.5, %v1707_v37 }
 0x11f   : > { %1017 = vst [vmem:[%s1606_s16 + $0x50] sm:$0xff] %v985_v4  ;;  %v859_v9 = vmul.f32 0.5, %v1698_v5  ;;  %v983_v13 = vmul.f32 %v951_v8, %v1599_v23  ;;  %v935_v21 = vadd.f32 1.0, %v1374_v12  ;;  %1385 = vtanh.f32 %v877_v11 }
 0x120   : > { %v875_v18 = vmul.f32 0.5, %v1703_v16  ;;  %1033 = vst [vmem:[%s1606_s16 + $0xd0] sm:$0xff] %v1001_v3  ;;  %v1722_v17 = vadd.f32 %v1525_v24, %v1647_v43  ;;  %v922_v23 = vadd.f32 1.0, %v1376_v15  ;;  %v878_v19 = vmul.f32 0.5, %v1717_v20 }
 0x121   : > { %1015 = vst [vmem:[%s1606_s16 + $0x40] sm:$0xff] %v983_v13  ;;  %1387 = vtanh.f32 %v859_v9  ;;  %v967_v38 = vmul.f32 0.5, %v935_v21  ;;  %v876_v34 = vmul.f32 0.5, %v1726_v22 }
 0x122   : > { %1389 = vtanh.f32 %v875_v18  ;;  %v860_v33 = vmul.f32 0.5, %v1722_v17  ;;  %v954_v39 = vmul.f32 0.5, %v922_v23 }
 0x123   : > { %1391 = vtanh.f32 %v862_v10  ;;  %v999_v43 = vmul.f32 %v967_v38, %v1636_v14 }
 0x124   : > { %1393 = vtanh.f32 %v878_v19  ;;  %v986_v30 = vmul.f32 %v954_v39, %v1645_v29 }
 0x125   : > { %v1378_v24 = vpop.eup %1377  ;;  %1395 = vtanh.f32 %v860_v33  ;;  %1031 = vst [vmem:[%s1606_s16 + $0xc0] sm:$0xff] %v999_v43 }
 0x126   : > { %v1380_v40 = vpop.eup %1379  ;;  %v938_v44 = vadd.f32 1.0, %v1378_v24  ;;  %1397 = vtanh.f32 %v876_v34  ;;  %1018 = vst [vmem:[%s1606_s16 + $0x58] sm:$0xff] %v986_v30 }
 0x127   : > { %v1382_v41 = vpop.eup %1381  ;;  %v920_v25 = vadd.f32 1.0, %v1380_v40 }
 0x128   : > { %v1384_v42 = vpop.eup %1383  ;;  %v970_v45 = vmul.f32 0.5, %v938_v44  ;;  %v936_v46 = vadd.f32 1.0, %v1382_v41 }
 0x129   : > { %v952_v47 = vmul.f32 0.5, %v920_v25  ;;  %v925_v51 = vadd.f32 1.0, %v1384_v42  ;;  %v1386_v14 = vpop.eup %1385 }
 0x12a   : > { %v1002_v48 = vmul.f32 %v970_v45, %v1665_v55  ;;  %v968_v29 = vmul.f32 0.5, %v936_v46  ;;  %v941_v52 = vadd.f32 1.0, %v1386_v14 }
 0x12b   : > { %v1388_v49 = vpop.eup %1387  ;;  %v984_v50 = vmul.f32 %v952_v47, %v1671_v56  ;;  %v957_v53 = vmul.f32 0.5, %v925_v51 }
 0x12c   : > { %v1390_v54 = vpop.eup %1389  ;;  %1034 = vst [vmem:[%s1606_s16 + $0xd8] sm:$0xff] %v1002_v48  ;;  %v1000_v57 = vmul.f32 %v968_v29, %v1675_v60  ;;  %v923_v27 = vadd.f32 1.0, %v1388_v49  ;;  %v973_v61 = vmul.f32 0.5, %v941_v52 }
 0x12d   : > { %v1392_v58 = vpop.eup %1391  ;;  %1016 = vst [vmem:[%s1606_s16 + $0x48] sm:$0xff] %v984_v50  ;;  %v989_v59 = vmul.f32 %v957_v53, %v1682_v2  ;;  %v939_v55 = vadd.f32 1.0, %v1390_v54 }
 0x12e   : > { %v1394_v28 = vpop.eup %1393  ;;  %1032 = vst [vmem:[%s1606_s16 + $0xc8] sm:$0xff] %v1000_v57  ;;  %v955_v26 = vmul.f32 0.5, %v923_v27  ;;  %v926_v56 = vadd.f32 1.0, %v1392_v58  ;;  %v1005_v63 = vmul.f32 %v973_v61, %v1694_v7 }
 0x12f   : > { %v1396_v62 = vpop.eup %1395  ;;  %1021 = vst [vmem:[%s1606_s16 + $0x70] sm:$0xff] %v989_v59  ;;  %v971_v35 = vmul.f32 0.5, %v939_v55  ;;  %v942_v60 = vadd.f32 1.0, %v1394_v28 }
 0x130   : > { %v1398_v0 = vpop.eup %1397  ;;  %v987_v2 = vmul.f32 %v955_v26, %v1698_v5  ;;  %v958_v36 = vmul.f32 0.5, %v926_v56  ;;  %v924_v31 = vadd.f32 1.0, %v1396_v62  ;;  %1037 = vst [vmem:[%s1606_s16 + $0xf0] sm:$0xff] %v1005_v63 }
 0x131   : > { %v1003_v4 = vmul.f32 %v971_v35, %v1703_v16  ;;  %v974_v6 = vmul.f32 0.5, %v942_v60  ;;  %v940_v32 = vadd.f32 1.0, %v1398_v0 }
 0x132   : > { %1019 = vst [vmem:[%s1606_s16 + $0x60] sm:$0xff] %v987_v2  ;;  %v990_v1 = vmul.f32 %v958_v36, %v1707_v37  ;;  %v956_v7 = vmul.f32 0.5, %v924_v31 }
 0x133   : > { %1035 = vst [vmem:[%s1606_s16 + $0xe0] sm:$0xff] %v1003_v4  ;;  %v1006_v8 = vmul.f32 %v974_v6, %v1717_v20  ;;  %v972_v3 = vmul.f32 0.5, %v940_v32 }
 0x134   : > { %1022 = vst [vmem:[%s1606_s16 + $0x78] sm:$0xff] %v990_v1  ;;  %v988_v5 = vmul.f32 %v956_v7, %v1722_v17 }
 0x135   : > { %1038 = vst [vmem:[%s1606_s16 + $0xf8] sm:$0xff] %v1006_v8  ;;  %v1004_v11 = vmul.f32 %v972_v3, %v1726_v22 }
 0x136   : > { %1020 = vst [vmem:[%s1606_s16 + $0x68] sm:$0xff] %v988_v5 }
 0x137   : > { %1036 = vst [vmem:[%s1606_s16 + $0xe8] sm:$0xff] %v1004_v11 }
 0x138 PF: > { %s13_s14 = sadd.s32 1, %s1421_s14   ;;  %s1771_s12 = smov %s1417_s13 }
 0x139   : > { %p10_p5 = scmp.ge.s32.totalorder %s13_s14, 10   ;;  %s1772_s13 = smov %s1774_s15 }
 0x13b   :  { %12 = sbr.rel (!%p10_p5) target bundleno = 2 (0x2), region = 76 }

// kernel: _lambda_.38
= control target key start
LH: loop header
LB: loop body
LE: loop exit
PB: predicated region body
PF: predicated region fallthrough
CT: control target
= control target key end

     0   :  { %s1520_s12 = smov 0   ;;  %s1522_s13 = smov 0   ;;  %s1820_s0 = inlined_call_operand.vmem [shape: bf16[2048,144], index: 0, kind: input, shape index: {}]   ;;  %s1821_s1 = inlined_call_operand.vmem [shape: bf16[144,128], index: 1, kind: input, shape index: {}]   ;;  %s1822_s2 = inlined_call_operand.vmem [shape: f32[1,128], index: 2, kind: input, shape index: {}]   ;;  %s1823_s3 = inlined_call_operand.vmem [shape: f32[2048,128], index: 3, kind: output, shape index: {}]  }
   0x1   :  { %s1524_s14 = smov 0  }
   0x2 LB: > { %s32_s15 = sadd.s32 1, %s1493_s13  ;;  %p1244_p0 = scmp.ge.s32.totalorder %s1497_s14, 1  ;;  %s1497_s14 = sphi %s1524_s14, %s13_s14   ;;  %s1493_s13 = sphi %s1522_s13, %s1825_s13   ;;  %s1489_s12 = sphi %s1520_s12, %s1824_s12  }
   0x3   : > { %p34_p1 = scmp.ge.s32.totalorder %s32_s15, 8  ;;  %p191_p2 = scmp.lt.s32.totalorder %s1497_s14, 9 }
   0x5   : > { %s1827_s15 = smov (%p34_p1, %s32_s15), 0  ;;  %p192_p3 = pnand %p1244_p0, %p191_p2 }
   0x6   : > { %v1354_v0 = vld [vmem:[%s1821_s1] sm:$0xff] (!%p192_p3)   ;;  %v1499_v1 = vmov (!%p192_p3), 0   ;;  %s1245_s18 = sshll.u32 (!%p192_p3), %s1489_s12, 5  ;;  %v1355_v2 = vld [vmem:[%s1821_s1 + $0x8] sm:$0xff] (!%p192_p3)   ;;  %v1356_v3 = vld [vmem:[%s1821_s1 + $0x10] sm:$0xff] (!%p192_p3)   ;;  %vm584_vm0 = vcmask (!%p192_p3), 130048  }
   0x7   : > { %195 = sbr.rel (%p192_p3) target bundleno = 337 (0x151), region = 32  ;;  %633 = vmatprep.subr.bf16.mxu0 (!%p192_p3), %v1499_v1  ;;  %1311 = vmatprep.subr.bf16.mxu1 (!%p192_p3), %v1499_v1  ;;  %p236_p4 = scmp.lt.s32.totalorder (!%p192_p3), %s1245_s18, 255  ;;  %v1357_v4 = vld [vmem:[%s1821_s1 + $0x18] sm:$0xff] (!%p192_p3)   ;;  %v1358_v7 = vld [vmem:[%s1821_s1 + $0x20] sm:$0xff] (!%p192_p3)   ;;  %v1359_v8 = vld [vmem:[%s1821_s1 + $0x28] sm:$0xff] (!%p192_p3)  }
   0x8   : > { %634 = vmatpush1.bf16.msra.mxu0 (!%p192_p3), %v1354_v0  ;;  %1320 = vmatpush1.bf16.msra.mxu1 (!%p192_p3), %v1354_v0  ;;  %v1360_v9 = vld [vmem:[%s1821_s1 + $0x30] sm:$0xff] (!%p192_p3)   ;;  %v1361_v10 = vld [vmem:[%s1821_s1 + $0x38] sm:$0xff] (!%p192_p3)   ;;  %v1362_v11 = vld [vmem:[%s1821_s1 + $0x40] sm:$0xff] (!%p192_p3)  }
   0x9   : > { %635 = vmatprep.subr.bf16.mxu0 (!%p192_p3), %v1499_v1  ;;  %1312 = vmatprep.subr.bf16.mxu1 (!%p192_p3), %v1499_v1  ;;  %v1626_v42 = vld [vmem:[%s1822_s2] ss:$0 sm:$0xff] (!%p192_p3) }
   0xc   : > { %636 = vmatpush1.bf16.msra.mxu0 (!%p192_p3), %v1355_v2  ;;  %1321 = vmatpush1.bf16.msra.mxu1 (!%p192_p3), %v1355_v2 }
   0xd   : > { %637 = vmatprep.subr.bf16.mxu0 (!%p192_p3), %v1499_v1  ;;  %1313 = vmatprep.subr.bf16.mxu1 (!%p192_p3), %v1499_v1 }
   0xe   : > { %s1829_s18 = smov (!%p236_p4, %s1245_s18), 255 }
   0xf   : > { %s1310_s23 = sshll.u32 %s1829_s18, 3 }
  0x10   : > { %s1555_s26 = scalar_lea.vmem %s1820_s0, %s1310_s23  ;;  %638 = vmatpush1.bf16.msra.mxu0 %v1356_v3  ;;  %1322 = vmatpush1.bf16.msra.mxu1 %v1356_v3  ;;  %s1665_s20 = scalar_lea.vmem %s1823_s3, %s1310_s23 }
  0x11   : > { %v1365_v5 = vld [vmem:[%s1555_s26 + $0x4] ss:$8 sps:$4 sm:$0xff]   ;;  %639 = vmatprep.subr.bf16.mxu0 %v1499_v1  ;;  %1314 = vmatprep.subr.bf16.mxu1 %v1499_v1  ;;  %v1363_v12 = vld [vmem:[%s1555_s26] ss:$8 sps:$4 sm:$0xff]   ;;  %v1369_v14 = vld [vmem:[%s1555_s26 + $0x14] ss:$8 sps:$4 sm:$0xff]  }
  0x12   : > { %v1368_v6 = vld [vmem:[%s1555_s26 + $0x84] ss:$8 sps:$4 sm:$0xff]   ;;  %1291 = vmatprep.mubr.msk.bf16.mxu0 %vm584_vm0, %v1365_v5  ;;  %v1366_v13 = vld [vmem:[%s1555_s26 + $0x80] ss:$8 sps:$4 sm:$0xff]   ;;  %v1371_v15 = vld [vmem:[%s1555_s26 + $0x94] ss:$8 sps:$4 sm:$0xff]  }
  0x13   : > { %1299 = vmatprep.mubr.msk.bf16.mxu1 %vm584_vm0, %v1368_v6  ;;  %v1373_v16 = vld [vmem:[%s1555_s26 + $0x10] ss:$8 sps:$4 sm:$0xff]   ;;  %v1375_v18 = vld [vmem:[%s1555_s26 + $0x24] ss:$8 sps:$4 sm:$0xff]   ;;  %v1379_v20 = vld [vmem:[%s1555_s26 + $0x20] ss:$8 sps:$4 sm:$0xff]  }
  0x14   : > { %640 = vmatpush1.bf16.msra.mxu0 %v1357_v4  ;;  %1323 = vmatpush1.bf16.msra.mxu1 %v1357_v4  ;;  %v1374_v17 = vld [vmem:[%s1555_s26 + $0x90] ss:$8 sps:$4 sm:$0xff]   ;;  %v1377_v19 = vld [vmem:[%s1555_s26 + $0xa4] ss:$8 sps:$4 sm:$0xff]   ;;  %v1380_v21 = vld [vmem:[%s1555_s26 + $0xa0] ss:$8 sps:$4 sm:$0xff]  }
  0x15   : > { %641 = vmatprep.subr.bf16.mxu0 %v1499_v1  ;;  %1315 = vmatprep.subr.bf16.mxu1 %v1499_v1  ;;  %v1381_v22 = vld [vmem:[%s1555_s26 + $0x34] ss:$8 sps:$4 sm:$0xff]   ;;  %v1385_v24 = vld [vmem:[%s1555_s26 + $0x30] ss:$8 sps:$4 sm:$0xff]   ;;  %v1387_v26 = vld [vmem:[%s1555_s26 + $0x44] ss:$8 sps:$4 sm:$0xff]  }
  0x16   : > { %v1383_v23 = vld [vmem:[%s1555_s26 + $0xb4] ss:$8 sps:$4 sm:$0xff]   ;;  %v1386_v25 = vld [vmem:[%s1555_s26 + $0xb0] ss:$8 sps:$4 sm:$0xff]   ;;  %v1389_v27 = vld [vmem:[%s1555_s26 + $0xc4] ss:$8 sps:$4 sm:$0xff]  }
  0x17   : > { %v1391_v28 = vld [vmem:[%s1555_s26 + $0x40] ss:$8 sps:$4 sm:$0xff]   ;;  %v1393_v30 = vld [vmem:[%s1555_s26 + $0x54] ss:$8 sps:$4 sm:$0xff]   ;;  %v1397_v32 = vld [vmem:[%s1555_s26 + $0x50] ss:$8 sps:$4 sm:$0xff]  }
  0x18   : > { %642 = vmatpush1.bf16.msra.mxu0 %v1358_v7  ;;  %1324 = vmatpush1.bf16.msra.mxu1 %v1358_v7  ;;  %v1392_v29 = vld [vmem:[%s1555_s26 + $0xc0] ss:$8 sps:$4 sm:$0xff]   ;;  %v1395_v31 = vld [vmem:[%s1555_s26 + $0xd4] ss:$8 sps:$4 sm:$0xff]   ;;  %v1398_v33 = vld [vmem:[%s1555_s26 + $0xd0] ss:$8 sps:$4 sm:$0xff]  }
  0x19   : > { %643 = vmatprep.subr.bf16.mxu0 %v1499_v1  ;;  %1316 = vmatprep.subr.bf16.mxu1 %v1499_v1  ;;  %v1399_v34 = vld [vmem:[%s1555_s26 + $0x64] ss:$8 sps:$4 sm:$0xff]   ;;  %v1403_v36 = vld [vmem:[%s1555_s26 + $0x60] ss:$8 sps:$4 sm:$0xff]   ;;  %v1405_v38 = vld [vmem:[%s1555_s26 + $0x74] ss:$8 sps:$4 sm:$0xff]  }
  0x1a   : > { %v1401_v35 = vld [vmem:[%s1555_s26 + $0xe4] ss:$8 sps:$4 sm:$0xff]   ;;  %v1404_v37 = vld [vmem:[%s1555_s26 + $0xe0] ss:$8 sps:$4 sm:$0xff]   ;;  %v1407_v39 = vld [vmem:[%s1555_s26 + $0xf4] ss:$8 sps:$4 sm:$0xff]  }
  0x1b   : > { %v1409_v40 = vld [vmem:[%s1555_s26 + $0x70] ss:$8 sps:$4 sm:$0xff]  }
  0x1c   : > { %644 = vmatpush1.bf16.msra.mxu0 %v1359_v8  ;;  %1325 = vmatpush1.bf16.msra.mxu1 %v1359_v8  ;;  %v1410_v41 = vld [vmem:[%s1555_s26 + $0xf0] ss:$8 sps:$4 sm:$0xff]  }
  0x1d   : > { %645 = vmatprep.subr.bf16.mxu0 %v1499_v1  ;;  %1317 = vmatprep.subr.bf16.mxu1 %v1499_v1 }
  0x20   : > { %646 = vmatpush1.bf16.msra.mxu0 %v1360_v9  ;;  %1326 = vmatpush1.bf16.msra.mxu1 %v1360_v9 }
  0x21   : > { %647 = vmatprep.subr.bf16.mxu0 %v1499_v1  ;;  %1318 = vmatprep.subr.bf16.mxu1 %v1499_v1 }
  0x24   : > { %648 = vmatpush1.bf16.msra.mxu0 %v1361_v10  ;;  %1327 = vmatpush1.bf16.msra.mxu1 %v1361_v10 }
  0x25   : > { %649 = vmatprep.subr.bf16.mxu0 %v1499_v1  ;;  %1319 = vmatprep.subr.bf16.mxu1 %v1499_v1 }
  0x28   : > { %650 = vmatpush1.bf16.msra.mxu0 %v1362_v11  ;;  %1328 = vmatpush1.bf16.msra.mxu1 %v1362_v11 }
  0x2b   : > { %666 = vmatmul.mubr.bf16.vlgmr.msra.gmra.mrb[0].mxu0 %v1363_v12  ;;  %730 = vmatmul.mubr.bf16.vlgmr.msra.gmra.mrb[0].mxu1 %v1366_v13 }
  0x2c   : > { %1292 = vmatprep.mubr.msk.bf16.mxu0 %vm584_vm0, %v1369_v14  ;;  %1300 = vmatprep.mubr.msk.bf16.mxu1 %vm584_vm0, %v1371_v15 }
  0x33   : > { %674 = vmatmul.mubr.bf16.gmra.mrb[4].mxu0 %v1373_v16  ;;  %738 = vmatmul.mubr.bf16.gmra.mrb[4].mxu1 %v1374_v17 }
  0x34   : > { %1293 = vmatprep.mubr.msk.bf16.mxu0 %vm584_vm0, %v1375_v18  ;;  %1301 = vmatprep.mubr.msk.bf16.mxu1 %vm584_vm0, %v1377_v19 }
  0x3b   : > { %682 = vmatmul.mubr.bf16.gmra.mrb[8].mxu0 %v1379_v20  ;;  %746 = vmatmul.mubr.bf16.gmra.mrb[8].mxu1 %v1380_v21 }
  0x3c   : > { %1294 = vmatprep.mubr.msk.bf16.mxu0 %vm584_vm0, %v1381_v22  ;;  %1302 = vmatprep.mubr.msk.bf16.mxu1 %vm584_vm0, %v1383_v23 }
  0x43   : > { %690 = vmatmul.mubr.bf16.gmra.mrb[12].mxu0 %v1385_v24  ;;  %754 = vmatmul.mubr.bf16.gmra.mrb[12].mxu1 %v1386_v25 }
  0x44   : > { %1295 = vmatprep.mubr.msk.bf16.mxu0 %vm584_vm0, %v1387_v26  ;;  %1303 = vmatprep.mubr.msk.bf16.mxu1 %vm584_vm0, %v1389_v27 }
  0x4b   : > { %698 = vmatmul.mubr.bf16.gmra.mrb[16].mxu0 %v1391_v28  ;;  %762 = vmatmul.mubr.bf16.gmra.mrb[16].mxu1 %v1392_v29 }
  0x4c   : > { %1296 = vmatprep.mubr.msk.bf16.mxu0 %vm584_vm0, %v1393_v30  ;;  %1304 = vmatprep.mubr.msk.bf16.mxu1 %vm584_vm0, %v1395_v31 }
  0x53   : > { %706 = vmatmul.mubr.bf16.gmra.mrb[20].mxu0 %v1397_v32  ;;  %770 = vmatmul.mubr.bf16.gmra.mrb[20].mxu1 %v1398_v33 }
  0x54   : > { %1297 = vmatprep.mubr.msk.bf16.mxu0 %vm584_vm0, %v1399_v34  ;;  %1305 = vmatprep.mubr.msk.bf16.mxu1 %vm584_vm0, %v1401_v35 }
  0x5b   : > { %714 = vmatmul.mubr.bf16.gmra.mrb[24].mxu0 %v1403_v36  ;;  %778 = vmatmul.mubr.bf16.gmra.mrb[24].mxu1 %v1404_v37 }
  0x5c   : > { %1298 = vmatprep.mubr.msk.bf16.mxu0 %vm584_vm0, %v1405_v38  ;;  %1306 = vmatprep.mubr.msk.bf16.mxu1 %vm584_vm0, %v1407_v39 }
  0x63   : > { %722 = vmatmul.mubr.bf16.gmra.mrb[28].mxu0 %v1409_v40  ;;  %786 = vmatmul.mubr.bf16.gmra.mrb[28].mxu1 %v1410_v41 }
  0xfe   : > { %v667_v43 = vpop.f32.mrb[0].mxu0  ;;  %v731_v44 = vpop.f32.mrb[0].mxu1 }
  0xff   : > { %v900_v45 = vadd.f32 %v1626_v42, %v667_v43  ;;  %v1630_v46 = vadd.f32 %v1626_v42, %v731_v44  ;;  %v669_v47 = vpop.f32.mrb[1].mxu0  ;;  %v733_v48 = vpop.f32.mrb[1].mxu1 }
 0x100   : > { %v670_v49 = vpop.f32.mrb[2].mxu0  ;;  %v734_v50 = vpop.f32.mrb[2].mxu1 }
 0x101   : > { %v932_v51 = vmul.f32 0.5, %v900_v45  ;;  %v948_v52 = vmul.f32 0.5, %v1630_v46  ;;  %v901_v53 = vadd.f32 %v1626_v42, %v670_v49  ;;  %v1635_v54 = vadd.f32 %v1626_v42, %v734_v50  ;;  %v672_v55 = vpop.f32.mrb[3].mxu0  ;;  %v736_v56 = vpop.f32.mrb[3].mxu1 }
 0x103   : > { %1411 = vtanh.f32 %v932_v51  ;;  %v933_v57 = vmul.f32 0.5, %v901_v53  ;;  %v949_v58 = vmul.f32 0.5, %v1635_v54 }
 0x104   : > { %1413 = vtanh.f32 %v948_v52 }
 0x105   : > { %1415 = vtanh.f32 %v933_v57 }
 0x106   : > { %1417 = vtanh.f32 %v949_v58  ;;  %v675_v59 = vpop.f32.mrb[4].mxu0  ;;  %v739_v60 = vpop.f32.mrb[4].mxu1 }
 0x107   : > { %v1639_v61 = vadd.f32 %v1626_v42, %v675_v59  ;;  %v1642_v62 = vadd.f32 %v1626_v42, %v739_v60  ;;  %v677_v63 = vpop.f32.mrb[5].mxu0  ;;  %v741_v0 = vpop.f32.mrb[5].mxu1 }
 0x108   : > { %v678_v1 = vpop.f32.mrb[6].mxu0  ;;  %v742_v2 = vpop.f32.mrb[6].mxu1 }
 0x109   : > { %v934_v3 = vmul.f32 0.5, %v1639_v61  ;;  %v950_v4 = vmul.f32 0.5, %v1642_v62  ;;  %v1647_v5 = vadd.f32 %v1626_v42, %v678_v1  ;;  %v1650_v6 = vadd.f32 %v1626_v42, %v742_v2  ;;  %v680_v7 = vpop.f32.mrb[7].mxu0  ;;  %v744_v8 = vpop.f32.mrb[7].mxu1 }
 0x10b   : > { %1419 = vtanh.f32 %v934_v3  ;;  %v935_v9 = vmul.f32 0.5, %v1647_v5  ;;  %v951_v10 = vmul.f32 0.5, %v1650_v6 }
 0x10c   : > { %1421 = vtanh.f32 %v950_v4 }
 0x10d   : > { %v1412_v11 = vpop.eup %1411  ;;  %1423 = vtanh.f32 %v935_v9 }
 0x10e   : > { %v1414_v12 = vpop.eup %1413  ;;  %v996_v13 = vadd.f32 1.0, %v1412_v11  ;;  %1425 = vtanh.f32 %v951_v10  ;;  %v683_v14 = vpop.f32.mrb[8].mxu0 }
 0x10f   : > { %v747_v15 = vpop.f32.mrb[8].mxu1  ;;  %v1416_v16 = vpop.eup %1415  ;;  %v1012_v17 = vadd.f32 1.0, %v1414_v12  ;;  %v1655_v18 = vadd.f32 %v1626_v42, %v683_v14 }
 0x110   : > { %v1658_v19 = vadd.f32 %v1626_v42, %v747_v15  ;;  %v685_v20 = vpop.f32.mrb[9].mxu0  ;;  %v749_v21 = vpop.f32.mrb[9].mxu1  ;;  %v1028_v23 = vmul.f32 0.5, %v996_v13  ;;  %v997_v24 = vadd.f32 1.0, %v1416_v16 }
 0x111   : > { %v1418_v22 = vpop.eup %1417  ;;  %v686_v25 = vpop.f32.mrb[10].mxu0  ;;  %v1044_v27 = vmul.f32 0.5, %v1012_v17  ;;  %v936_v29 = vmul.f32 0.5, %v1655_v18 }
 0x112   : > { %v750_v26 = vpop.f32.mrb[10].mxu1  ;;  %v1013_v28 = vadd.f32 1.0, %v1418_v22  ;;  %v952_v30 = vmul.f32 0.5, %v1658_v19  ;;  %v688_v31 = vpop.f32.mrb[11].mxu0  ;;  %v1060_v33 = vmul.f32 %v1028_v23, %v900_v45  ;;  %v1029_v34 = vmul.f32 0.5, %v997_v24 }
 0x113   : > { %v752_v32 = vpop.f32.mrb[11].mxu1  ;;  %v1670_v35 = vadd.f32 %v1626_v42, %v686_v25  ;;  %v1673_v36 = vadd.f32 %v1626_v42, %v750_v26  ;;  %v1076_v37 = vmul.f32 %v1044_v27, %v1630_v46  ;;  %1427 = vtanh.f32 %v936_v29 }
 0x114   : > { %v1045_v38 = vmul.f32 0.5, %v1013_v28  ;;  %1092 = vst [vmem:[%s1665_s20] sm:$0xff] %v1060_v33  ;;  %v1061_v39 = vmul.f32 %v1029_v34, %v901_v53  ;;  %1429 = vtanh.f32 %v952_v30 }
 0x115   : > { %v937_v40 = vmul.f32 0.5, %v1670_v35  ;;  %v953_v41 = vmul.f32 0.5, %v1673_v36  ;;  %v1420_v43 = vpop.eup %1419  ;;  %1108 = vst [vmem:[%s1665_s20 + $0x80] sm:$0xff] %v1076_v37 }
 0x116   : > { %v1077_v44 = vmul.f32 %v1045_v38, %v1635_v54  ;;  %v1422_v45 = vpop.eup %1421  ;;  %1093 = vst [vmem:[%s1665_s20 + $0x8] sm:$0xff] %v1061_v39  ;;  %v998_v47 = vadd.f32 1.0, %v1420_v43  ;;  %v691_v48 = vpop.f32.mrb[12].mxu0 }
 0x117   : > { %1431 = vtanh.f32 %v937_v40  ;;  %v755_v46 = vpop.f32.mrb[12].mxu1  ;;  %v1424_v49 = vpop.eup %1423  ;;  %v1014_v50 = vadd.f32 1.0, %v1422_v45  ;;  %v1684_v51 = vadd.f32 %v1626_v42, %v691_v48 }
 0x118   : > { %1109 = vst [vmem:[%s1665_s20 + $0x88] sm:$0xff] %v1077_v44  ;;  %1433 = vtanh.f32 %v953_v41  ;;  %v1687_v52 = vadd.f32 %v1626_v42, %v755_v46  ;;  %v693_v53 = vpop.f32.mrb[13].mxu0  ;;  %v757_v55 = vpop.f32.mrb[13].mxu1  ;;  %v1030_v54 = vmul.f32 0.5, %v998_v47  ;;  %v999_v57 = vadd.f32 1.0, %v1424_v49 }
 0x119   : > { %v1426_v56 = vpop.eup %1425  ;;  %v694_v58 = vpop.f32.mrb[14].mxu0  ;;  %v1046_v60 = vmul.f32 0.5, %v1014_v50  ;;  %v938_v0 = vmul.f32 0.5, %v1684_v51 }
 0x11a   : > { %v758_v59 = vpop.f32.mrb[14].mxu1  ;;  %v1015_v63 = vadd.f32 1.0, %v1426_v56  ;;  %v954_v1 = vmul.f32 0.5, %v1687_v52  ;;  %v696_v2 = vpop.f32.mrb[15].mxu0  ;;  %v1062_v4 = vmul.f32 %v1030_v54, %v1639_v61  ;;  %v1031_v7 = vmul.f32 0.5, %v999_v57 }
 0x11b   : > { %v760_v3 = vpop.f32.mrb[15].mxu1  ;;  %v1693_v8 = vadd.f32 %v1626_v42, %v694_v58  ;;  %v1696_v9 = vadd.f32 %v1626_v42, %v758_v59  ;;  %v1078_v10 = vmul.f32 %v1046_v60, %v1642_v62  ;;  %1435 = vtanh.f32 %v938_v0 }
 0x11c   : > { %v1047_v11 = vmul.f32 0.5, %v1015_v63  ;;  %1094 = vst [vmem:[%s1665_s20 + $0x10] sm:$0xff] %v1062_v4  ;;  %v1063_v12 = vmul.f32 %v1031_v7, %v1647_v5  ;;  %1437 = vtanh.f32 %v954_v1 }
 0x11d   : > { %v939_v13 = vmul.f32 0.5, %v1693_v8  ;;  %v955_v61 = vmul.f32 0.5, %v1696_v9  ;;  %v1428_v14 = vpop.eup %1427  ;;  %1110 = vst [vmem:[%s1665_s20 + $0x90] sm:$0xff] %v1078_v10 }
 0x11e   : > { %v1079_v15 = vmul.f32 %v1047_v11, %v1650_v6  ;;  %v1430_v16 = vpop.eup %1429  ;;  %1095 = vst [vmem:[%s1665_s20 + $0x18] sm:$0xff] %v1063_v12  ;;  %v1000_v17 = vadd.f32 1.0, %v1428_v14  ;;  %v699_v62 = vpop.f32.mrb[16].mxu0 }
 0x11f   : > { %1439 = vtanh.f32 %v939_v13  ;;  %v763_v20 = vpop.f32.mrb[16].mxu1  ;;  %v1016_v21 = vadd.f32 1.0, %v1430_v16  ;;  %v1708_v5 = vadd.f32 %v1626_v42, %v699_v62  ;;  %v701_v23 = vpop.f32.mrb[17].mxu0 }
 0x120   : > { %1111 = vst [vmem:[%s1665_s20 + $0x98] sm:$0xff] %v1079_v15  ;;  %1441 = vtanh.f32 %v955_v61  ;;  %v1711_v22 = vadd.f32 %v1626_v42, %v763_v20  ;;  %v765_v24 = vpop.f32.mrb[17].mxu1  ;;  %v1032_v26 = vmul.f32 0.5, %v1000_v17  ;;  %v702_v6 = vpop.f32.mrb[18].mxu0 }
 0x121   : > { %v1432_v25 = vpop.eup %1431  ;;  %v766_v27 = vpop.f32.mrb[18].mxu1  ;;  %v1048_v29 = vmul.f32 0.5, %v1016_v21  ;;  %v940_v31 = vmul.f32 0.5, %v1708_v5  ;;  %v1717_v39 = vadd.f32 %v1626_v42, %v702_v6 }
 0x122   : > { %v1434_v28 = vpop.eup %1433  ;;  %v1001_v30 = vadd.f32 1.0, %v1432_v25  ;;  %v956_v32 = vmul.f32 0.5, %v1711_v22  ;;  %v704_v33 = vpop.f32.mrb[19].mxu0  ;;  %v1064_v37 = vmul.f32 %v1032_v26, %v1655_v18  ;;  %v1720_v40 = vadd.f32 %v1626_v42, %v766_v27 }
 0x123   : > { %v768_v34 = vpop.f32.mrb[19].mxu1  ;;  %v1017_v38 = vadd.f32 1.0, %v1434_v28  ;;  %v1080_v41 = vmul.f32 %v1048_v29, %v1658_v19  ;;  %1443 = vtanh.f32 %v940_v31  ;;  %v941_v45 = vmul.f32 0.5, %v1717_v39 }
 0x124   : > { %v1033_v43 = vmul.f32 0.5, %v1001_v30  ;;  %1096 = vst [vmem:[%s1665_s20 + $0x20] sm:$0xff] %v1064_v37  ;;  %1445 = vtanh.f32 %v956_v32  ;;  %v957_v47 = vmul.f32 0.5, %v1720_v40 }
 0x125   : > { %v1049_v44 = vmul.f32 0.5, %v1017_v38  ;;  %v1436_v18 = vpop.eup %1435  ;;  %1112 = vst [vmem:[%s1665_s20 + $0xa0] sm:$0xff] %v1080_v41  ;;  %1447 = vtanh.f32 %v941_v45 }
 0x126   : > { %v1065_v48 = vmul.f32 %v1033_v43, %v1670_v35  ;;  %v1438_v46 = vpop.eup %1437  ;;  %v1002_v50 = vadd.f32 1.0, %v1436_v18  ;;  %v707_v19 = vpop.f32.mrb[20].mxu0  ;;  %1449 = vtanh.f32 %v957_v47 }
 0x127   : > { %v1081_v49 = vmul.f32 %v1049_v44, %v1673_v36  ;;  %v771_v53 = vpop.f32.mrb[20].mxu1  ;;  %v1018_v55 = vadd.f32 1.0, %v1438_v46  ;;  %v1731_v56 = vadd.f32 %v1626_v42, %v707_v19  ;;  %v709_v57 = vpop.f32.mrb[21].mxu0 }
 0x128   : > { %1097 = vst [vmem:[%s1665_s20 + $0x28] sm:$0xff] %v1065_v48  ;;  %v1734_v54 = vadd.f32 %v1626_v42, %v771_v53  ;;  %v773_v58 = vpop.f32.mrb[21].mxu1  ;;  %v1034_v35 = vmul.f32 0.5, %v1002_v50  ;;  %v710_v60 = vpop.f32.mrb[22].mxu0 }
 0x129   : > { %v1440_v59 = vpop.eup %1439  ;;  %1113 = vst [vmem:[%s1665_s20 + $0xa8] sm:$0xff] %v1081_v49  ;;  %v774_v36 = vpop.f32.mrb[22].mxu1  ;;  %v1050_v0 = vmul.f32 0.5, %v1018_v55  ;;  %v942_v2 = vmul.f32 0.5, %v1731_v56  ;;  %v1741_v12 = vadd.f32 %v1626_v42, %v710_v60 }
 0x12a   : > { %v1442_v63 = vpop.eup %1441  ;;  %v1003_v1 = vadd.f32 1.0, %v1440_v59  ;;  %v958_v3 = vmul.f32 0.5, %v1734_v54  ;;  %v712_v4 = vpop.f32.mrb[23].mxu0  ;;  %v1066_v10 = vmul.f32 %v1034_v35, %v1684_v51  ;;  %v1744_v13 = vadd.f32 %v1626_v42, %v774_v36 }
 0x12b   : > { %v776_v7 = vpop.f32.mrb[23].mxu1  ;;  %v1019_v11 = vadd.f32 1.0, %v1442_v63  ;;  %v1082_v61 = vmul.f32 %v1050_v0, %v1687_v52  ;;  %1451 = vtanh.f32 %v942_v2  ;;  %v943_v16 = vmul.f32 0.5, %v1741_v12 }
 0x12c   : > { %v1035_v14 = vmul.f32 0.5, %v1003_v1  ;;  %1098 = vst [vmem:[%s1665_s20 + $0x30] sm:$0xff] %v1066_v10  ;;  %1453 = vtanh.f32 %v958_v3  ;;  %v959_v17 = vmul.f32 0.5, %v1744_v13 }
 0x12d   : > { %v1051_v15 = vmul.f32 0.5, %v1019_v11  ;;  %v1444_v51 = vpop.eup %1443  ;;  %1114 = vst [vmem:[%s1665_s20 + $0xb0] sm:$0xff] %v1082_v61  ;;  %1455 = vtanh.f32 %v943_v16 }
 0x12e   : > { %v1067_v62 = vmul.f32 %v1035_v14, %v1693_v8  ;;  %v1446_v20 = vpop.eup %1445  ;;  %v1004_v23 = vadd.f32 1.0, %v1444_v51  ;;  %v715_v52 = vpop.f32.mrb[24].mxu0  ;;  %1457 = vtanh.f32 %v959_v17 }
 0x12f   : > { %v1083_v21 = vmul.f32 %v1051_v15, %v1696_v9  ;;  %v779_v24 = vpop.f32.mrb[24].mxu1  ;;  %v1020_v25 = vadd.f32 1.0, %v1446_v20  ;;  %v1755_v26 = vadd.f32 %v1626_v42, %v715_v52  ;;  %v717_v27 = vpop.f32.mrb[25].mxu0 }
 0x130   : > { %1099 = vst [vmem:[%s1665_s20 + $0x38] sm:$0xff] %v1067_v62  ;;  %v1758_v6 = vadd.f32 %v1626_v42, %v779_v24  ;;  %v781_v28 = vpop.f32.mrb[25].mxu1  ;;  %v1448_v29 = vpop.eup %1447  ;;  %v1036_v8 = vmul.f32 0.5, %v1004_v23 }
 0x131   : > { %1115 = vst [vmem:[%s1665_s20 + $0xb8] sm:$0xff] %v1083_v21  ;;  %v718_v30 = vpop.f32.mrb[26].mxu0  ;;  %v782_v9 = vpop.f32.mrb[26].mxu1  ;;  %v1052_v32 = vmul.f32 0.5, %v1020_v25  ;;  %v1005_v33 = vadd.f32 1.0, %v1448_v29  ;;  %v944_v34 = vmul.f32 0.5, %v1755_v26 }
 0x132   : > { %v1450_v31 = vpop.eup %1449  ;;  %v960_v37 = vmul.f32 0.5, %v1758_v6  ;;  %v720_v38 = vpop.f32.mrb[27].mxu0  ;;  %v1068_v43 = vmul.f32 %v1036_v8, %v1708_v5  ;;  %v1765_v45 = vadd.f32 %v1626_v42, %v718_v30  ;;  %v1768_v47 = vadd.f32 %v1626_v42, %v782_v9 }
 0x133   : > { %v784_v41 = vpop.f32.mrb[27].mxu1  ;;  %v1021_v44 = vadd.f32 1.0, %v1450_v31  ;;  %v1084_v18 = vmul.f32 %v1052_v32, %v1711_v22  ;;  %v1037_v48 = vmul.f32 0.5, %v1005_v33  ;;  %1459 = vtanh.f32 %v944_v34 }
 0x134   : > { %1100 = vst [vmem:[%s1665_s20 + $0x40] sm:$0xff] %v1068_v43  ;;  %1461 = vtanh.f32 %v960_v37  ;;  %v945_v49 = vmul.f32 0.5, %v1765_v45  ;;  %v961_v50 = vmul.f32 0.5, %v1768_v47 }
 0x135   : > { %v1053_v46 = vmul.f32 0.5, %v1021_v44  ;;  %v1452_v5 = vpop.eup %1451  ;;  %1116 = vst [vmem:[%s1665_s20 + $0xc0] sm:$0xff] %v1084_v18  ;;  %v1069_v19 = vmul.f32 %v1037_v48, %v1717_v39 }
 0x136   : > { %v1454_v53 = vpop.eup %1453  ;;  %v1006_v57 = vadd.f32 1.0, %v1452_v5  ;;  %1463 = vtanh.f32 %v945_v49  ;;  %v723_v22 = vpop.f32.mrb[28].mxu0 }
 0x137   : > { %v1085_v55 = vmul.f32 %v1053_v46, %v1720_v40  ;;  %v787_v58 = vpop.f32.mrb[28].mxu1  ;;  %1101 = vst [vmem:[%s1665_s20 + $0x48] sm:$0xff] %v1069_v19  ;;  %v1022_v59 = vadd.f32 1.0, %v1454_v53  ;;  %1465 = vtanh.f32 %v961_v50  ;;  %v1779_v35 = vadd.f32 %v1626_v42, %v723_v22  ;;  %v725_v36 = vpop.f32.mrb[29].mxu0 }
 0x138   : > { %v1782_v60 = vadd.f32 %v1626_v42, %v787_v58  ;;  %v789_v63 = vpop.f32.mrb[29].mxu1  ;;  %v1456_v0 = vpop.eup %1455  ;;  %v1038_v39 = vmul.f32 0.5, %v1006_v57 }
 0x139   : > { %1117 = vst [vmem:[%s1665_s20 + $0xc8] sm:$0xff] %v1085_v55  ;;  %v726_v1 = vpop.f32.mrb[30].mxu0  ;;  %v790_v40 = vpop.f32.mrb[30].mxu1  ;;  %v1054_v3 = vmul.f32 0.5, %v1022_v59  ;;  %v1007_v4 = vadd.f32 1.0, %v1456_v0  ;;  %v946_v7 = vmul.f32 0.5, %v1779_v35 }
 0x13a   : > { %v1458_v2 = vpop.eup %1457  ;;  %v962_v10 = vmul.f32 0.5, %v1782_v60  ;;  %v728_v11 = vpop.f32.mrb[31].mxu0  ;;  %v1070_v14 = vmul.f32 %v1038_v39, %v1731_v56  ;;  %v915_v16 = vadd.f32 %v1626_v42, %v726_v1  ;;  %v931_v17 = vadd.f32 %v1626_v42, %v790_v40 }
 0x13b   : > { %v792_v61 = vpop.f32.mrb[31].mxu1  ;;  %v1023_v15 = vadd.f32 1.0, %v1458_v2  ;;  %v1086_v51 = vmul.f32 %v1054_v3, %v1734_v54  ;;  %v1039_v62 = vmul.f32 0.5, %v1007_v4  ;;  %1467 = vtanh.f32 %v946_v7 }
 0x13c   : > { %1102 = vst [vmem:[%s1665_s20 + $0x50] sm:$0xff] %v1070_v14  ;;  %1469 = vtanh.f32 %v962_v10  ;;  %v947_v21 = vmul.f32 0.5, %v915_v16  ;;  %v963_v23 = vmul.f32 0.5, %v931_v17 }
 0x13d   : > { %v1055_v20 = vmul.f32 0.5, %v1023_v15  ;;  %v1460_v52 = vpop.eup %1459  ;;  %1118 = vst [vmem:[%s1665_s20 + $0xd0] sm:$0xff] %v1086_v51  ;;  %v1071_v56 = vmul.f32 %v1039_v62, %v1741_v12 }
 0x13e   : > { %v1462_v24 = vpop.eup %1461  ;;  %v1008_v42 = vadd.f32 1.0, %v1460_v52  ;;  %1471 = vtanh.f32 %v947_v21 }
 0x13f   : > { %v1087_v25 = vmul.f32 %v1055_v20, %v1744_v13  ;;  %1103 = vst [vmem:[%s1665_s20 + $0x58] sm:$0xff] %v1071_v56  ;;  %v1024_v54 = vadd.f32 1.0, %v1462_v24  ;;  %1473 = vtanh.f32 %v963_v23 }
 0x140   : > { %v1464_v27 = vpop.eup %1463  ;;  %v1040_v28 = vmul.f32 0.5, %v1008_v42 }
 0x141   : > { %1119 = vst [vmem:[%s1665_s20 + $0xd8] sm:$0xff] %v1087_v25  ;;  %v1466_v29 = vpop.eup %1465  ;;  %v1056_v8 = vmul.f32 0.5, %v1024_v54  ;;  %v1009_v30 = vadd.f32 1.0, %v1464_v27 }
 0x142   : > { %v1072_v12 = vmul.f32 %v1040_v28, %v1755_v26  ;;  %v1025_v9 = vadd.f32 1.0, %v1466_v29 }
 0x143   : > { %v1088_v13 = vmul.f32 %v1056_v8, %v1758_v6  ;;  %v1041_v31 = vmul.f32 0.5, %v1009_v30 }
 0x144   : > { %1104 = vst [vmem:[%s1665_s20 + $0x60] sm:$0xff] %v1072_v12  ;;  %v1057_v32 = vmul.f32 0.5, %v1025_v9 }
 0x145   : > { %v1468_v33 = vpop.eup %1467  ;;  %1120 = vst [vmem:[%s1665_s20 + $0xe0] sm:$0xff] %v1088_v13  ;;  %v1073_v34 = vmul.f32 %v1041_v31, %v1765_v45 }
 0x146   : > { %v1470_v37 = vpop.eup %1469  ;;  %v1089_v38 = vmul.f32 %v1057_v32, %v1768_v47  ;;  %v1010_v41 = vadd.f32 1.0, %v1468_v33 }
 0x147   : > { %1105 = vst [vmem:[%s1665_s20 + $0x68] sm:$0xff] %v1073_v34  ;;  %v1026_v43 = vadd.f32 1.0, %v1470_v37 }
 0x148   : > { %v1472_v26 = vpop.eup %1471  ;;  %1121 = vst [vmem:[%s1665_s20 + $0xe8] sm:$0xff] %v1089_v38  ;;  %v1042_v6 = vmul.f32 0.5, %v1010_v41 }
 0x149   : > { %v1474_v44 = vpop.eup %1473  ;;  %v1058_v18 = vmul.f32 0.5, %v1026_v43  ;;  %v1011_v48 = vadd.f32 1.0, %v1472_v26 }
 0x14a   : > { %v1074_v46 = vmul.f32 %v1042_v6, %v1779_v35  ;;  %v1027_v49 = vadd.f32 1.0, %v1474_v44 }
 0x14b   : > { %v1090_v45 = vmul.f32 %v1058_v18, %v1782_v60  ;;  %v1043_v50 = vmul.f32 0.5, %v1011_v48 }
 0x14c   : > { %1106 = vst [vmem:[%s1665_s20 + $0x70] sm:$0xff] %v1074_v46  ;;  %v1059_v47 = vmul.f32 0.5, %v1027_v49 }
 0x14d   : > { %1122 = vst [vmem:[%s1665_s20 + $0xf0] sm:$0xff] %v1090_v45  ;;  %v1075_v5 = vmul.f32 %v1043_v50, %v915_v16 }
 0x14e   : > { %v1091_v19 = vmul.f32 %v1059_v47, %v931_v17 }
 0x14f   : > { %1107 = vst [vmem:[%s1665_s20 + $0x78] sm:$0xff] %v1075_v5 }
 0x150   : > { %1123 = vst [vmem:[%s1665_s20 + $0xf8] sm:$0xff] %v1091_v19 }
 0x151 PF: > { %s13_s14 = sadd.s32 1, %s1497_s14   ;;  %s1824_s12 = smov %s1493_s13 }
 0x152   : > { %p10_p5 = scmp.ge.s32.totalorder %s13_s14, 10   ;;  %s1825_s13 = smov %s1827_s15 }
 0x154   :  { %12 = sbr.rel (!%p10_p5) target bundleno = 2 (0x2), region = 76 }

// kernel: _lambda_.39
= control target key start
LH: loop header
LB: loop body
LE: loop exit
PB: predicated region body
PF: predicated region fallthrough
CT: control target
= control target key end

     0   :  { %s1092_s21 = smov 0   ;;  %s1500_s0 = inlined_call_operand.vmem [shape: f32[2,17,16,32], index: 0, kind: input, shape index: {}]   ;;  %s1501_s1 = inlined_call_operand.vmem [shape: f32[2,17,16,32], index: 1, kind: input, shape index: {}]   ;;  %s1502_s2 = inlined_call_operand.vmem [shape: f32[2,17,16,32], index: 2, kind: input, shape index: {}]   ;;  %s1503_s3 = inlined_call_operand.vmem [shape: f32[2,17,16,32], index: 3, kind: input, shape index: {}]   ;;  %s1504_s4 = inlined_call_operand.vmem [shape: f32[2,17,16,32], index: 4, kind: input, shape index: {}]   ;;  %s1505_s5 = inlined_call_operand.vmem [shape: f32[2,17,16,32], index: 5, kind: input, shape index: {}]   ;;  %s1506_s6 = inlined_call_operand.vmem [shape: f32[2,16,16,32], index: 6, kind: output, shape index: {}]  }
   0x1 LB: > { %s1024_s22 = sadd.s32 4294967295, %s1055_s21   ;;  %p1028_p0 = scmp.ge.s32.totalorder %s1055_s21, 1  ;;  %s1055_s21 = sphi %s1092_s21, %s16_s21  }
   0x2   : > { %p262_p1 = scmp.lt.s32.totalorder %s1055_s21, 3 }
   0x4   : > { %p263_p2 = pnand %p1028_p0, %p262_p1 }
   0x5   : > { %p317_p3 = scmp.lt.s32.totalorder (!%p263_p2), %s1024_s22, 1  ;;  %vm876_vm0 = vcmask (!%p263_p2), 261120  }
   0x6   : > { %266 = sbr.rel (%p263_p2) target bundleno = 112 (0x70), region = 44 }
   0xd   : > { %s1508_s22 = smov (!%p317_p3, %s1024_s22), 1 }
   0xe   : > { %s1040_s23 = smul.u32 272, %s1508_s22  ;;  %s1039_s18 = sshll.u32 %s1508_s22, 8 }
   0xf   : > { %s1178_s22 = scalar_lea.vmem %s1506_s6, %s1039_s18 }
  0x10   : > { %s1106_s26 = scalar_lea.vmem %s1500_s0, %s1040_s23  ;;  %s1111_s29 = scalar_lea.vmem %s1501_s1, %s1040_s23 }
  0x11   : > { %s1116_s8 = scalar_lea.vmem %s1502_s2, %s1040_s23  ;;  %s1121_s11 = scalar_lea.vmem %s1503_s3, %s1040_s23  ;;  %v352_v0 = vld [vmem:[%s1106_s26] sm:$0xff]  ;;  %v354_v2 = vld [vmem:[%s1106_s26 + $0x10] sm:$0xff]  ;;  %v353_v12 = vld [vmem:[%s1106_s26 + $0x8] sm:$0xff] }
  0x12   : > { %v386_v1 = vld [vmem:[%s1111_s29] sm:$0xff]  ;;  %s1128_s14 = scalar_lea.vmem %s1504_s4, %s1040_s23  ;;  %s1133_s17 = scalar_lea.vmem %s1505_s5, %s1040_s23  ;;  %v388_v3 = vld [vmem:[%s1111_s29 + $0x10] sm:$0xff]  ;;  %v387_v13 = vld [vmem:[%s1111_s29 + $0x8] sm:$0xff] }
  0x13   : > { %v420_v4 = vmul.f32 2.0, %v386_v1  ;;  %v422_v5 = vmul.f32 2.0, %v388_v3  ;;  %v488_v6 = vld [vmem:[%s1116_s8] sm:$0xff]  ;;  %v490_v10 = vld [vmem:[%s1116_s8 + $0x10] sm:$0xff]  ;;  %v355_v16 = vld [vmem:[%s1106_s26 + $0x18] sm:$0xff]  ;;  %v421_v18 = vmul.f32 2.0, %v387_v13 }
  0x14   : > { %v556_v7 = vld [vmem:[%s1121_s11] sm:$0xff]  ;;  %v389_v17 = vld [vmem:[%s1111_s29 + $0x18] sm:$0xff]  ;;  %v489_v21 = vld [vmem:[%s1116_s8 + $0x8] sm:$0xff] }
  0x15   : > { %v588_v8 = vld [vmem:[%s1128_s14] sm:$0xff]  ;;  %v454_v9 = vadd.f32 %v420_v4, %v352_v0  ;;  %v456_v14 = vadd.f32 %v422_v5, %v354_v2  ;;  %v423_v20 = vmul.f32 2.0, %v389_v17  ;;  %v557_v22 = vld [vmem:[%s1121_s11 + $0x8] sm:$0xff]  ;;  %v455_v24 = vadd.f32 %v421_v18, %v353_v12  ;;  %v491_v25 = vld [vmem:[%s1116_s8 + $0x18] sm:$0xff] }
  0x16   : > { %v620_v11 = vmul.f32 2.0, %v588_v8  ;;  %v684_v15 = vld [vmem:[%s1133_s17] sm:$0xff]  ;;  %v589_v23 = vld [vmem:[%s1128_s14 + $0x8] sm:$0xff]  ;;  %v558_v34 = vld [vmem:[%s1121_s11 + $0x10] sm:$0xff] }
  0x17   : > { %v621_v26 = vmul.f32 2.0, %v589_v23  ;;  %v356_v27 = vld [vmem:[%s1106_s26 + $0x20] sm:$0xff]  ;;  %v522_v29 = vadd.f32 %v488_v6, %v454_v9  ;;  %v457_v31 = vadd.f32 %v423_v20, %v355_v16  ;;  %v685_v32 = vld [vmem:[%s1133_s17 + $0x8] sm:$0xff]  ;;  %v590_v35 = vld [vmem:[%s1128_s14 + $0x10] sm:$0xff]  ;;  %v524_v36 = vadd.f32 %v490_v10, %v456_v14 }
  0x18   : > { %v652_v19 = vadd.f32 %v620_v11, %v556_v7  ;;  %v390_v28 = vld [vmem:[%s1111_s29 + $0x20] sm:$0xff]  ;;  %v622_v39 = vmul.f32 2.0, %v590_v35  ;;  %v357_v40 = vld [vmem:[%s1106_s26 + $0x28] sm:$0xff]  ;;  %v523_v43 = vadd.f32 %v489_v21, %v455_v24  ;;  %v686_v45 = vld [vmem:[%s1133_s17 + $0x10] sm:$0xff] }
  0x19   : > { %v424_v33 = vmul.f32 2.0, %v390_v28  ;;  %v653_v37 = vadd.f32 %v621_v26, %v557_v22  ;;  %v492_v38 = vld [vmem:[%s1116_s8 + $0x20] sm:$0xff]  ;;  %v391_v41 = vld [vmem:[%s1111_s29 + $0x28] sm:$0xff]  ;;  %v559_v47 = vld [vmem:[%s1121_s11 + $0x18] sm:$0xff]  ;;  %v525_v49 = vadd.f32 %v491_v25, %v457_v31 }
  0x1a   : > { %v716_v30 = vadd.f32 %v684_v15, %v652_v19  ;;  %v425_v46 = vmul.f32 2.0, %v391_v41  ;;  %v591_v48 = vld [vmem:[%s1128_s14 + $0x18] sm:$0xff]  ;;  %v654_v51 = vadd.f32 %v622_v39, %v558_v34  ;;  %v493_v52 = vld [vmem:[%s1116_s8 + $0x28] sm:$0xff]  ;;  %v358_v54 = vld [vmem:[%s1106_s26 + $0x30] sm:$0xff] }
  0x1b   : > { %v458_v44 = vadd.f32 %v424_v33, %v356_v27  ;;  %v717_v50 = vadd.f32 %v685_v32, %v653_v37  ;;  %v623_v53 = vmul.f32 2.0, %v591_v48  ;;  %v392_v55 = vld [vmem:[%s1111_s29 + $0x30] sm:$0xff]  ;;  %v687_v59 = vld [vmem:[%s1133_s17 + $0x18] sm:$0xff]  ;;  %v560_v61 = vld [vmem:[%s1121_s11 + $0x20] sm:$0xff] }
  0x1c   : > { %v748_v42 = vmul.f32 2.0, %v716_v30  ;;  %v459_v58 = vadd.f32 %v425_v46, %v357_v40  ;;  %v426_v60 = vmul.f32 2.0, %v392_v55  ;;  %v592_v62 = vld [vmem:[%s1128_s14 + $0x20] sm:$0xff]  ;;  %v718_v0 = vadd.f32 %v686_v45, %v654_v51  ;;  %v494_v2 = vld [vmem:[%s1116_s8 + $0x30] sm:$0xff]  ;;  %v359_v4 = vld [vmem:[%s1106_s26 + $0x38] sm:$0xff] }
  0x1d   : > { %v526_v57 = vadd.f32 %v492_v38, %v458_v44  ;;  %v749_v63 = vmul.f32 2.0, %v717_v50  ;;  %v655_v1 = vadd.f32 %v623_v53, %v559_v47  ;;  %v624_v3 = vmul.f32 2.0, %v592_v62  ;;  %v393_v5 = vld [vmem:[%s1111_s29 + $0x38] sm:$0xff]  ;;  %v688_v9 = vld [vmem:[%s1133_s17 + $0x20] sm:$0xff]  ;;  %v593_v11 = vld [vmem:[%s1128_s14 + $0x28] sm:$0xff] }
  0x1e   : > { %v780_v56 = vadd.f32 %v748_v42, %v522_v29  ;;  %v1171_v7 = vadd.f32 %v493_v52, %v459_v58  ;;  %v460_v8 = vadd.f32 %v426_v60, %v358_v54  ;;  %v427_v10 = vmul.f32 2.0, %v393_v5  ;;  %v495_v16 = vld [vmem:[%s1116_s8 + $0x38] sm:$0xff]  ;;  %v561_v17 = vld [vmem:[%s1121_s11 + $0x28] sm:$0xff]  ;;  %v394_v18 = vld [vmem:[%s1111_s29 + $0x40] sm:$0xff] }
  0x1f   : > { %v781_v12 = vadd.f32 %v749_v63, %v523_v43  ;;  %v750_v13 = vmul.f32 2.0, %v718_v0  ;;  %v719_v14 = vadd.f32 %v687_v59, %v655_v1  ;;  %v656_v15 = vadd.f32 %v624_v3, %v560_v61  ;;  %v689_v23 = vld [vmem:[%s1133_s17 + $0x28] sm:$0xff]  ;;  %v594_v24 = vld [vmem:[%s1128_s14 + $0x30] sm:$0xff]  ;;  %v360_v29 = vld [vmem:[%s1106_s26 + $0x40] sm:$0xff] }
  0x20   : > { %v812_v6 = vadd.f32 %v780_v56, %v524_v36  ;;  %v1183_v20 = vadd.f32 %v494_v2, %v460_v8  ;;  %v461_v21 = vadd.f32 %v427_v10, %v359_v4  ;;  %v625_v22 = vmul.f32 2.0, %v593_v11  ;;  %v562_v30 = vld [vmem:[%s1121_s11 + $0x30] sm:$0xff]  ;;  %v395_v31 = vld [vmem:[%s1111_s29 + $0x48] sm:$0xff]  ;;  %v595_v37 = vld [vmem:[%s1128_s14 + $0x38] sm:$0xff] }
  0x21   : > { %v813_v25 = vadd.f32 %v781_v12, %v525_v49  ;;  %v782_v26 = vadd.f32 %v750_v13, %v524_v36  ;;  %v751_v27 = vmul.f32 2.0, %v719_v14  ;;  %v720_v28 = vadd.f32 %v688_v9, %v656_v15  ;;  %v496_v41 = vld [vmem:[%s1116_s8 + $0x40] sm:$0xff]  ;;  %v690_v42 = vld [vmem:[%s1133_s17 + $0x30] sm:$0xff]  ;;  %v361_v43 = vld [vmem:[%s1106_s26 + $0x48] sm:$0xff] }
  0x22   : > { %v844_v19 = vmul.f32 0.0625, %v812_v6  ;;  %v1192_v32 = vadd.f32 %v495_v16, %v461_v21  ;;  %v657_v33 = vadd.f32 %v625_v22, %v561_v17  ;;  %v428_v34 = vmul.f32 2.0, %v394_v18  ;;  %v563_v48 = vld [vmem:[%s1121_s11 + $0x38] sm:$0xff]  ;;  %v396_v50 = vld [vmem:[%s1111_s29 + $0x50] sm:$0xff]  ;;  %v497_v53 = vld [vmem:[%s1116_s8 + $0x48] sm:$0xff] }
  0x23   : > { %v626_v35 = vmul.f32 2.0, %v594_v24  ;;  %v845_v36 = vmul.f32 0.0625, %v813_v25  ;;  %v814_v38 = vadd.f32 %v782_v26, %v526_v57  ;;  %v783_v39 = vadd.f32 %v751_v27, %v525_v49  ;;  %v596_v55 = vld [vmem:[%s1128_s14 + $0x40] sm:$0xff]  ;;  %v691_v61 = vld [vmem:[%s1133_s17 + $0x38] sm:$0xff]  ;;  %v362_v62 = vld [vmem:[%s1106_s26 + $0x50] sm:$0xff] }
  0x24   : > { %877 = vst.msk [vmem:[%s1178_s22] sm:$0xff] %vm876_vm0, %v844_v19  ;;  %v752_v40 = vmul.f32 2.0, %v720_v28  ;;  %v721_v44 = vadd.f32 %v689_v23, %v657_v33  ;;  %v462_v45 = vadd.f32 %v428_v34, %v360_v29  ;;  %v429_v47 = vmul.f32 2.0, %v395_v31  ;;  %v397_v63 = vld [vmem:[%s1111_s29 + $0x58] sm:$0xff]  ;;  %v564_v3 = vld [vmem:[%s1121_s11 + $0x40] sm:$0xff]  ;;  %v597_v4 = vld [vmem:[%s1128_s14 + $0x48] sm:$0xff] }
  0x25   : > { %v658_v46 = vadd.f32 %v626_v35, %v562_v30  ;;  %878 = vst.msk [vmem:[%s1178_s22 + $0x8] sm:$0xff] %vm876_vm0, %v845_v36  ;;  %v846_v51 = vmul.f32 0.0625, %v814_v38  ;;  %v815_v49 = vadd.f32 %v783_v39, %v1171_v7  ;;  %v627_v54 = vmul.f32 2.0, %v595_v37  ;;  %v498_v9 = vld [vmem:[%s1116_s8 + $0x50] sm:$0xff]  ;;  %v363_v11 = vld [vmem:[%s1106_s26 + $0x58] sm:$0xff]  ;;  %v398_v12 = vld [vmem:[%s1111_s29 + $0x60] sm:$0xff] }
  0x26   : > { %v784_v52 = vadd.f32 %v752_v40, %v526_v57  ;;  %v753_v56 = vmul.f32 2.0, %v721_v44  ;;  %v1205_v58 = vadd.f32 %v496_v41, %v462_v45  ;;  %v463_v60 = vadd.f32 %v429_v47, %v361_v43  ;;  %v692_v16 = vld [vmem:[%s1133_s17 + $0x40] sm:$0xff]  ;;  %v565_v17 = vld [vmem:[%s1121_s11 + $0x48] sm:$0xff]  ;;  %v499_v22 = vld [vmem:[%s1116_s8 + $0x58] sm:$0xff] }
  0x27   : > { %v722_v59 = vadd.f32 %v690_v42, %v658_v46  ;;  %879 = vst.msk [vmem:[%s1178_s22 + $0x10] sm:$0xff] %vm876_vm0, %v846_v51  ;;  %v847_v57 = vmul.f32 0.0625, %v815_v49  ;;  %v659_v1 = vadd.f32 %v627_v54, %v563_v48  ;;  %v430_v2 = vmul.f32 2.0, %v396_v50  ;;  %v364_v24 = vld [vmem:[%s1106_s26 + $0x60] sm:$0xff]  ;;  %v598_v25 = vld [vmem:[%s1128_s14 + $0x50] sm:$0xff]  ;;  %v693_v29 = vld [vmem:[%s1133_s17 + $0x48] sm:$0xff] }
  0x28   : > { %v816_v0 = vadd.f32 %v784_v52, %v1183_v20  ;;  %v785_v5 = vadd.f32 %v753_v56, %v1171_v7  ;;  %v1216_v8 = vadd.f32 %v497_v53, %v463_v60  ;;  %v628_v10 = vmul.f32 2.0, %v596_v55  ;;  %v500_v37 = vld [vmem:[%s1116_s8 + $0x60] sm:$0xff]  ;;  %v566_v36 = vld [vmem:[%s1121_s11 + $0x50] sm:$0xff]  ;;  %v599_v38 = vld [vmem:[%s1128_s14 + $0x58] sm:$0xff] }
  0x29   : > { %v754_v6 = vmul.f32 2.0, %v722_v59  ;;  %880 = vst.msk [vmem:[%s1178_s22 + $0x18] sm:$0xff] %vm876_vm0, %v847_v57  ;;  %v723_v14 = vadd.f32 %v691_v61, %v659_v1  ;;  %v464_v15 = vadd.f32 %v430_v2, %v362_v62  ;;  %v431_v7 = vmul.f32 2.0, %v397_v63  ;;  %v365_v43 = vld [vmem:[%s1106_s26 + $0x68] sm:$0xff]  ;;  %v400_v44 = vld [vmem:[%s1111_s29 + $0x70] sm:$0xff]  ;;  %v600_v51 = vld [vmem:[%s1128_s14 + $0x60] sm:$0xff] }
  0x2a   : > { %v848_v13 = vmul.f32 0.0625, %v816_v0  ;;  %v817_v18 = vadd.f32 %v785_v5, %v1192_v32  ;;  %v660_v21 = vadd.f32 %v628_v10, %v564_v3  ;;  %v629_v23 = vmul.f32 2.0, %v597_v4  ;;  %v694_v48 = vld [vmem:[%s1133_s17 + $0x50] sm:$0xff]  ;;  %v501_v54 = vld [vmem:[%s1116_s8 + $0x68] sm:$0xff]  ;;  %v695_v62 = vld [vmem:[%s1133_s17 + $0x58] sm:$0xff] }
  0x2b   : > { %v786_v19 = vadd.f32 %v754_v6, %v1183_v20  ;;  %v755_v26 = vmul.f32 2.0, %v723_v14  ;;  %v1232_v27 = vadd.f32 %v498_v9, %v464_v15  ;;  %v465_v28 = vadd.f32 %v431_v7, %v363_v11  ;;  %v399_v20 = vld [vmem:[%s1111_s29 + $0x68] sm:$0xff]  ;;  %v366_v56 = vld [vmem:[%s1106_s26 + $0x70] sm:$0xff]  ;;  %v568_v57 = vld [vmem:[%s1121_s11 + $0x60] sm:$0xff] }
  0x2c   : > { %881 = vst.msk [vmem:[%s1178_s22 + $0x20] sm:$0xff] %vm876_vm0, %v848_v13  ;;  %v432_v30 = vmul.f32 2.0, %v398_v12  ;;  %v849_v31 = vmul.f32 0.0625, %v817_v18  ;;  %v724_v34 = vadd.f32 %v692_v16, %v660_v21  ;;  %v661_v35 = vadd.f32 %v629_v23, %v565_v17  ;;  %v401_v0 = vld [vmem:[%s1111_s29 + $0x78] sm:$0xff]  ;;  %v502_v4 = vld [vmem:[%s1116_s8 + $0x70] sm:$0xff]  ;;  %v601_v6 = vld [vmem:[%s1128_s14 + $0x68] sm:$0xff] }
  0x2d   : > { %v818_v33 = vadd.f32 %v786_v19, %v1205_v58  ;;  %v787_v39 = vadd.f32 %v755_v26, %v1192_v32  ;;  %v1241_v40 = vadd.f32 %v499_v22, %v465_v28  ;;  %v630_v42 = vmul.f32 2.0, %v598_v25  ;;  %v567_v32 = vld [vmem:[%s1121_s11 + $0x58] sm:$0xff]  ;;  %v696_v12 = vld [vmem:[%s1133_s17 + $0x60] sm:$0xff]  ;;  %v569_v17 = vld [vmem:[%s1121_s11 + $0x68] sm:$0xff] }
  0x2e   : > { %v466_v41 = vadd.f32 %v432_v30, %v364_v24  ;;  %882 = vst.msk [vmem:[%s1178_s22 + $0x28] sm:$0xff] %vm876_vm0, %v849_v31  ;;  %v756_v46 = vmul.f32 2.0, %v724_v34  ;;  %v725_v47 = vadd.f32 %v693_v29, %v661_v35  ;;  %v433_v50 = vmul.f32 2.0, %v399_v20  ;;  %v367_v13 = vld [vmem:[%s1106_s26 + $0x78] sm:$0xff]  ;;  %v402_v18 = vld [vmem:[%s1111_s29 + $0x80] sm:$0xff]  ;;  %v697_v25 = vld [vmem:[%s1133_s17 + $0x68] sm:$0xff] }
  0x2f   : > { %v850_v45 = vmul.f32 0.0625, %v818_v33  ;;  %v819_v49 = vadd.f32 %v787_v39, %v1216_v8  ;;  %v662_v53 = vadd.f32 %v630_v42, %v566_v36  ;;  %v631_v55 = vmul.f32 2.0, %v599_v38  ;;  %v503_v23 = vld [vmem:[%s1116_s8 + $0x78] sm:$0xff]  ;;  %v368_v20 = vld [vmem:[%s1106_s26 + $0x80] sm:$0xff]  ;;  %v570_v31 = vld [vmem:[%s1121_s11 + $0x70] sm:$0xff] }
  0x30   : > { %v1251_v52 = vadd.f32 %v500_v37, %v466_v41  ;;  %v788_v59 = vadd.f32 %v756_v46, %v1205_v58  ;;  %v757_v60 = vmul.f32 2.0, %v725_v47  ;;  %v467_v61 = vadd.f32 %v433_v50, %v365_v43  ;;  %v403_v33 = vld [vmem:[%s1111_s29 + $0x88] sm:$0xff]  ;;  %v603_v38 = vld [vmem:[%s1128_s14 + $0x78] sm:$0xff]  ;;  %v504_v43 = vld [vmem:[%s1116_s8 + $0x80] sm:$0xff] }
  0x31   : > { %883 = vst.msk [vmem:[%s1178_s22 + $0x30] sm:$0xff] %vm876_vm0, %v850_v45  ;;  %v434_v63 = vmul.f32 2.0, %v400_v44  ;;  %v851_v1 = vmul.f32 0.0625, %v819_v49  ;;  %v726_v2 = vadd.f32 %v694_v48, %v662_v53  ;;  %v663_v3 = vadd.f32 %v631_v55, %v567_v32  ;;  %v698_v44 = vld [vmem:[%s1133_s17 + $0x70] sm:$0xff]  ;;  %v369_v45 = vld [vmem:[%s1106_s26 + $0x88] sm:$0xff]  ;;  %v571_v32 = vld [vmem:[%s1121_s11 + $0x78] sm:$0xff] }
  0x32   : > { %v632_v5 = vmul.f32 2.0, %v600_v51  ;;  %v820_v58 = vadd.f32 %v788_v59, %v1232_v27  ;;  %v789_v9 = vadd.f32 %v757_v60, %v1216_v8  ;;  %v1265_v10 = vadd.f32 %v501_v54, %v467_v61  ;;  %v602_v8 = vld [vmem:[%s1128_s14 + $0x70] sm:$0xff]  ;;  %v505_v54 = vld [vmem:[%s1116_s8 + $0x88] sm:$0xff] }
  0x33   : > { %v468_v11 = vadd.f32 %v434_v63, %v366_v56  ;;  %884 = vst.msk [vmem:[%s1178_s22 + $0x38] sm:$0xff] %vm876_vm0, %v851_v1  ;;  %v758_v14 = vmul.f32 2.0, %v726_v2  ;;  %v727_v15 = vadd.f32 %v695_v62, %v663_v3  ;;  %v435_v7 = vmul.f32 2.0, %v401_v0  ;;  %v604_v56 = vld [vmem:[%s1128_s14 + $0x80] sm:$0xff]  ;;  %v699_v63 = vld [vmem:[%s1133_s17 + $0x78] sm:$0xff] }
  0x34   : > { %v664_v16 = vadd.f32 %v632_v5, %v568_v57  ;;  %v852_v19 = vmul.f32 0.0625, %v820_v58  ;;  %v821_v21 = vadd.f32 %v789_v9, %v1241_v40  ;;  %v633_v24 = vmul.f32 2.0, %v601_v6  ;;  %v370_v57 = vld [vmem:[%s1106_s26 + $0x90] sm:$0xff]  ;;  %v405_v0 = vld [vmem:[%s1111_s29 + $0x98] sm:$0xff]  ;;  %v605_v5 = vld [vmem:[%s1128_s14 + $0x88] sm:$0xff] }
  0x35   : > { %v1275_v22 = vadd.f32 %v502_v4, %v468_v11  ;;  %v790_v26 = vadd.f32 %v758_v14, %v1232_v27  ;;  %v759_v28 = vmul.f32 2.0, %v727_v15  ;;  %v469_v30 = vadd.f32 %v435_v7, %v367_v13  ;;  %v572_v4 = vld [vmem:[%s1121_s11 + $0x80] sm:$0xff]  ;;  %v506_v11 = vld [vmem:[%s1116_s8 + $0x90] sm:$0xff]  ;;  %v371_v13 = vld [vmem:[%s1106_s26 + $0x98] sm:$0xff] }
  0x36   : > { %v728_v29 = vadd.f32 %v696_v12, %v664_v16  ;;  %885 = vst.msk [vmem:[%s1178_s22 + $0x40] sm:$0xff] %vm876_vm0, %v852_v19  ;;  %v853_v34 = vmul.f32 0.0625, %v821_v21  ;;  %v665_v35 = vadd.f32 %v633_v24, %v569_v17  ;;  %v436_v37 = vmul.f32 2.0, %v402_v18  ;;  %v406_v14 = vld [vmem:[%s1111_s29 + $0xa0] sm:$0xff]  ;;  %v573_v18 = vld [vmem:[%s1121_s11 + $0x88] sm:$0xff] }
  0x37   : > { %v634_v36 = vmul.f32 2.0, %v602_v8  ;;  %v822_v27 = vadd.f32 %v790_v26, %v1251_v52  ;;  %v791_v39 = vadd.f32 %v759_v28, %v1241_v40  ;;  %v1288_v42 = vadd.f32 %v503_v23, %v469_v30  ;;  %v404_v40 = vld [vmem:[%s1111_s29 + $0x90] sm:$0xff]  ;;  %v700_v17 = vld [vmem:[%s1133_s17 + $0x80] sm:$0xff]  ;;  %v507_v23 = vld [vmem:[%s1116_s8 + $0x98] sm:$0xff] }
  0x38   : > { %v760_v41 = vmul.f32 2.0, %v728_v29  ;;  %886 = vst.msk [vmem:[%s1178_s22 + $0x48] sm:$0xff] %vm876_vm0, %v853_v34  ;;  %v729_v46 = vadd.f32 %v697_v25, %v665_v35  ;;  %v470_v47 = vadd.f32 %v436_v37, %v368_v20  ;;  %v437_v50 = vmul.f32 2.0, %v403_v33  ;;  %v372_v25 = vld [vmem:[%s1106_s26 + $0xa0] sm:$0xff]  ;;  %v606_v26 = vld [vmem:[%s1128_s14 + $0x90] sm:$0xff]  ;;  %v701_v20 = vld [vmem:[%s1133_s17 + $0x88] sm:$0xff] }
  0x39   : > { %v666_v48 = vadd.f32 %v634_v36, %v570_v31  ;;  %v854_v51 = vmul.f32 0.0625, %v822_v27  ;;  %v823_v49 = vadd.f32 %v791_v39, %v1265_v10  ;;  %v635_v55 = vmul.f32 2.0, %v603_v38  ;;  %v508_v36 = vld [vmem:[%s1116_s8 + $0xa0] sm:$0xff]  ;;  %v574_v38 = vld [vmem:[%s1121_s11 + $0x90] sm:$0xff]  ;;  %v607_v27 = vld [vmem:[%s1128_s14 + $0x98] sm:$0xff] }
  0x3a   : > { %v792_v53 = vadd.f32 %v760_v41, %v1251_v52  ;;  %v761_v59 = vmul.f32 2.0, %v729_v46  ;;  %v1301_v60 = vadd.f32 %v504_v43, %v470_v47  ;;  %v471_v62 = vadd.f32 %v437_v50, %v369_v45  ;;  %v373_v45 = vld [vmem:[%s1106_s26 + $0xa8] sm:$0xff]  ;;  %v408_v46 = vld [vmem:[%s1111_s29 + $0xb0] sm:$0xff] }
  0x3b   : > { %v730_v61 = vadd.f32 %v698_v44, %v666_v48  ;;  %887 = vst.msk [vmem:[%s1178_s22 + $0x50] sm:$0xff] %vm876_vm0, %v854_v51  ;;  %v855_v52 = vmul.f32 0.0625, %v823_v49  ;;  %v667_v2 = vadd.f32 %v635_v55, %v571_v32  ;;  %v438_v3 = vmul.f32 2.0, %v404_v40  ;;  %v702_v32 = vld [vmem:[%s1133_s17 + $0x90] sm:$0xff]  ;;  %v608_v51 = vld [vmem:[%s1128_s14 + $0xa0] sm:$0xff]  ;;  %v509_v55 = vld [vmem:[%s1116_s8 + $0xa8] sm:$0xff] }
  0x3c   : > { %v824_v1 = vadd.f32 %v792_v53, %v1275_v22  ;;  %v793_v6 = vadd.f32 %v761_v59, %v1265_v10  ;;  %v1312_v9 = vadd.f32 %v505_v54, %v471_v62  ;;  %v636_v12 = vmul.f32 2.0, %v604_v56  ;;  %v374_v59 = vld [vmem:[%s1106_s26 + $0xb0] sm:$0xff] }
  0x3d   : > { %v762_v58 = vmul.f32 2.0, %v730_v61  ;;  %888 = vst.msk [vmem:[%s1178_s22 + $0x58] sm:$0xff] %vm876_vm0, %v855_v52  ;;  %v731_v16 = vadd.f32 %v699_v63, %v667_v2  ;;  %v472_v7 = vadd.f32 %v438_v3, %v370_v57  ;;  %v439_v10 = vmul.f32 2.0, %v405_v0  ;;  %v703_v57 = vld [vmem:[%s1133_s17 + $0x98] sm:$0xff]  ;;  %v576_v52 = vld [vmem:[%s1121_s11 + $0xa0] sm:$0xff] }
  0x3e   : > { %v856_v15 = vmul.f32 0.0625, %v824_v1  ;;  %v825_v8 = vadd.f32 %v793_v6, %v1288_v42  ;;  %v668_v21 = vadd.f32 %v636_v12, %v572_v4  ;;  %v637_v24 = vmul.f32 2.0, %v605_v5  ;;  %v409_v1 = vld [vmem:[%s1111_s29 + $0xb8] sm:$0xff]  ;;  %v510_v5 = vld [vmem:[%s1116_s8 + $0xb0] sm:$0xff] }
  0x3f   : > { %v794_v19 = vadd.f32 %v762_v58, %v1275_v22  ;;  %v763_v28 = vmul.f32 2.0, %v731_v16  ;;  %v1328_v29 = vadd.f32 %v506_v11, %v472_v7  ;;  %v473_v30 = vadd.f32 %v439_v10, %v371_v13  ;;  %v407_v22 = vld [vmem:[%s1111_s29 + $0xa8] sm:$0xff] }
  0x40   : > { %889 = vst.msk [vmem:[%s1178_s22 + $0x60] sm:$0xff] %vm876_vm0, %v856_v15  ;;  %v440_v31 = vmul.f32 2.0, %v406_v14  ;;  %v857_v33 = vmul.f32 0.0625, %v825_v8  ;;  %v732_v35 = vadd.f32 %v700_v17, %v668_v21  ;;  %v669_v37 = vadd.f32 %v637_v24, %v573_v18  ;;  %v609_v58 = vld [vmem:[%s1128_s14 + $0xa8] sm:$0xff]  ;;  %v704_v14 = vld [vmem:[%s1133_s17 + $0xa0] sm:$0xff]  ;;  %v375_v15 = vld [vmem:[%s1106_s26 + $0xb8] sm:$0xff] }
  0x41   : > { %v826_v34 = vadd.f32 %v794_v19, %v1301_v60  ;;  %v795_v39 = vadd.f32 %v763_v28, %v1288_v42  ;;  %v1337_v41 = vadd.f32 %v507_v23, %v473_v30  ;;  %v638_v44 = vmul.f32 2.0, %v606_v26  ;;  %v575_v42 = vld [vmem:[%s1121_s11 + $0x98] sm:$0xff]  ;;  %v577_v18 = vld [vmem:[%s1121_s11 + $0xa8] sm:$0xff]  ;;  %v410_v8 = vld [vmem:[%s1111_s29 + $0xc0] sm:$0xff] }
  0x42   : > { %v474_v43 = vadd.f32 %v440_v31, %v372_v25  ;;  %890 = vst.msk [vmem:[%s1178_s22 + $0x68] sm:$0xff] %vm876_vm0, %v857_v33  ;;  %v764_v48 = vmul.f32 2.0, %v732_v35  ;;  %v733_v50 = vadd.f32 %v701_v20, %v669_v37  ;;  %v441_v40 = vmul.f32 2.0, %v407_v22  ;;  %v511_v24 = vld [vmem:[%s1116_s8 + $0xb8] sm:$0xff]  ;;  %v705_v26 = vld [vmem:[%s1133_s17 + $0xa8] sm:$0xff]  ;;  %v376_v22 = vld [vmem:[%s1106_s26 + $0xc0] sm:$0xff] }
  0x43   : > { %v858_v47 = vmul.f32 0.0625, %v826_v34  ;;  %v827_v49 = vadd.f32 %v795_v39, %v1312_v9  ;;  %v670_v54 = vadd.f32 %v638_v44, %v574_v38  ;;  %v639_v56 = vmul.f32 2.0, %v607_v27  ;;  %v578_v33 = vld [vmem:[%s1121_s11 + $0xb0] sm:$0xff]  ;;  %v411_v34 = vld [vmem:[%s1111_s29 + $0xc8] sm:$0xff]  ;;  %v611_v27 = vld [vmem:[%s1128_s14 + $0xb8] sm:$0xff] }
  0x44   : > { %v1347_v53 = vadd.f32 %v508_v36, %v474_v43  ;;  %v796_v61 = vadd.f32 %v764_v48, %v1301_v60  ;;  %v765_v62 = vmul.f32 2.0, %v733_v50  ;;  %v475_v63 = vadd.f32 %v441_v40, %v373_v45  ;;  %v512_v45 = vld [vmem:[%s1116_s8 + $0xc0] sm:$0xff] }
  0x45   : > { %891 = vst.msk [vmem:[%s1178_s22 + $0x70] sm:$0xff] %vm876_vm0, %v858_v47  ;;  %v442_v0 = vmul.f32 2.0, %v408_v46  ;;  %v859_v2 = vmul.f32 0.0625, %v827_v49  ;;  %v734_v3 = vadd.f32 %v702_v32, %v670_v54  ;;  %v671_v4 = vadd.f32 %v639_v56, %v575_v42  ;;  %v706_v46 = vld [vmem:[%s1133_s17 + $0xb0] sm:$0xff]  ;;  %v377_v47 = vld [vmem:[%s1106_s26 + $0xc8] sm:$0xff]  ;;  %v579_v42 = vld [vmem:[%s1121_s11 + $0xb8] sm:$0xff] }
  0x46   : > { %v640_v6 = vmul.f32 2.0, %v608_v51  ;;  %v828_v60 = vadd.f32 %v796_v61, %v1328_v29  ;;  %v797_v11 = vadd.f32 %v765_v62, %v1312_v9  ;;  %v1361_v12 = vadd.f32 %v509_v55, %v475_v63  ;;  %v610_v9 = vld [vmem:[%s1128_s14 + $0xb0] sm:$0xff]  ;;  %v513_v55 = vld [vmem:[%s1116_s8 + $0xc8] sm:$0xff] }
  0x47   : > { %v476_v13 = vadd.f32 %v442_v0, %v374_v59  ;;  %892 = vst.msk [vmem:[%s1178_s22 + $0x78] sm:$0xff] %vm876_vm0, %v859_v2  ;;  %v766_v16 = vmul.f32 2.0, %v734_v3  ;;  %v735_v7 = vadd.f32 %v703_v57, %v671_v4  ;;  %v443_v10 = vmul.f32 2.0, %v409_v1  ;;  %v612_v59 = vld [vmem:[%s1128_s14 + $0xc0] sm:$0xff]  ;;  %v707_v0 = vld [vmem:[%s1133_s17 + $0xb8] sm:$0xff] }
  0x48   : > { %v672_v17 = vadd.f32 %v640_v6, %v576_v52  ;;  %v860_v19 = vmul.f32 0.0625, %v828_v60  ;;  %v829_v21 = vadd.f32 %v797_v11, %v1337_v41  ;;  %v641_v25 = vmul.f32 2.0, %v609_v58  ;;  %v378_v52 = vld [vmem:[%s1106_s26 + $0xd0] sm:$0xff]  ;;  %v413_v1 = vld [vmem:[%s1111_s29 + $0xd8] sm:$0xff]  ;;  %v613_v6 = vld [vmem:[%s1128_s14 + $0xc8] sm:$0xff] }
  0x49   : > { %v1371_v23 = vadd.f32 %v510_v5, %v476_v13  ;;  %v798_v28 = vadd.f32 %v766_v16, %v1328_v29  ;;  %v767_v30 = vmul.f32 2.0, %v735_v7  ;;  %v477_v31 = vadd.f32 %v443_v10, %v375_v15  ;;  %v580_v5 = vld [vmem:[%s1121_s11 + $0xc0] sm:$0xff]  ;;  %v514_v13 = vld [vmem:[%s1116_s8 + $0xd0] sm:$0xff]  ;;  %v379_v15 = vld [vmem:[%s1106_s26 + $0xd8] sm:$0xff] }
  0x4a   : > { %v736_v20 = vadd.f32 %v704_v14, %v672_v17  ;;  %893 = vst.msk [vmem:[%s1178_s22 + $0x80] sm:$0xff] %vm876_vm0, %v860_v19  ;;  %v861_v35 = vmul.f32 0.0625, %v829_v21  ;;  %v673_v37 = vadd.f32 %v641_v25, %v577_v18  ;;  %v444_v36 = vmul.f32 2.0, %v410_v8  ;;  %v414_v16 = vld [vmem:[%s1111_s29 + $0xe0] sm:$0xff]  ;;  %v581_v8 = vld [vmem:[%s1121_s11 + $0xc8] sm:$0xff] }
  0x4b   : > { %v642_v38 = vmul.f32 2.0, %v610_v9  ;;  %v830_v29 = vadd.f32 %v798_v28, %v1347_v53  ;;  %v799_v39 = vadd.f32 %v767_v30, %v1337_v41  ;;  %v1384_v44 = vadd.f32 %v511_v24, %v477_v31  ;;  %v412_v41 = vld [vmem:[%s1111_s29 + $0xd0] sm:$0xff]  ;;  %v708_v18 = vld [vmem:[%s1133_s17 + $0xc0] sm:$0xff]  ;;  %v515_v24 = vld [vmem:[%s1116_s8 + $0xd8] sm:$0xff] }
  0x4c   : > { %v768_v43 = vmul.f32 2.0, %v736_v20  ;;  %894 = vst.msk [vmem:[%s1178_s22 + $0x88] sm:$0xff] %vm876_vm0, %v861_v35  ;;  %v737_v48 = vadd.f32 %v705_v26, %v673_v37  ;;  %v478_v50 = vadd.f32 %v444_v36, %v376_v22  ;;  %v445_v40 = vmul.f32 2.0, %v411_v34  ;;  %v380_v26 = vld [vmem:[%s1106_s26 + $0xe0] sm:$0xff]  ;;  %v614_v28 = vld [vmem:[%s1128_s14 + $0xd0] sm:$0xff]  ;;  %v709_v22 = vld [vmem:[%s1133_s17 + $0xc8] sm:$0xff] }
  0x4d   : > { %v674_v32 = vadd.f32 %v642_v38, %v578_v33  ;;  %v862_v51 = vmul.f32 0.0625, %v830_v29  ;;  %v831_v49 = vadd.f32 %v799_v39, %v1361_v12  ;;  %v643_v56 = vmul.f32 2.0, %v611_v27  ;;  %v516_v38 = vld [vmem:[%s1116_s8 + $0xe0] sm:$0xff]  ;;  %v582_v27 = vld [vmem:[%s1121_s11 + $0xd0] sm:$0xff]  ;;  %v615_v29 = vld [vmem:[%s1128_s14 + $0xd8] sm:$0xff] }
  0x4e   : > { %v800_v54 = vadd.f32 %v768_v43, %v1347_v53  ;;  %v769_v61 = vmul.f32 2.0, %v737_v48  ;;  %v1397_v62 = vadd.f32 %v512_v45, %v478_v50  ;;  %v479_v57 = vadd.f32 %v445_v40, %v377_v47  ;;  %v381_v47 = vld [vmem:[%s1106_s26 + $0xe8] sm:$0xff]  ;;  %v416_v48 = vld [vmem:[%s1111_s29 + $0xf0] sm:$0xff] }
  0x4f   : > { %v738_v63 = vadd.f32 %v706_v46, %v674_v32  ;;  %895 = vst.msk [vmem:[%s1178_s22 + $0x90] sm:$0xff] %vm876_vm0, %v862_v51  ;;  %v863_v53 = vmul.f32 0.0625, %v831_v49  ;;  %v675_v3 = vadd.f32 %v643_v56, %v579_v42  ;;  %v446_v4 = vmul.f32 2.0, %v412_v41  ;;  %v710_v42 = vld [vmem:[%s1133_s17 + $0xd0] sm:$0xff]  ;;  %v616_v51 = vld [vmem:[%s1128_s14 + $0xe0] sm:$0xff]  ;;  %v517_v56 = vld [vmem:[%s1116_s8 + $0xe8] sm:$0xff] }
  0x50   : > { %v832_v2 = vadd.f32 %v800_v54, %v1371_v23  ;;  %v801_v58 = vadd.f32 %v769_v61, %v1361_v12  ;;  %v1408_v11 = vadd.f32 %v513_v55, %v479_v57  ;;  %v644_v14 = vmul.f32 2.0, %v612_v59  ;;  %v382_v61 = vld [vmem:[%s1106_s26 + $0xf0] sm:$0xff] }
  0x51   : > { %v770_v60 = vmul.f32 2.0, %v738_v63  ;;  %896 = vst.msk [vmem:[%s1178_s22 + $0x98] sm:$0xff] %vm876_vm0, %v863_v53  ;;  %v739_v17 = vadd.f32 %v707_v0, %v675_v3  ;;  %v480_v10 = vadd.f32 %v446_v4, %v378_v52  ;;  %v447_v12 = vmul.f32 2.0, %v413_v1  ;;  %v711_v52 = vld [vmem:[%s1133_s17 + $0xd8] sm:$0xff]  ;;  %v584_v53 = vld [vmem:[%s1121_s11 + $0xe0] sm:$0xff] }
  0x52   : > { %v864_v7 = vmul.f32 0.0625, %v832_v2  ;;  %v833_v9 = vadd.f32 %v801_v58, %v1384_v44  ;;  %v676_v21 = vadd.f32 %v644_v14, %v580_v5  ;;  %v645_v25 = vmul.f32 2.0, %v613_v6  ;;  %v417_v2 = vld [vmem:[%s1111_s29 + $0xf8] sm:$0xff]  ;;  %v518_v6 = vld [vmem:[%s1116_s8 + $0xf0] sm:$0xff] }
  0x53   : > { %v802_v19 = vadd.f32 %v770_v60, %v1371_v23  ;;  %v771_v30 = vmul.f32 2.0, %v739_v17  ;;  %v1424_v20 = vadd.f32 %v514_v13, %v480_v10  ;;  %v481_v31 = vadd.f32 %v447_v12, %v379_v15  ;;  %v415_v23 = vld [vmem:[%s1111_s29 + $0xe8] sm:$0xff] }
  0x54   : > { %897 = vst.msk [vmem:[%s1178_s22 + $0xa0] sm:$0xff] %vm876_vm0, %v864_v7  ;;  %v448_v33 = vmul.f32 2.0, %v414_v16  ;;  %v865_v34 = vmul.f32 0.0625, %v833_v9  ;;  %v740_v37 = vadd.f32 %v708_v18, %v676_v21  ;;  %v677_v36 = vadd.f32 %v645_v25, %v581_v8  ;;  %v617_v60 = vld [vmem:[%s1128_s14 + $0xe8] sm:$0xff]  ;;  %v712_v16 = vld [vmem:[%s1133_s17 + $0xe0] sm:$0xff]  ;;  %v383_v7 = vld [vmem:[%s1106_s26 + $0xf8] sm:$0xff] }
  0x55   : > { %v834_v35 = vadd.f32 %v802_v19, %v1397_v62  ;;  %v803_v39 = vadd.f32 %v771_v30, %v1384_v44  ;;  %v1433_v43 = vadd.f32 %v515_v24, %v481_v31  ;;  %v646_v46 = vmul.f32 2.0, %v614_v28  ;;  %v583_v44 = vld [vmem:[%s1121_s11 + $0xd8] sm:$0xff]  ;;  %v585_v8 = vld [vmem:[%s1121_s11 + $0xe8] sm:$0xff]  ;;  %v418_v9 = vld [vmem:[%s1111_s29 + $0x100] sm:$0xff] }
  0x56   : > { %v482_v45 = vadd.f32 %v448_v33, %v380_v26  ;;  %898 = vst.msk [vmem:[%s1178_s22 + $0xa8] sm:$0xff] %vm876_vm0, %v865_v34  ;;  %v772_v32 = vmul.f32 2.0, %v740_v37  ;;  %v741_v40 = vadd.f32 %v709_v22, %v677_v36  ;;  %v449_v41 = vmul.f32 2.0, %v415_v23  ;;  %v618_v19 = vld [vmem:[%s1128_s14 + $0xf0] sm:$0xff]  ;;  %v519_v25 = vld [vmem:[%s1116_s8 + $0xf8] sm:$0xff]  ;;  %v713_v28 = vld [vmem:[%s1133_s17 + $0xe8] sm:$0xff] }
  0x57   : > { %v866_v50 = vmul.f32 0.0625, %v834_v35  ;;  %v835_v49 = vadd.f32 %v803_v39, %v1408_v11  ;;  %v678_v55 = vadd.f32 %v646_v46, %v582_v27  ;;  %v647_v59 = vmul.f32 2.0, %v615_v29  ;;  %v384_v23 = vld [vmem:[%s1106_s26 + $0x100] sm:$0xff]  ;;  %v586_v34 = vld [vmem:[%s1121_s11 + $0xf0] sm:$0xff]  ;;  %v419_v35 = vld [vmem:[%s1111_s29 + $0x108] sm:$0xff] }
  0x58   : > { %v1443_v54 = vadd.f32 %v516_v38, %v482_v45  ;;  %v804_v63 = vadd.f32 %v772_v32, %v1397_v62  ;;  %v773_v57 = vmul.f32 2.0, %v741_v40  ;;  %v483_v0 = vadd.f32 %v449_v41, %v381_v47  ;;  %v619_v29 = vld [vmem:[%s1128_s14 + $0xf8] sm:$0xff]  ;;  %v520_v47 = vld [vmem:[%s1116_s8 + $0x100] sm:$0xff] }
  0x59   : > { %899 = vst.msk [vmem:[%s1178_s22 + $0xb0] sm:$0xff] %vm876_vm0, %v866_v50  ;;  %v450_v1 = vmul.f32 2.0, %v416_v48  ;;  %v867_v3 = vmul.f32 0.0625, %v835_v49  ;;  %v742_v4 = vadd.f32 %v710_v42, %v678_v55  ;;  %v679_v5 = vadd.f32 %v647_v59, %v583_v44  ;;  %v714_v48 = vld [vmem:[%s1133_s17 + $0xf0] sm:$0xff]  ;;  %v385_v50 = vld [vmem:[%s1106_s26 + $0x108] sm:$0xff]  ;;  %v587_v44 = vld [vmem:[%s1121_s11 + $0xf8] sm:$0xff] }
  0x5a   : > { %v648_v58 = vmul.f32 2.0, %v616_v51  ;;  %v836_v62 = vadd.f32 %v804_v63, %v1424_v20  ;;  %v805_v13 = vadd.f32 %v773_v57, %v1408_v11  ;;  %v551_v14 = vadd.f32 %v517_v56, %v483_v0  ;;  %v715_v0 = vld [vmem:[%s1133_s17 + $0xf8] sm:$0xff] }
  0x5b   : > { %v484_v15 = vadd.f32 %v450_v1, %v382_v61  ;;  %900 = vst.msk [vmem:[%s1178_s22 + $0xb8] sm:$0xff] %vm876_vm0, %v867_v3  ;;  %v774_v17 = vmul.f32 2.0, %v742_v4  ;;  %v743_v10 = vadd.f32 %v711_v52, %v679_v5  ;;  %v451_v12 = vmul.f32 2.0, %v417_v2 }
  0x5c   : > { %v680_v18 = vadd.f32 %v648_v58, %v584_v53  ;;  %v868_v11 = vmul.f32 0.0625, %v836_v62  ;;  %v837_v21 = vadd.f32 %v805_v13, %v1433_v43  ;;  %v649_v26 = vmul.f32 2.0, %v617_v60 }
  0x5d   : > { %v552_v24 = vadd.f32 %v518_v6, %v484_v15  ;;  %v806_v30 = vadd.f32 %v774_v17, %v1424_v20  ;;  %v775_v31 = vmul.f32 2.0, %v743_v10  ;;  %v485_v33 = vadd.f32 %v451_v12, %v383_v7 }
  0x5e   : > { %v744_v22 = vadd.f32 %v712_v16, %v680_v18  ;;  %901 = vst.msk [vmem:[%s1178_s22 + $0xc0] sm:$0xff] %vm876_vm0, %v868_v11  ;;  %v869_v37 = vmul.f32 0.0625, %v837_v21  ;;  %v681_v36 = vadd.f32 %v649_v26, %v585_v8  ;;  %v452_v38 = vmul.f32 2.0, %v418_v9 }
  0x5f   : > { %v650_v27 = vmul.f32 2.0, %v618_v19  ;;  %v838_v20 = vadd.f32 %v806_v30, %v1443_v54  ;;  %v807_v39 = vadd.f32 %v775_v31, %v1433_v43  ;;  %v553_v46 = vadd.f32 %v519_v25, %v485_v33  ;;  %v521_v43 = vld [vmem:[%s1116_s8 + $0x108] sm:$0xff] }
  0x60   : > { %v776_v45 = vmul.f32 2.0, %v744_v22  ;;  %902 = vst.msk [vmem:[%s1178_s22 + $0xc8] sm:$0xff] %vm876_vm0, %v869_v37  ;;  %v745_v32 = vadd.f32 %v713_v28, %v681_v36  ;;  %v486_v40 = vadd.f32 %v452_v38, %v384_v23  ;;  %v453_v41 = vmul.f32 2.0, %v419_v35 }
  0x61   : > { %v682_v42 = vadd.f32 %v650_v27, %v586_v34  ;;  %v870_v51 = vmul.f32 0.0625, %v838_v20  ;;  %v839_v49 = vadd.f32 %v807_v39, %v551_v14  ;;  %v651_v56 = vmul.f32 2.0, %v619_v29 }
  0x62   : > { %v808_v55 = vadd.f32 %v776_v45, %v1443_v54  ;;  %v777_v59 = vmul.f32 2.0, %v745_v32  ;;  %v554_v61 = vadd.f32 %v520_v47, %v486_v40  ;;  %v487_v57 = vadd.f32 %v453_v41, %v385_v50 }
  0x63   : > { %v746_v63 = vadd.f32 %v714_v48, %v682_v42  ;;  %903 = vst.msk [vmem:[%s1178_s22 + $0xd0] sm:$0xff] %vm876_vm0, %v870_v51  ;;  %v871_v52 = vmul.f32 0.0625, %v839_v49  ;;  %v683_v53 = vadd.f32 %v651_v56, %v587_v44 }
  0x64   : > { %v840_v1 = vadd.f32 %v808_v55, %v552_v24  ;;  %v809_v2 = vadd.f32 %v777_v59, %v551_v14  ;;  %v555_v4 = vadd.f32 %v521_v43, %v487_v57 }
  0x65   : > { %v778_v3 = vmul.f32 2.0, %v746_v63  ;;  %904 = vst.msk [vmem:[%s1178_s22 + $0xd8] sm:$0xff] %vm876_vm0, %v871_v52  ;;  %v747_v5 = vadd.f32 %v715_v0, %v683_v53 }
  0x66   : > { %v872_v54 = vmul.f32 0.0625, %v840_v1  ;;  %v841_v6 = vadd.f32 %v809_v2, %v553_v46 }
  0x67   : > { %v810_v58 = vadd.f32 %v778_v3, %v552_v24  ;;  %v779_v60 = vmul.f32 2.0, %v747_v5 }
  0x68   : > { %905 = vst.msk [vmem:[%s1178_s22 + $0xe0] sm:$0xff] %vm876_vm0, %v872_v54  ;;  %v873_v62 = vmul.f32 0.0625, %v841_v6 }
  0x69   : > { %v842_v13 = vadd.f32 %v810_v58, %v554_v61  ;;  %v811_v15 = vadd.f32 %v779_v60, %v553_v46 }
  0x6a   : > { %906 = vst.msk [vmem:[%s1178_s22 + $0xe8] sm:$0xff] %vm876_vm0, %v873_v62 }
  0x6b   : > { %v874_v16 = vmul.f32 0.0625, %v842_v13  ;;  %v843_v14 = vadd.f32 %v811_v15, %v555_v4 }
  0x6d   : > { %907 = vst.msk [vmem:[%s1178_s22 + $0xf0] sm:$0xff] %vm876_vm0, %v874_v16  ;;  %v875_v7 = vmul.f32 0.0625, %v843_v14 }
  0x6f   : > { %908 = vst.msk [vmem:[%s1178_s22 + $0xf8] sm:$0xff] %vm876_vm0, %v875_v7 }
  0x70 PF: > { %s16_s21 = sadd.s32 1, %s1055_s21  }
  0x71   : > { %p13_p4 = scmp.ge.s32.totalorder %s16_s21, 4  }
  0x73   :  { %15 = sbr.rel (!%p13_p4) target bundleno = 1 (0x1), region = 89 }

// kernel: _lambda_.40
= control target key start
LH: loop header
LB: loop body
LE: loop exit
PB: predicated region body
PF: predicated region fallthrough
CT: control target
= control target key end

     0   :  { %s1363_s12 = smov 0   ;;  %s1365_s13 = smov 0   ;;  %s1675_s0 = inlined_call_operand.vmem [shape: bf16[512,32], index: 0, kind: input, shape index: {}]   ;;  %s1676_s1 = inlined_call_operand.vmem [shape: bf16[32,128], index: 1, kind: input, shape index: {}]   ;;  %s1677_s2 = inlined_call_operand.vmem [shape: f32[1,128], index: 2, kind: input, shape index: {}]   ;;  %s1678_s3 = inlined_call_operand.vmem [shape: f32[512,128], index: 3, kind: output, shape index: {}]  }
   0x1   :  { %s1367_s14 = smov 0  }
   0x2 LB: > { %s32_s15 = sadd.s32 1, %s1337_s13  ;;  %p1113_p0 = scmp.ge.s32.totalorder %s1341_s14, 1  ;;  %s1341_s14 = sphi %s1367_s14, %s13_s14   ;;  %s1337_s13 = sphi %s1365_s13, %s1680_s13   ;;  %s1333_s12 = sphi %s1363_s12, %s1679_s12  }
   0x3   : > { %p34_p1 = scmp.ge.s32.totalorder %s32_s15, 2  ;;  %p188_p2 = scmp.lt.s32.totalorder %s1341_s14, 3 }
   0x5   : > { %s1682_s15 = smov (%p34_p1, %s32_s15), 0  ;;  %p189_p3 = pnand %p1113_p0, %p188_p2 }
   0x6   : > { %v1237_v0 = vld [vmem:[%s1676_s1] sm:$0xff] (!%p189_p3)   ;;  %s1114_s18 = sshll.u32 (!%p189_p3), %s1333_s12, 5  ;;  %v1238_v1 = vld [vmem:[%s1676_s1 + $0x8] sm:$0xff] (!%p189_p3)   ;;  %vm456_vm0 = vcmask (!%p189_p3), 261120  }
   0x7   : > { %192 = sbr.rel (%p189_p3) target bundleno = 294 (0x126), region = 32  ;;  %p230_p4 = scmp.lt.s32.totalorder (!%p189_p3), %s1114_s18, 63  ;;  %1173 = vmatprep.subr.bf16.mxu0 (!%p189_p3), %v1237_v0  ;;  %1209 = vmatprep.subr.bf16.mxu1 (!%p189_p3), %v1237_v0  ;;  %v1430_v18 = vld [vmem:[%s1677_s2] ss:$0 sm:$0xff] (!%p189_p3) }
   0x8   : > { %1174 = vmatpush3.bf16.msra.mxu0 (!%p189_p3), %v1237_v0  ;;  %1211 = vmatpush3.bf16.msra.mxu1 (!%p189_p3), %v1237_v0 }
   0x9   : > { %1175 = vmatprep.subr.bf16.mxu0 (!%p189_p3), %v1238_v1  ;;  %1210 = vmatprep.subr.bf16.mxu1 (!%p189_p3), %v1238_v1 }
   0xc   : > { %1176 = vmatpush3.bf16.msra.mxu0 (!%p189_p3), %v1238_v1  ;;  %1212 = vmatpush3.bf16.msra.mxu1 (!%p189_p3), %v1238_v1 }
   0xe   : > { %s1684_s18 = smov (!%p230_p4, %s1114_s18), 63 }
   0xf   : > { %s1115_s21 = sshll.u32 %s1684_s18, 2  ;;  %s1117_s27 = sshll.u32 %s1684_s18, 3 }
  0x10   : > { %s1393_s24 = scalar_lea.vmem %s1675_s0, %s1115_s21  ;;  %s1508_s30 = scalar_lea.vmem %s1678_s3, %s1117_s27 }
  0x11   : > { %v1239_v2 = vld [vmem:[%s1393_s24] sm:$0xff]   ;;  %v1241_v4 = vld [vmem:[%s1393_s24 + $0x8] sm:$0xff]   ;;  %v1243_v6 = vld [vmem:[%s1393_s24 + $0x10] sm:$0xff]  }
  0x12   : > { %v1240_v3 = vld [vmem:[%s1393_s24 + $0x40] sm:$0xff]   ;;  %1177 = vmatprep.mubr.msk.bf16.mxu0 %vm456_vm0, %v1239_v2  ;;  %v1242_v5 = vld [vmem:[%s1393_s24 + $0x48] sm:$0xff]   ;;  %v1244_v7 = vld [vmem:[%s1393_s24 + $0x50] sm:$0xff]  }
  0x13   : > { %1193 = vmatprep.mubr.msk.bf16.mxu1 %vm456_vm0, %v1240_v3  ;;  %1178 = vmatmul.mubr.msk.bf16.vlgmr.msra.gmra.mrb[0].mxu0 %vm456_vm0, %v1241_v4  ;;  %v1245_v8 = vld [vmem:[%s1393_s24 + $0x18] sm:$0xff]   ;;  %v1247_v10 = vld [vmem:[%s1393_s24 + $0x20] sm:$0xff]   ;;  %v1249_v12 = vld [vmem:[%s1393_s24 + $0x28] sm:$0xff]  }
  0x14   : > { %1194 = vmatmul.mubr.msk.bf16.vlgmr.msra.gmra.mrb[0].mxu1 %vm456_vm0, %v1242_v5  ;;  %1181 = vmatprep.mubr.msk.bf16.mxu0 %vm456_vm0, %v1243_v6  ;;  %v1246_v9 = vld [vmem:[%s1393_s24 + $0x58] sm:$0xff]   ;;  %v1248_v11 = vld [vmem:[%s1393_s24 + $0x60] sm:$0xff]   ;;  %v1250_v13 = vld [vmem:[%s1393_s24 + $0x68] sm:$0xff]  }
  0x15   : > { %1197 = vmatprep.mubr.msk.bf16.mxu1 %vm456_vm0, %v1244_v7  ;;  %v1251_v14 = vld [vmem:[%s1393_s24 + $0x30] sm:$0xff]   ;;  %v1253_v16 = vld [vmem:[%s1393_s24 + $0x38] sm:$0xff]  }
  0x16   : > { %v1252_v15 = vld [vmem:[%s1393_s24 + $0x70] sm:$0xff]   ;;  %v1254_v17 = vld [vmem:[%s1393_s24 + $0x78] sm:$0xff]  }
  0x1b   : > { %1182 = vmatmul.mubr.msk.bf16.gmra.mrb[4].mxu0 %vm456_vm0, %v1245_v8 }
  0x1c   : > { %1198 = vmatmul.mubr.msk.bf16.gmra.mrb[4].mxu1 %vm456_vm0, %v1246_v9  ;;  %1185 = vmatprep.mubr.msk.bf16.mxu0 %vm456_vm0, %v1247_v10 }
  0x1d   : > { %1201 = vmatprep.mubr.msk.bf16.mxu1 %vm456_vm0, %v1248_v11 }
  0x23   : > { %1186 = vmatmul.mubr.msk.bf16.gmra.mrb[8].mxu0 %vm456_vm0, %v1249_v12 }
  0x24   : > { %1202 = vmatmul.mubr.msk.bf16.gmra.mrb[8].mxu1 %vm456_vm0, %v1250_v13  ;;  %1189 = vmatprep.mubr.msk.bf16.mxu0 %vm456_vm0, %v1251_v14 }
  0x25   : > { %1205 = vmatprep.mubr.msk.bf16.mxu1 %vm456_vm0, %v1252_v15 }
  0x2b   : > { %1190 = vmatmul.mubr.msk.bf16.gmra.mrb[12].mxu0 %vm456_vm0, %v1253_v16 }
  0x2c   : > { %1206 = vmatmul.mubr.msk.bf16.gmra.mrb[12].mxu1 %vm456_vm0, %v1254_v17 }
  0xe6   : > { %v1179_v19 = vpop.f32.mrb[0].mxu0 }
  0xe7   : > { %v1433_v20 = vadd.f32 %v1179_v19, %v1430_v18  ;;  %v1195_v21 = vpop.f32.mrb[0].mxu1  ;;  %v539_v22 = vpop.f32.mrb[1].mxu0 }
  0xe8   : > { %v1436_v23 = vadd.f32 %v1195_v21, %v1430_v18  ;;  %v1439_v24 = vadd.f32 %v1430_v18, %v539_v22  ;;  %v603_v25 = vpop.f32.mrb[1].mxu1  ;;  %v1180_v26 = vpop.f32.mrb[2].mxu0 }
  0xe9   : > { %v806_v27 = vmul.f32 0.5, %v1433_v20  ;;  %v1443_v28 = vadd.f32 %v1430_v18, %v603_v25  ;;  %v1446_v29 = vadd.f32 %v1180_v26, %v1430_v18  ;;  %v1196_v30 = vpop.f32.mrb[2].mxu1  ;;  %v542_v31 = vpop.f32.mrb[3].mxu0 }
  0xea   : > { %v822_v32 = vmul.f32 0.5, %v1436_v23  ;;  %v804_v33 = vmul.f32 0.5, %v1439_v24  ;;  %v1451_v34 = vadd.f32 %v1196_v30, %v1430_v18  ;;  %v1454_v35 = vadd.f32 %v1430_v18, %v542_v31  ;;  %v606_v36 = vpop.f32.mrb[3].mxu1 }
  0xeb   : > { %1255 = vtanh.f32 %v806_v27  ;;  %v820_v37 = vmul.f32 0.5, %v1443_v28  ;;  %v807_v38 = vmul.f32 0.5, %v1446_v29  ;;  %v1459_v39 = vadd.f32 %v1430_v18, %v606_v36 }
  0xec   : > { %1257 = vtanh.f32 %v822_v32  ;;  %v823_v40 = vmul.f32 0.5, %v1451_v34  ;;  %v805_v41 = vmul.f32 0.5, %v1454_v35 }
  0xed   : > { %1259 = vtanh.f32 %v804_v33  ;;  %v821_v42 = vmul.f32 0.5, %v1459_v39 }
  0xee   : > { %1261 = vtanh.f32 %v820_v37  ;;  %v1183_v43 = vpop.f32.mrb[4].mxu0 }
  0xef   : > { %1263 = vtanh.f32 %v807_v38  ;;  %v1465_v44 = vadd.f32 %v1183_v43, %v1430_v18  ;;  %v1199_v45 = vpop.f32.mrb[4].mxu1  ;;  %v555_v46 = vpop.f32.mrb[5].mxu0 }
  0xf0   : > { %1265 = vtanh.f32 %v823_v40  ;;  %v1468_v47 = vadd.f32 %v1199_v45, %v1430_v18  ;;  %v1471_v48 = vadd.f32 %v1430_v18, %v555_v46  ;;  %v619_v49 = vpop.f32.mrb[5].mxu1  ;;  %v1184_v50 = vpop.f32.mrb[6].mxu0 }
  0xf1   : > { %1267 = vtanh.f32 %v805_v41  ;;  %v810_v51 = vmul.f32 0.5, %v1465_v44  ;;  %v1475_v52 = vadd.f32 %v1430_v18, %v619_v49  ;;  %v1478_v53 = vadd.f32 %v1184_v50, %v1430_v18  ;;  %v1200_v54 = vpop.f32.mrb[6].mxu1  ;;  %v558_v55 = vpop.f32.mrb[7].mxu0 }
  0xf2   : > { %1269 = vtanh.f32 %v821_v42  ;;  %v826_v56 = vmul.f32 0.5, %v1468_v47  ;;  %v808_v57 = vmul.f32 0.5, %v1471_v48  ;;  %v1483_v58 = vadd.f32 %v1200_v54, %v1430_v18  ;;  %v622_v59 = vpop.f32.mrb[7].mxu1 }
  0xf3   : > { %1271 = vtanh.f32 %v810_v51  ;;  %v824_v60 = vmul.f32 0.5, %v1475_v52  ;;  %v811_v61 = vmul.f32 0.5, %v1478_v53  ;;  %v1488_v62 = vadd.f32 %v1430_v18, %v558_v55 }
  0xf4   : > { %1273 = vtanh.f32 %v826_v56  ;;  %v827_v63 = vmul.f32 0.5, %v1483_v58  ;;  %v1492_v0 = vadd.f32 %v1430_v18, %v622_v59 }
  0xf5   : > { %v1256_v1 = vpop.eup %1255  ;;  %1275 = vtanh.f32 %v808_v57  ;;  %v809_v2 = vmul.f32 0.5, %v1488_v62 }
  0xf6   : > { %v1258_v3 = vpop.eup %1257  ;;  %v870_v4 = vadd.f32 1.0, %v1256_v1  ;;  %1277 = vtanh.f32 %v824_v60  ;;  %v825_v5 = vmul.f32 0.5, %v1492_v0  ;;  %v1187_v6 = vpop.f32.mrb[8].mxu0 }
  0xf7   : > { %v1260_v7 = vpop.eup %1259  ;;  %v886_v8 = vadd.f32 1.0, %v1258_v3  ;;  %1279 = vtanh.f32 %v811_v61  ;;  %v1498_v9 = vadd.f32 %v1187_v6, %v1430_v18  ;;  %v1203_v10 = vpop.f32.mrb[8].mxu1 }
  0xf8   : > { %v571_v11 = vpop.f32.mrb[9].mxu0  ;;  %v1262_v12 = vpop.eup %1261  ;;  %v902_v13 = vmul.f32 0.5, %v870_v4  ;;  %v868_v14 = vadd.f32 1.0, %v1260_v7  ;;  %1281 = vtanh.f32 %v827_v63  ;;  %v1501_v15 = vadd.f32 %v1203_v10, %v1430_v18 }
  0xf9   : > { %v635_v16 = vpop.f32.mrb[9].mxu1  ;;  %v1503_v17 = vpop.f32.mrb[10].mxu0  ;;  %v918_v21 = vmul.f32 0.5, %v886_v8  ;;  %v884_v22 = vadd.f32 1.0, %v1262_v12  ;;  %1283 = vtanh.f32 %v809_v2  ;;  %v814_v25 = vmul.f32 0.5, %v1498_v9 }
  0xfa   : > { %v1264_v19 = vpop.eup %1263  ;;  %v1511_v26 = vpop.f32.mrb[10].mxu1  ;;  %v934_v31 = vmul.f32 %v902_v13, %v1433_v20  ;;  %v900_v32 = vmul.f32 0.5, %v868_v14  ;;  %1285 = vtanh.f32 %v825_v5  ;;  %v830_v20 = vmul.f32 0.5, %v1501_v15 }
  0xfb   : > { %v1513_v27 = vpop.f32.mrb[11].mxu0  ;;  %v1266_v30 = vpop.eup %1265  ;;  %v871_v33 = vadd.f32 1.0, %v1264_v19  ;;  %v950_v38 = vmul.f32 %v918_v21, %v1436_v23  ;;  %v916_v40 = vmul.f32 0.5, %v884_v22  ;;  %1287 = vtanh.f32 %v814_v25 }
  0xfc   : > { %v1516_v36 = vpop.f32.mrb[11].mxu1  ;;  %v1268_v37 = vpop.eup %1267  ;;  %v887_v41 = vadd.f32 1.0, %v1266_v30  ;;  %966 = vst [vmem:[%s1508_s30 + $0x10] sm:$0xff] %v934_v31  ;;  %v932_v43 = vmul.f32 %v900_v32, %v1439_v24  ;;  %v1525_v23 = vadd.f32 %v1430_v18, %v571_v11  ;;  %1289 = vtanh.f32 %v830_v20 }
  0xfd   : > { %v1270_v42 = vpop.eup %1269  ;;  %v903_v45 = vmul.f32 0.5, %v871_v33  ;;  %v869_v46 = vadd.f32 1.0, %v1268_v37  ;;  %982 = vst [vmem:[%s1508_s30 + $0x90] sm:$0xff] %v950_v38  ;;  %v948_v50 = vmul.f32 %v916_v40, %v1443_v28  ;;  %v1541_v7 = vadd.f32 %v1430_v18, %v635_v16 }
  0xfe   : > { %v1272_v49 = vpop.eup %1271  ;;  %v919_v51 = vmul.f32 0.5, %v887_v41  ;;  %v885_v54 = vadd.f32 1.0, %v1270_v42  ;;  %964 = vst [vmem:[%s1508_s30] sm:$0xff] %v932_v43  ;;  %v1529_v59 = vpop.f32.mrb[12].mxu0  ;;  %v812_v1 = vmul.f32 0.5, %v1525_v23  ;;  %v1562_v37 = vadd.f32 %v1503_v17, %v1430_v18 }
  0xff   : > { %v1274_v55 = vpop.eup %1273  ;;  %v935_v56 = vmul.f32 %v903_v45, %v1446_v29  ;;  %v901_v24 = vmul.f32 0.5, %v869_v46  ;;  %v874_v57 = vadd.f32 1.0, %v1272_v49  ;;  %980 = vst [vmem:[%s1508_s30 + $0x80] sm:$0xff] %v948_v50  ;;  %v1534_v2 = vpop.f32.mrb[12].mxu1  ;;  %v828_v25 = vmul.f32 0.5, %v1541_v7 }
 0x100   : > { %v1276_v60 = vpop.eup %1275  ;;  %v951_v28 = vmul.f32 %v919_v51, %v1451_v34  ;;  %v917_v61 = vmul.f32 0.5, %v885_v54  ;;  %v890_v63 = vadd.f32 1.0, %v1274_v55  ;;  %v1536_v3 = vpop.f32.mrb[13].mxu0  ;;  %1291 = vtanh.f32 %v812_v1 }
 0x101   : > { %v1278_v4 = vpop.eup %1277  ;;  %967 = vst [vmem:[%s1508_s30 + $0x18] sm:$0xff] %v935_v56  ;;  %v933_v29 = vmul.f32 %v901_v24, %v1454_v35  ;;  %v906_v5 = vmul.f32 0.5, %v874_v57  ;;  %v872_v6 = vadd.f32 1.0, %v1276_v60  ;;  %v1543_v8 = vpop.f32.mrb[13].mxu1  ;;  %1293 = vtanh.f32 %v828_v25 }
 0x102   : > { %v1545_v34 = vpop.f32.mrb[14].mxu0  ;;  %v1280_v10 = vpop.eup %1279  ;;  %983 = vst [vmem:[%s1508_s30 + $0x98] sm:$0xff] %v951_v28  ;;  %v949_v11 = vmul.f32 %v917_v61, %v1459_v39  ;;  %v922_v12 = vmul.f32 0.5, %v890_v63  ;;  %v888_v13 = vadd.f32 1.0, %v1278_v4  ;;  %v815_v46 = vmul.f32 0.5, %v1562_v37 }
 0x103   : > { %v1549_v14 = vpop.f32.mrb[14].mxu1  ;;  %v1551_v35 = vpop.f32.mrb[15].mxu0  ;;  %965 = vst [vmem:[%s1508_s30 + $0x8] sm:$0xff] %v933_v29  ;;  %v938_v16 = vmul.f32 %v906_v5, %v1465_v44  ;;  %v904_v21 = vmul.f32 0.5, %v872_v6  ;;  %v875_v22 = vadd.f32 1.0, %v1280_v10  ;;  %v1593_v57 = vadd.f32 %v1529_v59, %v1430_v18 }
 0x104   : > { %v1282_v19 = vpop.eup %1281  ;;  %v1556_v30 = vpop.f32.mrb[15].mxu1  ;;  %981 = vst [vmem:[%s1508_s30 + $0x88] sm:$0xff] %v949_v11  ;;  %v954_v31 = vmul.f32 %v922_v12, %v1468_v47  ;;  %v920_v32 = vmul.f32 0.5, %v888_v13  ;;  %1295 = vtanh.f32 %v815_v46  ;;  %v1606_v59 = vadd.f32 %v1430_v18, %v1536_v3 }
 0x105   : > { %v1284_v39 = vpop.eup %1283  ;;  %v891_v33 = vadd.f32 1.0, %v1282_v19  ;;  %970 = vst [vmem:[%s1508_s30 + $0x30] sm:$0xff] %v938_v16  ;;  %v936_v44 = vmul.f32 %v904_v21, %v1471_v48  ;;  %v907_v40 = vmul.f32 0.5, %v875_v22  ;;  %v1573_v48 = vadd.f32 %v1511_v26, %v1430_v18 }
 0x106   : > { %v1286_v38 = vpop.eup %1285  ;;  %v873_v41 = vadd.f32 1.0, %v1284_v39  ;;  %986 = vst [vmem:[%s1508_s30 + $0xb0] sm:$0xff] %v954_v31  ;;  %v952_v47 = vmul.f32 %v920_v32, %v1475_v52  ;;  %v1579_v52 = vadd.f32 %v1430_v18, %v1513_v27  ;;  %v1586_v26 = vadd.f32 %v1430_v18, %v1516_v36 }
 0x107   : > { %v1288_v42 = vpop.eup %1287  ;;  %v923_v43 = vmul.f32 0.5, %v891_v33  ;;  %v889_v45 = vadd.f32 1.0, %v1286_v38  ;;  %968 = vst [vmem:[%s1508_s30 + $0x20] sm:$0xff] %v936_v44  ;;  %v939_v17 = vmul.f32 %v907_v40, %v1478_v53  ;;  %v831_v56 = vmul.f32 0.5, %v1573_v48 }
 0x108   : > { %v905_v20 = vmul.f32 0.5, %v873_v41  ;;  %v878_v49 = vadd.f32 1.0, %v1288_v42  ;;  %984 = vst [vmem:[%s1508_s30 + $0xa0] sm:$0xff] %v952_v47  ;;  %v1290_v54 = vpop.eup %1289  ;;  %v813_v27 = vmul.f32 0.5, %v1579_v52  ;;  %v829_v60 = vmul.f32 0.5, %v1586_v26 }
 0x109   : > { %v955_v50 = vmul.f32 %v923_v43, %v1483_v58  ;;  %v921_v51 = vmul.f32 0.5, %v889_v45  ;;  %971 = vst [vmem:[%s1508_s30 + $0x38] sm:$0xff] %v939_v17  ;;  %v894_v24 = vadd.f32 1.0, %v1290_v54  ;;  %1297 = vtanh.f32 %v831_v56 }
 0x10a   : > { %v937_v53 = vmul.f32 %v905_v20, %v1488_v62  ;;  %v910_v55 = vmul.f32 0.5, %v878_v49  ;;  %v1600_v36 = vadd.f32 %v1534_v2, %v1430_v18  ;;  %v1292_v28 = vpop.eup %1291  ;;  %1299 = vtanh.f32 %v813_v27 }
 0x10b   : > { %987 = vst [vmem:[%s1508_s30 + $0xb8] sm:$0xff] %v955_v50  ;;  %v953_v58 = vmul.f32 %v921_v51, %v1492_v0  ;;  %v926_v0 = vmul.f32 0.5, %v894_v24  ;;  %v818_v61 = vmul.f32 0.5, %v1593_v57  ;;  %1301 = vtanh.f32 %v829_v60  ;;  %v1294_v3 = vpop.eup %1293 }
 0x10c   : > { %969 = vst [vmem:[%s1508_s30 + $0x28] sm:$0xff] %v937_v53  ;;  %v942_v62 = vmul.f32 %v910_v55, %v1498_v9  ;;  %v876_v9 = vadd.f32 1.0, %v1292_v28  ;;  %v834_v63 = vmul.f32 0.5, %v1600_v36  ;;  %v1612_v1 = vadd.f32 %v1430_v18, %v1543_v8 }
 0x10d   : > { %985 = vst [vmem:[%s1508_s30 + $0xa8] sm:$0xff] %v953_v58  ;;  %v958_v2 = vmul.f32 %v926_v0, %v1501_v15  ;;  %1303 = vtanh.f32 %v818_v61  ;;  %v816_v4 = vmul.f32 0.5, %v1606_v59  ;;  %v1618_v29 = vadd.f32 %v1545_v34, %v1430_v18 }
 0x10e   : > { %974 = vst [vmem:[%s1508_s30 + $0x50] sm:$0xff] %v942_v62  ;;  %v908_v5 = vmul.f32 0.5, %v876_v9  ;;  %1305 = vtanh.f32 %v834_v63  ;;  %v832_v6 = vmul.f32 0.5, %v1612_v1  ;;  %v1623_v10 = vadd.f32 %v1549_v14, %v1430_v18  ;;  %v1296_v14 = vpop.eup %1295 }
 0x10f   : > { %990 = vst [vmem:[%s1508_s30 + $0xd0] sm:$0xff] %v958_v2  ;;  %v892_v8 = vadd.f32 1.0, %v1294_v3  ;;  %1307 = vtanh.f32 %v816_v4  ;;  %v819_v15 = vmul.f32 0.5, %v1618_v29  ;;  %v1629_v11 = vadd.f32 %v1430_v18, %v1551_v35 }
 0x110   : > { %v940_v34 = vmul.f32 %v908_v5, %v1525_v23  ;;  %1309 = vtanh.f32 %v832_v6  ;;  %v835_v12 = vmul.f32 0.5, %v1623_v10  ;;  %v1635_v13 = vadd.f32 %v1430_v18, %v1556_v30 }
 0x111   : > { %v924_v19 = vmul.f32 0.5, %v892_v8  ;;  %1311 = vtanh.f32 %v819_v15  ;;  %v817_v16 = vmul.f32 0.5, %v1629_v11  ;;  %v879_v21 = vadd.f32 1.0, %v1296_v14 }
 0x112   : > { %972 = vst [vmem:[%s1508_s30 + $0x40] sm:$0xff] %v940_v34  ;;  %1313 = vtanh.f32 %v835_v12  ;;  %v833_v35 = vmul.f32 0.5, %v1635_v13 }
 0x113   : > { %v956_v23 = vmul.f32 %v924_v19, %v1541_v7  ;;  %1315 = vtanh.f32 %v817_v16  ;;  %v1298_v22 = vpop.eup %1297  ;;  %v911_v25 = vmul.f32 0.5, %v879_v21 }
 0x114   : > { %1317 = vtanh.f32 %v833_v35  ;;  %v1300_v39 = vpop.eup %1299  ;;  %v895_v18 = vadd.f32 1.0, %v1298_v22 }
 0x115   : > { %988 = vst [vmem:[%s1508_s30 + $0xc0] sm:$0xff] %v956_v23  ;;  %v1302_v30 = vpop.eup %1301  ;;  %v943_v31 = vmul.f32 %v911_v25, %v1562_v37  ;;  %v877_v32 = vadd.f32 1.0, %v1300_v39 }
 0x116   : > { %v927_v38 = vmul.f32 0.5, %v895_v18  ;;  %v893_v44 = vadd.f32 1.0, %v1302_v30 }
 0x117   : > { %v1304_v33 = vpop.eup %1303  ;;  %975 = vst [vmem:[%s1508_s30 + $0x58] sm:$0xff] %v943_v31  ;;  %v909_v41 = vmul.f32 0.5, %v877_v32 }
 0x118   : > { %v1306_v40 = vpop.eup %1305  ;;  %v882_v7 = vadd.f32 1.0, %v1304_v33  ;;  %v959_v47 = vmul.f32 %v927_v38, %v1573_v48  ;;  %v925_v43 = vmul.f32 0.5, %v893_v44 }
 0x119   : > { %v1308_v42 = vpop.eup %1307  ;;  %v898_v45 = vadd.f32 1.0, %v1306_v40  ;;  %v941_v17 = vmul.f32 %v909_v41, %v1579_v52 }
 0x11a   : > { %v1310_v46 = vpop.eup %1309  ;;  %v914_v37 = vmul.f32 0.5, %v882_v7  ;;  %v880_v20 = vadd.f32 1.0, %v1308_v42  ;;  %991 = vst [vmem:[%s1508_s30 + $0xd8] sm:$0xff] %v959_v47  ;;  %v957_v50 = vmul.f32 %v925_v43, %v1586_v26 }
 0x11b   : > { %v1312_v49 = vpop.eup %1311  ;;  %v930_v51 = vmul.f32 0.5, %v898_v45  ;;  %v896_v54 = vadd.f32 1.0, %v1310_v46  ;;  %973 = vst [vmem:[%s1508_s30 + $0x48] sm:$0xff] %v941_v17 }
 0x11c   : > { %v1314_v53 = vpop.eup %1313  ;;  %v946_v48 = vmul.f32 %v914_v37, %v1593_v57  ;;  %v912_v55 = vmul.f32 0.5, %v880_v20  ;;  %v883_v56 = vadd.f32 1.0, %v1312_v49  ;;  %989 = vst [vmem:[%s1508_s30 + $0xc8] sm:$0xff] %v957_v50 }
 0x11d   : > { %v1316_v58 = vpop.eup %1315  ;;  %v962_v52 = vmul.f32 %v930_v51, %v1600_v36  ;;  %v928_v24 = vmul.f32 0.5, %v896_v54  ;;  %v899_v27 = vadd.f32 1.0, %v1314_v53 }
 0x11e   : > { %v1318_v62 = vpop.eup %1317  ;;  %978 = vst [vmem:[%s1508_s30 + $0x70] sm:$0xff] %v946_v48  ;;  %v944_v26 = vmul.f32 %v912_v55, %v1606_v59  ;;  %v915_v60 = vmul.f32 0.5, %v883_v56  ;;  %v881_v28 = vadd.f32 1.0, %v1316_v58 }
 0x11f   : > { %994 = vst [vmem:[%s1508_s30 + $0xf0] sm:$0xff] %v962_v52  ;;  %v960_v57 = vmul.f32 %v928_v24, %v1612_v1  ;;  %v931_v0 = vmul.f32 0.5, %v899_v27  ;;  %v897_v61 = vadd.f32 1.0, %v1318_v62 }
 0x120   : > { %976 = vst [vmem:[%s1508_s30 + $0x60] sm:$0xff] %v944_v26  ;;  %v947_v36 = vmul.f32 %v915_v60, %v1618_v29  ;;  %v913_v9 = vmul.f32 0.5, %v881_v28 }
 0x121   : > { %992 = vst [vmem:[%s1508_s30 + $0xe0] sm:$0xff] %v960_v57  ;;  %v963_v63 = vmul.f32 %v931_v0, %v1623_v10  ;;  %v929_v2 = vmul.f32 0.5, %v897_v61 }
 0x122   : > { %979 = vst [vmem:[%s1508_s30 + $0x78] sm:$0xff] %v947_v36  ;;  %v945_v59 = vmul.f32 %v913_v9, %v1629_v11 }
 0x123   : > { %995 = vst [vmem:[%s1508_s30 + $0xf8] sm:$0xff] %v963_v63  ;;  %v961_v4 = vmul.f32 %v929_v2, %v1635_v13 }
 0x124   : > { %977 = vst [vmem:[%s1508_s30 + $0x68] sm:$0xff] %v945_v59 }
 0x125   : > { %993 = vst [vmem:[%s1508_s30 + $0xe8] sm:$0xff] %v961_v4 }
 0x126 PF: > { %s13_s14 = sadd.s32 1, %s1341_s14   ;;  %s1679_s12 = smov %s1337_s13 }
 0x127   : > { %p10_p5 = scmp.ge.s32.totalorder %s13_s14, 4   ;;  %s1680_s13 = smov %s1682_s15 }
 0x129   :  { %12 = sbr.rel (!%p10_p5) target bundleno = 2 (0x2), region = 76 }

// kernel: _lambda_.42
= control target key start
LH: loop header
LB: loop body
LE: loop exit
PB: predicated region body
PF: predicated region fallthrough
CT: control target
= control target key end

     0   :  { %s1348_s12 = smov 0   ;;  %s1350_s13 = smov 0   ;;  %s1657_s0 = inlined_call_operand.vmem [shape: bf16[512,16], index: 0, kind: input, shape index: {}]   ;;  %s1658_s1 = inlined_call_operand.vmem [shape: bf16[16,128], index: 1, kind: input, shape index: {}]   ;;  %s1659_s2 = inlined_call_operand.vmem [shape: f32[1,128], index: 2, kind: input, shape index: {}]   ;;  %s1660_s3 = inlined_call_operand.vmem [shape: f32[512,128], index: 3, kind: output, shape index: {}]  }
   0x1   :  { %s1352_s14 = smov 0  }
   0x2 LB: > { %s32_s15 = sadd.s32 1, %s1322_s13  ;;  %p1105_p0 = scmp.ge.s32.totalorder %s1326_s14, 1  ;;  %s1326_s14 = sphi %s1352_s14, %s13_s14   ;;  %s1322_s13 = sphi %s1350_s13, %s1662_s13   ;;  %s1318_s12 = sphi %s1348_s12, %s1661_s12  }
   0x3   : > { %p34_p1 = scmp.ge.s32.totalorder %s32_s15, 2  ;;  %p188_p2 = scmp.lt.s32.totalorder %s1326_s14, 3 }
   0x5   : > { %s1664_s15 = smov (%p34_p1, %s32_s15), 0  ;;  %p189_p3 = pnand %p1105_p0, %p188_p2 }
   0x6   : > { %v1223_v0 = vld [vmem:[%s1658_s1] sm:$0xff] (!%p189_p3)   ;;  %s1106_s18 = sshll.u32 (!%p189_p3), %s1318_s12, 5  ;;  %vm448_vm0 = vcmask (!%p189_p3), 130048  }
   0x7   : > { %192 = sbr.rel (%p189_p3) target bundleno = 294 (0x126), region = 32  ;;  %p230_p4 = scmp.lt.s32.totalorder (!%p189_p3), %s1106_s18, 63  ;;  %1163 = vmatprep.subr.bf16.mxu0 (!%p189_p3), %v1223_v0  ;;  %1197 = vmatprep.subr.bf16.mxu1 (!%p189_p3), %v1223_v0  ;;  %v1412_v17 = vld [vmem:[%s1659_s2] ss:$0 sm:$0xff] (!%p189_p3) }
   0x8   : > { %1164 = vmatpush3.bf16.msra.mxu0 (!%p189_p3), %v1223_v0  ;;  %1198 = vmatpush3.bf16.msra.mxu1 (!%p189_p3), %v1223_v0 }
   0xe   : > { %s1666_s18 = smov (!%p230_p4, %s1106_s18), 63 }
   0xf   : > { %s1107_s19 = sshll.u32 %s1666_s18, 2  ;;  %s1109_s25 = sshll.u32 %s1666_s18, 3 }
  0x10   : > { %s1375_s22 = scalar_lea.vmem %s1657_s0, %s1107_s19  ;;  %s1490_s28 = scalar_lea.vmem %s1660_s3, %s1109_s25 }
  0x11   : > { %v1224_v1 = vld [vmem:[%s1375_s22] sm:$0xff]   ;;  %v1226_v3 = vld [vmem:[%s1375_s22 + $0x8] sm:$0xff]   ;;  %v1228_v5 = vld [vmem:[%s1375_s22 + $0x10] sm:$0xff]  }
  0x12   : > { %v1225_v2 = vld [vmem:[%s1375_s22 + $0x40] sm:$0xff]   ;;  %1165 = vmatprep.mubr.msk.bf16.mxu0 %vm448_vm0, %v1224_v1  ;;  %v1227_v4 = vld [vmem:[%s1375_s22 + $0x48] sm:$0xff]   ;;  %v1229_v6 = vld [vmem:[%s1375_s22 + $0x50] sm:$0xff]  }
  0x13   : > { %1181 = vmatprep.mubr.msk.bf16.mxu1 %vm448_vm0, %v1225_v2  ;;  %1166 = vmatmul.mubr.msk.bf16.vlgmr.msra.gmra.mrb[0].mxu0 %vm448_vm0, %v1226_v3  ;;  %v1230_v7 = vld [vmem:[%s1375_s22 + $0x18] sm:$0xff]   ;;  %v1232_v9 = vld [vmem:[%s1375_s22 + $0x20] sm:$0xff]   ;;  %v1234_v11 = vld [vmem:[%s1375_s22 + $0x28] sm:$0xff]  }
  0x14   : > { %1182 = vmatmul.mubr.msk.bf16.vlgmr.msra.gmra.mrb[0].mxu1 %vm448_vm0, %v1227_v4  ;;  %1169 = vmatprep.mubr.msk.bf16.mxu0 %vm448_vm0, %v1228_v5  ;;  %v1231_v8 = vld [vmem:[%s1375_s22 + $0x58] sm:$0xff]   ;;  %v1233_v10 = vld [vmem:[%s1375_s22 + $0x60] sm:$0xff]   ;;  %v1235_v12 = vld [vmem:[%s1375_s22 + $0x68] sm:$0xff]  }
  0x15   : > { %1185 = vmatprep.mubr.msk.bf16.mxu1 %vm448_vm0, %v1229_v6  ;;  %v1236_v13 = vld [vmem:[%s1375_s22 + $0x30] sm:$0xff]   ;;  %v1238_v15 = vld [vmem:[%s1375_s22 + $0x38] sm:$0xff]  }
  0x16   : > { %v1237_v14 = vld [vmem:[%s1375_s22 + $0x70] sm:$0xff]   ;;  %v1239_v16 = vld [vmem:[%s1375_s22 + $0x78] sm:$0xff]  }
  0x1b   : > { %1170 = vmatmul.mubr.msk.bf16.gmra.mrb[4].mxu0 %vm448_vm0, %v1230_v7 }
  0x1c   : > { %1186 = vmatmul.mubr.msk.bf16.gmra.mrb[4].mxu1 %vm448_vm0, %v1231_v8  ;;  %1173 = vmatprep.mubr.msk.bf16.mxu0 %vm448_vm0, %v1232_v9 }
  0x1d   : > { %1189 = vmatprep.mubr.msk.bf16.mxu1 %vm448_vm0, %v1233_v10 }
  0x23   : > { %1174 = vmatmul.mubr.msk.bf16.gmra.mrb[8].mxu0 %vm448_vm0, %v1234_v11 }
  0x24   : > { %1190 = vmatmul.mubr.msk.bf16.gmra.mrb[8].mxu1 %vm448_vm0, %v1235_v12  ;;  %1177 = vmatprep.mubr.msk.bf16.mxu0 %vm448_vm0, %v1236_v13 }
  0x25   : > { %1193 = vmatprep.mubr.msk.bf16.mxu1 %vm448_vm0, %v1237_v14 }
  0x2b   : > { %1178 = vmatmul.mubr.msk.bf16.gmra.mrb[12].mxu0 %vm448_vm0, %v1238_v15 }
  0x2c   : > { %1194 = vmatmul.mubr.msk.bf16.gmra.mrb[12].mxu1 %vm448_vm0, %v1239_v16 }
  0xe6   : > { %v1167_v18 = vpop.f32.mrb[0].mxu0 }
  0xe7   : > { %v1415_v19 = vadd.f32 %v1167_v18, %v1412_v17  ;;  %v1183_v20 = vpop.f32.mrb[0].mxu1  ;;  %v531_v21 = vpop.f32.mrb[1].mxu0 }
  0xe8   : > { %v1418_v22 = vadd.f32 %v1183_v20, %v1412_v17  ;;  %v1421_v23 = vadd.f32 %v1412_v17, %v531_v21  ;;  %v595_v24 = vpop.f32.mrb[1].mxu1  ;;  %v1168_v25 = vpop.f32.mrb[2].mxu0 }
  0xe9   : > { %v798_v26 = vmul.f32 0.5, %v1415_v19  ;;  %v1425_v27 = vadd.f32 %v1412_v17, %v595_v24  ;;  %v1428_v28 = vadd.f32 %v1168_v25, %v1412_v17  ;;  %v1184_v29 = vpop.f32.mrb[2].mxu1  ;;  %v534_v30 = vpop.f32.mrb[3].mxu0 }
  0xea   : > { %v814_v31 = vmul.f32 0.5, %v1418_v22  ;;  %v796_v32 = vmul.f32 0.5, %v1421_v23  ;;  %v1433_v33 = vadd.f32 %v1184_v29, %v1412_v17  ;;  %v1436_v34 = vadd.f32 %v1412_v17, %v534_v30  ;;  %v598_v35 = vpop.f32.mrb[3].mxu1 }
  0xeb   : > { %1240 = vtanh.f32 %v798_v26  ;;  %v812_v36 = vmul.f32 0.5, %v1425_v27  ;;  %v799_v37 = vmul.f32 0.5, %v1428_v28  ;;  %v1441_v38 = vadd.f32 %v1412_v17, %v598_v35 }
  0xec   : > { %1242 = vtanh.f32 %v814_v31  ;;  %v815_v39 = vmul.f32 0.5, %v1433_v33  ;;  %v797_v40 = vmul.f32 0.5, %v1436_v34 }
  0xed   : > { %1244 = vtanh.f32 %v796_v32  ;;  %v813_v41 = vmul.f32 0.5, %v1441_v38 }
  0xee   : > { %1246 = vtanh.f32 %v812_v36  ;;  %v1171_v42 = vpop.f32.mrb[4].mxu0 }
  0xef   : > { %1248 = vtanh.f32 %v799_v37  ;;  %v1447_v43 = vadd.f32 %v1171_v42, %v1412_v17  ;;  %v1187_v44 = vpop.f32.mrb[4].mxu1  ;;  %v547_v45 = vpop.f32.mrb[5].mxu0 }
  0xf0   : > { %1250 = vtanh.f32 %v815_v39  ;;  %v1450_v46 = vadd.f32 %v1187_v44, %v1412_v17  ;;  %v1453_v47 = vadd.f32 %v1412_v17, %v547_v45  ;;  %v611_v48 = vpop.f32.mrb[5].mxu1  ;;  %v1172_v49 = vpop.f32.mrb[6].mxu0 }
  0xf1   : > { %1252 = vtanh.f32 %v797_v40  ;;  %v802_v50 = vmul.f32 0.5, %v1447_v43  ;;  %v1457_v51 = vadd.f32 %v1412_v17, %v611_v48  ;;  %v1460_v52 = vadd.f32 %v1172_v49, %v1412_v17  ;;  %v1188_v53 = vpop.f32.mrb[6].mxu1  ;;  %v550_v54 = vpop.f32.mrb[7].mxu0 }
  0xf2   : > { %1254 = vtanh.f32 %v813_v41  ;;  %v818_v55 = vmul.f32 0.5, %v1450_v46  ;;  %v800_v56 = vmul.f32 0.5, %v1453_v47  ;;  %v1465_v57 = vadd.f32 %v1188_v53, %v1412_v17  ;;  %v614_v58 = vpop.f32.mrb[7].mxu1 }
  0xf3   : > { %1256 = vtanh.f32 %v802_v50  ;;  %v816_v59 = vmul.f32 0.5, %v1457_v51  ;;  %v803_v60 = vmul.f32 0.5, %v1460_v52  ;;  %v1470_v61 = vadd.f32 %v1412_v17, %v550_v54 }
  0xf4   : > { %1258 = vtanh.f32 %v818_v55  ;;  %v819_v62 = vmul.f32 0.5, %v1465_v57  ;;  %v1474_v63 = vadd.f32 %v1412_v17, %v614_v58 }
  0xf5   : > { %v1241_v0 = vpop.eup %1240  ;;  %1260 = vtanh.f32 %v800_v56  ;;  %v801_v1 = vmul.f32 0.5, %v1470_v61 }
  0xf6   : > { %v1243_v2 = vpop.eup %1242  ;;  %v862_v3 = vadd.f32 1.0, %v1241_v0  ;;  %1262 = vtanh.f32 %v816_v59  ;;  %v817_v4 = vmul.f32 0.5, %v1474_v63  ;;  %v1175_v5 = vpop.f32.mrb[8].mxu0 }
  0xf7   : > { %v1245_v6 = vpop.eup %1244  ;;  %v878_v7 = vadd.f32 1.0, %v1243_v2  ;;  %1264 = vtanh.f32 %v803_v60  ;;  %v1480_v8 = vadd.f32 %v1175_v5, %v1412_v17  ;;  %v1191_v9 = vpop.f32.mrb[8].mxu1 }
  0xf8   : > { %v563_v10 = vpop.f32.mrb[9].mxu0  ;;  %v1247_v11 = vpop.eup %1246  ;;  %v894_v12 = vmul.f32 0.5, %v862_v3  ;;  %v860_v13 = vadd.f32 1.0, %v1245_v6  ;;  %1266 = vtanh.f32 %v819_v62  ;;  %v1483_v14 = vadd.f32 %v1191_v9, %v1412_v17 }
  0xf9   : > { %v627_v15 = vpop.f32.mrb[9].mxu1  ;;  %v1485_v16 = vpop.f32.mrb[10].mxu0  ;;  %v910_v20 = vmul.f32 0.5, %v878_v7  ;;  %v876_v21 = vadd.f32 1.0, %v1247_v11  ;;  %1268 = vtanh.f32 %v801_v1  ;;  %v806_v24 = vmul.f32 0.5, %v1480_v8 }
  0xfa   : > { %v1249_v18 = vpop.eup %1248  ;;  %v1493_v25 = vpop.f32.mrb[10].mxu1  ;;  %v926_v30 = vmul.f32 %v894_v12, %v1415_v19  ;;  %v892_v31 = vmul.f32 0.5, %v860_v13  ;;  %1270 = vtanh.f32 %v817_v4  ;;  %v822_v19 = vmul.f32 0.5, %v1483_v14 }
  0xfb   : > { %v1495_v26 = vpop.f32.mrb[11].mxu0  ;;  %v1251_v29 = vpop.eup %1250  ;;  %v863_v32 = vadd.f32 1.0, %v1249_v18  ;;  %v942_v37 = vmul.f32 %v910_v20, %v1418_v22  ;;  %v908_v39 = vmul.f32 0.5, %v876_v21  ;;  %1272 = vtanh.f32 %v806_v24 }
  0xfc   : > { %v1498_v35 = vpop.f32.mrb[11].mxu1  ;;  %v1253_v36 = vpop.eup %1252  ;;  %v879_v40 = vadd.f32 1.0, %v1251_v29  ;;  %958 = vst [vmem:[%s1490_s28 + $0x10] sm:$0xff] %v926_v30  ;;  %v924_v42 = vmul.f32 %v892_v31, %v1421_v23  ;;  %v1507_v22 = vadd.f32 %v1412_v17, %v563_v10  ;;  %1274 = vtanh.f32 %v822_v19 }
  0xfd   : > { %v1255_v41 = vpop.eup %1254  ;;  %v895_v44 = vmul.f32 0.5, %v863_v32  ;;  %v861_v45 = vadd.f32 1.0, %v1253_v36  ;;  %974 = vst [vmem:[%s1490_s28 + $0x90] sm:$0xff] %v942_v37  ;;  %v940_v49 = vmul.f32 %v908_v39, %v1425_v27  ;;  %v1523_v6 = vadd.f32 %v1412_v17, %v627_v15 }
  0xfe   : > { %v1257_v48 = vpop.eup %1256  ;;  %v911_v50 = vmul.f32 0.5, %v879_v40  ;;  %v877_v53 = vadd.f32 1.0, %v1255_v41  ;;  %956 = vst [vmem:[%s1490_s28] sm:$0xff] %v924_v42  ;;  %v1511_v58 = vpop.f32.mrb[12].mxu0  ;;  %v804_v0 = vmul.f32 0.5, %v1507_v22  ;;  %v1544_v36 = vadd.f32 %v1485_v16, %v1412_v17 }
  0xff   : > { %v1259_v54 = vpop.eup %1258  ;;  %v927_v55 = vmul.f32 %v895_v44, %v1428_v28  ;;  %v893_v23 = vmul.f32 0.5, %v861_v45  ;;  %v866_v56 = vadd.f32 1.0, %v1257_v48  ;;  %972 = vst [vmem:[%s1490_s28 + $0x80] sm:$0xff] %v940_v49  ;;  %v1516_v1 = vpop.f32.mrb[12].mxu1  ;;  %v820_v24 = vmul.f32 0.5, %v1523_v6 }
 0x100   : > { %v1261_v59 = vpop.eup %1260  ;;  %v943_v27 = vmul.f32 %v911_v50, %v1433_v33  ;;  %v909_v60 = vmul.f32 0.5, %v877_v53  ;;  %v882_v62 = vadd.f32 1.0, %v1259_v54  ;;  %v1518_v2 = vpop.f32.mrb[13].mxu0  ;;  %1276 = vtanh.f32 %v804_v0 }
 0x101   : > { %v1263_v3 = vpop.eup %1262  ;;  %959 = vst [vmem:[%s1490_s28 + $0x18] sm:$0xff] %v927_v55  ;;  %v925_v28 = vmul.f32 %v893_v23, %v1436_v34  ;;  %v898_v4 = vmul.f32 0.5, %v866_v56  ;;  %v864_v5 = vadd.f32 1.0, %v1261_v59  ;;  %v1525_v7 = vpop.f32.mrb[13].mxu1  ;;  %1278 = vtanh.f32 %v820_v24 }
 0x102   : > { %v1527_v33 = vpop.f32.mrb[14].mxu0  ;;  %v1265_v9 = vpop.eup %1264  ;;  %975 = vst [vmem:[%s1490_s28 + $0x98] sm:$0xff] %v943_v27  ;;  %v941_v10 = vmul.f32 %v909_v60, %v1441_v38  ;;  %v914_v11 = vmul.f32 0.5, %v882_v62  ;;  %v880_v12 = vadd.f32 1.0, %v1263_v3  ;;  %v807_v45 = vmul.f32 0.5, %v1544_v36 }
 0x103   : > { %v1531_v13 = vpop.f32.mrb[14].mxu1  ;;  %v1533_v34 = vpop.f32.mrb[15].mxu0  ;;  %957 = vst [vmem:[%s1490_s28 + $0x8] sm:$0xff] %v925_v28  ;;  %v930_v15 = vmul.f32 %v898_v4, %v1447_v43  ;;  %v896_v20 = vmul.f32 0.5, %v864_v5  ;;  %v867_v21 = vadd.f32 1.0, %v1265_v9  ;;  %v1575_v56 = vadd.f32 %v1511_v58, %v1412_v17 }
 0x104   : > { %v1267_v18 = vpop.eup %1266  ;;  %v1538_v29 = vpop.f32.mrb[15].mxu1  ;;  %973 = vst [vmem:[%s1490_s28 + $0x88] sm:$0xff] %v941_v10  ;;  %v946_v30 = vmul.f32 %v914_v11, %v1450_v46  ;;  %v912_v31 = vmul.f32 0.5, %v880_v12  ;;  %1280 = vtanh.f32 %v807_v45  ;;  %v1588_v58 = vadd.f32 %v1412_v17, %v1518_v2 }
 0x105   : > { %v1269_v38 = vpop.eup %1268  ;;  %v883_v32 = vadd.f32 1.0, %v1267_v18  ;;  %962 = vst [vmem:[%s1490_s28 + $0x30] sm:$0xff] %v930_v15  ;;  %v928_v43 = vmul.f32 %v896_v20, %v1453_v47  ;;  %v899_v39 = vmul.f32 0.5, %v867_v21  ;;  %v1555_v47 = vadd.f32 %v1493_v25, %v1412_v17 }
 0x106   : > { %v1271_v37 = vpop.eup %1270  ;;  %v865_v40 = vadd.f32 1.0, %v1269_v38  ;;  %978 = vst [vmem:[%s1490_s28 + $0xb0] sm:$0xff] %v946_v30  ;;  %v944_v46 = vmul.f32 %v912_v31, %v1457_v51  ;;  %v1561_v51 = vadd.f32 %v1412_v17, %v1495_v26  ;;  %v1568_v25 = vadd.f32 %v1412_v17, %v1498_v35 }
 0x107   : > { %v1273_v41 = vpop.eup %1272  ;;  %v915_v42 = vmul.f32 0.5, %v883_v32  ;;  %v881_v44 = vadd.f32 1.0, %v1271_v37  ;;  %960 = vst [vmem:[%s1490_s28 + $0x20] sm:$0xff] %v928_v43  ;;  %v931_v16 = vmul.f32 %v899_v39, %v1460_v52  ;;  %v823_v55 = vmul.f32 0.5, %v1555_v47 }
 0x108   : > { %v897_v19 = vmul.f32 0.5, %v865_v40  ;;  %v870_v48 = vadd.f32 1.0, %v1273_v41  ;;  %976 = vst [vmem:[%s1490_s28 + $0xa0] sm:$0xff] %v944_v46  ;;  %v1275_v53 = vpop.eup %1274  ;;  %v805_v26 = vmul.f32 0.5, %v1561_v51  ;;  %v821_v59 = vmul.f32 0.5, %v1568_v25 }
 0x109   : > { %v947_v49 = vmul.f32 %v915_v42, %v1465_v57  ;;  %v913_v50 = vmul.f32 0.5, %v881_v44  ;;  %963 = vst [vmem:[%s1490_s28 + $0x38] sm:$0xff] %v931_v16  ;;  %v886_v23 = vadd.f32 1.0, %v1275_v53  ;;  %1282 = vtanh.f32 %v823_v55 }
 0x10a   : > { %v929_v52 = vmul.f32 %v897_v19, %v1470_v61  ;;  %v902_v54 = vmul.f32 0.5, %v870_v48  ;;  %v1582_v35 = vadd.f32 %v1516_v1, %v1412_v17  ;;  %v1277_v27 = vpop.eup %1276  ;;  %1284 = vtanh.f32 %v805_v26 }
 0x10b   : > { %979 = vst [vmem:[%s1490_s28 + $0xb8] sm:$0xff] %v947_v49  ;;  %v945_v57 = vmul.f32 %v913_v50, %v1474_v63  ;;  %v918_v63 = vmul.f32 0.5, %v886_v23  ;;  %v810_v60 = vmul.f32 0.5, %v1575_v56  ;;  %1286 = vtanh.f32 %v821_v59  ;;  %v1279_v2 = vpop.eup %1278 }
 0x10c   : > { %961 = vst [vmem:[%s1490_s28 + $0x28] sm:$0xff] %v929_v52  ;;  %v934_v61 = vmul.f32 %v902_v54, %v1480_v8  ;;  %v868_v8 = vadd.f32 1.0, %v1277_v27  ;;  %v826_v62 = vmul.f32 0.5, %v1582_v35  ;;  %v1594_v0 = vadd.f32 %v1412_v17, %v1525_v7 }
 0x10d   : > { %977 = vst [vmem:[%s1490_s28 + $0xa8] sm:$0xff] %v945_v57  ;;  %v950_v1 = vmul.f32 %v918_v63, %v1483_v14  ;;  %1288 = vtanh.f32 %v810_v60  ;;  %v808_v3 = vmul.f32 0.5, %v1588_v58  ;;  %v1600_v28 = vadd.f32 %v1527_v33, %v1412_v17 }
 0x10e   : > { %966 = vst [vmem:[%s1490_s28 + $0x50] sm:$0xff] %v934_v61  ;;  %v900_v4 = vmul.f32 0.5, %v868_v8  ;;  %1290 = vtanh.f32 %v826_v62  ;;  %v824_v5 = vmul.f32 0.5, %v1594_v0  ;;  %v1605_v9 = vadd.f32 %v1531_v13, %v1412_v17  ;;  %v1281_v13 = vpop.eup %1280 }
 0x10f   : > { %982 = vst [vmem:[%s1490_s28 + $0xd0] sm:$0xff] %v950_v1  ;;  %v884_v7 = vadd.f32 1.0, %v1279_v2  ;;  %1292 = vtanh.f32 %v808_v3  ;;  %v811_v14 = vmul.f32 0.5, %v1600_v28  ;;  %v1611_v10 = vadd.f32 %v1412_v17, %v1533_v34 }
 0x110   : > { %v932_v33 = vmul.f32 %v900_v4, %v1507_v22  ;;  %1294 = vtanh.f32 %v824_v5  ;;  %v827_v11 = vmul.f32 0.5, %v1605_v9  ;;  %v1617_v12 = vadd.f32 %v1412_v17, %v1538_v29 }
 0x111   : > { %v916_v18 = vmul.f32 0.5, %v884_v7  ;;  %1296 = vtanh.f32 %v811_v14  ;;  %v809_v15 = vmul.f32 0.5, %v1611_v10  ;;  %v871_v20 = vadd.f32 1.0, %v1281_v13 }
 0x112   : > { %964 = vst [vmem:[%s1490_s28 + $0x40] sm:$0xff] %v932_v33  ;;  %1298 = vtanh.f32 %v827_v11  ;;  %v825_v34 = vmul.f32 0.5, %v1617_v12 }
 0x113   : > { %v948_v22 = vmul.f32 %v916_v18, %v1523_v6  ;;  %1300 = vtanh.f32 %v809_v15  ;;  %v1283_v21 = vpop.eup %1282  ;;  %v903_v24 = vmul.f32 0.5, %v871_v20 }
 0x114   : > { %1302 = vtanh.f32 %v825_v34  ;;  %v1285_v38 = vpop.eup %1284  ;;  %v887_v17 = vadd.f32 1.0, %v1283_v21 }
 0x115   : > { %980 = vst [vmem:[%s1490_s28 + $0xc0] sm:$0xff] %v948_v22  ;;  %v1287_v29 = vpop.eup %1286  ;;  %v935_v30 = vmul.f32 %v903_v24, %v1544_v36  ;;  %v869_v31 = vadd.f32 1.0, %v1285_v38 }
 0x116   : > { %v919_v37 = vmul.f32 0.5, %v887_v17  ;;  %v885_v43 = vadd.f32 1.0, %v1287_v29 }
 0x117   : > { %v1289_v32 = vpop.eup %1288  ;;  %967 = vst [vmem:[%s1490_s28 + $0x58] sm:$0xff] %v935_v30  ;;  %v901_v40 = vmul.f32 0.5, %v869_v31 }
 0x118   : > { %v1291_v39 = vpop.eup %1290  ;;  %v874_v6 = vadd.f32 1.0, %v1289_v32  ;;  %v951_v46 = vmul.f32 %v919_v37, %v1555_v47  ;;  %v917_v42 = vmul.f32 0.5, %v885_v43 }
 0x119   : > { %v1293_v41 = vpop.eup %1292  ;;  %v890_v44 = vadd.f32 1.0, %v1291_v39  ;;  %v933_v16 = vmul.f32 %v901_v40, %v1561_v51 }
 0x11a   : > { %v1295_v45 = vpop.eup %1294  ;;  %v906_v36 = vmul.f32 0.5, %v874_v6  ;;  %v872_v19 = vadd.f32 1.0, %v1293_v41  ;;  %983 = vst [vmem:[%s1490_s28 + $0xd8] sm:$0xff] %v951_v46  ;;  %v949_v49 = vmul.f32 %v917_v42, %v1568_v25 }
 0x11b   : > { %v1297_v48 = vpop.eup %1296  ;;  %v922_v50 = vmul.f32 0.5, %v890_v44  ;;  %v888_v53 = vadd.f32 1.0, %v1295_v45  ;;  %965 = vst [vmem:[%s1490_s28 + $0x48] sm:$0xff] %v933_v16 }
 0x11c   : > { %v1299_v52 = vpop.eup %1298  ;;  %v938_v47 = vmul.f32 %v906_v36, %v1575_v56  ;;  %v904_v54 = vmul.f32 0.5, %v872_v19  ;;  %v875_v55 = vadd.f32 1.0, %v1297_v48  ;;  %981 = vst [vmem:[%s1490_s28 + $0xc8] sm:$0xff] %v949_v49 }
 0x11d   : > { %v1301_v57 = vpop.eup %1300  ;;  %v954_v51 = vmul.f32 %v922_v50, %v1582_v35  ;;  %v920_v23 = vmul.f32 0.5, %v888_v53  ;;  %v891_v26 = vadd.f32 1.0, %v1299_v52 }
 0x11e   : > { %v1303_v61 = vpop.eup %1302  ;;  %970 = vst [vmem:[%s1490_s28 + $0x70] sm:$0xff] %v938_v47  ;;  %v936_v25 = vmul.f32 %v904_v54, %v1588_v58  ;;  %v907_v59 = vmul.f32 0.5, %v875_v55  ;;  %v873_v27 = vadd.f32 1.0, %v1301_v57 }
 0x11f   : > { %986 = vst [vmem:[%s1490_s28 + $0xf0] sm:$0xff] %v954_v51  ;;  %v952_v56 = vmul.f32 %v920_v23, %v1594_v0  ;;  %v923_v63 = vmul.f32 0.5, %v891_v26  ;;  %v889_v60 = vadd.f32 1.0, %v1303_v61 }
 0x120   : > { %968 = vst [vmem:[%s1490_s28 + $0x60] sm:$0xff] %v936_v25  ;;  %v939_v35 = vmul.f32 %v907_v59, %v1600_v28  ;;  %v905_v8 = vmul.f32 0.5, %v873_v27 }
 0x121   : > { %984 = vst [vmem:[%s1490_s28 + $0xe0] sm:$0xff] %v952_v56  ;;  %v955_v62 = vmul.f32 %v923_v63, %v1605_v9  ;;  %v921_v1 = vmul.f32 0.5, %v889_v60 }
 0x122   : > { %971 = vst [vmem:[%s1490_s28 + $0x78] sm:$0xff] %v939_v35  ;;  %v937_v58 = vmul.f32 %v905_v8, %v1611_v10 }
 0x123   : > { %987 = vst [vmem:[%s1490_s28 + $0xf8] sm:$0xff] %v955_v62  ;;  %v953_v3 = vmul.f32 %v921_v1, %v1617_v12 }
 0x124   : > { %969 = vst [vmem:[%s1490_s28 + $0x68] sm:$0xff] %v937_v58 }
 0x125   : > { %985 = vst [vmem:[%s1490_s28 + $0xe8] sm:$0xff] %v953_v3 }
 0x126 PF: > { %s13_s14 = sadd.s32 1, %s1326_s14   ;;  %s1661_s12 = smov %s1322_s13 }
 0x127   : > { %p10_p5 = scmp.ge.s32.totalorder %s13_s14, 4   ;;  %s1662_s13 = smov %s1664_s15 }
 0x129   :  { %12 = sbr.rel (!%p10_p5) target bundleno = 2 (0x2), region = 76 }

// kernel: _lambda_.43
= control target key start
LH: loop header
LB: loop body
LE: loop exit
PB: predicated region body
PF: predicated region fallthrough
CT: control target
= control target key end

     0   :  { %s1666_s15 = smov 0   ;;  %s1668_s16 = smov 0   ;;  %s2013_s0 = inlined_call_operand.vmem [shape: bf16[512,144], index: 0, kind: input, shape index: {}]   ;;  %s2014_s1 = inlined_call_operand.vmem [shape: bf16[144,128], index: 1, kind: input, shape index: {}]   ;;  %s2015_s2 = inlined_call_operand.vmem [shape: f32[1,128], index: 2, kind: input, shape index: {}]   ;;  %s2016_s3 = inlined_call_operand.vmem [shape: f32[512,128], index: 3, kind: input, shape index: {}]   ;;  %s2017_s4 = inlined_call_operand.vmem [shape: f32[512,128], index: 4, kind: output, shape index: {}]  }
   0x1   :  { %s1670_s17 = smov 0  }
   0x2 LB: > { %s33_s18 = sadd.s32 1, %s1634_s16  ;;  %p1383_p0 = scmp.ge.s32.totalorder %s1638_s17, 1  ;;  %s1638_s17 = sphi %s1670_s17, %s14_s17   ;;  %s1634_s16 = sphi %s1668_s16, %s2019_s16   ;;  %s1630_s15 = sphi %s1666_s15, %s2018_s15  }
   0x3   : > { %p35_p1 = scmp.ge.s32.totalorder %s33_s18, 2  ;;  %p232_p2 = scmp.lt.s32.totalorder %s1638_s17, 3 }
   0x5   : > { %s2021_s18 = smov (%p35_p1, %s33_s18), 0  ;;  %p233_p3 = pnand %p1383_p0, %p232_p2 }
   0x6   : > { %v1495_v0 = vld [vmem:[%s2014_s1] sm:$0xff] (!%p233_p3)   ;;  %v1640_v1 = vmov (!%p233_p3), 0   ;;  %s1384_s21 = sshll.u32 (!%p233_p3), %s1630_s15, 5  ;;  %v1496_v2 = vld [vmem:[%s2014_s1 + $0x8] sm:$0xff] (!%p233_p3)   ;;  %v1497_v3 = vld [vmem:[%s2014_s1 + $0x10] sm:$0xff] (!%p233_p3)   ;;  %vm644_vm0 = vcmask (!%p233_p3), 130048  }
   0x7   : > { %236 = sbr.rel (%p233_p3) target bundleno = 339 (0x153), region = 36  ;;  %693 = vmatprep.subr.bf16.mxu0 (!%p233_p3), %v1640_v1  ;;  %1452 = vmatprep.subr.bf16.mxu1 (!%p233_p3), %v1640_v1  ;;  %p287_p4 = scmp.lt.s32.totalorder (!%p233_p3), %s1384_s21, 63  ;;  %v1498_v4 = vld [vmem:[%s2014_s1 + $0x18] sm:$0xff] (!%p233_p3)   ;;  %v1499_v7 = vld [vmem:[%s2014_s1 + $0x20] sm:$0xff] (!%p233_p3)   ;;  %v1500_v8 = vld [vmem:[%s2014_s1 + $0x28] sm:$0xff] (!%p233_p3)  }
   0x8   : > { %694 = vmatpush1.bf16.msra.mxu0 (!%p233_p3), %v1495_v0  ;;  %1461 = vmatpush1.bf16.msra.mxu1 (!%p233_p3), %v1495_v0  ;;  %v1501_v9 = vld [vmem:[%s2014_s1 + $0x30] sm:$0xff] (!%p233_p3)   ;;  %v1502_v10 = vld [vmem:[%s2014_s1 + $0x38] sm:$0xff] (!%p233_p3)   ;;  %v1503_v11 = vld [vmem:[%s2014_s1 + $0x40] sm:$0xff] (!%p233_p3)  }
   0x9   : > { %695 = vmatprep.subr.bf16.mxu0 (!%p233_p3), %v1640_v1  ;;  %1453 = vmatprep.subr.bf16.mxu1 (!%p233_p3), %v1640_v1  ;;  %v1770_v42 = vld [vmem:[%s2015_s2] ss:$0 sm:$0xff] (!%p233_p3) }
   0xc   : > { %696 = vmatpush1.bf16.msra.mxu0 (!%p233_p3), %v1496_v2  ;;  %1462 = vmatpush1.bf16.msra.mxu1 (!%p233_p3), %v1496_v2 }
   0xd   : > { %697 = vmatprep.subr.bf16.mxu0 (!%p233_p3), %v1640_v1  ;;  %1454 = vmatprep.subr.bf16.mxu1 (!%p233_p3), %v1640_v1 }
   0xe   : > { %s2023_s21 = smov (!%p287_p4, %s1384_s21), 63 }
   0xf   : > { %s1693_s26 = sshll.u32 %s2023_s21, 3 }
  0x10   : > { %s1699_s29 = scalar_lea.vmem %s2013_s0, %s1693_s26  ;;  %698 = vmatpush1.bf16.msra.mxu0 %v1497_v3  ;;  %1463 = vmatpush1.bf16.msra.mxu1 %v1497_v3  ;;  %s1805_s23 = scalar_lea.vmem %s2016_s3, %s1693_s26 }
  0x11   : > { %v1506_v5 = vld [vmem:[%s1699_s29 + $0x4] ss:$8 sps:$4 sm:$0xff]   ;;  %699 = vmatprep.subr.bf16.mxu0 %v1640_v1  ;;  %1455 = vmatprep.subr.bf16.mxu1 %v1640_v1  ;;  %v1504_v12 = vld [vmem:[%s1699_s29] ss:$8 sps:$4 sm:$0xff]   ;;  %v1510_v14 = vld [vmem:[%s1699_s29 + $0x14] ss:$8 sps:$4 sm:$0xff]   ;;  %s1827_s27 = scalar_lea.vmem %s2017_s4, %s1693_s26 }
  0x12   : > { %v1509_v6 = vld [vmem:[%s1699_s29 + $0x84] ss:$8 sps:$4 sm:$0xff]   ;;  %1432 = vmatprep.mubr.msk.bf16.mxu0 %vm644_vm0, %v1506_v5  ;;  %v1507_v13 = vld [vmem:[%s1699_s29 + $0x80] ss:$8 sps:$4 sm:$0xff]   ;;  %v1512_v15 = vld [vmem:[%s1699_s29 + $0x94] ss:$8 sps:$4 sm:$0xff]  }
  0x13   : > { %1440 = vmatprep.mubr.msk.bf16.mxu1 %vm644_vm0, %v1509_v6  ;;  %v1514_v16 = vld [vmem:[%s1699_s29 + $0x10] ss:$8 sps:$4 sm:$0xff]   ;;  %v1516_v18 = vld [vmem:[%s1699_s29 + $0x24] ss:$8 sps:$4 sm:$0xff]   ;;  %v1520_v20 = vld [vmem:[%s1699_s29 + $0x20] ss:$8 sps:$4 sm:$0xff]  }
  0x14   : > { %700 = vmatpush1.bf16.msra.mxu0 %v1498_v4  ;;  %1464 = vmatpush1.bf16.msra.mxu1 %v1498_v4  ;;  %v1515_v17 = vld [vmem:[%s1699_s29 + $0x90] ss:$8 sps:$4 sm:$0xff]   ;;  %v1518_v19 = vld [vmem:[%s1699_s29 + $0xa4] ss:$8 sps:$4 sm:$0xff]   ;;  %v1521_v21 = vld [vmem:[%s1699_s29 + $0xa0] ss:$8 sps:$4 sm:$0xff]  }
  0x15   : > { %701 = vmatprep.subr.bf16.mxu0 %v1640_v1  ;;  %1456 = vmatprep.subr.bf16.mxu1 %v1640_v1  ;;  %v1522_v22 = vld [vmem:[%s1699_s29 + $0x34] ss:$8 sps:$4 sm:$0xff]   ;;  %v1526_v24 = vld [vmem:[%s1699_s29 + $0x30] ss:$8 sps:$4 sm:$0xff]   ;;  %v1528_v26 = vld [vmem:[%s1699_s29 + $0x44] ss:$8 sps:$4 sm:$0xff]  }
  0x16   : > { %v1524_v23 = vld [vmem:[%s1699_s29 + $0xb4] ss:$8 sps:$4 sm:$0xff]   ;;  %v1527_v25 = vld [vmem:[%s1699_s29 + $0xb0] ss:$8 sps:$4 sm:$0xff]   ;;  %v1530_v27 = vld [vmem:[%s1699_s29 + $0xc4] ss:$8 sps:$4 sm:$0xff]  }
  0x17   : > { %v1532_v28 = vld [vmem:[%s1699_s29 + $0x40] ss:$8 sps:$4 sm:$0xff]   ;;  %v1534_v30 = vld [vmem:[%s1699_s29 + $0x54] ss:$8 sps:$4 sm:$0xff]   ;;  %v1538_v32 = vld [vmem:[%s1699_s29 + $0x50] ss:$8 sps:$4 sm:$0xff]  }
  0x18   : > { %702 = vmatpush1.bf16.msra.mxu0 %v1499_v7  ;;  %1465 = vmatpush1.bf16.msra.mxu1 %v1499_v7  ;;  %v1533_v29 = vld [vmem:[%s1699_s29 + $0xc0] ss:$8 sps:$4 sm:$0xff]   ;;  %v1536_v31 = vld [vmem:[%s1699_s29 + $0xd4] ss:$8 sps:$4 sm:$0xff]   ;;  %v1539_v33 = vld [vmem:[%s1699_s29 + $0xd0] ss:$8 sps:$4 sm:$0xff]  }
  0x19   : > { %703 = vmatprep.subr.bf16.mxu0 %v1640_v1  ;;  %1457 = vmatprep.subr.bf16.mxu1 %v1640_v1  ;;  %v1540_v34 = vld [vmem:[%s1699_s29 + $0x64] ss:$8 sps:$4 sm:$0xff]   ;;  %v1544_v36 = vld [vmem:[%s1699_s29 + $0x60] ss:$8 sps:$4 sm:$0xff]   ;;  %v1546_v38 = vld [vmem:[%s1699_s29 + $0x74] ss:$8 sps:$4 sm:$0xff]  }
  0x1a   : > { %v1542_v35 = vld [vmem:[%s1699_s29 + $0xe4] ss:$8 sps:$4 sm:$0xff]   ;;  %v1545_v37 = vld [vmem:[%s1699_s29 + $0xe0] ss:$8 sps:$4 sm:$0xff]   ;;  %v1548_v39 = vld [vmem:[%s1699_s29 + $0xf4] ss:$8 sps:$4 sm:$0xff]  }
  0x1b   : > { %v1550_v40 = vld [vmem:[%s1699_s29 + $0x70] ss:$8 sps:$4 sm:$0xff]  }
  0x1c   : > { %704 = vmatpush1.bf16.msra.mxu0 %v1500_v8  ;;  %1466 = vmatpush1.bf16.msra.mxu1 %v1500_v8  ;;  %v1551_v41 = vld [vmem:[%s1699_s29 + $0xf0] ss:$8 sps:$4 sm:$0xff]  }
  0x1d   : > { %705 = vmatprep.subr.bf16.mxu0 %v1640_v1  ;;  %1458 = vmatprep.subr.bf16.mxu1 %v1640_v1 }
  0x20   : > { %706 = vmatpush1.bf16.msra.mxu0 %v1501_v9  ;;  %1467 = vmatpush1.bf16.msra.mxu1 %v1501_v9 }
  0x21   : > { %707 = vmatprep.subr.bf16.mxu0 %v1640_v1  ;;  %1459 = vmatprep.subr.bf16.mxu1 %v1640_v1 }
  0x24   : > { %708 = vmatpush1.bf16.msra.mxu0 %v1502_v10  ;;  %1468 = vmatpush1.bf16.msra.mxu1 %v1502_v10 }
  0x25   : > { %709 = vmatprep.subr.bf16.mxu0 %v1640_v1  ;;  %1460 = vmatprep.subr.bf16.mxu1 %v1640_v1 }
  0x28   : > { %710 = vmatpush1.bf16.msra.mxu0 %v1503_v11  ;;  %1469 = vmatpush1.bf16.msra.mxu1 %v1503_v11 }
  0x2b   : > { %726 = vmatmul.mubr.bf16.vlgmr.msra.gmra.mrb[0].mxu0 %v1504_v12  ;;  %790 = vmatmul.mubr.bf16.vlgmr.msra.gmra.mrb[0].mxu1 %v1507_v13 }
  0x2c   : > { %1433 = vmatprep.mubr.msk.bf16.mxu0 %vm644_vm0, %v1510_v14  ;;  %1441 = vmatprep.mubr.msk.bf16.mxu1 %vm644_vm0, %v1512_v15 }
  0x33   : > { %734 = vmatmul.mubr.bf16.gmra.mrb[4].mxu0 %v1514_v16  ;;  %798 = vmatmul.mubr.bf16.gmra.mrb[4].mxu1 %v1515_v17 }
  0x34   : > { %1434 = vmatprep.mubr.msk.bf16.mxu0 %vm644_vm0, %v1516_v18  ;;  %1442 = vmatprep.mubr.msk.bf16.mxu1 %vm644_vm0, %v1518_v19 }
  0x3b   : > { %742 = vmatmul.mubr.bf16.gmra.mrb[8].mxu0 %v1520_v20  ;;  %806 = vmatmul.mubr.bf16.gmra.mrb[8].mxu1 %v1521_v21 }
  0x3c   : > { %1435 = vmatprep.mubr.msk.bf16.mxu0 %vm644_vm0, %v1522_v22  ;;  %1443 = vmatprep.mubr.msk.bf16.mxu1 %vm644_vm0, %v1524_v23 }
  0x43   : > { %750 = vmatmul.mubr.bf16.gmra.mrb[12].mxu0 %v1526_v24  ;;  %814 = vmatmul.mubr.bf16.gmra.mrb[12].mxu1 %v1527_v25  ;;  %v1152_v24 = vld [vmem:[%s1805_s23] sm:$0xff] }
  0x44   : > { %1436 = vmatprep.mubr.msk.bf16.mxu0 %vm644_vm0, %v1528_v26  ;;  %1444 = vmatprep.mubr.msk.bf16.mxu1 %vm644_vm0, %v1530_v27 }
  0x4b   : > { %758 = vmatmul.mubr.bf16.gmra.mrb[16].mxu0 %v1532_v28  ;;  %822 = vmatmul.mubr.bf16.gmra.mrb[16].mxu1 %v1533_v29 }
  0x4c   : > { %1437 = vmatprep.mubr.msk.bf16.mxu0 %vm644_vm0, %v1534_v30  ;;  %1445 = vmatprep.mubr.msk.bf16.mxu1 %vm644_vm0, %v1536_v31 }
  0x53   : > { %766 = vmatmul.mubr.bf16.gmra.mrb[20].mxu0 %v1538_v32  ;;  %830 = vmatmul.mubr.bf16.gmra.mrb[20].mxu1 %v1539_v33 }
  0x54   : > { %1438 = vmatprep.mubr.msk.bf16.mxu0 %vm644_vm0, %v1540_v34  ;;  %1446 = vmatprep.mubr.msk.bf16.mxu1 %vm644_vm0, %v1542_v35  ;;  %v1168_v35 = vld [vmem:[%s1805_s23 + $0x80] sm:$0xff] }
  0x5b   : > { %774 = vmatmul.mubr.bf16.gmra.mrb[24].mxu0 %v1544_v36  ;;  %838 = vmatmul.mubr.bf16.gmra.mrb[24].mxu1 %v1545_v37 }
  0x5c   : > { %1439 = vmatprep.mubr.msk.bf16.mxu0 %vm644_vm0, %v1546_v38  ;;  %1447 = vmatprep.mubr.msk.bf16.mxu1 %vm644_vm0, %v1548_v39 }
  0x63   : > { %782 = vmatmul.mubr.bf16.gmra.mrb[28].mxu0 %v1550_v40  ;;  %846 = vmatmul.mubr.bf16.gmra.mrb[28].mxu1 %v1551_v41  ;;  %v1153_v40 = vld [vmem:[%s1805_s23 + $0x8] sm:$0xff] }
  0xfe   : > { %v727_v43 = vpop.f32.mrb[0].mxu0  ;;  %v791_v44 = vpop.f32.mrb[0].mxu1 }
  0xff   : > { %v960_v45 = vadd.f32 %v1770_v42, %v727_v43  ;;  %v1774_v46 = vadd.f32 %v1770_v42, %v791_v44  ;;  %v729_v47 = vpop.f32.mrb[1].mxu0  ;;  %v793_v48 = vpop.f32.mrb[1].mxu1 }
 0x100   : > { %v730_v49 = vpop.f32.mrb[2].mxu0  ;;  %v794_v50 = vpop.f32.mrb[2].mxu1 }
 0x101   : > { %v992_v51 = vmul.f32 0.5, %v960_v45  ;;  %v1008_v52 = vmul.f32 0.5, %v1774_v46  ;;  %v1778_v53 = vadd.f32 %v1770_v42, %v730_v49  ;;  %v1781_v54 = vadd.f32 %v1770_v42, %v794_v50  ;;  %v732_v55 = vpop.f32.mrb[3].mxu0  ;;  %v796_v56 = vpop.f32.mrb[3].mxu1 }
 0x103   : > { %1552 = vtanh.f32 %v992_v51  ;;  %v993_v57 = vmul.f32 0.5, %v1778_v53  ;;  %v1009_v58 = vmul.f32 0.5, %v1781_v54 }
 0x104   : > { %1554 = vtanh.f32 %v1008_v52 }
 0x105   : > { %1556 = vtanh.f32 %v993_v57 }
 0x106   : > { %1558 = vtanh.f32 %v1009_v58  ;;  %v735_v59 = vpop.f32.mrb[4].mxu0  ;;  %v799_v60 = vpop.f32.mrb[4].mxu1 }
 0x107   : > { %v1786_v61 = vadd.f32 %v1770_v42, %v735_v59  ;;  %v1789_v62 = vadd.f32 %v1770_v42, %v799_v60  ;;  %v737_v63 = vpop.f32.mrb[5].mxu0  ;;  %v801_v0 = vpop.f32.mrb[5].mxu1 }
 0x108   : > { %v738_v1 = vpop.f32.mrb[6].mxu0  ;;  %v802_v2 = vpop.f32.mrb[6].mxu1 }
 0x109   : > { %v994_v3 = vmul.f32 0.5, %v1786_v61  ;;  %v1010_v4 = vmul.f32 0.5, %v1789_v62  ;;  %v1794_v5 = vadd.f32 %v1770_v42, %v738_v1  ;;  %v1797_v6 = vadd.f32 %v1770_v42, %v802_v2  ;;  %v740_v7 = vpop.f32.mrb[7].mxu0  ;;  %v804_v8 = vpop.f32.mrb[7].mxu1 }
 0x10a   : > { %v1154_v8 = vld [vmem:[%s1805_s23 + $0x10] sm:$0xff] }
 0x10b   : > { %1560 = vtanh.f32 %v994_v3  ;;  %v995_v9 = vmul.f32 0.5, %v1794_v5  ;;  %v1011_v10 = vmul.f32 0.5, %v1797_v6 }
 0x10c   : > { %1562 = vtanh.f32 %v1010_v4 }
 0x10d   : > { %v1553_v11 = vpop.eup %1552  ;;  %1564 = vtanh.f32 %v995_v9 }
 0x10e   : > { %v1555_v12 = vpop.eup %1554  ;;  %v1056_v13 = vadd.f32 1.0, %v1553_v11  ;;  %1566 = vtanh.f32 %v1011_v10  ;;  %v743_v14 = vpop.f32.mrb[8].mxu0 }
 0x10f   : > { %v807_v15 = vpop.f32.mrb[8].mxu1  ;;  %v1557_v16 = vpop.eup %1556  ;;  %v1072_v17 = vadd.f32 1.0, %v1555_v12  ;;  %v1808_v18 = vadd.f32 %v1770_v42, %v743_v14 }
 0x110   : > { %v1811_v19 = vadd.f32 %v1770_v42, %v807_v15  ;;  %v745_v20 = vpop.f32.mrb[9].mxu0  ;;  %v809_v21 = vpop.f32.mrb[9].mxu1  ;;  %v1088_v23 = vmul.f32 0.5, %v1056_v13  ;;  %v1057_v25 = vadd.f32 1.0, %v1557_v16  ;;  %v1170_v16 = vld [vmem:[%s1805_s23 + $0x90] sm:$0xff] }
 0x111   : > { %v1559_v22 = vpop.eup %1558  ;;  %v746_v26 = vpop.f32.mrb[10].mxu0  ;;  %v1104_v28 = vmul.f32 0.5, %v1072_v17  ;;  %v996_v30 = vmul.f32 0.5, %v1808_v18 }
 0x112   : > { %v810_v27 = vpop.f32.mrb[10].mxu1  ;;  %v1073_v29 = vadd.f32 1.0, %v1559_v22  ;;  %v1012_v31 = vmul.f32 0.5, %v1811_v19  ;;  %v748_v32 = vpop.f32.mrb[11].mxu0  ;;  %v1120_v34 = vmul.f32 %v1088_v23, %v960_v45  ;;  %v1089_v36 = vmul.f32 0.5, %v1057_v25  ;;  %v1169_v45 = vld [vmem:[%s1805_s23 + $0x88] sm:$0xff] }
 0x113   : > { %v812_v33 = vpop.f32.mrb[11].mxu1  ;;  %v1818_v37 = vadd.f32 %v1770_v42, %v746_v26  ;;  %v1821_v38 = vadd.f32 %v1770_v42, %v810_v27  ;;  %v1136_v39 = vmul.f32 %v1104_v28, %v1774_v46  ;;  %1568 = vtanh.f32 %v996_v30  ;;  %v1155_v23 = vld [vmem:[%s1805_s23 + $0x18] sm:$0xff] }
 0x114   : > { %v1105_v41 = vmul.f32 0.5, %v1073_v29  ;;  %v1184_v43 = vadd.f32 %v1152_v24, %v1120_v34  ;;  %v1121_v44 = vmul.f32 %v1089_v36, %v1778_v53  ;;  %1570 = vtanh.f32 %v1012_v31 }
 0x115   : > { %v997_v47 = vmul.f32 0.5, %v1818_v37  ;;  %v1561_v48 = vpop.eup %1560  ;;  %v1200_v49 = vadd.f32 %v1168_v35, %v1136_v39  ;;  %v1013_v51 = vmul.f32 0.5, %v1821_v38 }
 0x116   : > { %v1137_v50 = vmul.f32 %v1105_v41, %v1781_v54  ;;  %v1563_v52 = vpop.eup %1562  ;;  %1216 = vst [vmem:[%s1827_s27] sm:$0xff] %v1184_v43  ;;  %v1185_v46 = vadd.f32 %v1153_v40, %v1121_v44  ;;  %v1058_v55 = vadd.f32 1.0, %v1561_v48  ;;  %v751_v56 = vpop.f32.mrb[12].mxu0 }
 0x117   : > { %1572 = vtanh.f32 %v997_v47  ;;  %v815_v57 = vpop.f32.mrb[12].mxu1  ;;  %v1565_v53 = vpop.eup %1564  ;;  %1232 = vst [vmem:[%s1827_s27 + $0x80] sm:$0xff] %v1200_v49  ;;  %v1074_v59 = vadd.f32 1.0, %v1563_v52  ;;  %v1839_v60 = vadd.f32 %v1770_v42, %v751_v56 }
 0x118   : > { %v1201_v58 = vadd.f32 %v1169_v45, %v1137_v50  ;;  %1574 = vtanh.f32 %v1013_v51  ;;  %v753_v54 = vpop.f32.mrb[13].mxu0  ;;  %v817_v63 = vpop.f32.mrb[13].mxu1  ;;  %1217 = vst [vmem:[%s1827_s27 + $0x8] sm:$0xff] %v1185_v46  ;;  %v1090_v1 = vmul.f32 0.5, %v1058_v55  ;;  %v1059_v2 = vadd.f32 1.0, %v1565_v53  ;;  %v1156_v45 = vld [vmem:[%s1805_s23 + $0x20] sm:$0xff] }
 0x119   : > { %v1567_v0 = vpop.eup %1566  ;;  %v1843_v3 = vadd.f32 %v1770_v42, %v815_v57  ;;  %v754_v4 = vpop.f32.mrb[14].mxu0  ;;  %v1106_v9 = vmul.f32 0.5, %v1074_v59  ;;  %v998_v11 = vmul.f32 0.5, %v1839_v60  ;;  %v1172_v53 = vld [vmem:[%s1805_s23 + $0xa0] sm:$0xff] }
 0x11a   : > { %v818_v7 = vpop.f32.mrb[14].mxu1  ;;  %1233 = vst [vmem:[%s1827_s27 + $0x88] sm:$0xff] %v1201_v58  ;;  %v1075_v10 = vadd.f32 1.0, %v1567_v0  ;;  %v1849_v12 = vadd.f32 %v1770_v42, %v754_v4  ;;  %v756_v13 = vpop.f32.mrb[15].mxu0  ;;  %v1122_v15 = vmul.f32 %v1090_v1, %v1786_v61  ;;  %v1091_v17 = vmul.f32 0.5, %v1059_v2  ;;  %v1171_v61 = vld [vmem:[%s1805_s23 + $0x98] sm:$0xff] }
 0x11b   : > { %v820_v14 = vpop.f32.mrb[15].mxu1  ;;  %v1014_v20 = vmul.f32 0.5, %v1843_v3  ;;  %v1855_v21 = vadd.f32 %v1770_v42, %v818_v7  ;;  %v1138_v22 = vmul.f32 %v1106_v9, %v1789_v62  ;;  %1576 = vtanh.f32 %v998_v11  ;;  %v1157_v2 = vld [vmem:[%s1805_s23 + $0x28] sm:$0xff] }
 0x11c   : > { %v1107_v24 = vmul.f32 0.5, %v1075_v10  ;;  %v999_v25 = vmul.f32 0.5, %v1849_v12  ;;  %v1186_v26 = vadd.f32 %v1154_v8, %v1122_v15  ;;  %v1123_v27 = vmul.f32 %v1091_v17, %v1794_v5  ;;  %v1173_v10 = vld [vmem:[%s1805_s23 + $0xa8] sm:$0xff] }
 0x11d   : > { %1578 = vtanh.f32 %v1014_v20  ;;  %v1015_v28 = vmul.f32 0.5, %v1855_v21  ;;  %v1569_v29 = vpop.eup %1568  ;;  %v1202_v30 = vadd.f32 %v1170_v16, %v1138_v22 }
 0x11e   : > { %v1139_v31 = vmul.f32 %v1107_v24, %v1797_v6  ;;  %1580 = vtanh.f32 %v999_v25  ;;  %v1571_v62 = vpop.eup %1570  ;;  %1218 = vst [vmem:[%s1827_s27 + $0x10] sm:$0xff] %v1186_v26  ;;  %v1187_v32 = vadd.f32 %v1155_v23, %v1123_v27  ;;  %v1060_v33 = vadd.f32 1.0, %v1569_v29  ;;  %v759_v34 = vpop.f32.mrb[16].mxu0 }
 0x11f   : > { %1582 = vtanh.f32 %v1015_v28  ;;  %v823_v35 = vpop.f32.mrb[16].mxu1  ;;  %1234 = vst [vmem:[%s1827_s27 + $0x90] sm:$0xff] %v1202_v30  ;;  %v1076_v36 = vadd.f32 1.0, %v1571_v62  ;;  %v1867_v39 = vadd.f32 %v1770_v42, %v759_v34  ;;  %v761_v6 = vpop.f32.mrb[17].mxu0  ;;  %v1158_v30 = vld [vmem:[%s1805_s23 + $0x30] sm:$0xff] }
 0x120   : > { %v1203_v5 = vadd.f32 %v1171_v61, %v1139_v31  ;;  %v1870_v40 = vadd.f32 %v1770_v42, %v823_v35  ;;  %v825_v41 = vpop.f32.mrb[17].mxu1  ;;  %1219 = vst [vmem:[%s1827_s27 + $0x18] sm:$0xff] %v1187_v32  ;;  %v1092_v44 = vmul.f32 0.5, %v1060_v33  ;;  %v762_v47 = vpop.f32.mrb[18].mxu0 }
 0x121   : > { %v1573_v43 = vpop.eup %1572  ;;  %v826_v48 = vpop.f32.mrb[18].mxu1  ;;  %v1108_v50 = vmul.f32 0.5, %v1076_v36  ;;  %v1000_v52 = vmul.f32 0.5, %v1867_v39  ;;  %v1880_v59 = vadd.f32 %v1770_v42, %v762_v47  ;;  %v1174_v36 = vld [vmem:[%s1805_s23 + $0xb0] sm:$0xff] }
 0x122   : > { %v1575_v49 = vpop.eup %1574  ;;  %1235 = vst [vmem:[%s1827_s27 + $0x98] sm:$0xff] %v1203_v5  ;;  %v1061_v51 = vadd.f32 1.0, %v1573_v43  ;;  %v1016_v46 = vmul.f32 0.5, %v1870_v40  ;;  %v764_v55 = vpop.f32.mrb[19].mxu0  ;;  %v1124_v57 = vmul.f32 %v1092_v44, %v1808_v18  ;;  %v1883_v54 = vadd.f32 %v1770_v42, %v826_v48 }
 0x123   : > { %v828_v56 = vpop.f32.mrb[19].mxu1  ;;  %v1077_v58 = vadd.f32 1.0, %v1575_v49  ;;  %v1140_v63 = vmul.f32 %v1108_v50, %v1811_v19  ;;  %1584 = vtanh.f32 %v1000_v52  ;;  %v1001_v18 = vmul.f32 0.5, %v1880_v59 }
 0x124   : > { %v1093_v0 = vmul.f32 0.5, %v1061_v51  ;;  %v1188_v1 = vadd.f32 %v1156_v45, %v1124_v57  ;;  %1586 = vtanh.f32 %v1016_v46  ;;  %v1017_v11 = vmul.f32 0.5, %v1883_v54  ;;  %v1159_v45 = vld [vmem:[%s1805_s23 + $0x38] sm:$0xff] }
 0x125   : > { %v1109_v4 = vmul.f32 0.5, %v1077_v58  ;;  %v1577_v7 = vpop.eup %1576  ;;  %v1204_v8 = vadd.f32 %v1172_v53, %v1140_v63  ;;  %1588 = vtanh.f32 %v1001_v18 }
 0x126   : > { %v1125_v9 = vmul.f32 %v1093_v0, %v1818_v37  ;;  %1220 = vst [vmem:[%s1827_s27 + $0x20] sm:$0xff] %v1188_v1  ;;  %v1062_v14 = vadd.f32 1.0, %v1577_v7  ;;  %v767_v15 = vpop.f32.mrb[20].mxu0  ;;  %v831_v16 = vpop.f32.mrb[20].mxu1  ;;  %1590 = vtanh.f32 %v1017_v11  ;;  %v1160_v7 = vld [vmem:[%s1805_s23 + $0x40] sm:$0xff] }
 0x127   : > { %v1579_v13 = vpop.eup %1578  ;;  %v1141_v19 = vmul.f32 %v1109_v4, %v1821_v38  ;;  %1236 = vst [vmem:[%s1827_s27 + $0xa0] sm:$0xff] %v1204_v8  ;;  %v1895_v37 = vadd.f32 %v1770_v42, %v767_v15  ;;  %v769_v23 = vpop.f32.mrb[21].mxu0  ;;  %v1898_v61 = vadd.f32 %v1770_v42, %v831_v16 }
 0x128   : > { %v1581_v17 = vpop.eup %1580  ;;  %v1189_v20 = vadd.f32 %v1157_v2, %v1125_v9  ;;  %v1078_v22 = vadd.f32 1.0, %v1579_v13  ;;  %v833_v24 = vpop.f32.mrb[21].mxu1  ;;  %v1094_v38 = vmul.f32 0.5, %v1062_v14 }
 0x129   : > { %v1583_v25 = vpop.eup %1582  ;;  %v1205_v26 = vadd.f32 %v1173_v10, %v1141_v19  ;;  %v1063_v27 = vadd.f32 1.0, %v1581_v17  ;;  %v770_v28 = vpop.f32.mrb[22].mxu0  ;;  %v1002_v32 = vmul.f32 0.5, %v1895_v37  ;;  %v1018_v41 = vmul.f32 0.5, %v1898_v61 }
 0x12a   : > { %v834_v29 = vpop.f32.mrb[22].mxu1  ;;  %1221 = vst [vmem:[%s1827_s27 + $0x28] sm:$0xff] %v1189_v20  ;;  %v1110_v31 = vmul.f32 0.5, %v1078_v22  ;;  %v1079_v62 = vadd.f32 1.0, %v1583_v25  ;;  %v1904_v33 = vadd.f32 %v1770_v42, %v770_v28  ;;  %v772_v34 = vpop.f32.mrb[23].mxu0  ;;  %v1126_v5 = vmul.f32 %v1094_v38, %v1839_v60  ;;  %v1175_v60 = vld [vmem:[%s1805_s23 + $0xb8] sm:$0xff] }
 0x12b   : > { %v836_v35 = vpop.f32.mrb[23].mxu1  ;;  %1237 = vst [vmem:[%s1827_s27 + $0xa8] sm:$0xff] %v1205_v26  ;;  %v1095_v6 = vmul.f32 0.5, %v1063_v27  ;;  %v1911_v43 = vadd.f32 %v1770_v42, %v834_v29  ;;  %1592 = vtanh.f32 %v1002_v32  ;;  %v1176_v20 = vld [vmem:[%s1805_s23 + $0xc0] sm:$0xff]  ;;  %v1161_v27 = vld [vmem:[%s1805_s23 + $0x48] sm:$0xff] }
 0x12c   : > { %v1142_v44 = vmul.f32 %v1110_v31, %v1843_v3  ;;  %v1111_v47 = vmul.f32 0.5, %v1079_v62  ;;  %v1003_v48 = vmul.f32 0.5, %v1904_v33  ;;  %v1190_v49 = vadd.f32 %v1158_v30, %v1126_v5  ;;  %v1177_v62 = vld [vmem:[%s1805_s23 + $0xc8] sm:$0xff] }
 0x12d   : > { %v1127_v50 = vmul.f32 %v1095_v6, %v1849_v12  ;;  %1594 = vtanh.f32 %v1018_v41  ;;  %v1019_v51 = vmul.f32 0.5, %v1911_v43  ;;  %v1585_v52 = vpop.eup %1584 }
 0x12e   : > { %v1206_v46 = vadd.f32 %v1174_v36, %v1142_v44  ;;  %v1143_v55 = vmul.f32 %v1111_v47, %v1855_v21  ;;  %1596 = vtanh.f32 %v1003_v48  ;;  %v1587_v3 = vpop.eup %1586  ;;  %1222 = vst [vmem:[%s1827_s27 + $0x30] sm:$0xff] %v1190_v49  ;;  %v1064_v57 = vadd.f32 1.0, %v1585_v52  ;;  %v775_v53 = vpop.f32.mrb[24].mxu0 }
 0x12f   : > { %v1191_v56 = vadd.f32 %v1159_v45, %v1127_v50  ;;  %1598 = vtanh.f32 %v1019_v51  ;;  %v839_v58 = vpop.f32.mrb[24].mxu1  ;;  %v1080_v63 = vadd.f32 1.0, %v1587_v3  ;;  %v1923_v0 = vadd.f32 %v1770_v42, %v775_v53  ;;  %v777_v21 = vpop.f32.mrb[25].mxu0 }
 0x130   : > { %1238 = vst [vmem:[%s1827_s27 + $0xb0] sm:$0xff] %v1206_v46  ;;  %v1207_v12 = vadd.f32 %v1175_v60, %v1143_v55  ;;  %v1926_v1 = vadd.f32 %v1770_v42, %v839_v58  ;;  %v841_v2 = vpop.f32.mrb[25].mxu1  ;;  %v1589_v4 = vpop.eup %1588  ;;  %v1096_v18 = vmul.f32 0.5, %v1064_v57  ;;  %v1162_v46 = vld [vmem:[%s1805_s23 + $0x50] sm:$0xff] }
 0x131   : > { %1223 = vst [vmem:[%s1827_s27 + $0x38] sm:$0xff] %v1191_v56  ;;  %v778_v8 = vpop.f32.mrb[26].mxu0  ;;  %v842_v9 = vpop.f32.mrb[26].mxu1  ;;  %v1112_v11 = vmul.f32 0.5, %v1080_v63  ;;  %v1065_v13 = vadd.f32 1.0, %v1589_v4  ;;  %v1004_v19 = vmul.f32 0.5, %v1923_v0 }
 0x132   : > { %v1591_v10 = vpop.eup %1590  ;;  %1239 = vst [vmem:[%s1827_s27 + $0xb8] sm:$0xff] %v1207_v12  ;;  %v1020_v14 = vmul.f32 0.5, %v1926_v1  ;;  %v780_v15 = vpop.f32.mrb[27].mxu0  ;;  %v1128_v17 = vmul.f32 %v1096_v18, %v1867_v39  ;;  %v1936_v23 = vadd.f32 %v1770_v42, %v778_v8  ;;  %v1939_v24 = vadd.f32 %v1770_v42, %v842_v9  ;;  %v1178_v63 = vld [vmem:[%s1805_s23 + $0xd0] sm:$0xff] }
 0x133   : > { %v844_v16 = vpop.f32.mrb[27].mxu1  ;;  %v1081_v22 = vadd.f32 1.0, %v1591_v10  ;;  %v1144_v25 = vmul.f32 %v1112_v11, %v1870_v40  ;;  %v1097_v26 = vmul.f32 0.5, %v1065_v13  ;;  %1600 = vtanh.f32 %v1004_v19 }
 0x134   : > { %v1192_v38 = vadd.f32 %v1160_v7, %v1128_v17  ;;  %1602 = vtanh.f32 %v1020_v14  ;;  %v1005_v39 = vmul.f32 0.5, %v1936_v23  ;;  %v1021_v32 = vmul.f32 0.5, %v1939_v24  ;;  %v1163_v7 = vld [vmem:[%s1805_s23 + $0x58] sm:$0xff] }
 0x135   : > { %v1113_v28 = vmul.f32 0.5, %v1081_v22  ;;  %v1593_v29 = vpop.eup %1592  ;;  %v1208_v30 = vadd.f32 %v1176_v20, %v1144_v25  ;;  %v1129_v31 = vmul.f32 %v1097_v26, %v1880_v59  ;;  %v1164_v26 = vld [vmem:[%s1805_s23 + $0x60] sm:$0xff] }
 0x136   : > { %1224 = vst [vmem:[%s1827_s27 + $0x40] sm:$0xff] %v1192_v38  ;;  %v1066_v35 = vadd.f32 1.0, %v1593_v29  ;;  %1604 = vtanh.f32 %v1005_v39  ;;  %v783_v5 = vpop.f32.mrb[28].mxu0  ;;  %v847_v36 = vpop.f32.mrb[28].mxu1 }
 0x137   : > { %v1595_v34 = vpop.eup %1594  ;;  %v1145_v40 = vmul.f32 %v1113_v28, %v1883_v54  ;;  %1240 = vst [vmem:[%s1827_s27 + $0xc0] sm:$0xff] %v1208_v30  ;;  %v1193_v41 = vadd.f32 %v1161_v27, %v1129_v31  ;;  %1606 = vtanh.f32 %v1021_v32  ;;  %v1951_v59 = vadd.f32 %v1770_v42, %v783_v5  ;;  %v785_v45 = vpop.f32.mrb[29].mxu0  ;;  %v1180_v28 = vld [vmem:[%s1805_s23 + $0xe0] sm:$0xff]  ;;  %v1181_v5 = vld [vmem:[%s1805_s23 + $0xe8] sm:$0xff] }
 0x138   : > { %v1597_v6 = vpop.eup %1596  ;;  %v1082_v44 = vadd.f32 1.0, %v1595_v34  ;;  %v849_v47 = vpop.f32.mrb[29].mxu1  ;;  %v1098_v54 = vmul.f32 0.5, %v1066_v35  ;;  %v1954_v60 = vadd.f32 %v1770_v42, %v847_v36 }
 0x139   : > { %v1599_v48 = vpop.eup %1598  ;;  %v1209_v49 = vadd.f32 %v1177_v62, %v1145_v40  ;;  %v1067_v50 = vadd.f32 1.0, %v1597_v6  ;;  %v786_v51 = vpop.f32.mrb[30].mxu0  ;;  %1225 = vst [vmem:[%s1827_s27 + $0x48] sm:$0xff] %v1193_v41  ;;  %v1006_v56 = vmul.f32 0.5, %v1951_v59  ;;  %v1165_v62 = vld [vmem:[%s1805_s23 + $0x68] sm:$0xff] }
 0x13a   : > { %v850_v52 = vpop.f32.mrb[30].mxu1  ;;  %v1114_v55 = vmul.f32 0.5, %v1082_v44  ;;  %v1083_v3 = vadd.f32 1.0, %v1599_v48  ;;  %v1960_v57 = vadd.f32 %v1770_v42, %v786_v51  ;;  %v788_v53 = vpop.f32.mrb[31].mxu0  ;;  %v1130_v12 = vmul.f32 %v1098_v54, %v1895_v37  ;;  %v1179_v37 = vld [vmem:[%s1805_s23 + $0xd8] sm:$0xff]  ;;  %v1182_v51 = vld [vmem:[%s1805_s23 + $0xf0] sm:$0xff] }
 0x13b   : > { %v852_v58 = vpop.f32.mrb[31].mxu1  ;;  %1241 = vst [vmem:[%s1827_s27 + $0xc8] sm:$0xff] %v1209_v49  ;;  %v1099_v21 = vmul.f32 0.5, %v1067_v50  ;;  %v1022_v2 = vmul.f32 0.5, %v1954_v60  ;;  %v1967_v4 = vadd.f32 %v1770_v42, %v850_v52  ;;  %1608 = vtanh.f32 %v1006_v56 }
 0x13c   : > { %v1146_v18 = vmul.f32 %v1114_v55, %v1898_v61  ;;  %v1115_v8 = vmul.f32 0.5, %v1083_v3  ;;  %v1007_v9 = vmul.f32 0.5, %v1960_v57  ;;  %v1194_v10 = vadd.f32 %v1162_v46, %v1130_v12  ;;  %v1167_v55 = vld [vmem:[%s1805_s23 + $0x78] sm:$0xff] }
 0x13d   : > { %v1131_v11 = vmul.f32 %v1099_v21, %v1904_v33  ;;  %1610 = vtanh.f32 %v1022_v2  ;;  %v1023_v13 = vmul.f32 0.5, %v1967_v4  ;;  %v1601_v19 = vpop.eup %1600  ;;  %v1183_v58 = vld [vmem:[%s1805_s23 + $0xf8] sm:$0xff] }
 0x13e   : > { %v1210_v42 = vadd.f32 %v1178_v63, %v1146_v18  ;;  %v1147_v61 = vmul.f32 %v1115_v8, %v1911_v43  ;;  %1612 = vtanh.f32 %v1007_v9  ;;  %v1603_v14 = vpop.eup %1602  ;;  %1226 = vst [vmem:[%s1827_s27 + $0x50] sm:$0xff] %v1194_v10  ;;  %v1068_v16 = vadd.f32 1.0, %v1601_v19 }
 0x13f   : > { %v1195_v15 = vadd.f32 %v1163_v7, %v1131_v11  ;;  %1614 = vtanh.f32 %v1023_v13  ;;  %v1084_v17 = vadd.f32 1.0, %v1603_v14 }
 0x140   : > { %1242 = vst [vmem:[%s1827_s27 + $0xd0] sm:$0xff] %v1210_v42  ;;  %v1211_v33 = vadd.f32 %v1179_v37, %v1147_v61  ;;  %v1605_v20 = vpop.eup %1604  ;;  %v1100_v22 = vmul.f32 0.5, %v1068_v16 }
 0x141   : > { %1227 = vst [vmem:[%s1827_s27 + $0x58] sm:$0xff] %v1195_v15  ;;  %v1607_v25 = vpop.eup %1606  ;;  %v1116_v43 = vmul.f32 0.5, %v1084_v17  ;;  %v1069_v38 = vadd.f32 1.0, %v1605_v20 }
 0x142   : > { %1243 = vst [vmem:[%s1827_s27 + $0xd8] sm:$0xff] %v1211_v33  ;;  %v1132_v27 = vmul.f32 %v1100_v22, %v1923_v0  ;;  %v1085_v39 = vadd.f32 1.0, %v1607_v25 }
 0x143   : > { %v1148_v29 = vmul.f32 %v1116_v43, %v1926_v1  ;;  %v1101_v30 = vmul.f32 0.5, %v1069_v38 }
 0x144   : > { %v1196_v31 = vadd.f32 %v1164_v26, %v1132_v27  ;;  %v1117_v32 = vmul.f32 0.5, %v1085_v39 }
 0x145   : > { %v1609_v34 = vpop.eup %1608  ;;  %v1212_v40 = vadd.f32 %v1180_v28, %v1148_v29  ;;  %v1133_v35 = vmul.f32 %v1101_v30, %v1936_v23  ;;  %v1166_v23 = vld [vmem:[%s1805_s23 + $0x70] sm:$0xff] }
 0x146   : > { %1228 = vst [vmem:[%s1827_s27 + $0x60] sm:$0xff] %v1196_v31  ;;  %v1149_v0 = vmul.f32 %v1117_v32, %v1939_v24  ;;  %v1070_v6 = vadd.f32 1.0, %v1609_v34 }
 0x147   : > { %v1611_v36 = vpop.eup %1610  ;;  %1244 = vst [vmem:[%s1827_s27 + $0xe0] sm:$0xff] %v1212_v40  ;;  %v1197_v1 = vadd.f32 %v1165_v62, %v1133_v35 }
 0x148   : > { %v1613_v41 = vpop.eup %1612  ;;  %v1086_v44 = vadd.f32 1.0, %v1611_v36  ;;  %v1213_v47 = vadd.f32 %v1181_v5, %v1149_v0  ;;  %v1102_v48 = vmul.f32 0.5, %v1070_v6 }
 0x149   : > { %v1615_v45 = vpop.eup %1614  ;;  %v1071_v49 = vadd.f32 1.0, %v1613_v41  ;;  %1229 = vst [vmem:[%s1827_s27 + $0x68] sm:$0xff] %v1197_v1 }
 0x14a   : > { %v1118_v54 = vmul.f32 0.5, %v1086_v44  ;;  %v1087_v50 = vadd.f32 1.0, %v1615_v45  ;;  %1245 = vst [vmem:[%s1827_s27 + $0xe8] sm:$0xff] %v1213_v47  ;;  %v1134_v24 = vmul.f32 %v1102_v48, %v1951_v59 }
 0x14b   : > { %v1103_v52 = vmul.f32 0.5, %v1071_v49 }
 0x14c   : > { %v1150_v46 = vmul.f32 %v1118_v54, %v1954_v60  ;;  %v1119_v3 = vmul.f32 0.5, %v1087_v50  ;;  %v1198_v56 = vadd.f32 %v1166_v23, %v1134_v24 }
 0x14d   : > { %v1135_v53 = vmul.f32 %v1103_v52, %v1960_v57 }
 0x14e   : > { %v1214_v12 = vadd.f32 %v1182_v51, %v1150_v46  ;;  %v1151_v63 = vmul.f32 %v1119_v3, %v1967_v4  ;;  %1230 = vst [vmem:[%s1827_s27 + $0x70] sm:$0xff] %v1198_v56 }
 0x14f   : > { %v1199_v21 = vadd.f32 %v1167_v55, %v1135_v53 }
 0x150   : > { %1246 = vst [vmem:[%s1827_s27 + $0xf0] sm:$0xff] %v1214_v12  ;;  %v1215_v2 = vadd.f32 %v1183_v58, %v1151_v63 }
 0x151   : > { %1231 = vst [vmem:[%s1827_s27 + $0x78] sm:$0xff] %v1199_v21 }
 0x152   : > { %1247 = vst [vmem:[%s1827_s27 + $0xf8] sm:$0xff] %v1215_v2 }
 0x153 PF: > { %s14_s17 = sadd.s32 1, %s1638_s17   ;;  %s2018_s15 = smov %s1634_s16 }
 0x154   : > { %p11_p5 = scmp.ge.s32.totalorder %s14_s17, 4   ;;  %s2019_s16 = smov %s2021_s18 }
 0x156   :  { %13 = sbr.rel (!%p11_p5) target bundleno = 2 (0x2), region = 83 }

// kernel: _lambda_.45
= control target key start
LH: loop header
LB: loop body
LE: loop exit
PB: predicated region body
PF: predicated region fallthrough
CT: control target
= control target key end

     0   :  { %s2092_s12 = smov 0   ;;  %s2094_s13 = smov 0   ;;  %s2481_s0 = inlined_call_operand.vmem [shape: bf16[512,288], index: 0, kind: input, shape index: {}]   ;;  %s2482_s1 = inlined_call_operand.vmem [shape: bf16[288,128], index: 1, kind: input, shape index: {}]   ;;  %s2483_s2 = inlined_call_operand.vmem [shape: f32[1,128], index: 2, kind: input, shape index: {}]   ;;  %s2484_s3 = inlined_call_operand.vmem [shape: f32[512,128], index: 3, kind: output, shape index: {}]  }
   0x1   :  { %s2096_s14 = smov 0  }
   0x2 LB: > { %s32_s15 = sadd.s32 1, %s2066_s13  ;;  %p1605_p0 = scmp.ge.s32.totalorder %s2070_s14, 1  ;;  %s2070_s14 = sphi %s2096_s14, %s13_s14   ;;  %s2066_s13 = sphi %s2094_s13, %s2486_s13   ;;  %s2062_s12 = sphi %s2092_s12, %s2485_s12  }
   0x3   : > { %p34_p1 = scmp.ge.s32.totalorder %s32_s15, 2  ;;  %p191_p2 = scmp.lt.s32.totalorder %s2070_s14, 3 }
   0x5   : > { %s2488_s15 = smov (%p34_p1, %s32_s15), 0  ;;  %p192_p3 = pnand %p1605_p0, %p191_p2 }
   0x6   : > { %v1902_v0 = vld [vmem:[%s2482_s1 + $0x40] sm:$0xff] (!%p192_p3)   ;;  %s1606_s18 = sshll.u32 (!%p192_p3), %s2062_s12, 5  ;;  %v1904_v2 = vld [vmem:[%s2482_s1 + $0x48] sm:$0xff] (!%p192_p3)   ;;  %v1906_v4 = vld [vmem:[%s2482_s1 + $0x50] sm:$0xff] (!%p192_p3)   ;;  %vm784_vm0 = vcmask (!%p192_p3), 261120  }
   0x7   : > { %195 = sbr.rel (%p192_p3) target bundleno = 371 (0x173), region = 32  ;;  %v1903_v1 = vld [vmem:[%s2482_s1] sm:$0xff] (!%p192_p3)   ;;  %1695 = vmatprep.subr.bf16.mxu0 (!%p192_p3), %v1902_v0  ;;  %1861 = vmatprep.subr.bf16.mxu1 (!%p192_p3), %v1902_v0  ;;  %p236_p4 = scmp.lt.s32.totalorder (!%p192_p3), %s1606_s18, 63  ;;  %v1905_v3 = vld [vmem:[%s2482_s1 + $0x8] sm:$0xff] (!%p192_p3)   ;;  %v1907_v5 = vld [vmem:[%s2482_s1 + $0x10] sm:$0xff] (!%p192_p3)  }
   0x8   : > { %1696 = vmatpush3.bf16.msra.mxu0 (!%p192_p3), %v1903_v1  ;;  %1869 = vmatpush3.bf16.msra.mxu1 (!%p192_p3), %v1903_v1  ;;  %v1908_v6 = vld [vmem:[%s2482_s1 + $0x58] sm:$0xff] (!%p192_p3)   ;;  %v1910_v8 = vld [vmem:[%s2482_s1 + $0x60] sm:$0xff] (!%p192_p3)   ;;  %v1912_v10 = vld [vmem:[%s2482_s1 + $0x68] sm:$0xff] (!%p192_p3)  }
   0x9   : > { %1697 = vmatprep.subr.bf16.mxu0 (!%p192_p3), %v1904_v2  ;;  %1862 = vmatprep.subr.bf16.mxu1 (!%p192_p3), %v1904_v2  ;;  %v1909_v7 = vld [vmem:[%s2482_s1 + $0x18] sm:$0xff] (!%p192_p3)   ;;  %v1911_v9 = vld [vmem:[%s2482_s1 + $0x20] sm:$0xff] (!%p192_p3)   ;;  %v1913_v13 = vld [vmem:[%s2482_s1 + $0x28] sm:$0xff] (!%p192_p3)  }
   0xa   : > { %v1914_v14 = vld [vmem:[%s2482_s1 + $0x70] sm:$0xff] (!%p192_p3)   ;;  %v1916_v16 = vld [vmem:[%s2482_s1 + $0x78] sm:$0xff] (!%p192_p3)   ;;  %v1924_v18 = vld [vmem:[%s2482_s1 + $0x80] sm:$0xff] (!%p192_p3)  }
   0xb   : > { %v1915_v15 = vld [vmem:[%s2482_s1 + $0x30] sm:$0xff] (!%p192_p3)   ;;  %v1917_v17 = vld [vmem:[%s2482_s1 + $0x38] sm:$0xff] (!%p192_p3)   ;;  %v1937_v23 = vld [vmem:[%s2482_s1 + $0x88] sm:$0xff] (!%p192_p3)  }
   0xc   : > { %1698 = vmatpush3.bf16.msra.mxu0 (!%p192_p3), %v1905_v3  ;;  %1870 = vmatpush3.bf16.msra.mxu1 (!%p192_p3), %v1905_v3 }
   0xd   : > { %1699 = vmatprep.subr.bf16.mxu0 (!%p192_p3), %v1906_v4  ;;  %1863 = vmatprep.subr.bf16.mxu1 (!%p192_p3), %v1906_v4 }
   0xe   : > { %s2490_s18 = smov (!%p236_p4, %s1606_s18), 63 }
   0xf   : > { %s1877_s4 = smul.u32 12, %s2490_s18  ;;  %s1609_s9 = sshll.u32 %s2490_s18, 3 }
  0x10   : > { %1700 = vmatpush3.bf16.msra.mxu0 %v1907_v5  ;;  %1871 = vmatpush3.bf16.msra.mxu1 %v1907_v5 }
  0x11   : > { %1701 = vmatprep.subr.bf16.mxu0 %v1908_v6  ;;  %1864 = vmatprep.subr.bf16.mxu1 %v1908_v6  ;;  %s2143_s11 = scalar_lea.vmem %s2481_s0, %s1877_s4 }
  0x12   : > { %v1920_v11 = vld [vmem:[%s2143_s11 + $0x4] ss:$12 sps:$4 sm:$0xff]   ;;  %v1918_v19 = vld [vmem:[%s2143_s11] ss:$12 sps:$4 sm:$0xff]   ;;  %v1925_v21 = vld [vmem:[%s2143_s11 + $0x1c] ss:$12 sps:$4 sm:$0xff]  }
  0x13   : > { %v1923_v12 = vld [vmem:[%s2143_s11 + $0x124] ss:$12 sps:$4 sm:$0xff]   ;;  %865 = vmatprep.mubr.bf16.mxu0 %v1920_v11  ;;  %v1921_v20 = vld [vmem:[%s2143_s11 + $0x120] ss:$12 sps:$4 sm:$0xff]   ;;  %v1927_v22 = vld [vmem:[%s2143_s11 + $0x13c] ss:$12 sps:$4 sm:$0xff]  }
  0x14   : > { %1702 = vmatpush3.bf16.msra.mxu0 %v1909_v7  ;;  %1872 = vmatpush3.bf16.msra.mxu1 %v1909_v7  ;;  %v1929_v24 = vld [vmem:[%s2143_s11 + $0x18] ss:$12 sps:$4 sm:$0xff]   ;;  %v1931_v26 = vld [vmem:[%s2143_s11 + $0x34] ss:$12 sps:$4 sm:$0xff]   ;;  %v1935_v28 = vld [vmem:[%s2143_s11 + $0x30] ss:$12 sps:$4 sm:$0xff]  }
  0x15   : > { %1703 = vmatprep.subr.bf16.mxu0 %v1910_v8  ;;  %1865 = vmatprep.subr.bf16.mxu1 %v1910_v8  ;;  %v1930_v25 = vld [vmem:[%s2143_s11 + $0x138] ss:$12 sps:$4 sm:$0xff]   ;;  %v1933_v27 = vld [vmem:[%s2143_s11 + $0x154] ss:$12 sps:$4 sm:$0xff]   ;;  %v1936_v29 = vld [vmem:[%s2143_s11 + $0x150] ss:$12 sps:$4 sm:$0xff]  }
  0x16   : > { %961 = vmatprep.mubr.bf16.mxu1 %v1923_v12  ;;  %v1938_v30 = vld [vmem:[%s2143_s11 + $0x4c] ss:$12 sps:$4 sm:$0xff]   ;;  %v1942_v32 = vld [vmem:[%s2143_s11 + $0x48] ss:$12 sps:$4 sm:$0xff]   ;;  %v1944_v34 = vld [vmem:[%s2143_s11 + $0x64] ss:$12 sps:$4 sm:$0xff]  }
  0x17   : > { %v1940_v31 = vld [vmem:[%s2143_s11 + $0x16c] ss:$12 sps:$4 sm:$0xff]   ;;  %v1943_v33 = vld [vmem:[%s2143_s11 + $0x168] ss:$12 sps:$4 sm:$0xff]   ;;  %v1953_v41 = vld [vmem:[%s2143_s11 + $0x50] ss:$12 sps:$4 sm:$0xff]  }
  0x18   : > { %1704 = vmatpush3.bf16.msra.mxu0 %v1911_v9  ;;  %1873 = vmatpush3.bf16.msra.mxu1 %v1911_v9  ;;  %v1946_v35 = vld [vmem:[%s2143_s11 + $0x8] ss:$12 sps:$4 sm:$0xff]   ;;  %v1947_v36 = vld [vmem:[%s2143_s11 + $0x60] ss:$12 sps:$4 sm:$0xff]   ;;  %v1951_v39 = vld [vmem:[%s2143_s11 + $0x38] ss:$12 sps:$4 sm:$0xff]  }
  0x19   : > { %1705 = vmatprep.subr.bf16.mxu0 %v1912_v10  ;;  %1866 = vmatprep.subr.bf16.mxu1 %v1912_v10  ;;  %v1948_v37 = vld [vmem:[%s2143_s11 + $0x20] ss:$12 sps:$4 sm:$0xff]   ;;  %v1949_v38 = vld [vmem:[%s2143_s11 + $0x7c] ss:$12 sps:$4 sm:$0xff]   ;;  %v1952_v40 = vld [vmem:[%s2143_s11 + $0x78] ss:$12 sps:$4 sm:$0xff]  }
  0x1a   : > { %v1954_v42 = vld [vmem:[%s2143_s11 + $0x94] ss:$12 sps:$4 sm:$0xff]   ;;  %v1957_v44 = vld [vmem:[%s2143_s11 + $0x90] ss:$12 sps:$4 sm:$0xff]   ;;  %v1959_v46 = vld [vmem:[%s2143_s11 + $0xac] ss:$12 sps:$4 sm:$0xff]  }
  0x1b   : > { %v1956_v43 = vld [vmem:[%s2143_s11 + $0x68] ss:$12 sps:$4 sm:$0xff]   ;;  %v1958_v45 = vld [vmem:[%s2143_s11 + $0x80] ss:$12 sps:$4 sm:$0xff]   ;;  %v1961_v47 = vld [vmem:[%s2143_s11 + $0x98] ss:$12 sps:$4 sm:$0xff]  }
  0x1c   : > { %1706 = vmatpush3.bf16.msra.mxu0 %v1913_v13  ;;  %1874 = vmatpush3.bf16.msra.mxu1 %v1913_v13  ;;  %v1962_v48 = vld [vmem:[%s2143_s11 + $0xa8] ss:$12 sps:$4 sm:$0xff]   ;;  %v1963_v49 = vld [vmem:[%s2143_s11 + $0xb0] ss:$12 sps:$4 sm:$0xff]   ;;  %v1967_v52 = vld [vmem:[%s2143_s11 + $0xc0] ss:$12 sps:$4 sm:$0xff]  }
  0x1d   : > { %1707 = vmatprep.subr.bf16.mxu0 %v1914_v14  ;;  %1867 = vmatprep.subr.bf16.mxu1 %v1914_v14  ;;  %v1964_v50 = vld [vmem:[%s2143_s11 + $0xc4] ss:$12 sps:$4 sm:$0xff]   ;;  %v1966_v51 = vld [vmem:[%s2143_s11 + $0xc8] ss:$12 sps:$4 sm:$0xff]   ;;  %v1968_v53 = vld [vmem:[%s2143_s11 + $0xe0] ss:$12 sps:$4 sm:$0xff]  }
  0x1e   : > { %v1969_v54 = vld [vmem:[%s2143_s11 + $0xdc] ss:$12 sps:$4 sm:$0xff]   ;;  %v1971_v55 = vld [vmem:[%s2143_s11 + $0xf8] ss:$12 sps:$4 sm:$0xff]   ;;  %v1974_v58 = vld [vmem:[%s2143_s11 + $0xf4] ss:$12 sps:$4 sm:$0xff]  }
  0x1f   : > { %v1972_v56 = vld [vmem:[%s2143_s11 + $0xd8] ss:$12 sps:$4 sm:$0xff]   ;;  %v1973_v57 = vld [vmem:[%s2143_s11 + $0x110] ss:$12 sps:$4 sm:$0xff]   ;;  %v1976_v59 = vld [vmem:[%s2143_s11 + $0x128] ss:$12 sps:$4 sm:$0xff]  }
  0x20   : > { %1708 = vmatpush3.bf16.msra.mxu0 %v1915_v15  ;;  %1875 = vmatpush3.bf16.msra.mxu1 %v1915_v15  ;;  %v1977_v60 = vld [vmem:[%s2143_s11 + $0xf0] ss:$12 sps:$4 sm:$0xff]   ;;  %v1978_v61 = vld [vmem:[%s2143_s11 + $0x140] ss:$12 sps:$4 sm:$0xff]   ;;  %v1981_v63 = vld [vmem:[%s2143_s11 + $0x158] ss:$12 sps:$4 sm:$0xff]  }
  0x21   : > { %1709 = vmatprep.subr.bf16.mxu0 %v1916_v16  ;;  %1868 = vmatprep.subr.bf16.mxu1 %v1916_v16  ;;  %v1979_v62 = vld [vmem:[%s2143_s11 + $0x10c] ss:$12 sps:$4 sm:$0xff]   ;;  %v1982_v0 = vld [vmem:[%s2143_s11 + $0x108] ss:$12 sps:$4 sm:$0xff]   ;;  %v1983_v1 = vld [vmem:[%s2143_s11 + $0x170] ss:$12 sps:$4 sm:$0xff]   ;;  %s2301_s11 = scalar_lea.vmem %s2484_s3, %s1609_s9 }
  0x24   : > { %1710 = vmatpush3.bf16.msra.mxu0 %v1917_v17  ;;  %1876 = vmatpush3.bf16.msra.mxu1 %v1917_v17 }
  0x25   : > { %1825 = vmatprep.subr.bf16.mxu1 %v1924_v18 }
  0x27   : > { %866 = vmatmul.mubr.bf16.vlgmr.msra.gmra.mrb[0].mxu0 %v1918_v19  ;;  %962 = vmatmul.mubr.bf16.vlgmr.msra.gmra.mrb[0].mxu1 %v1921_v20 }
  0x28   : > { %1826 = vmatpush3.bf16.msra.mxu1 %v1924_v18  ;;  %873 = vmatprep.mubr.bf16.mxu0 %v1925_v21 }
  0x29   : > { %969 = vmatprep.mubr.bf16.mxu1 %v1927_v22  ;;  %1827 = vmatprep.subr.bf16.mxu1 %v1937_v23 }
  0x2c   : > { %1828 = vmatpush3.bf16.msra.mxu1 %v1937_v23 }
  0x2f   : > { %874 = vmatmul.mubr.bf16.gmra.mrb[4].mxu0 %v1929_v24  ;;  %970 = vmatmul.mubr.bf16.gmra.mrb[4].mxu1 %v1930_v25 }
  0x30   : > { %881 = vmatprep.mubr.bf16.mxu0 %v1931_v26  ;;  %977 = vmatprep.mubr.bf16.mxu1 %v1933_v27 }
  0x37   : > { %882 = vmatmul.mubr.bf16.gmra.mrb[8].mxu0 %v1935_v28  ;;  %978 = vmatmul.mubr.bf16.gmra.mrb[8].mxu1 %v1936_v29 }
  0x38   : > { %889 = vmatprep.mubr.bf16.mxu0 %v1938_v30  ;;  %985 = vmatprep.mubr.bf16.mxu1 %v1940_v31 }
  0x3f   : > { %890 = vmatmul.mubr.bf16.gmra.mrb[12].mxu0 %v1942_v32  ;;  %986 = vmatmul.mubr.bf16.gmra.mrb[12].mxu1 %v1943_v33 }
  0x40   : > { %897 = vmatprep.mubr.bf16.mxu0 %v1944_v34  ;;  %1829 = vmatprep.mubr.msk.bf16.mxu1 %vm784_vm0, %v1946_v35 }
  0x47   : > { %898 = vmatmul.mubr.bf16.gmra.mrb[16].mxu0 %v1947_v36  ;;  %1830 = vmatmul.mubr.msk.bf16.vlgmr.msra.gmra.mrb[16].mxu1 %vm784_vm0, %v1948_v37 }
  0x48   : > { %905 = vmatprep.mubr.bf16.mxu0 %v1949_v38  ;;  %1833 = vmatprep.mubr.msk.bf16.mxu1 %vm784_vm0, %v1951_v39 }
  0x4f   : > { %906 = vmatmul.mubr.bf16.gmra.mrb[20].mxu0 %v1952_v40  ;;  %1834 = vmatmul.mubr.msk.bf16.gmra.mrb[20].mxu1 %vm784_vm0, %v1953_v41 }
  0x50   : > { %913 = vmatprep.mubr.bf16.mxu0 %v1954_v42  ;;  %1837 = vmatprep.mubr.msk.bf16.mxu1 %vm784_vm0, %v1956_v43 }
  0x57   : > { %914 = vmatmul.mubr.bf16.gmra.mrb[24].mxu0 %v1957_v44  ;;  %1838 = vmatmul.mubr.msk.bf16.gmra.mrb[24].mxu1 %vm784_vm0, %v1958_v45 }
  0x58   : > { %921 = vmatprep.mubr.bf16.mxu0 %v1959_v46  ;;  %1841 = vmatprep.mubr.msk.bf16.mxu1 %vm784_vm0, %v1961_v47 }
  0x5f   : > { %922 = vmatmul.mubr.bf16.gmra.mrb[28].mxu0 %v1962_v48  ;;  %1842 = vmatmul.mubr.msk.bf16.gmra.mrb[28].mxu1 %vm784_vm0, %v1963_v49 }
  0x60   : > { %929 = vmatprep.mubr.bf16.mxu0 %v1964_v50  ;;  %1845 = vmatprep.mubr.msk.bf16.mxu1 %vm784_vm0, %v1966_v51 }
  0x67   : > { %930 = vmatmul.mubr.bf16.gmra.mrb[32].mxu0 %v1967_v52  ;;  %1846 = vmatmul.mubr.msk.bf16.gmra.mrb[32].mxu1 %vm784_vm0, %v1968_v53  ;;  %v2255_v52 = vld [vmem:[%s2483_s2] ss:$0 sm:$0xff] }
  0x68   : > { %937 = vmatprep.mubr.bf16.mxu0 %v1969_v54  ;;  %1849 = vmatprep.mubr.msk.bf16.mxu1 %vm784_vm0, %v1971_v55 }
  0x6f   : > { %938 = vmatmul.mubr.bf16.gmra.mrb[36].mxu0 %v1972_v56  ;;  %1850 = vmatmul.mubr.msk.bf16.gmra.mrb[36].mxu1 %vm784_vm0, %v1973_v57 }
  0x70   : > { %945 = vmatprep.mubr.bf16.mxu0 %v1974_v58  ;;  %1853 = vmatprep.mubr.msk.bf16.mxu1 %vm784_vm0, %v1976_v59 }
  0x77   : > { %946 = vmatmul.mubr.bf16.gmra.mrb[40].mxu0 %v1977_v60  ;;  %1854 = vmatmul.mubr.msk.bf16.gmra.mrb[40].mxu1 %vm784_vm0, %v1978_v61 }
  0x78   : > { %953 = vmatprep.mubr.bf16.mxu0 %v1979_v62  ;;  %1857 = vmatprep.mubr.msk.bf16.mxu1 %vm784_vm0, %v1981_v63 }
  0x7f   : > { %954 = vmatmul.mubr.bf16.gmra.mrb[44].mxu0 %v1982_v0  ;;  %1858 = vmatmul.mubr.msk.bf16.gmra.mrb[44].mxu1 %vm784_vm0, %v1983_v1 }
  0xfa   : > { %v1711_v2 = vpop.f32.mrb[0].mxu0  ;;  %v1783_v3 = vpop.f32.mrb[0].mxu1 }
  0xfb   : > { %v1712_v4 = vpop.f32.mrb[1].mxu0  ;;  %v1784_v5 = vpop.f32.mrb[1].mxu1 }
  0xfc   : > { %v1713_v6 = vadd.f32 %v1712_v4, %v1711_v2  ;;  %v2236_v7 = vadd.f32 %v1784_v5, %v1783_v3  ;;  %v1714_v8 = vpop.f32.mrb[2].mxu0  ;;  %v1786_v9 = vpop.f32.mrb[2].mxu1 }
  0xfd   : > { %v1715_v10 = vpop.f32.mrb[3].mxu0  ;;  %v1787_v11 = vpop.f32.mrb[3].mxu1 }
  0xfe   : > { %v1716_v12 = vadd.f32 %v1715_v10, %v1714_v8  ;;  %v2238_v13 = vadd.f32 %v1787_v11, %v1786_v9 }
 0x102   : > { %v1717_v14 = vpop.f32.mrb[4].mxu0  ;;  %v1789_v15 = vpop.f32.mrb[4].mxu1 }
 0x103   : > { %v1718_v16 = vpop.f32.mrb[5].mxu0  ;;  %v1790_v17 = vpop.f32.mrb[5].mxu1 }
 0x104   : > { %v1719_v18 = vadd.f32 %v1718_v16, %v1717_v14  ;;  %v2240_v19 = vadd.f32 %v1790_v17, %v1789_v15  ;;  %v1720_v20 = vpop.f32.mrb[6].mxu0  ;;  %v1792_v21 = vpop.f32.mrb[6].mxu1 }
 0x105   : > { %v1721_v22 = vpop.f32.mrb[7].mxu0  ;;  %v1793_v23 = vpop.f32.mrb[7].mxu1 }
 0x106   : > { %v1722_v24 = vadd.f32 %v1721_v22, %v1720_v20  ;;  %v2242_v25 = vadd.f32 %v1793_v23, %v1792_v21 }
 0x10a   : > { %v1723_v26 = vpop.f32.mrb[8].mxu0  ;;  %v1795_v27 = vpop.f32.mrb[8].mxu1 }
 0x10b   : > { %v1724_v28 = vpop.f32.mrb[9].mxu0  ;;  %v1796_v29 = vpop.f32.mrb[9].mxu1 }
 0x10c   : > { %v1725_v30 = vadd.f32 %v1724_v28, %v1723_v26  ;;  %v2244_v31 = vadd.f32 %v1796_v29, %v1795_v27  ;;  %v1726_v32 = vpop.f32.mrb[10].mxu0  ;;  %v1798_v33 = vpop.f32.mrb[10].mxu1 }
 0x10d   : > { %v1727_v34 = vpop.f32.mrb[11].mxu0  ;;  %v1799_v35 = vpop.f32.mrb[11].mxu1 }
 0x10e   : > { %v1728_v36 = vadd.f32 %v1727_v34, %v1726_v32  ;;  %v2246_v37 = vadd.f32 %v1799_v35, %v1798_v33 }
 0x112   : > { %v1729_v38 = vpop.f32.mrb[12].mxu0  ;;  %v1801_v39 = vpop.f32.mrb[12].mxu1 }
 0x113   : > { %v1730_v40 = vpop.f32.mrb[13].mxu0  ;;  %v1802_v41 = vpop.f32.mrb[13].mxu1 }
 0x114   : > { %v1731_v42 = vadd.f32 %v1730_v40, %v1729_v38  ;;  %v2248_v43 = vadd.f32 %v1802_v41, %v1801_v39  ;;  %v1732_v44 = vpop.f32.mrb[14].mxu0  ;;  %v1804_v45 = vpop.f32.mrb[14].mxu1 }
 0x115   : > { %v1733_v46 = vpop.f32.mrb[15].mxu0  ;;  %v1805_v47 = vpop.f32.mrb[15].mxu1 }
 0x116   : > { %v1734_v48 = vadd.f32 %v1733_v46, %v1732_v44  ;;  %v2250_v49 = vadd.f32 %v1805_v47, %v1804_v45 }
 0x11a   : > { %v1735_v50 = vpop.f32.mrb[16].mxu0  ;;  %v1831_v51 = vpop.f32.mrb[16].mxu1 }
 0x11b   : > { %v1037_v53 = vadd.f32 %v1831_v51, %v1719_v18  ;;  %v1736_v54 = vpop.f32.mrb[17].mxu0  ;;  %v1028_v55 = vpop.f32.mrb[17].mxu1 }
 0x11c   : > { %v1737_v56 = vadd.f32 %v1736_v54, %v1735_v50  ;;  %v1029_v57 = vadd.f32 %v1713_v6, %v1028_v55  ;;  %v1738_v58 = vpop.f32.mrb[18].mxu0  ;;  %v1832_v59 = vpop.f32.mrb[18].mxu1 }
 0x11d   : > { %v2258_v60 = vadd.f32 %v2255_v52, %v1037_v53  ;;  %v1040_v61 = vadd.f32 %v1832_v59, %v1722_v24  ;;  %v1739_v62 = vpop.f32.mrb[19].mxu0  ;;  %v1031_v63 = vpop.f32.mrb[19].mxu1 }
 0x11e   : > { %v2261_v0 = vadd.f32 %v2255_v52, %v1029_v57  ;;  %v2263_v1 = vadd.f32 %v1739_v62, %v1738_v58  ;;  %v1032_v2 = vadd.f32 %v1716_v12, %v1031_v63 }
 0x11f   : > { %v1295_v3 = vmul.f32 0.5, %v2258_v60  ;;  %v2267_v4 = vadd.f32 %v2255_v52, %v1040_v61 }
 0x120   : > { %v1293_v5 = vmul.f32 0.5, %v2261_v0  ;;  %v2271_v6 = vadd.f32 %v2255_v52, %v1032_v2 }
 0x121   : > { %1984 = vtanh.f32 %v1295_v3  ;;  %v1296_v8 = vmul.f32 0.5, %v2267_v4 }
 0x122   : > { %1986 = vtanh.f32 %v1293_v5  ;;  %v1294_v9 = vmul.f32 0.5, %v2271_v6  ;;  %v1741_v10 = vpop.f32.mrb[20].mxu0  ;;  %v1835_v11 = vpop.f32.mrb[20].mxu1 }
 0x123   : > { %1988 = vtanh.f32 %v1296_v8  ;;  %v1053_v12 = vadd.f32 %v1835_v11, %v1731_v42  ;;  %v1742_v14 = vpop.f32.mrb[21].mxu0  ;;  %v1044_v15 = vpop.f32.mrb[21].mxu1 }
 0x124   : > { %1990 = vtanh.f32 %v1294_v9  ;;  %v1743_v16 = vadd.f32 %v1742_v14, %v1741_v10  ;;  %v1045_v17 = vadd.f32 %v1725_v30, %v1044_v15  ;;  %v1744_v18 = vpop.f32.mrb[22].mxu0  ;;  %v1836_v20 = vpop.f32.mrb[22].mxu1 }
 0x125   : > { %v2276_v21 = vadd.f32 %v2255_v52, %v1053_v12  ;;  %v1056_v22 = vadd.f32 %v1836_v20, %v1734_v48  ;;  %v1745_v23 = vpop.f32.mrb[23].mxu0  ;;  %v1047_v24 = vpop.f32.mrb[23].mxu1 }
 0x126   : > { %v2279_v26 = vadd.f32 %v2255_v52, %v1045_v17  ;;  %v1746_v27 = vadd.f32 %v1745_v23, %v1744_v18  ;;  %v1048_v28 = vadd.f32 %v1728_v36, %v1047_v24 }
 0x127   : > { %v1299_v29 = vmul.f32 0.5, %v2276_v21  ;;  %v2283_v32 = vadd.f32 %v2255_v52, %v1056_v22 }
 0x128   : > { %v1297_v30 = vmul.f32 0.5, %v2279_v26  ;;  %v2287_v33 = vadd.f32 %v2255_v52, %v1048_v28 }
 0x129   : > { %1992 = vtanh.f32 %v1299_v29  ;;  %v1300_v34 = vmul.f32 0.5, %v2283_v32 }
 0x12a   : > { %1994 = vtanh.f32 %v1297_v30  ;;  %v1298_v35 = vmul.f32 0.5, %v2287_v33  ;;  %v1747_v38 = vpop.f32.mrb[24].mxu0  ;;  %v1839_v39 = vpop.f32.mrb[24].mxu1 }
 0x12b   : > { %v1985_v36 = vpop.eup %1984  ;;  %1996 = vtanh.f32 %v1300_v34  ;;  %v1069_v40 = vadd.f32 %v1839_v39, %v1743_v16  ;;  %v1748_v41 = vpop.f32.mrb[25].mxu0 }
 0x12c   : > { %v1060_v42 = vpop.f32.mrb[25].mxu1  ;;  %v1987_v44 = vpop.eup %1986  ;;  %v1359_v45 = vadd.f32 1.0, %v1985_v36  ;;  %1998 = vtanh.f32 %v1298_v35  ;;  %v1749_v46 = vadd.f32 %v1748_v41, %v1747_v38 }
 0x12d   : > { %v1061_v47 = vadd.f32 %v1737_v56, %v1060_v42  ;;  %v1750_v48 = vpop.f32.mrb[26].mxu0  ;;  %v1840_v50 = vpop.f32.mrb[26].mxu1  ;;  %v1357_v53 = vadd.f32 1.0, %v1987_v44  ;;  %v2293_v54 = vadd.f32 %v2255_v52, %v1069_v40 }
 0x12e   : > { %v1989_v51 = vpop.eup %1988  ;;  %v1072_v55 = vadd.f32 %v1840_v50, %v1746_v27  ;;  %v1751_v57 = vpop.f32.mrb[27].mxu0  ;;  %v1391_v61 = vmul.f32 0.5, %v1359_v45 }
 0x12f   : > { %v1063_v58 = vpop.f32.mrb[27].mxu1  ;;  %v1991_v59 = vpop.eup %1990  ;;  %v1360_v62 = vadd.f32 1.0, %v1989_v51  ;;  %v2296_v63 = vadd.f32 %v2255_v52, %v1061_v47  ;;  %v1752_v2 = vadd.f32 %v1751_v57, %v1750_v48  ;;  %v1389_v56 = vmul.f32 0.5, %v1357_v53 }
 0x130   : > { %v1358_v3 = vadd.f32 1.0, %v1991_v59  ;;  %v1303_v5 = vmul.f32 0.5, %v2293_v54  ;;  %v2305_v8 = vadd.f32 %v2255_v52, %v1072_v55  ;;  %v1423_v9 = vmul.f32 %v1391_v61, %v2258_v60 }
 0x131   : > { %v1392_v10 = vmul.f32 0.5, %v1360_v62  ;;  %v1301_v11 = vmul.f32 0.5, %v2296_v63  ;;  %v1064_v12 = vadd.f32 %v2263_v1, %v1063_v58  ;;  %v1421_v14 = vmul.f32 %v1389_v56, %v2261_v0 }
 0x132   : > { %v1390_v15 = vmul.f32 0.5, %v1358_v3  ;;  %2000 = vtanh.f32 %v1303_v5  ;;  %v1304_v16 = vmul.f32 0.5, %v2305_v8  ;;  %1455 = vst [vmem:[%s2301_s11 + $0x10] sm:$0xff] %v1423_v9  ;;  %v1753_v60 = vpop.f32.mrb[28].mxu0  ;;  %v1843_v20 = vpop.f32.mrb[28].mxu1 }
 0x133   : > { %v1424_v17 = vmul.f32 %v1392_v10, %v2267_v4  ;;  %2002 = vtanh.f32 %v1301_v11  ;;  %v2315_v18 = vadd.f32 %v2255_v52, %v1064_v12  ;;  %v1993_v22 = vpop.eup %1992  ;;  %1453 = vst [vmem:[%s2301_s11] sm:$0xff] %v1421_v14  ;;  %v1754_v0 = vpop.f32.mrb[29].mxu0 }
 0x134   : > { %v1422_v1 = vmul.f32 %v1390_v15, %v2271_v6  ;;  %2004 = vtanh.f32 %v1304_v16  ;;  %v1076_v23 = vpop.f32.mrb[29].mxu1  ;;  %v1995_v24 = vpop.eup %1994  ;;  %v1363_v27 = vadd.f32 1.0, %v1993_v22  ;;  %v1755_v4 = vadd.f32 %v1754_v0, %v1753_v60 }
 0x135   : > { %1456 = vst [vmem:[%s2301_s11 + $0x18] sm:$0xff] %v1424_v17  ;;  %v1302_v28 = vmul.f32 0.5, %v2315_v18  ;;  %v1077_v29 = vadd.f32 %v1749_v46, %v1076_v23  ;;  %v1756_v30 = vpop.f32.mrb[30].mxu0  ;;  %v1844_v34 = vpop.f32.mrb[30].mxu1  ;;  %v1361_v38 = vadd.f32 1.0, %v1995_v24 }
 0x136   : > { %v1997_v35 = vpop.eup %1996  ;;  %1454 = vst [vmem:[%s2301_s11 + $0x8] sm:$0xff] %v1422_v1  ;;  %v1757_v39 = vpop.f32.mrb[31].mxu0  ;;  %v1395_v41 = vmul.f32 0.5, %v1363_v27  ;;  %v1085_v42 = vadd.f32 %v1843_v20, %v1755_v4 }
 0x137   : > { %v1079_v36 = vpop.f32.mrb[31].mxu1  ;;  %v1999_v40 = vpop.eup %1998  ;;  %v1364_v6 = vadd.f32 1.0, %v1997_v35  ;;  %2006 = vtanh.f32 %v1302_v28  ;;  %v1393_v44 = vmul.f32 0.5, %v1361_v38  ;;  %v2323_v47 = vadd.f32 %v2255_v52, %v1077_v29 }
 0x138   : > { %v1362_v45 = vadd.f32 1.0, %v1999_v40  ;;  %v1758_v48 = vadd.f32 %v1757_v39, %v1756_v30  ;;  %v1427_v46 = vmul.f32 %v1395_v41, %v2276_v21  ;;  %v2327_v51 = vadd.f32 %v2255_v52, %v1085_v42 }
 0x139   : > { %v1396_v50 = vmul.f32 0.5, %v1364_v6  ;;  %v1080_v53 = vadd.f32 %v1752_v2, %v1079_v36  ;;  %v1425_v55 = vmul.f32 %v1393_v44, %v2279_v26  ;;  %v1305_v58 = vmul.f32 0.5, %v2323_v47 }
 0x13a   : > { %v1394_v57 = vmul.f32 0.5, %v1362_v45  ;;  %v1088_v59 = vadd.f32 %v1844_v34, %v1758_v48  ;;  %1459 = vst [vmem:[%s2301_s11 + $0x30] sm:$0xff] %v1427_v46  ;;  %v1307_v62 = vmul.f32 0.5, %v2327_v51  ;;  %v1759_v21 = vpop.f32.mrb[32].mxu0  ;;  %v1847_v3 = vpop.f32.mrb[32].mxu1 }
 0x13b   : > { %v1428_v61 = vmul.f32 %v1396_v50, %v2283_v32  ;;  %v2335_v56 = vadd.f32 %v2255_v52, %v1080_v53  ;;  %1457 = vst [vmem:[%s2301_s11 + $0x20] sm:$0xff] %v1425_v55  ;;  %2008 = vtanh.f32 %v1305_v58  ;;  %v1760_v9 = vpop.f32.mrb[33].mxu0  ;;  %v1092_v10 = vpop.f32.mrb[33].mxu1 }
 0x13c   : > { %v2001_v5 = vpop.eup %2000  ;;  %v1426_v26 = vmul.f32 %v1394_v57, %v2287_v33  ;;  %v2340_v2 = vadd.f32 %v2255_v52, %v1088_v59  ;;  %2010 = vtanh.f32 %v1307_v62  ;;  %v1761_v14 = vadd.f32 %v1760_v9, %v1759_v21  ;;  %v1762_v15 = vpop.f32.mrb[34].mxu0 }
 0x13d   : > { %v2003_v11 = vpop.eup %2002  ;;  %1460 = vst [vmem:[%s2301_s11 + $0x38] sm:$0xff] %v1428_v61  ;;  %v1367_v32 = vadd.f32 1.0, %v2001_v5  ;;  %v1306_v12 = vmul.f32 0.5, %v2335_v56  ;;  %v1848_v16 = vpop.f32.mrb[34].mxu1 }
 0x13e   : > { %v2005_v17 = vpop.eup %2004  ;;  %1458 = vst [vmem:[%s2301_s11 + $0x28] sm:$0xff] %v1426_v26  ;;  %v1365_v60 = vadd.f32 1.0, %v2003_v11  ;;  %v1308_v33 = vmul.f32 0.5, %v2340_v2  ;;  %v1763_v20 = vpop.f32.mrb[35].mxu0  ;;  %v1093_v23 = vadd.f32 %v1761_v14, %v1092_v10 }
 0x13f   : > { %v1095_v22 = vpop.f32.mrb[35].mxu1  ;;  %v1399_v1 = vmul.f32 0.5, %v1367_v32  ;;  %v1368_v0 = vadd.f32 1.0, %v2005_v17  ;;  %2012 = vtanh.f32 %v1306_v12  ;;  %v1764_v27 = vadd.f32 %v1763_v20, %v1762_v15 }
 0x140   : > { %v1397_v24 = vmul.f32 0.5, %v1365_v60  ;;  %2014 = vtanh.f32 %v1308_v33  ;;  %v2348_v30 = vadd.f32 %v2255_v52, %v1093_v23 }
 0x141   : > { %v2007_v28 = vpop.eup %2006  ;;  %v1431_v4 = vmul.f32 %v1399_v1, %v2293_v54  ;;  %v1400_v29 = vmul.f32 0.5, %v1368_v0  ;;  %v1096_v38 = vadd.f32 %v1764_v27, %v1095_v22 }
 0x142   : > { %v1429_v34 = vmul.f32 %v1397_v24, %v2296_v63  ;;  %v1366_v35 = vadd.f32 1.0, %v2007_v28  ;;  %v1309_v36 = vmul.f32 0.5, %v2348_v30  ;;  %v1765_v40 = vpop.f32.mrb[36].mxu0  ;;  %v2354_v41 = vpop.f32.mrb[36].mxu1 }
 0x143   : > { %1463 = vst [vmem:[%s2301_s11 + $0x50] sm:$0xff] %v1431_v4  ;;  %v1432_v39 = vmul.f32 %v1400_v29, %v2305_v8  ;;  %v2358_v54 = vadd.f32 %v2255_v52, %v1096_v38  ;;  %v1766_v42 = vpop.f32.mrb[37].mxu0  ;;  %v1108_v44 = vpop.f32.mrb[37].mxu1 }
 0x144   : > { %1461 = vst [vmem:[%s2301_s11 + $0x40] sm:$0xff] %v1429_v34  ;;  %v1398_v6 = vmul.f32 0.5, %v1366_v35  ;;  %2016 = vtanh.f32 %v1309_v36  ;;  %v1767_v63 = vadd.f32 %v1766_v42, %v1765_v40  ;;  %v1768_v45 = vpop.f32.mrb[38].mxu0  ;;  %v2361_v48 = vpop.f32.mrb[38].mxu1 }
 0x145   : > { %1464 = vst [vmem:[%s2301_s11 + $0x58] sm:$0xff] %v1432_v39  ;;  %v2009_v8 = vpop.eup %2008  ;;  %v1310_v50 = vmul.f32 0.5, %v2358_v54  ;;  %v1769_v53 = vpop.f32.mrb[39].mxu0 }
 0x146   : > { %v1430_v46 = vmul.f32 %v1398_v6, %v2315_v18  ;;  %v1111_v55 = vpop.f32.mrb[39].mxu1  ;;  %v2011_v57 = vpop.eup %2010  ;;  %v1369_v58 = vadd.f32 1.0, %v2009_v8  ;;  %v1101_v59 = vadd.f32 %v1847_v3, %v1767_v63  ;;  %v1770_v61 = vadd.f32 %v1769_v53, %v1768_v45 }
 0x147   : > { %v1371_v62 = vadd.f32 1.0, %v2011_v57  ;;  %2018 = vtanh.f32 %v1310_v50 }
 0x148   : > { %1462 = vst [vmem:[%s2301_s11 + $0x48] sm:$0xff] %v1430_v46  ;;  %v1401_v5 = vmul.f32 0.5, %v1369_v58  ;;  %v2367_v26 = vadd.f32 %v2255_v52, %v1101_v59  ;;  %v1104_v9 = vadd.f32 %v1848_v16, %v1770_v61 }
 0x149   : > { %v2013_v21 = vpop.eup %2012  ;;  %v1403_v18 = vmul.f32 0.5, %v1371_v62 }
 0x14a   : > { %v2015_v10 = vpop.eup %2014  ;;  %v1370_v11 = vadd.f32 1.0, %v2013_v21  ;;  %v1433_v32 = vmul.f32 %v1401_v5, %v2323_v47  ;;  %v1311_v14 = vmul.f32 0.5, %v2367_v26  ;;  %v2372_v3 = vadd.f32 %v2255_v52, %v1104_v9  ;;  %v1771_v15 = vpop.f32.mrb[40].mxu0 }
 0x14b   : > { %v1372_v12 = vadd.f32 1.0, %v2015_v10  ;;  %v1855_v17 = vpop.f32.mrb[40].mxu1  ;;  %v1435_v60 = vmul.f32 %v1403_v18, %v2327_v51  ;;  %v1772_v16 = vpop.f32.mrb[41].mxu0 }
 0x14c   : > { %v1402_v33 = vmul.f32 0.5, %v1370_v11  ;;  %v1133_v20 = vadd.f32 %v1855_v17, %v2240_v19  ;;  %v1124_v22 = vpop.f32.mrb[41].mxu1  ;;  %1465 = vst [vmem:[%s2301_s11 + $0x60] sm:$0xff] %v1433_v32  ;;  %2020 = vtanh.f32 %v1311_v14  ;;  %v1312_v47 = vmul.f32 0.5, %v2372_v3  ;;  %v1774_v23 = vpop.f32.mrb[42].mxu0 }
 0x14d   : > { %v1404_v1 = vmul.f32 0.5, %v1372_v12  ;;  %v1773_v0 = vadd.f32 %v1772_v16, %v1771_v15  ;;  %v1856_v24 = vpop.f32.mrb[42].mxu1  ;;  %1467 = vst [vmem:[%s2301_s11 + $0x70] sm:$0xff] %v1435_v60  ;;  %v1125_v19 = vadd.f32 %v2236_v7, %v1124_v22  ;;  %v1775_v4 = vpop.f32.mrb[43].mxu0 }
 0x14e   : > { %v1434_v27 = vmul.f32 %v1402_v33, %v2335_v56  ;;  %v2381_v51 = vadd.f32 %v2255_v52, %v1133_v20  ;;  %v1136_v28 = vadd.f32 %v1856_v24, %v2242_v25  ;;  %v1127_v29 = vpop.f32.mrb[43].mxu1  ;;  %v2017_v34 = vpop.eup %2016  ;;  %2022 = vtanh.f32 %v1312_v47 }
 0x14f   : > { %v1436_v35 = vmul.f32 %v1404_v1, %v2340_v2  ;;  %v1109_v38 = vadd.f32 %v1773_v0, %v1108_v44  ;;  %v1776_v39 = vadd.f32 %v1775_v4, %v1774_v23  ;;  %v1373_v36 = vadd.f32 1.0, %v2017_v34 }
 0x150   : > { %1466 = vst [vmem:[%s2301_s11 + $0x68] sm:$0xff] %v1434_v27  ;;  %v1319_v56 = vmul.f32 0.5, %v2381_v51  ;;  %v2389_v40 = vadd.f32 %v2255_v52, %v1125_v19  ;;  %v2392_v6 = vadd.f32 %v2255_v52, %v1136_v28  ;;  %v1128_v2 = vadd.f32 %v2238_v13, %v1127_v29 }
 0x151   : > { %1468 = vst [vmem:[%s2301_s11 + $0x78] sm:$0xff] %v1436_v35  ;;  %v2396_v7 = vadd.f32 %v2255_v52, %v1109_v38  ;;  %v1112_v25 = vadd.f32 %v1776_v39, %v1111_v55  ;;  %v2019_v42 = vpop.eup %2018  ;;  %v1405_v44 = vmul.f32 0.5, %v1373_v36 }
 0x152   : > { %2024 = vtanh.f32 %v1319_v56  ;;  %v1317_v63 = vmul.f32 0.5, %v2389_v40  ;;  %v1320_v45 = vmul.f32 0.5, %v2392_v6  ;;  %v1374_v8 = vadd.f32 1.0, %v2019_v42  ;;  %v1777_v55 = vpop.f32.mrb[44].mxu0  ;;  %v1859_v57 = vpop.f32.mrb[44].mxu1 }
 0x153   : > { %v1313_v46 = vmul.f32 0.5, %v2396_v7  ;;  %v2403_v50 = vadd.f32 %v2255_v52, %v1112_v25  ;;  %v2406_v53 = vadd.f32 %v2255_v52, %v1128_v2  ;;  %v1437_v13 = vmul.f32 %v1405_v44, %v2348_v30  ;;  %v1778_v59 = vpop.f32.mrb[45].mxu0  ;;  %v1140_v61 = vpop.f32.mrb[45].mxu1 }
 0x154   : > { %2026 = vtanh.f32 %v1317_v63  ;;  %v1149_v58 = vadd.f32 %v1859_v57, %v2248_v43  ;;  %v1406_v62 = vmul.f32 0.5, %v1374_v8  ;;  %v1780_v9 = vpop.f32.mrb[46].mxu0  ;;  %v1860_v10 = vpop.f32.mrb[46].mxu1  ;;  %v1779_v30 = vadd.f32 %v1778_v59, %v1777_v55 }
 0x155   : > { %2028 = vtanh.f32 %v1313_v46  ;;  %v1314_v21 = vmul.f32 0.5, %v2403_v50  ;;  %v1318_v5 = vmul.f32 0.5, %v2406_v53  ;;  %1469 = vst [vmem:[%s2301_s11 + $0x80] sm:$0xff] %v1437_v13  ;;  %v1141_v11 = vadd.f32 %v2244_v31, %v1140_v61  ;;  %v1781_v43 = vpop.f32.mrb[47].mxu0  ;;  %v1143_v32 = vpop.f32.mrb[47].mxu1 }
 0x156   : > { %2030 = vtanh.f32 %v1320_v45  ;;  %v2414_v18 = vadd.f32 %v2255_v52, %v1149_v58  ;;  %v2021_v12 = vpop.eup %2020  ;;  %v1438_v14 = vmul.f32 %v1406_v62, %v2358_v54  ;;  %v1152_v15 = vadd.f32 %v1860_v10, %v2250_v49 }
 0x157   : > { %2032 = vtanh.f32 %v1314_v21  ;;  %v1782_v17 = vadd.f32 %v1781_v43, %v1780_v9  ;;  %v1375_v60 = vadd.f32 1.0, %v2021_v12  ;;  %v1117_v20 = vadd.f32 %v2354_v41, %v1779_v30 }
 0x158   : > { %2034 = vtanh.f32 %v1318_v5  ;;  %v1323_v33 = vmul.f32 0.5, %v2414_v18  ;;  %v2023_v16 = vpop.eup %2022  ;;  %1470 = vst [vmem:[%s2301_s11 + $0x88] sm:$0xff] %v1438_v14  ;;  %v2423_v22 = vadd.f32 %v2255_v52, %v1141_v11  ;;  %v2426_v31 = vadd.f32 %v2255_v52, %v1152_v15 }
 0x159   : > { %v1120_v54 = vadd.f32 %v2361_v48, %v1782_v17  ;;  %v1144_v1 = vadd.f32 %v2246_v37, %v1143_v32  ;;  %v1407_v49 = vmul.f32 0.5, %v1375_v60  ;;  %v1376_v47 = vadd.f32 1.0, %v2023_v16 }
 0x15a   : > { %2036 = vtanh.f32 %v1323_v33  ;;  %v2431_v0 = vadd.f32 %v2255_v52, %v1117_v20  ;;  %v1321_v41 = vmul.f32 0.5, %v2423_v22  ;;  %v1324_v23 = vmul.f32 0.5, %v2426_v31 }
 0x15b   : > { %v2436_v24 = vadd.f32 %v2255_v52, %v1120_v54  ;;  %v2439_v27 = vadd.f32 %v2255_v52, %v1144_v1  ;;  %v1439_v37 = vmul.f32 %v1407_v49, %v2367_v26  ;;  %v1408_v19 = vmul.f32 0.5, %v1376_v47 }
 0x15c   : > { %v2025_v48 = vpop.eup %2024  ;;  %v1315_v28 = vmul.f32 0.5, %v2431_v0  ;;  %2038 = vtanh.f32 %v1321_v41 }
 0x15d   : > { %v1383_v4 = vadd.f32 1.0, %v2025_v48  ;;  %v1316_v29 = vmul.f32 0.5, %v2436_v24  ;;  %v1322_v34 = vmul.f32 0.5, %v2439_v27  ;;  %1471 = vst [vmem:[%s2301_s11 + $0x90] sm:$0xff] %v1439_v37  ;;  %v1440_v38 = vmul.f32 %v1408_v19, %v2372_v3 }
 0x15e   : > { %v2027_v35 = vpop.eup %2026  ;;  %2040 = vtanh.f32 %v1315_v28 }
 0x15f   : > { %v2029_v52 = vpop.eup %2028  ;;  %v1415_v39 = vmul.f32 0.5, %v1383_v4  ;;  %v1381_v36 = vadd.f32 1.0, %v2027_v35  ;;  %2042 = vtanh.f32 %v1324_v23  ;;  %1472 = vst [vmem:[%s2301_s11 + $0x98] sm:$0xff] %v1440_v38 }
 0x160   : > { %v2031_v26 = vpop.eup %2030  ;;  %v1377_v56 = vadd.f32 1.0, %v2029_v52  ;;  %2044 = vtanh.f32 %v1316_v29 }
 0x161   : > { %v2033_v25 = vpop.eup %2032  ;;  %v1447_v2 = vmul.f32 %v1415_v39, %v2381_v51  ;;  %v1413_v42 = vmul.f32 0.5, %v1381_v36  ;;  %v1384_v44 = vadd.f32 1.0, %v2031_v26  ;;  %2046 = vtanh.f32 %v1322_v34 }
 0x162   : > { %v2035_v63 = vpop.eup %2034  ;;  %v1409_v3 = vmul.f32 0.5, %v1377_v56  ;;  %v1378_v45 = vadd.f32 1.0, %v2033_v25 }
 0x163   : > { %1479 = vst [vmem:[%s2301_s11 + $0xd0] sm:$0xff] %v1447_v2  ;;  %v1445_v8 = vmul.f32 %v1413_v42, %v2389_v40  ;;  %v1416_v46 = vmul.f32 0.5, %v1384_v44  ;;  %v1382_v55 = vadd.f32 1.0, %v2035_v63 }
 0x164   : > { %v2037_v57 = vpop.eup %2036  ;;  %v1441_v13 = vmul.f32 %v1409_v3, %v2396_v7  ;;  %v1410_v58 = vmul.f32 0.5, %v1378_v45 }
 0x165   : > { %1477 = vst [vmem:[%s2301_s11 + $0xc0] sm:$0xff] %v1445_v8  ;;  %v1448_v51 = vmul.f32 %v1416_v46, %v2392_v6  ;;  %v1414_v59 = vmul.f32 0.5, %v1382_v55  ;;  %v1387_v61 = vadd.f32 1.0, %v2037_v57 }
 0x166   : > { %1473 = vst [vmem:[%s2301_s11 + $0xa0] sm:$0xff] %v1441_v13  ;;  %v1442_v62 = vmul.f32 %v1410_v58, %v2403_v50  ;;  %v2039_v21 = vpop.eup %2038 }
 0x167   : > { %1480 = vst [vmem:[%s2301_s11 + $0xd8] sm:$0xff] %v1448_v51  ;;  %v1446_v40 = vmul.f32 %v1414_v59, %v2406_v53  ;;  %v1419_v5 = vmul.f32 0.5, %v1387_v61  ;;  %v1385_v10 = vadd.f32 1.0, %v2039_v21 }
 0x168   : > { %v2041_v9 = vpop.eup %2040  ;;  %1474 = vst [vmem:[%s2301_s11 + $0xa8] sm:$0xff] %v1442_v62 }
 0x169   : > { %v2043_v7 = vpop.eup %2042  ;;  %1478 = vst [vmem:[%s2301_s11 + $0xc8] sm:$0xff] %v1446_v40  ;;  %v1451_v30 = vmul.f32 %v1419_v5, %v2414_v18  ;;  %v1379_v6 = vadd.f32 1.0, %v2041_v9  ;;  %v1417_v43 = vmul.f32 0.5, %v1385_v10 }
 0x16a   : > { %v2045_v11 = vpop.eup %2044  ;;  %v1388_v50 = vadd.f32 1.0, %v2043_v7 }
 0x16b   : > { %v2047_v32 = vpop.eup %2046  ;;  %1483 = vst [vmem:[%s2301_s11 + $0xf0] sm:$0xff] %v1451_v30  ;;  %v1411_v53 = vmul.f32 0.5, %v1379_v6  ;;  %v1380_v12 = vadd.f32 1.0, %v2045_v11  ;;  %v1449_v14 = vmul.f32 %v1417_v43, %v2423_v22 }
 0x16c   : > { %v1420_v15 = vmul.f32 0.5, %v1388_v50  ;;  %v1386_v17 = vadd.f32 1.0, %v2047_v32 }
 0x16d   : > { %v1443_v60 = vmul.f32 %v1411_v53, %v2431_v0  ;;  %v1412_v33 = vmul.f32 0.5, %v1380_v12  ;;  %1481 = vst [vmem:[%s2301_s11 + $0xe0] sm:$0xff] %v1449_v14 }
 0x16e   : > { %v1452_v18 = vmul.f32 %v1420_v15, %v2426_v31  ;;  %v1418_v20 = vmul.f32 0.5, %v1386_v17 }
 0x16f   : > { %1475 = vst [vmem:[%s2301_s11 + $0xb0] sm:$0xff] %v1443_v60  ;;  %v1444_v16 = vmul.f32 %v1412_v33, %v2436_v24 }
 0x170   : > { %1484 = vst [vmem:[%s2301_s11 + $0xf8] sm:$0xff] %v1452_v18  ;;  %v1450_v54 = vmul.f32 %v1418_v20, %v2439_v27 }
 0x171   : > { %1476 = vst [vmem:[%s2301_s11 + $0xb8] sm:$0xff] %v1444_v16 }
 0x172   : > { %1482 = vst [vmem:[%s2301_s11 + $0xe8] sm:$0xff] %v1450_v54 }
 0x173 PF: > { %s13_s14 = sadd.s32 1, %s2070_s14   ;;  %s2485_s12 = smov %s2066_s13 }
 0x174   : > { %p10_p5 = scmp.ge.s32.totalorder %s13_s14, 4   ;;  %s2486_s13 = smov %s2488_s15 }
 0x176   :  { %12 = sbr.rel (!%p10_p5) target bundleno = 2 (0x2), region = 76 }

// kernel: _lambda_.46
= control target key start
LH: loop header
LB: loop body
LE: loop exit
PB: predicated region body
PF: predicated region fallthrough
CT: control target
= control target key end

     0   :  { %s678_s21 = smov 0   ;;  %s795_s0 = inlined_call_operand.vmem [shape: f32[2,9,8,64], index: 0, kind: input, shape index: {}]   ;;  %s796_s1 = inlined_call_operand.vmem [shape: f32[2,9,8,64], index: 1, kind: input, shape index: {}]   ;;  %s797_s2 = inlined_call_operand.vmem [shape: f32[2,9,8,64], index: 2, kind: input, shape index: {}]   ;;  %s798_s3 = inlined_call_operand.vmem [shape: f32[2,9,8,64], index: 3, kind: input, shape index: {}]   ;;  %s799_s4 = inlined_call_operand.vmem [shape: f32[2,9,8,64], index: 4, kind: input, shape index: {}]   ;;  %s800_s5 = inlined_call_operand.vmem [shape: f32[2,9,8,64], index: 5, kind: input, shape index: {}]   ;;  %s801_s6 = inlined_call_operand.vmem [shape: f32[2,8,8,64], index: 6, kind: output, shape index: {}]  }
   0x1 LB: > { %s610_s22 = sadd.s32 4294967295, %s641_s21   ;;  %p614_p0 = scmp.ge.s32.totalorder %s641_s21, 1  ;;  %s641_s21 = sphi %s678_s21, %s16_s21  }
   0x2   : > { %p262_p1 = scmp.lt.s32.totalorder %s641_s21, 3 }
   0x4   : > { %p263_p2 = pnand %p614_p0, %p262_p1 }
   0x5   : > { %p317_p3 = scmp.lt.s32.totalorder (!%p263_p2), %s610_s22, 1  ;;  %vm486_vm0 = vcmask (!%p263_p2), 523264  }
   0x6   : > { %266 = sbr.rel (%p263_p2) target bundleno = 50 (0x32), region = 44 }
   0xd   : > { %s803_s22 = smov (!%p317_p3, %s610_s22), 1 }
   0xe   : > { %s626_s23 = smul.u32 72, %s803_s22  ;;  %s625_s18 = sshll.u32 %s803_s22, 6 }
   0xf   : > { %s761_s22 = scalar_lea.vmem %s801_s6, %s625_s18 }
  0x10   : > { %s692_s26 = scalar_lea.vmem %s795_s0, %s626_s23  ;;  %s697_s29 = scalar_lea.vmem %s796_s1, %s626_s23 }
  0x11   : > { %s702_s8 = scalar_lea.vmem %s797_s2, %s626_s23  ;;  %s707_s11 = scalar_lea.vmem %s798_s3, %s626_s23  ;;  %v352_v0 = vld [vmem:[%s692_s26] sm:$0xff]  ;;  %v353_v2 = vld [vmem:[%s692_s26 + $0x8] sm:$0xff]  ;;  %v354_v11 = vld [vmem:[%s692_s26 + $0x10] sm:$0xff] }
  0x12   : > { %v361_v1 = vld [vmem:[%s697_s29] sm:$0xff]  ;;  %s714_s14 = scalar_lea.vmem %s799_s4, %s626_s23  ;;  %s719_s17 = scalar_lea.vmem %s800_s5, %s626_s23  ;;  %v362_v3 = vld [vmem:[%s697_s29 + $0x8] sm:$0xff]  ;;  %v363_v12 = vld [vmem:[%s697_s29 + $0x10] sm:$0xff] }
  0x13   : > { %v370_v4 = vmul.f32 2.0, %v361_v1  ;;  %v371_v5 = vmul.f32 2.0, %v362_v3  ;;  %v406_v6 = vld [vmem:[%s707_s11] sm:$0xff]  ;;  %v372_v15 = vmul.f32 2.0, %v363_v12  ;;  %v407_v16 = vld [vmem:[%s707_s11 + $0x8] sm:$0xff]  ;;  %v355_v21 = vld [vmem:[%s692_s26 + $0x18] sm:$0xff] }
  0x14   : > { %v414_v7 = vld [vmem:[%s714_s14] sm:$0xff]  ;;  %v415_v17 = vld [vmem:[%s714_s14 + $0x8] sm:$0xff]  ;;  %v364_v22 = vld [vmem:[%s697_s29 + $0x18] sm:$0xff] }
  0x15   : > { %v379_v8 = vadd.f32 %v370_v4, %v352_v0  ;;  %v388_v9 = vld [vmem:[%s702_s8] sm:$0xff]  ;;  %v422_v10 = vmul.f32 2.0, %v414_v7  ;;  %v380_v13 = vadd.f32 %v371_v5, %v353_v2  ;;  %v389_v18 = vld [vmem:[%s702_s8 + $0x8] sm:$0xff]  ;;  %v423_v20 = vmul.f32 2.0, %v415_v17  ;;  %v408_v26 = vld [vmem:[%s707_s11 + $0x10] sm:$0xff] }
  0x16   : > { %v438_v14 = vld [vmem:[%s719_s17] sm:$0xff]  ;;  %v381_v23 = vadd.f32 %v372_v15, %v354_v11  ;;  %v439_v24 = vld [vmem:[%s719_s17 + $0x8] sm:$0xff]  ;;  %v373_v25 = vmul.f32 2.0, %v364_v22  ;;  %v416_v27 = vld [vmem:[%s714_s14 + $0x10] sm:$0xff] }
  0x17   : > { %v430_v19 = vadd.f32 %v422_v10, %v406_v6  ;;  %v397_v28 = vadd.f32 %v388_v9, %v379_v8  ;;  %v390_v30 = vld [vmem:[%s702_s8 + $0x10] sm:$0xff]  ;;  %v431_v31 = vadd.f32 %v423_v20, %v407_v16  ;;  %v424_v32 = vmul.f32 2.0, %v416_v27  ;;  %v356_v33 = vld [vmem:[%s692_s26 + $0x20] sm:$0xff]  ;;  %v409_v39 = vld [vmem:[%s707_s11 + $0x18] sm:$0xff] }
  0x18   : > { %v365_v34 = vld [vmem:[%s697_s29 + $0x20] sm:$0xff]  ;;  %v398_v35 = vadd.f32 %v389_v18, %v380_v13  ;;  %v382_v36 = vadd.f32 %v373_v25, %v355_v21  ;;  %v440_v37 = vld [vmem:[%s719_s17 + $0x10] sm:$0xff]  ;;  %v417_v40 = vld [vmem:[%s714_s14 + $0x18] sm:$0xff]  ;;  %v399_v48 = vadd.f32 %v390_v30, %v381_v23 }
  0x19   : > { %v446_v29 = vadd.f32 %v438_v14, %v430_v19  ;;  %v374_v38 = vmul.f32 2.0, %v365_v34  ;;  %v447_v42 = vadd.f32 %v439_v24, %v431_v31  ;;  %v391_v43 = vld [vmem:[%s702_s8 + $0x18] sm:$0xff]  ;;  %v432_v44 = vadd.f32 %v424_v32, %v408_v26  ;;  %v357_v46 = vld [vmem:[%s692_s26 + $0x28] sm:$0xff]  ;;  %v392_v50 = vld [vmem:[%s702_s8 + $0x20] sm:$0xff] }
  0x1a   : > { %v425_v45 = vmul.f32 2.0, %v417_v40  ;;  %v366_v47 = vld [vmem:[%s697_s29 + $0x28] sm:$0xff]  ;;  %v441_v51 = vld [vmem:[%s719_s17 + $0x18] sm:$0xff]  ;;  %v418_v53 = vld [vmem:[%s714_s14 + $0x20] sm:$0xff]  ;;  %v400_v61 = vadd.f32 %v391_v43, %v382_v36 }
  0x1b   : > { %v454_v41 = vmul.f32 2.0, %v446_v29  ;;  %v383_v49 = vadd.f32 %v374_v38, %v356_v33  ;;  %v375_v52 = vmul.f32 2.0, %v366_v47  ;;  %v455_v55 = vmul.f32 2.0, %v447_v42  ;;  %v393_v58 = vld [vmem:[%s702_s8 + $0x28] sm:$0xff]  ;;  %v410_v59 = vld [vmem:[%s707_s11 + $0x20] sm:$0xff]  ;;  %v367_v60 = vld [vmem:[%s697_s29 + $0x30] sm:$0xff] }
  0x1c   : > { %v448_v56 = vadd.f32 %v440_v37, %v432_v44  ;;  %v433_v57 = vadd.f32 %v425_v45, %v409_v39  ;;  %v426_v63 = vmul.f32 2.0, %v418_v53  ;;  %v442_v0 = vld [vmem:[%s719_s17 + $0x20] sm:$0xff]  ;;  %v376_v1 = vmul.f32 2.0, %v367_v60  ;;  %v419_v2 = vld [vmem:[%s714_s14 + $0x28] sm:$0xff]  ;;  %v358_v7 = vld [vmem:[%s692_s26 + $0x30] sm:$0xff] }
  0x1d   : > { %v462_v54 = vadd.f32 %v454_v41, %v397_v28  ;;  %v384_v62 = vadd.f32 %v375_v52, %v357_v46  ;;  %v463_v4 = vadd.f32 %v455_v55, %v398_v35  ;;  %v411_v8 = vld [vmem:[%s707_s11 + $0x28] sm:$0xff]  ;;  %v368_v9 = vld [vmem:[%s697_s29 + $0x38] sm:$0xff]  ;;  %v401_v10 = vadd.f32 %v392_v50, %v383_v49  ;;  %v420_v14 = vld [vmem:[%s714_s14 + $0x30] sm:$0xff] }
  0x1e   : > { %v456_v5 = vmul.f32 2.0, %v448_v56  ;;  %v449_v6 = vadd.f32 %v441_v51, %v433_v57  ;;  %v434_v12 = vadd.f32 %v426_v63, %v410_v59  ;;  %v427_v13 = vmul.f32 2.0, %v419_v2  ;;  %v443_v19 = vld [vmem:[%s719_s17 + $0x28] sm:$0xff]  ;;  %v359_v20 = vld [vmem:[%s692_s26 + $0x38] sm:$0xff]  ;;  %v369_v21 = vld [vmem:[%s697_s29 + $0x40] sm:$0xff] }
  0x1f   : > { %v470_v3 = vadd.f32 %v462_v54, %v398_v35  ;;  %v402_v11 = vadd.f32 %v393_v58, %v384_v62  ;;  %v471_v16 = vadd.f32 %v463_v4, %v399_v48  ;;  %v385_v23 = vadd.f32 %v376_v1, %v358_v7  ;;  %v412_v26 = vld [vmem:[%s707_s11 + $0x30] sm:$0xff]  ;;  %v421_v27 = vld [vmem:[%s714_s14 + $0x38] sm:$0xff]  ;;  %v360_v37 = vld [vmem:[%s692_s26 + $0x40] sm:$0xff] }
  0x20   : > { %v464_v17 = vadd.f32 %v456_v5, %v399_v48  ;;  %v457_v18 = vmul.f32 2.0, %v449_v6  ;;  %v450_v22 = vadd.f32 %v442_v0, %v434_v12  ;;  %v435_v24 = vadd.f32 %v427_v13, %v411_v8  ;;  %v394_v31 = vld [vmem:[%s702_s8 + $0x30] sm:$0xff]  ;;  %v413_v39 = vld [vmem:[%s707_s11 + $0x38] sm:$0xff]  ;;  %v396_v55 = vld [vmem:[%s702_s8 + $0x40] sm:$0xff] }
  0x21   : > { %v478_v15 = vmul.f32 0.0625, %v470_v3  ;;  %v377_v25 = vmul.f32 2.0, %v368_v9  ;;  %v479_v28 = vmul.f32 0.0625, %v471_v16  ;;  %v428_v32 = vmul.f32 2.0, %v420_v14  ;;  %v444_v36 = vld [vmem:[%s719_s17 + $0x30] sm:$0xff]  ;;  %v395_v47 = vld [vmem:[%s702_s8 + $0x38] sm:$0xff] }
  0x22   : > { %v472_v29 = vadd.f32 %v464_v17, %v400_v61  ;;  %v465_v30 = vadd.f32 %v457_v18, %v400_v61  ;;  %v458_v33 = vmul.f32 2.0, %v450_v22  ;;  %v451_v34 = vadd.f32 %v443_v19, %v435_v24  ;;  %v445_v48 = vld [vmem:[%s719_s17 + $0x38] sm:$0xff] }
  0x23   : > { %487 = vst.msk [vmem:[%s761_s22] sm:$0xff] %vm486_vm0, %v478_v15  ;;  %v386_v35 = vadd.f32 %v377_v25, %v359_v20  ;;  %v378_v38 = vmul.f32 2.0, %v369_v21  ;;  %488 = vst.msk [vmem:[%s761_s22 + $0x8] sm:$0xff] %vm486_vm0, %v479_v28  ;;  %v436_v42 = vadd.f32 %v428_v32, %v412_v26  ;;  %v429_v43 = vmul.f32 2.0, %v421_v27 }
  0x24   : > { %v480_v40 = vmul.f32 0.0625, %v472_v29  ;;  %v473_v41 = vadd.f32 %v465_v30, %v401_v10  ;;  %v466_v44 = vadd.f32 %v458_v33, %v401_v10  ;;  %v403_v45 = vadd.f32 %v394_v31, %v385_v23 }
  0x25   : > { %v459_v46 = vmul.f32 2.0, %v451_v34  ;;  %v452_v50 = vadd.f32 %v444_v36, %v436_v42  ;;  %v387_v51 = vadd.f32 %v378_v38, %v360_v37  ;;  %v437_v52 = vadd.f32 %v429_v43, %v413_v39 }
  0x26   : > { %489 = vst.msk [vmem:[%s761_s22 + $0x10] sm:$0xff] %vm486_vm0, %v480_v40  ;;  %v481_v49 = vmul.f32 0.0625, %v473_v41  ;;  %v474_v53 = vadd.f32 %v466_v44, %v402_v11  ;;  %v404_v56 = vadd.f32 %v395_v47, %v386_v35 }
  0x27   : > { %v467_v54 = vadd.f32 %v459_v46, %v402_v11  ;;  %v460_v57 = vmul.f32 2.0, %v452_v50  ;;  %v453_v58 = vadd.f32 %v445_v48, %v437_v52  ;;  %v405_v62 = vadd.f32 %v396_v55, %v387_v51 }
  0x28   : > { %490 = vst.msk [vmem:[%s761_s22 + $0x18] sm:$0xff] %vm486_vm0, %v481_v49  ;;  %v482_v59 = vmul.f32 0.0625, %v474_v53 }
  0x29   : > { %v475_v60 = vadd.f32 %v467_v54, %v403_v45  ;;  %v468_v61 = vadd.f32 %v460_v57, %v403_v45  ;;  %v461_v63 = vmul.f32 2.0, %v453_v58 }
  0x2a   : > { %491 = vst.msk [vmem:[%s761_s22 + $0x20] sm:$0xff] %vm486_vm0, %v482_v59 }
  0x2b   : > { %v483_v0 = vmul.f32 0.0625, %v475_v60  ;;  %v476_v1 = vadd.f32 %v468_v61, %v404_v56  ;;  %v469_v2 = vadd.f32 %v461_v63, %v404_v56 }
  0x2d   : > { %492 = vst.msk [vmem:[%s761_s22 + $0x28] sm:$0xff] %vm486_vm0, %v483_v0  ;;  %v484_v3 = vmul.f32 0.0625, %v476_v1  ;;  %v477_v4 = vadd.f32 %v469_v2, %v405_v62 }
  0x2f   : > { %493 = vst.msk [vmem:[%s761_s22 + $0x30] sm:$0xff] %vm486_vm0, %v484_v3  ;;  %v485_v5 = vmul.f32 0.0625, %v477_v4 }
  0x31   : > { %494 = vst.msk [vmem:[%s761_s22 + $0x38] sm:$0xff] %vm486_vm0, %v485_v5 }
  0x32 PF: > { %s16_s21 = sadd.s32 1, %s641_s21  }
  0x33   : > { %p13_p4 = scmp.ge.s32.totalorder %s16_s21, 4  }
  0x35   :  { %15 = sbr.rel (!%p13_p4) target bundleno = 1 (0x1), region = 89 }

// kernel: _lambda_.47
= control target key start
LH: loop header
LB: loop body
LE: loop exit
PB: predicated region body
PF: predicated region fallthrough
CT: control target
= control target key end

     0   :  { %vm139_vm0 = vcmask 523264   ;;  %s723_s1 = inlined_call_operand.vmem [shape: bf16[64,128], index: 1, kind: input, shape index: {}]   ;;  %s724_s0 = inlined_call_operand.vmem [shape: bf16[128,64], index: 0, kind: input, shape index: {}]   ;;  %s725_s2 = inlined_call_operand.vmem [shape: f32[1,128], index: 2, kind: input, shape index: {}]   ;;  %s726_s3 = inlined_call_operand.vmem [shape: f32[128,128], index: 3, kind: output, shape index: {}]  }
   0x1   :  { %v500_v0 = vld [vmem:[%s723_s1] sm:$0xff]   ;;  %v501_v1 = vld [vmem:[%s723_s1 + $0x8] sm:$0xff]   ;;  %v502_v2 = vld [vmem:[%s723_s1 + $0x10] sm:$0xff]  }
   0x2   :  { %468 = vmatprep.subr.bf16.mxu0 %v500_v0  ;;  %492 = vmatprep.subr.bf16.mxu1 %v500_v0  ;;  %v504_v3 = vld [vmem:[%s724_s0] sm:$0xff]   ;;  %v503_v5 = vld [vmem:[%s723_s1 + $0x18] sm:$0xff]   ;;  %v506_v6 = vld [vmem:[%s724_s0 + $0x8] sm:$0xff]  }
   0x3   :  { %469 = vmatpush3.bf16.msra.mxu0 %v500_v0  ;;  %496 = vmatpush3.bf16.msra.mxu1 %v500_v0  ;;  %v505_v4 = vld [vmem:[%s724_s0 + $0x20] sm:$0xff]   ;;  %v507_v7 = vld [vmem:[%s724_s0 + $0x28] sm:$0xff]   ;;  %v508_v8 = vld [vmem:[%s724_s0 + $0x10] sm:$0xff]  }
   0x4   :  { %470 = vmatprep.subr.bf16.mxu0 %v501_v1  ;;  %493 = vmatprep.subr.bf16.mxu1 %v501_v1  ;;  %v509_v9 = vld [vmem:[%s724_s0 + $0x30] sm:$0xff]   ;;  %v510_v10 = vld [vmem:[%s724_s0 + $0x18] sm:$0xff]   ;;  %v455_v12 = vld [vmem:[%s725_s2] ss:$0 sm:$0xff] }
   0x5   :  { %476 = vmatprep.mubr.msk.bf16.mxu0 %vm139_vm0, %v504_v3  ;;  %484 = vmatprep.mubr.msk.bf16.mxu1 %vm139_vm0, %v505_v4  ;;  %v511_v11 = vld [vmem:[%s724_s0 + $0x38] sm:$0xff]  }
   0x7   :  { %471 = vmatpush3.bf16.msra.mxu0 %v501_v1  ;;  %497 = vmatpush3.bf16.msra.mxu1 %v501_v1 }
   0x8   :  { %472 = vmatprep.subr.bf16.mxu0 %v502_v2  ;;  %494 = vmatprep.subr.bf16.mxu1 %v502_v2 }
   0xb   :  { %473 = vmatpush3.bf16.msra.mxu0 %v502_v2  ;;  %498 = vmatpush3.bf16.msra.mxu1 %v502_v2 }
   0xc   :  { %474 = vmatprep.subr.bf16.mxu0 %v503_v5  ;;  %495 = vmatprep.subr.bf16.mxu1 %v503_v5 }
   0xf   :  { %475 = vmatpush3.bf16.msra.mxu0 %v503_v5  ;;  %499 = vmatpush3.bf16.msra.mxu1 %v503_v5 }
  0x12   :  { %477 = vmatmul.mubr.msk.bf16.vlgmr.msra.gmra.mrb[0].mxu0 %vm139_vm0, %v506_v6  ;;  %485 = vmatmul.mubr.msk.bf16.vlgmr.msra.gmra.mrb[0].mxu1 %vm139_vm0, %v507_v7 }
  0x13   :  { %480 = vmatprep.mubr.msk.bf16.mxu0 %vm139_vm0, %v508_v8  ;;  %488 = vmatprep.mubr.msk.bf16.mxu1 %vm139_vm0, %v509_v9 }
  0x1a   :  { %481 = vmatmul.mubr.msk.bf16.gmra.mrb[4].mxu0 %vm139_vm0, %v510_v10  ;;  %489 = vmatmul.mubr.msk.bf16.gmra.mrb[4].mxu1 %vm139_vm0, %v511_v11 }
  0xe5   :  { %v478_v13 = vpop.f32.mrb[0].mxu0  ;;  %v486_v14 = vpop.f32.mrb[0].mxu1 }
  0xe6   :  { %v611_v15 = vadd.f32 %v478_v13, %v455_v12  ;;  %v613_v16 = vadd.f32 %v486_v14, %v455_v12  ;;  %v198_v17 = vpop.f32.mrb[1].mxu0  ;;  %v230_v18 = vpop.f32.mrb[1].mxu1 }
  0xe7   :  { %v615_v19 = vadd.f32 %v455_v12, %v198_v17  ;;  %v617_v20 = vadd.f32 %v455_v12, %v230_v18  ;;  %v479_v21 = vpop.f32.mrb[2].mxu0  ;;  %v487_v22 = vpop.f32.mrb[2].mxu1 }
  0xe8   :  { %v337_v23 = vmul.f32 0.5, %v611_v15  ;;  %v345_v24 = vmul.f32 0.5, %v613_v16  ;;  %v621_v25 = vadd.f32 %v479_v21, %v455_v12  ;;  %v623_v26 = vadd.f32 %v487_v22, %v455_v12  ;;  %v201_v27 = vpop.f32.mrb[3].mxu0  ;;  %v233_v28 = vpop.f32.mrb[3].mxu1 }
  0xe9   :  { %v335_v29 = vmul.f32 0.5, %v615_v19  ;;  %v343_v30 = vmul.f32 0.5, %v617_v20  ;;  %v627_v31 = vadd.f32 %v455_v12, %v201_v27  ;;  %v629_v32 = vadd.f32 %v455_v12, %v233_v28 }
  0xea   :  { %512 = vtanh.f32 %v337_v23  ;;  %v338_v33 = vmul.f32 0.5, %v621_v25  ;;  %v346_v34 = vmul.f32 0.5, %v623_v26 }
  0xeb   :  { %514 = vtanh.f32 %v345_v24  ;;  %v336_v35 = vmul.f32 0.5, %v627_v31  ;;  %v344_v36 = vmul.f32 0.5, %v629_v32 }
  0xec   :  { %516 = vtanh.f32 %v335_v29 }
  0xed   :  { %518 = vtanh.f32 %v343_v30  ;;  %v482_v37 = vpop.f32.mrb[4].mxu0  ;;  %v490_v38 = vpop.f32.mrb[4].mxu1 }
  0xee   :  { %520 = vtanh.f32 %v338_v33  ;;  %v635_v39 = vadd.f32 %v482_v37, %v455_v12  ;;  %v637_v40 = vadd.f32 %v490_v38, %v455_v12  ;;  %v214_v41 = vpop.f32.mrb[5].mxu0  ;;  %v246_v42 = vpop.f32.mrb[5].mxu1 }
  0xef   :  { %522 = vtanh.f32 %v346_v34  ;;  %v639_v43 = vadd.f32 %v455_v12, %v214_v41  ;;  %v641_v44 = vadd.f32 %v455_v12, %v246_v42  ;;  %v483_v45 = vpop.f32.mrb[6].mxu0  ;;  %v491_v46 = vpop.f32.mrb[6].mxu1 }
  0xf0   :  { %524 = vtanh.f32 %v336_v35  ;;  %v341_v47 = vmul.f32 0.5, %v635_v39  ;;  %v349_v48 = vmul.f32 0.5, %v637_v40  ;;  %v645_v49 = vadd.f32 %v483_v45, %v455_v12  ;;  %v217_v50 = vpop.f32.mrb[7].mxu0  ;;  %v249_v51 = vpop.f32.mrb[7].mxu1 }
  0xf1   :  { %526 = vtanh.f32 %v344_v36  ;;  %v339_v52 = vmul.f32 0.5, %v639_v43  ;;  %v347_v53 = vmul.f32 0.5, %v641_v44  ;;  %v649_v54 = vadd.f32 %v491_v46, %v455_v12 }
  0xf2   :  { %528 = vtanh.f32 %v341_v47  ;;  %v342_v55 = vmul.f32 0.5, %v645_v49  ;;  %v652_v56 = vadd.f32 %v455_v12, %v217_v50  ;;  %v654_v57 = vadd.f32 %v455_v12, %v249_v51 }
  0xf3   :  { %530 = vtanh.f32 %v349_v48  ;;  %v350_v58 = vmul.f32 0.5, %v649_v54 }
  0xf4   :  { %v513_v59 = vpop.eup %512  ;;  %532 = vtanh.f32 %v339_v52  ;;  %v340_v60 = vmul.f32 0.5, %v652_v56  ;;  %v348_v63 = vmul.f32 0.5, %v654_v57 }
  0xf5   :  { %v515_v61 = vpop.eup %514  ;;  %v369_v62 = vadd.f32 1.0, %v513_v59  ;;  %534 = vtanh.f32 %v347_v53 }
  0xf6   :  { %v517_v0 = vpop.eup %516  ;;  %v377_v1 = vadd.f32 1.0, %v515_v61  ;;  %536 = vtanh.f32 %v342_v55 }
  0xf7   :  { %v519_v2 = vpop.eup %518  ;;  %v385_v3 = vmul.f32 0.5, %v369_v62  ;;  %v367_v4 = vadd.f32 1.0, %v517_v0  ;;  %538 = vtanh.f32 %v350_v58 }
  0xf8   :  { %v521_v5 = vpop.eup %520  ;;  %v393_v6 = vmul.f32 0.5, %v377_v1  ;;  %v375_v7 = vadd.f32 1.0, %v519_v2  ;;  %540 = vtanh.f32 %v340_v60 }
  0xf9   :  { %v523_v8 = vpop.eup %522  ;;  %v401_v9 = vmul.f32 %v385_v3, %v611_v15  ;;  %v383_v10 = vmul.f32 0.5, %v367_v4  ;;  %v370_v11 = vadd.f32 1.0, %v521_v5  ;;  %542 = vtanh.f32 %v348_v63 }
  0xfa   :  { %v525_v12 = vpop.eup %524  ;;  %v409_v13 = vmul.f32 %v393_v6, %v613_v16  ;;  %v391_v14 = vmul.f32 0.5, %v375_v7  ;;  %v378_v17 = vadd.f32 1.0, %v523_v8 }
  0xfb   :  { %v527_v18 = vpop.eup %526  ;;  %417 = vst [vmem:[%s726_s3 + $0x10] sm:$0xff] %v401_v9  ;;  %v399_v21 = vmul.f32 %v383_v10, %v615_v19  ;;  %v386_v22 = vmul.f32 0.5, %v370_v11  ;;  %v368_v23 = vadd.f32 1.0, %v525_v12 }
  0xfc   :  { %v529_v24 = vpop.eup %528  ;;  %425 = vst [vmem:[%s726_s3 + $0x50] sm:$0xff] %v409_v13  ;;  %v407_v15 = vmul.f32 %v391_v14, %v617_v20  ;;  %v394_v27 = vmul.f32 0.5, %v378_v17  ;;  %v376_v16 = vadd.f32 1.0, %v527_v18 }
  0xfd   :  { %v531_v28 = vpop.eup %530  ;;  %415 = vst [vmem:[%s726_s3] sm:$0xff] %v399_v21  ;;  %v402_v29 = vmul.f32 %v386_v22, %v621_v25  ;;  %v384_v30 = vmul.f32 0.5, %v368_v23  ;;  %v373_v19 = vadd.f32 1.0, %v529_v24 }
  0xfe   :  { %v533_v33 = vpop.eup %532  ;;  %423 = vst [vmem:[%s726_s3 + $0x40] sm:$0xff] %v407_v15  ;;  %v410_v34 = vmul.f32 %v394_v27, %v623_v26  ;;  %v392_v35 = vmul.f32 0.5, %v376_v16  ;;  %v381_v20 = vadd.f32 1.0, %v531_v28 }
  0xff   :  { %v535_v36 = vpop.eup %534  ;;  %418 = vst [vmem:[%s726_s3 + $0x18] sm:$0xff] %v402_v29  ;;  %v400_v37 = vmul.f32 %v384_v30, %v627_v31  ;;  %v389_v38 = vmul.f32 0.5, %v373_v19  ;;  %v371_v25 = vadd.f32 1.0, %v533_v33 }
 0x100   :  { %v537_v41 = vpop.eup %536  ;;  %426 = vst [vmem:[%s726_s3 + $0x58] sm:$0xff] %v410_v34  ;;  %v408_v42 = vmul.f32 %v392_v35, %v629_v32  ;;  %v397_v45 = vmul.f32 0.5, %v381_v20  ;;  %v379_v26 = vadd.f32 1.0, %v535_v36 }
 0x101   :  { %v539_v46 = vpop.eup %538  ;;  %416 = vst [vmem:[%s726_s3 + $0x8] sm:$0xff] %v400_v37  ;;  %v405_v47 = vmul.f32 %v389_v38, %v635_v39  ;;  %v387_v48 = vmul.f32 0.5, %v371_v25  ;;  %v374_v31 = vadd.f32 1.0, %v537_v41 }
 0x102   :  { %v541_v50 = vpop.eup %540  ;;  %424 = vst [vmem:[%s726_s3 + $0x48] sm:$0xff] %v408_v42  ;;  %v413_v51 = vmul.f32 %v397_v45, %v637_v40  ;;  %v395_v52 = vmul.f32 0.5, %v379_v26  ;;  %v382_v32 = vadd.f32 1.0, %v539_v46 }
 0x103   :  { %v543_v53 = vpop.eup %542  ;;  %421 = vst [vmem:[%s726_s3 + $0x30] sm:$0xff] %v405_v47  ;;  %v403_v55 = vmul.f32 %v387_v48, %v639_v43  ;;  %v390_v58 = vmul.f32 0.5, %v374_v31  ;;  %v372_v39 = vadd.f32 1.0, %v541_v50 }
 0x104   :  { %429 = vst [vmem:[%s726_s3 + $0x70] sm:$0xff] %v413_v51  ;;  %v411_v59 = vmul.f32 %v395_v52, %v641_v44  ;;  %v398_v60 = vmul.f32 0.5, %v382_v32  ;;  %v380_v61 = vadd.f32 1.0, %v543_v53 }
 0x105   :  { %419 = vst [vmem:[%s726_s3 + $0x20] sm:$0xff] %v403_v55  ;;  %v406_v40 = vmul.f32 %v390_v58, %v645_v49  ;;  %v388_v62 = vmul.f32 0.5, %v372_v39 }
 0x106   :  { %427 = vst [vmem:[%s726_s3 + $0x60] sm:$0xff] %v411_v59  ;;  %v414_v43 = vmul.f32 %v398_v60, %v649_v54  ;;  %v396_v63 = vmul.f32 0.5, %v380_v61 }
 0x107   :  { %422 = vst [vmem:[%s726_s3 + $0x38] sm:$0xff] %v406_v40  ;;  %v404_v44 = vmul.f32 %v388_v62, %v652_v56 }
 0x108   :  { %430 = vst [vmem:[%s726_s3 + $0x78] sm:$0xff] %v414_v43  ;;  %v412_v49 = vmul.f32 %v396_v63, %v654_v57 }
 0x109   :  { %420 = vst [vmem:[%s726_s3 + $0x28] sm:$0xff] %v404_v44 }
 0x10a   :  { %428 = vst [vmem:[%s726_s3 + $0x68] sm:$0xff] %v412_v49 }

// kernel: _lambda_.49
= control target key start
LH: loop header
LB: loop body
LE: loop exit
PB: predicated region body
PF: predicated region fallthrough
CT: control target
= control target key end

     0   :  { %vm123_vm0 = vcmask 261120   ;;  %s687_s1 = inlined_call_operand.vmem [shape: bf16[32,128], index: 1, kind: input, shape index: {}]   ;;  %s688_s0 = inlined_call_operand.vmem [shape: bf16[128,32], index: 0, kind: input, shape index: {}]   ;;  %s689_s2 = inlined_call_operand.vmem [shape: f32[1,128], index: 2, kind: input, shape index: {}]   ;;  %s690_s3 = inlined_call_operand.vmem [shape: f32[128,128], index: 3, kind: output, shape index: {}]  }
   0x1   :  { %v472_v0 = vld [vmem:[%s687_s1] sm:$0xff]   ;;  %v473_v1 = vld [vmem:[%s687_s1 + $0x8] sm:$0xff]   ;;  %v478_v6 = vld [vmem:[%s688_s0 + $0x10] sm:$0xff]  }
   0x2   :  { %448 = vmatprep.subr.bf16.mxu0 %v472_v0  ;;  %468 = vmatprep.subr.bf16.mxu1 %v472_v0  ;;  %v474_v2 = vld [vmem:[%s688_s0] sm:$0xff]   ;;  %v476_v4 = vld [vmem:[%s688_s0 + $0x8] sm:$0xff]   ;;  %v479_v7 = vld [vmem:[%s688_s0 + $0x30] sm:$0xff]  }
   0x3   :  { %449 = vmatpush3.bf16.msra.mxu0 %v472_v0  ;;  %470 = vmatpush3.bf16.msra.mxu1 %v472_v0  ;;  %v475_v3 = vld [vmem:[%s688_s0 + $0x20] sm:$0xff]   ;;  %v477_v5 = vld [vmem:[%s688_s0 + $0x28] sm:$0xff]   ;;  %v480_v8 = vld [vmem:[%s688_s0 + $0x18] sm:$0xff]  }
   0x4   :  { %450 = vmatprep.subr.bf16.mxu0 %v473_v1  ;;  %469 = vmatprep.subr.bf16.mxu1 %v473_v1  ;;  %v481_v9 = vld [vmem:[%s688_s0 + $0x38] sm:$0xff]   ;;  %v437_v10 = vld [vmem:[%s689_s2] ss:$0 sm:$0xff] }
   0x5   :  { %452 = vmatprep.mubr.msk.bf16.mxu0 %vm123_vm0, %v474_v2  ;;  %460 = vmatprep.mubr.msk.bf16.mxu1 %vm123_vm0, %v475_v3 }
   0x7   :  { %451 = vmatpush3.bf16.msra.mxu0 %v473_v1  ;;  %471 = vmatpush3.bf16.msra.mxu1 %v473_v1 }
   0xa   :  { %453 = vmatmul.mubr.msk.bf16.vlgmr.msra.gmra.mrb[0].mxu0 %vm123_vm0, %v476_v4  ;;  %461 = vmatmul.mubr.msk.bf16.vlgmr.msra.gmra.mrb[0].mxu1 %vm123_vm0, %v477_v5 }
   0xb   :  { %456 = vmatprep.mubr.msk.bf16.mxu0 %vm123_vm0, %v478_v6  ;;  %464 = vmatprep.mubr.msk.bf16.mxu1 %vm123_vm0, %v479_v7 }
  0x12   :  { %457 = vmatmul.mubr.msk.bf16.gmra.mrb[4].mxu0 %vm123_vm0, %v480_v8  ;;  %465 = vmatmul.mubr.msk.bf16.gmra.mrb[4].mxu1 %vm123_vm0, %v481_v9 }
  0xdd   :  { %v454_v11 = vpop.f32.mrb[0].mxu0  ;;  %v462_v12 = vpop.f32.mrb[0].mxu1 }
  0xde   :  { %v575_v13 = vadd.f32 %v454_v11, %v437_v10  ;;  %v577_v14 = vadd.f32 %v462_v12, %v437_v10  ;;  %v182_v15 = vpop.f32.mrb[1].mxu0  ;;  %v214_v16 = vpop.f32.mrb[1].mxu1 }
  0xdf   :  { %v579_v17 = vadd.f32 %v437_v10, %v182_v15  ;;  %v581_v18 = vadd.f32 %v437_v10, %v214_v16  ;;  %v455_v19 = vpop.f32.mrb[2].mxu0  ;;  %v463_v20 = vpop.f32.mrb[2].mxu1 }
  0xe0   :  { %v321_v21 = vmul.f32 0.5, %v575_v13  ;;  %v329_v22 = vmul.f32 0.5, %v577_v14  ;;  %v585_v23 = vadd.f32 %v455_v19, %v437_v10  ;;  %v587_v24 = vadd.f32 %v463_v20, %v437_v10  ;;  %v185_v25 = vpop.f32.mrb[3].mxu0  ;;  %v217_v26 = vpop.f32.mrb[3].mxu1 }
  0xe1   :  { %v319_v27 = vmul.f32 0.5, %v579_v17  ;;  %v327_v28 = vmul.f32 0.5, %v581_v18  ;;  %v591_v29 = vadd.f32 %v437_v10, %v185_v25  ;;  %v593_v30 = vadd.f32 %v437_v10, %v217_v26 }
  0xe2   :  { %482 = vtanh.f32 %v321_v21  ;;  %v322_v31 = vmul.f32 0.5, %v585_v23  ;;  %v330_v32 = vmul.f32 0.5, %v587_v24 }
  0xe3   :  { %484 = vtanh.f32 %v329_v22  ;;  %v320_v33 = vmul.f32 0.5, %v591_v29  ;;  %v328_v34 = vmul.f32 0.5, %v593_v30 }
  0xe4   :  { %486 = vtanh.f32 %v319_v27 }
  0xe5   :  { %488 = vtanh.f32 %v327_v28  ;;  %v458_v35 = vpop.f32.mrb[4].mxu0  ;;  %v466_v36 = vpop.f32.mrb[4].mxu1 }
  0xe6   :  { %490 = vtanh.f32 %v322_v31  ;;  %v599_v37 = vadd.f32 %v458_v35, %v437_v10  ;;  %v601_v38 = vadd.f32 %v466_v36, %v437_v10  ;;  %v198_v39 = vpop.f32.mrb[5].mxu0  ;;  %v230_v40 = vpop.f32.mrb[5].mxu1 }
  0xe7   :  { %492 = vtanh.f32 %v330_v32  ;;  %v603_v41 = vadd.f32 %v437_v10, %v198_v39  ;;  %v605_v42 = vadd.f32 %v437_v10, %v230_v40  ;;  %v459_v43 = vpop.f32.mrb[6].mxu0  ;;  %v467_v44 = vpop.f32.mrb[6].mxu1 }
  0xe8   :  { %494 = vtanh.f32 %v320_v33  ;;  %v325_v45 = vmul.f32 0.5, %v599_v37  ;;  %v333_v46 = vmul.f32 0.5, %v601_v38  ;;  %v609_v47 = vadd.f32 %v459_v43, %v437_v10  ;;  %v201_v48 = vpop.f32.mrb[7].mxu0  ;;  %v233_v49 = vpop.f32.mrb[7].mxu1 }
  0xe9   :  { %496 = vtanh.f32 %v328_v34  ;;  %v323_v50 = vmul.f32 0.5, %v603_v41  ;;  %v331_v51 = vmul.f32 0.5, %v605_v42  ;;  %v613_v52 = vadd.f32 %v467_v44, %v437_v10 }
  0xea   :  { %498 = vtanh.f32 %v325_v45  ;;  %v326_v53 = vmul.f32 0.5, %v609_v47  ;;  %v616_v54 = vadd.f32 %v437_v10, %v201_v48  ;;  %v618_v55 = vadd.f32 %v437_v10, %v233_v49 }
  0xeb   :  { %500 = vtanh.f32 %v333_v46  ;;  %v334_v56 = vmul.f32 0.5, %v613_v52 }
  0xec   :  { %v483_v57 = vpop.eup %482  ;;  %502 = vtanh.f32 %v323_v50  ;;  %v324_v58 = vmul.f32 0.5, %v616_v54  ;;  %v332_v61 = vmul.f32 0.5, %v618_v55 }
  0xed   :  { %v485_v59 = vpop.eup %484  ;;  %v353_v60 = vadd.f32 1.0, %v483_v57  ;;  %504 = vtanh.f32 %v331_v51 }
  0xee   :  { %v487_v62 = vpop.eup %486  ;;  %v361_v63 = vadd.f32 1.0, %v485_v59  ;;  %506 = vtanh.f32 %v326_v53 }
  0xef   :  { %v489_v0 = vpop.eup %488  ;;  %v369_v1 = vmul.f32 0.5, %v353_v60  ;;  %v351_v2 = vadd.f32 1.0, %v487_v62  ;;  %508 = vtanh.f32 %v334_v56 }
  0xf0   :  { %v491_v3 = vpop.eup %490  ;;  %v377_v4 = vmul.f32 0.5, %v361_v63  ;;  %v359_v5 = vadd.f32 1.0, %v489_v0  ;;  %510 = vtanh.f32 %v324_v58 }
  0xf1   :  { %v493_v6 = vpop.eup %492  ;;  %v385_v7 = vmul.f32 %v369_v1, %v575_v13  ;;  %v367_v8 = vmul.f32 0.5, %v351_v2  ;;  %v354_v9 = vadd.f32 1.0, %v491_v3  ;;  %512 = vtanh.f32 %v332_v61 }
  0xf2   :  { %v495_v10 = vpop.eup %494  ;;  %v393_v11 = vmul.f32 %v377_v4, %v577_v14  ;;  %v375_v12 = vmul.f32 0.5, %v359_v5  ;;  %v362_v15 = vadd.f32 1.0, %v493_v6 }
  0xf3   :  { %v497_v16 = vpop.eup %496  ;;  %401 = vst [vmem:[%s690_s3 + $0x10] sm:$0xff] %v385_v7  ;;  %v383_v19 = vmul.f32 %v367_v8, %v579_v17  ;;  %v370_v20 = vmul.f32 0.5, %v354_v9  ;;  %v352_v21 = vadd.f32 1.0, %v495_v10 }
  0xf4   :  { %v499_v22 = vpop.eup %498  ;;  %409 = vst [vmem:[%s690_s3 + $0x50] sm:$0xff] %v393_v11  ;;  %v391_v13 = vmul.f32 %v375_v12, %v581_v18  ;;  %v378_v25 = vmul.f32 0.5, %v362_v15  ;;  %v360_v14 = vadd.f32 1.0, %v497_v16 }
  0xf5   :  { %v501_v26 = vpop.eup %500  ;;  %399 = vst [vmem:[%s690_s3] sm:$0xff] %v383_v19  ;;  %v386_v27 = vmul.f32 %v370_v20, %v585_v23  ;;  %v368_v28 = vmul.f32 0.5, %v352_v21  ;;  %v357_v17 = vadd.f32 1.0, %v499_v22 }
  0xf6   :  { %v503_v31 = vpop.eup %502  ;;  %407 = vst [vmem:[%s690_s3 + $0x40] sm:$0xff] %v391_v13  ;;  %v394_v32 = vmul.f32 %v378_v25, %v587_v24  ;;  %v376_v33 = vmul.f32 0.5, %v360_v14  ;;  %v365_v18 = vadd.f32 1.0, %v501_v26 }
  0xf7   :  { %v505_v34 = vpop.eup %504  ;;  %402 = vst [vmem:[%s690_s3 + $0x18] sm:$0xff] %v386_v27  ;;  %v384_v35 = vmul.f32 %v368_v28, %v591_v29  ;;  %v373_v36 = vmul.f32 0.5, %v357_v17  ;;  %v355_v23 = vadd.f32 1.0, %v503_v31 }
  0xf8   :  { %v507_v39 = vpop.eup %506  ;;  %410 = vst [vmem:[%s690_s3 + $0x58] sm:$0xff] %v394_v32  ;;  %v392_v40 = vmul.f32 %v376_v33, %v593_v30  ;;  %v381_v43 = vmul.f32 0.5, %v365_v18  ;;  %v363_v24 = vadd.f32 1.0, %v505_v34 }
  0xf9   :  { %v509_v44 = vpop.eup %508  ;;  %400 = vst [vmem:[%s690_s3 + $0x8] sm:$0xff] %v384_v35  ;;  %v389_v45 = vmul.f32 %v373_v36, %v599_v37  ;;  %v371_v46 = vmul.f32 0.5, %v355_v23  ;;  %v358_v29 = vadd.f32 1.0, %v507_v39 }
  0xfa   :  { %v511_v48 = vpop.eup %510  ;;  %408 = vst [vmem:[%s690_s3 + $0x48] sm:$0xff] %v392_v40  ;;  %v397_v49 = vmul.f32 %v381_v43, %v601_v38  ;;  %v379_v50 = vmul.f32 0.5, %v363_v24  ;;  %v366_v30 = vadd.f32 1.0, %v509_v44 }
  0xfb   :  { %v513_v51 = vpop.eup %512  ;;  %405 = vst [vmem:[%s690_s3 + $0x30] sm:$0xff] %v389_v45  ;;  %v387_v53 = vmul.f32 %v371_v46, %v603_v41  ;;  %v374_v56 = vmul.f32 0.5, %v358_v29  ;;  %v356_v37 = vadd.f32 1.0, %v511_v48 }
  0xfc   :  { %413 = vst [vmem:[%s690_s3 + $0x70] sm:$0xff] %v397_v49  ;;  %v395_v57 = vmul.f32 %v379_v50, %v605_v42  ;;  %v382_v58 = vmul.f32 0.5, %v366_v30  ;;  %v364_v59 = vadd.f32 1.0, %v513_v51 }
  0xfd   :  { %403 = vst [vmem:[%s690_s3 + $0x20] sm:$0xff] %v387_v53  ;;  %v390_v38 = vmul.f32 %v374_v56, %v609_v47  ;;  %v372_v60 = vmul.f32 0.5, %v356_v37 }
  0xfe   :  { %411 = vst [vmem:[%s690_s3 + $0x60] sm:$0xff] %v395_v57  ;;  %v398_v41 = vmul.f32 %v382_v58, %v613_v52  ;;  %v380_v61 = vmul.f32 0.5, %v364_v59 }
  0xff   :  { %406 = vst [vmem:[%s690_s3 + $0x38] sm:$0xff] %v390_v38  ;;  %v388_v42 = vmul.f32 %v372_v60, %v616_v54 }
 0x100   :  { %414 = vst [vmem:[%s690_s3 + $0x78] sm:$0xff] %v398_v41  ;;  %v396_v47 = vmul.f32 %v380_v61, %v618_v55 }
 0x101   :  { %404 = vst [vmem:[%s690_s3 + $0x28] sm:$0xff] %v388_v42 }
 0x102   :  { %412 = vst [vmem:[%s690_s3 + $0x68] sm:$0xff] %v396_v47 }

// kernel: _lambda_.50
= control target key start
LH: loop header
LB: loop body
LE: loop exit
PB: predicated region body
PF: predicated region fallthrough
CT: control target
= control target key end

     0   :  { %vm350_vm0 = vcmask 261120   ;;  %s1368_s1 = inlined_call_operand.vmem [shape: bf16[288,128], index: 1, kind: input, shape index: {}]   ;;  %s1369_s0 = inlined_call_operand.vmem [shape: bf16[128,288], index: 0, kind: input, shape index: {}]   ;;  %s1370_s2 = inlined_call_operand.vmem [shape: f32[1,128], index: 2, kind: input, shape index: {}]   ;;  %s1371_s3 = inlined_call_operand.vmem [shape: f32[128,128], index: 3, kind: input, shape index: {}]   ;;  %s1372_s4 = inlined_call_operand.vmem [shape: f32[128,128], index: 4, kind: output, shape index: {}]  }
   0x1   :  { %v936_v0 = vld [vmem:[%s1368_s1 + $0x40] sm:$0xff]   ;;  %v938_v2 = vld [vmem:[%s1368_s1 + $0x48] sm:$0xff]   ;;  %v940_v4 = vld [vmem:[%s1368_s1 + $0x50] sm:$0xff]  }
   0x2   :  { %v937_v1 = vld [vmem:[%s1368_s1] sm:$0xff]   ;;  %826 = vmatprep.subr.bf16.mxu0 %v936_v0  ;;  %920 = vmatprep.subr.bf16.mxu1 %v936_v0  ;;  %v939_v3 = vld [vmem:[%s1368_s1 + $0x8] sm:$0xff]   ;;  %v941_v5 = vld [vmem:[%s1368_s1 + $0x10] sm:$0xff]  }
   0x3   :  { %827 = vmatpush3.bf16.msra.mxu0 %v937_v1  ;;  %928 = vmatpush3.bf16.msra.mxu1 %v937_v1  ;;  %v942_v6 = vld [vmem:[%s1368_s1 + $0x58] sm:$0xff]   ;;  %v944_v8 = vld [vmem:[%s1368_s1 + $0x60] sm:$0xff]   ;;  %v946_v10 = vld [vmem:[%s1368_s1 + $0x68] sm:$0xff]  }
   0x4   :  { %828 = vmatprep.subr.bf16.mxu0 %v938_v2  ;;  %921 = vmatprep.subr.bf16.mxu1 %v938_v2  ;;  %v943_v7 = vld [vmem:[%s1368_s1 + $0x18] sm:$0xff]   ;;  %v945_v9 = vld [vmem:[%s1368_s1 + $0x20] sm:$0xff]   ;;  %v947_v13 = vld [vmem:[%s1368_s1 + $0x28] sm:$0xff]  }
   0x5   :  { %v954_v11 = vld [vmem:[%s1369_s0 + $0x4] ss:$12 sps:$4 sm:$0xff]   ;;  %v957_v12 = vld [vmem:[%s1369_s0 + $0x94] ss:$12 sps:$4 sm:$0xff]   ;;  %v950_v16 = vld [vmem:[%s1368_s1 + $0x78] sm:$0xff]  }
   0x6   :  { %v948_v14 = vld [vmem:[%s1368_s1 + $0x70] sm:$0xff]   ;;  %407 = vmatprep.mubr.bf16.mxu0 %v954_v11  ;;  %455 = vmatprep.mubr.bf16.mxu1 %v957_v12  ;;  %v951_v17 = vld [vmem:[%s1368_s1 + $0x38] sm:$0xff]   ;;  %v952_v18 = vld [vmem:[%s1369_s0] ss:$12 sps:$4 sm:$0xff]  }
   0x7   :  { %829 = vmatpush3.bf16.msra.mxu0 %v939_v3  ;;  %929 = vmatpush3.bf16.msra.mxu1 %v939_v3  ;;  %v949_v15 = vld [vmem:[%s1368_s1 + $0x30] sm:$0xff]   ;;  %v958_v19 = vld [vmem:[%s1368_s1 + $0x80] sm:$0xff]   ;;  %v959_v21 = vld [vmem:[%s1369_s0 + $0x1c] ss:$12 sps:$4 sm:$0xff]  }
   0x8   :  { %830 = vmatprep.subr.bf16.mxu0 %v940_v4  ;;  %922 = vmatprep.subr.bf16.mxu1 %v940_v4  ;;  %v955_v20 = vld [vmem:[%s1369_s0 + $0x90] ss:$12 sps:$4 sm:$0xff]   ;;  %v961_v22 = vld [vmem:[%s1369_s0 + $0xac] ss:$12 sps:$4 sm:$0xff]   ;;  %v964_v25 = vld [vmem:[%s1369_s0 + $0xa8] ss:$12 sps:$4 sm:$0xff]  }
   0x9   :  { %v965_v23 = vld [vmem:[%s1368_s1 + $0x88] sm:$0xff]   ;;  %v963_v24 = vld [vmem:[%s1369_s0 + $0x18] ss:$12 sps:$4 sm:$0xff]   ;;  %v966_v26 = vld [vmem:[%s1369_s0 + $0x34] ss:$12 sps:$4 sm:$0xff]  }
   0xa   :  { %v968_v27 = vld [vmem:[%s1369_s0 + $0x8] ss:$12 sps:$4 sm:$0xff]   ;;  %v969_v28 = vld [vmem:[%s1369_s0 + $0x30] ss:$12 sps:$4 sm:$0xff]   ;;  %v970_v29 = vld [vmem:[%s1369_s0 + $0x20] ss:$12 sps:$4 sm:$0xff]  }
   0xb   :  { %831 = vmatpush3.bf16.msra.mxu0 %v941_v5  ;;  %930 = vmatpush3.bf16.msra.mxu1 %v941_v5  ;;  %v971_v30 = vld [vmem:[%s1369_s0 + $0x4c] ss:$12 sps:$4 sm:$0xff]   ;;  %v974_v32 = vld [vmem:[%s1369_s0 + $0x48] ss:$12 sps:$4 sm:$0xff]   ;;  %v975_v33 = vld [vmem:[%s1369_s0 + $0x50] ss:$12 sps:$4 sm:$0xff]  }
   0xc   :  { %832 = vmatprep.subr.bf16.mxu0 %v942_v6  ;;  %923 = vmatprep.subr.bf16.mxu1 %v942_v6  ;;  %v973_v31 = vld [vmem:[%s1369_s0 + $0x38] ss:$12 sps:$4 sm:$0xff]   ;;  %v978_v35 = vld [vmem:[%s1369_s0 + $0x68] ss:$12 sps:$4 sm:$0xff]   ;;  %v979_v36 = vld [vmem:[%s1369_s0 + $0x60] ss:$12 sps:$4 sm:$0xff]  }
   0xd   :  { %v976_v34 = vld [vmem:[%s1369_s0 + $0x64] ss:$12 sps:$4 sm:$0xff]   ;;  %v980_v37 = vld [vmem:[%s1369_s0 + $0x80] ss:$12 sps:$4 sm:$0xff]   ;;  %v981_v38 = vld [vmem:[%s1369_s0 + $0x7c] ss:$12 sps:$4 sm:$0xff]  }
   0xe   :  { %v983_v39 = vld [vmem:[%s1369_s0 + $0x98] ss:$12 sps:$4 sm:$0xff]   ;;  %v985_v41 = vld [vmem:[%s1369_s0 + $0xb0] ss:$12 sps:$4 sm:$0xff]   ;;  %v1188_v4 = vld [vmem:[%s1370_s2] ss:$0 sm:$0xff] }
   0xf   :  { %833 = vmatpush3.bf16.msra.mxu0 %v943_v7  ;;  %931 = vmatpush3.bf16.msra.mxu1 %v943_v7  ;;  %v984_v40 = vld [vmem:[%s1369_s0 + $0x78] ss:$12 sps:$4 sm:$0xff]  }
  0x10   :  { %834 = vmatprep.subr.bf16.mxu0 %v944_v8  ;;  %924 = vmatprep.subr.bf16.mxu1 %v944_v8 }
  0x13   :  { %835 = vmatpush3.bf16.msra.mxu0 %v945_v9  ;;  %932 = vmatpush3.bf16.msra.mxu1 %v945_v9 }
  0x14   :  { %836 = vmatprep.subr.bf16.mxu0 %v946_v10  ;;  %925 = vmatprep.subr.bf16.mxu1 %v946_v10 }
  0x17   :  { %837 = vmatpush3.bf16.msra.mxu0 %v947_v13  ;;  %933 = vmatpush3.bf16.msra.mxu1 %v947_v13 }
  0x18   :  { %838 = vmatprep.subr.bf16.mxu0 %v948_v14  ;;  %926 = vmatprep.subr.bf16.mxu1 %v948_v14 }
  0x1b   :  { %839 = vmatpush3.bf16.msra.mxu0 %v949_v15  ;;  %934 = vmatpush3.bf16.msra.mxu1 %v949_v15 }
  0x1c   :  { %840 = vmatprep.subr.bf16.mxu0 %v950_v16  ;;  %927 = vmatprep.subr.bf16.mxu1 %v950_v16 }
  0x1f   :  { %841 = vmatpush3.bf16.msra.mxu0 %v951_v17  ;;  %935 = vmatpush3.bf16.msra.mxu1 %v951_v17 }
  0x20   :  { %900 = vmatprep.subr.bf16.mxu1 %v958_v19 }
  0x22   :  { %408 = vmatmul.mubr.bf16.vlgmr.msra.gmra.mrb[0].mxu0 %v952_v18  ;;  %456 = vmatmul.mubr.bf16.vlgmr.msra.gmra.mrb[0].mxu1 %v955_v20 }
  0x23   :  { %901 = vmatpush3.bf16.msra.mxu1 %v958_v19  ;;  %415 = vmatprep.mubr.bf16.mxu0 %v959_v21 }
  0x24   :  { %463 = vmatprep.mubr.bf16.mxu1 %v961_v22  ;;  %902 = vmatprep.subr.bf16.mxu1 %v965_v23 }
  0x27   :  { %903 = vmatpush3.bf16.msra.mxu1 %v965_v23 }
  0x2a   :  { %416 = vmatmul.mubr.bf16.gmra.mrb[4].mxu0 %v963_v24  ;;  %464 = vmatmul.mubr.bf16.gmra.mrb[4].mxu1 %v964_v25 }
  0x2b   :  { %423 = vmatprep.mubr.bf16.mxu0 %v966_v26  ;;  %904 = vmatprep.mubr.msk.bf16.mxu1 %vm350_vm0, %v968_v27 }
  0x32   :  { %424 = vmatmul.mubr.bf16.gmra.mrb[8].mxu0 %v969_v28  ;;  %905 = vmatmul.mubr.msk.bf16.vlgmr.msra.gmra.mrb[8].mxu1 %vm350_vm0, %v970_v29 }
  0x33   :  { %431 = vmatprep.mubr.bf16.mxu0 %v971_v30  ;;  %908 = vmatprep.mubr.msk.bf16.mxu1 %vm350_vm0, %v973_v31 }
  0x3a   :  { %432 = vmatmul.mubr.bf16.gmra.mrb[12].mxu0 %v974_v32  ;;  %909 = vmatmul.mubr.msk.bf16.gmra.mrb[12].mxu1 %vm350_vm0, %v975_v33 }
  0x3b   :  { %439 = vmatprep.mubr.bf16.mxu0 %v976_v34  ;;  %912 = vmatprep.mubr.msk.bf16.mxu1 %vm350_vm0, %v978_v35 }
  0x42   :  { %440 = vmatmul.mubr.bf16.gmra.mrb[16].mxu0 %v979_v36  ;;  %913 = vmatmul.mubr.msk.bf16.gmra.mrb[16].mxu1 %vm350_vm0, %v980_v37 }
  0x43   :  { %447 = vmatprep.mubr.bf16.mxu0 %v981_v38  ;;  %916 = vmatprep.mubr.msk.bf16.mxu1 %vm350_vm0, %v983_v39 }
  0x4a   :  { %448 = vmatmul.mubr.bf16.gmra.mrb[20].mxu0 %v984_v40  ;;  %917 = vmatmul.mubr.msk.bf16.gmra.mrb[20].mxu1 %vm350_vm0, %v985_v41 }
  0xf5   :  { %v842_v42 = vpop.f32.mrb[0].mxu0  ;;  %v878_v43 = vpop.f32.mrb[0].mxu1 }
  0xf6   :  { %v843_v44 = vpop.f32.mrb[1].mxu0  ;;  %v879_v45 = vpop.f32.mrb[1].mxu1 }
  0xf7   :  { %v844_v46 = vadd.f32 %v843_v44, %v842_v42  ;;  %v1177_v47 = vadd.f32 %v879_v45, %v878_v43  ;;  %v845_v48 = vpop.f32.mrb[2].mxu0  ;;  %v881_v49 = vpop.f32.mrb[2].mxu1 }
  0xf8   :  { %v846_v50 = vpop.f32.mrb[3].mxu0  ;;  %v882_v51 = vpop.f32.mrb[3].mxu1 }
  0xf9   :  { %v847_v52 = vadd.f32 %v846_v50, %v845_v48  ;;  %v1179_v53 = vadd.f32 %v882_v51, %v881_v49 }
  0xfd   :  { %v848_v54 = vpop.f32.mrb[4].mxu0  ;;  %v884_v55 = vpop.f32.mrb[4].mxu1 }
  0xfe   :  { %v849_v56 = vpop.f32.mrb[5].mxu0  ;;  %v885_v57 = vpop.f32.mrb[5].mxu1 }
  0xff   :  { %v850_v58 = vadd.f32 %v849_v56, %v848_v54  ;;  %v1181_v59 = vadd.f32 %v885_v57, %v884_v55  ;;  %v851_v60 = vpop.f32.mrb[6].mxu0  ;;  %v887_v61 = vpop.f32.mrb[6].mxu1 }
 0x100   :  { %v852_v62 = vpop.f32.mrb[7].mxu0  ;;  %v888_v63 = vpop.f32.mrb[7].mxu1 }
 0x101   :  { %v853_v0 = vadd.f32 %v852_v62, %v851_v60  ;;  %v1183_v1 = vadd.f32 %v888_v63, %v887_v61 }
 0x105   :  { %v854_v2 = vpop.f32.mrb[8].mxu0  ;;  %v906_v3 = vpop.f32.mrb[8].mxu1 }
 0x106   :  { %v515_v5 = vadd.f32 %v906_v3, %v850_v58  ;;  %v855_v6 = vpop.f32.mrb[9].mxu0  ;;  %v506_v7 = vpop.f32.mrb[9].mxu1 }
 0x107   :  { %v856_v8 = vadd.f32 %v855_v6, %v854_v2  ;;  %v507_v9 = vadd.f32 %v844_v46, %v506_v7  ;;  %v857_v10 = vpop.f32.mrb[10].mxu0  ;;  %v907_v11 = vpop.f32.mrb[10].mxu1  ;;  %v725_v6 = vld [vmem:[%s1371_s3 + $0x10] sm:$0xff] }
 0x108   :  { %v1191_v12 = vadd.f32 %v1188_v4, %v515_v5  ;;  %v518_v13 = vadd.f32 %v907_v11, %v853_v0  ;;  %v858_v14 = vpop.f32.mrb[11].mxu0  ;;  %v509_v15 = vpop.f32.mrb[11].mxu1  ;;  %v723_v11 = vld [vmem:[%s1371_s3] sm:$0xff] }
 0x109   :  { %v1194_v16 = vadd.f32 %v1188_v4, %v507_v9  ;;  %v859_v17 = vadd.f32 %v858_v14, %v857_v10  ;;  %v510_v18 = vadd.f32 %v847_v52, %v509_v15 }
 0x10a   :  { %v645_v19 = vmul.f32 0.5, %v1191_v12  ;;  %v1198_v20 = vadd.f32 %v1188_v4, %v518_v13 }
 0x10b   :  { %v643_v21 = vmul.f32 0.5, %v1194_v16  ;;  %v1202_v22 = vadd.f32 %v1188_v4, %v510_v18 }
 0x10c   :  { %986 = vtanh.f32 %v645_v19  ;;  %v646_v23 = vmul.f32 0.5, %v1198_v20 }
 0x10d   :  { %988 = vtanh.f32 %v643_v21  ;;  %v644_v24 = vmul.f32 0.5, %v1202_v22  ;;  %v860_v25 = vpop.f32.mrb[12].mxu0  ;;  %v910_v26 = vpop.f32.mrb[12].mxu1 }
 0x10e   :  { %990 = vtanh.f32 %v646_v23  ;;  %v861_v27 = vpop.f32.mrb[13].mxu0  ;;  %v522_v28 = vpop.f32.mrb[13].mxu1 }
 0x10f   :  { %992 = vtanh.f32 %v644_v24  ;;  %v862_v29 = vadd.f32 %v861_v27, %v860_v25  ;;  %v523_v30 = vadd.f32 %v856_v8, %v522_v28  ;;  %v863_v31 = vpop.f32.mrb[14].mxu0  ;;  %v911_v32 = vpop.f32.mrb[14].mxu1 }
 0x110   :  { %v864_v33 = vpop.f32.mrb[15].mxu0  ;;  %v525_v34 = vpop.f32.mrb[15].mxu1 }
 0x111   :  { %v531_v35 = vadd.f32 %v910_v26, %v862_v29  ;;  %v1207_v36 = vadd.f32 %v1188_v4, %v523_v30  ;;  %v865_v37 = vadd.f32 %v864_v33, %v863_v31  ;;  %v526_v38 = vadd.f32 %v859_v17, %v525_v34  ;;  %v726_v17 = vld [vmem:[%s1371_s3 + $0x18] sm:$0xff] }
 0x113   :  { %v1210_v39 = vadd.f32 %v1188_v4, %v531_v35  ;;  %v647_v40 = vmul.f32 0.5, %v1207_v36  ;;  %v534_v41 = vadd.f32 %v911_v32, %v865_v37  ;;  %v1214_v42 = vadd.f32 %v1188_v4, %v526_v38 }
 0x115   :  { %v649_v43 = vmul.f32 0.5, %v1210_v39  ;;  %994 = vtanh.f32 %v647_v40  ;;  %v1218_v44 = vadd.f32 %v1188_v4, %v534_v41  ;;  %v648_v45 = vmul.f32 0.5, %v1214_v42  ;;  %v866_v46 = vpop.f32.mrb[16].mxu0  ;;  %v1221_v48 = vpop.f32.mrb[16].mxu1 }
 0x116   :  { %v987_v49 = vpop.eup %986  ;;  %v867_v50 = vpop.f32.mrb[17].mxu0 }
 0x117   :  { %v538_v51 = vpop.f32.mrb[17].mxu1  ;;  %v989_v52 = vpop.eup %988  ;;  %v677_v54 = vadd.f32 1.0, %v987_v49  ;;  %996 = vtanh.f32 %v649_v43  ;;  %v650_v55 = vmul.f32 0.5, %v1218_v44  ;;  %v868_v56 = vadd.f32 %v867_v50, %v866_v46 }
 0x118   :  { %v869_v57 = vpop.f32.mrb[18].mxu0  ;;  %v1224_v58 = vpop.f32.mrb[18].mxu1  ;;  %v675_v61 = vadd.f32 1.0, %v989_v52  ;;  %998 = vtanh.f32 %v648_v45 }
 0x119   :  { %v991_v60 = vpop.eup %990  ;;  %v870_v62 = vpop.f32.mrb[19].mxu0  ;;  %v693_v2 = vmul.f32 0.5, %v677_v54  ;;  %1000 = vtanh.f32 %v650_v55  ;;  %v539_v5 = vadd.f32 %v868_v56, %v538_v51 }
 0x11a   :  { %v541_v63 = vpop.f32.mrb[19].mxu1  ;;  %v993_v0 = vpop.eup %992  ;;  %v678_v3 = vadd.f32 1.0, %v991_v60  ;;  %v691_v7 = vmul.f32 0.5, %v675_v61  ;;  %v871_v9 = vadd.f32 %v870_v62, %v869_v57 }
 0x11b   :  { %v676_v8 = vadd.f32 1.0, %v993_v0  ;;  %v709_v10 = vmul.f32 %v693_v2, %v1191_v12  ;;  %v1234_v14 = vadd.f32 %v1188_v4, %v539_v5  ;;  %v724_v12 = vld [vmem:[%s1371_s3 + $0x8] sm:$0xff]  ;;  %v729_v2 = vld [vmem:[%s1371_s3 + $0x30] sm:$0xff] }
 0x11c   :  { %v694_v13 = vmul.f32 0.5, %v678_v3  ;;  %v707_v15 = vmul.f32 %v691_v7, %v1194_v16  ;;  %v542_v19 = vadd.f32 %v871_v9, %v541_v63 }
 0x11d   :  { %v692_v18 = vmul.f32 0.5, %v676_v8  ;;  %v741_v21 = vadd.f32 %v725_v6, %v709_v10  ;;  %v651_v24 = vmul.f32 0.5, %v1234_v14  ;;  %v872_v25 = vpop.f32.mrb[20].mxu0  ;;  %v918_v26 = vpop.f32.mrb[20].mxu1 }
 0x11e   :  { %v710_v23 = vmul.f32 %v694_v13, %v1198_v20  ;;  %v739_v27 = vadd.f32 %v723_v11, %v707_v15  ;;  %v1247_v28 = vadd.f32 %v1188_v4, %v542_v19  ;;  %v563_v29 = vadd.f32 %v918_v26, %v1181_v59  ;;  %v873_v30 = vpop.f32.mrb[21].mxu0  ;;  %v554_v31 = vpop.f32.mrb[21].mxu1  ;;  %v730_v11 = vld [vmem:[%s1371_s3 + $0x38] sm:$0xff] }
 0x11f   :  { %v708_v16 = vmul.f32 %v692_v18, %v1202_v22  ;;  %v995_v32 = vpop.eup %994  ;;  %757 = vst [vmem:[%s1372_s4 + $0x10] sm:$0xff] %v741_v21  ;;  %1002 = vtanh.f32 %v651_v24  ;;  %v874_v33 = vadd.f32 %v873_v30, %v872_v25  ;;  %v555_v34 = vadd.f32 %v1177_v47, %v554_v31  ;;  %v875_v35 = vpop.f32.mrb[22].mxu0 }
 0x120   :  { %v742_v20 = vadd.f32 %v726_v17, %v710_v23  ;;  %v919_v37 = vpop.f32.mrb[22].mxu1  ;;  %755 = vst [vmem:[%s1372_s4] sm:$0xff] %v739_v27  ;;  %v679_v59 = vadd.f32 1.0, %v995_v32  ;;  %v652_v38 = vmul.f32 0.5, %v1247_v28  ;;  %v1259_v40 = vadd.f32 %v1188_v4, %v563_v29  ;;  %v876_v41 = vpop.f32.mrb[23].mxu0  ;;  %v732_v32 = vld [vmem:[%s1371_s3 + $0x48] sm:$0xff] }
 0x121   :  { %v740_v22 = vadd.f32 %v724_v12, %v708_v16  ;;  %v557_v43 = vpop.f32.mrb[23].mxu1  ;;  %v997_v45 = vpop.eup %996  ;;  %v547_v47 = vadd.f32 %v1221_v48, %v874_v33  ;;  %v1266_v46 = vadd.f32 %v1188_v4, %v555_v34  ;;  %v566_v49 = vadd.f32 %v919_v37, %v1183_v1  ;;  %v727_v48 = vld [vmem:[%s1371_s3 + $0x20] sm:$0xff] }
 0x122   :  { %758 = vst [vmem:[%s1372_s4 + $0x18] sm:$0xff] %v742_v20  ;;  %v877_v50 = vadd.f32 %v876_v41, %v875_v35  ;;  %v999_v51 = vpop.eup %998  ;;  %v681_v52 = vadd.f32 1.0, %v997_v45  ;;  %v695_v54 = vmul.f32 0.5, %v679_v59  ;;  %1004 = vtanh.f32 %v652_v38 }
 0x123   :  { %756 = vst [vmem:[%s1372_s4 + $0x8] sm:$0xff] %v740_v22  ;;  %v657_v55 = vmul.f32 0.5, %v1259_v40  ;;  %v1001_v56 = vpop.eup %1000  ;;  %v680_v57 = vadd.f32 1.0, %v999_v51  ;;  %v1277_v60 = vadd.f32 %v1188_v4, %v547_v47  ;;  %v655_v1 = vmul.f32 0.5, %v1266_v46 }
 0x124   :  { %v1281_v61 = vadd.f32 %v1188_v4, %v566_v49  ;;  %v697_v62 = vmul.f32 0.5, %v681_v52  ;;  %v711_v63 = vmul.f32 %v695_v54, %v1207_v36  ;;  %v682_v0 = vadd.f32 1.0, %v1001_v56  ;;  %v728_v36 = vld [vmem:[%s1371_s3 + $0x28] sm:$0xff] }
 0x125   :  { %1006 = vtanh.f32 %v657_v55  ;;  %v696_v3 = vmul.f32 0.5, %v680_v57  ;;  %v653_v5 = vmul.f32 0.5, %v1277_v60  ;;  %v550_v10 = vadd.f32 %v1224_v58, %v877_v50  ;;  %v733_v50 = vld [vmem:[%s1371_s3 + $0x50] sm:$0xff]  ;;  %v738_v55 = vld [vmem:[%s1371_s3 + $0x78] sm:$0xff] }
 0x126   :  { %1008 = vtanh.f32 %v655_v1  ;;  %v658_v6 = vmul.f32 0.5, %v1281_v61  ;;  %v713_v7 = vmul.f32 %v697_v62, %v1210_v39  ;;  %v743_v8 = vadd.f32 %v727_v48, %v711_v63  ;;  %v734_v63 = vld [vmem:[%s1371_s3 + $0x58] sm:$0xff] }
 0x127   :  { %v698_v9 = vmul.f32 0.5, %v682_v0  ;;  %v712_v13 = vmul.f32 %v696_v3, %v1214_v42  ;;  %1010 = vtanh.f32 %v653_v5  ;;  %v558_v15 = vadd.f32 %v1179_v53, %v557_v43  ;;  %v735_v43 = vld [vmem:[%s1371_s3 + $0x60] sm:$0xff] }
 0x128   :  { %v745_v17 = vadd.f32 %v729_v2, %v713_v7  ;;  %759 = vst [vmem:[%s1372_s4 + $0x20] sm:$0xff] %v743_v8  ;;  %1012 = vtanh.f32 %v658_v6  ;;  %v638_v18 = vadd.f32 %v1188_v4, %v550_v10  ;;  %v736_v2 = vld [vmem:[%s1371_s3 + $0x68] sm:$0xff] }
 0x129   :  { %v714_v39 = vmul.f32 %v698_v9, %v1218_v44  ;;  %v1003_v58 = vpop.eup %1002  ;;  %v744_v19 = vadd.f32 %v728_v36, %v712_v13  ;;  %v640_v21 = vadd.f32 %v1188_v4, %v558_v15  ;;  %v731_v4 = vld [vmem:[%s1371_s3 + $0x40] sm:$0xff] }
 0x12a   :  { %761 = vst [vmem:[%s1372_s4 + $0x30] sm:$0xff] %v745_v17  ;;  %v683_v53 = vadd.f32 1.0, %v1003_v58  ;;  %v654_v23 = vmul.f32 0.5, %v638_v18 }
 0x12b   :  { %v746_v42 = vadd.f32 %v730_v11, %v714_v39  ;;  %760 = vst [vmem:[%s1372_s4 + $0x28] sm:$0xff] %v744_v19  ;;  %v656_v12 = vmul.f32 0.5, %v640_v21 }
 0x12c   :  { %v1005_v44 = vpop.eup %1004  ;;  %v699_v24 = vmul.f32 0.5, %v683_v53  ;;  %1014 = vtanh.f32 %v654_v23 }
 0x12d   :  { %762 = vst [vmem:[%s1372_s4 + $0x38] sm:$0xff] %v746_v42  ;;  %v684_v25 = vadd.f32 1.0, %v1005_v44  ;;  %1016 = vtanh.f32 %v656_v12 }
 0x12e   :  { %v715_v27 = vmul.f32 %v699_v24, %v1234_v14  ;;  %v737_v14 = vld [vmem:[%s1371_s3 + $0x70] sm:$0xff] }
 0x12f   :  { %v1007_v26 = vpop.eup %1006  ;;  %v700_v29 = vmul.f32 0.5, %v684_v25 }
 0x130   :  { %v1009_v16 = vpop.eup %1008  ;;  %v689_v30 = vadd.f32 1.0, %v1007_v26  ;;  %v747_v31 = vadd.f32 %v731_v4, %v715_v27 }
 0x131   :  { %v687_v20 = vadd.f32 1.0, %v1009_v16  ;;  %v1011_v33 = vpop.eup %1010  ;;  %v716_v34 = vmul.f32 %v700_v29, %v1247_v28 }
 0x132   :  { %v705_v35 = vmul.f32 0.5, %v689_v30  ;;  %v1013_v37 = vpop.eup %1012  ;;  %763 = vst [vmem:[%s1372_s4 + $0x40] sm:$0xff] %v747_v31  ;;  %v685_v22 = vadd.f32 1.0, %v1011_v33 }
 0x133   :  { %v703_v59 = vmul.f32 0.5, %v687_v20  ;;  %v748_v38 = vadd.f32 %v732_v32, %v716_v34  ;;  %v690_v28 = vadd.f32 1.0, %v1013_v37 }
 0x134   :  { %v721_v41 = vmul.f32 %v705_v35, %v1259_v40  ;;  %v701_v45 = vmul.f32 0.5, %v685_v22 }
 0x135   :  { %v719_v47 = vmul.f32 %v703_v59, %v1266_v46  ;;  %764 = vst [vmem:[%s1372_s4 + $0x48] sm:$0xff] %v748_v38  ;;  %v706_v51 = vmul.f32 0.5, %v690_v28 }
 0x136   :  { %v753_v49 = vadd.f32 %v737_v14, %v721_v41  ;;  %v1015_v52 = vpop.eup %1014  ;;  %v717_v40 = vmul.f32 %v701_v45, %v1277_v60 }
 0x137   :  { %v751_v54 = vadd.f32 %v735_v43, %v719_v47  ;;  %v1017_v56 = vpop.eup %1016  ;;  %v722_v46 = vmul.f32 %v706_v51, %v1281_v61  ;;  %v686_v48 = vadd.f32 1.0, %v1015_v52 }
 0x138   :  { %769 = vst [vmem:[%s1372_s4 + $0x70] sm:$0xff] %v753_v49  ;;  %v749_v57 = vadd.f32 %v733_v50, %v717_v40  ;;  %v688_v1 = vadd.f32 1.0, %v1017_v56 }
 0x139   :  { %767 = vst [vmem:[%s1372_s4 + $0x60] sm:$0xff] %v751_v54  ;;  %v754_v60 = vadd.f32 %v738_v55, %v722_v46  ;;  %v702_v62 = vmul.f32 0.5, %v686_v48 }
 0x13a   :  { %765 = vst [vmem:[%s1372_s4 + $0x50] sm:$0xff] %v749_v57  ;;  %v704_v0 = vmul.f32 0.5, %v688_v1 }
 0x13b   :  { %770 = vst [vmem:[%s1372_s4 + $0x78] sm:$0xff] %v754_v60  ;;  %v718_v61 = vmul.f32 %v702_v62, %v638_v18 }
 0x13c   :  { %v720_v3 = vmul.f32 %v704_v0, %v640_v21 }
 0x13d   :  { %v750_v5 = vadd.f32 %v734_v63, %v718_v61 }
 0x13e   :  { %v752_v6 = vadd.f32 %v736_v2, %v720_v3 }
 0x13f   :  { %766 = vst [vmem:[%s1372_s4 + $0x58] sm:$0xff] %v750_v5 }
 0x140   :  { %768 = vst [vmem:[%s1372_s4 + $0x68] sm:$0xff] %v752_v6 }

// kernel: _lambda_.57
= control target key start
LH: loop header
LB: loop body
LE: loop exit
PB: predicated region body
PF: predicated region fallthrough
CT: control target
= control target key end

     0   :  { %s334_s1 = inlined_call_operand.vmem [shape: bf16[128,128], index: 1, kind: input, shape index: {}]   ;;  %s335_s0 = inlined_call_operand.vmem [shape: bf16[32,128], index: 0, kind: input, shape index: {}]   ;;  %s336_s2 = inlined_call_operand.vmem [shape: f32[1,128], index: 2, kind: input, shape index: {}]   ;;  %s337_s3 = inlined_call_operand.vmem [shape: f32[32,128], index: 3, kind: output, shape index: {}]  }
   0x1   :  { %v251_v0 = vld [vmem:[%s334_s1] sm:$0xff]   ;;  %v252_v1 = vld [vmem:[%s334_s1 + $0x8] sm:$0xff]   ;;  %v253_v2 = vld [vmem:[%s334_s1 + $0x10] sm:$0xff]  }
   0x2   :  { %231 = vmatprep.subr.bf16.mxu0 %v251_v0  ;;  %v254_v3 = vld [vmem:[%s334_s1 + $0x18] sm:$0xff]   ;;  %v259_v4 = vld [vmem:[%s335_s0] sm:$0xff]   ;;  %v256_v6 = vld [vmem:[%s334_s1 + $0x28] sm:$0xff]  }
   0x3   :  { %232 = vmatpush3.bf16.msra.mxu0 %v251_v0  ;;  %247 = vmatprep.mubr.bf16.mxu0 %v259_v4  ;;  %v255_v5 = vld [vmem:[%s334_s1 + $0x20] sm:$0xff]   ;;  %v257_v7 = vld [vmem:[%s334_s1 + $0x30] sm:$0xff]   ;;  %v258_v8 = vld [vmem:[%s334_s1 + $0x38] sm:$0xff]  }
   0x4   :  { %233 = vmatprep.subr.bf16.mxu0 %v252_v1  ;;  %v260_v9 = vld [vmem:[%s335_s0 + $0x8] sm:$0xff]   ;;  %v220_v10 = vld [vmem:[%s336_s2] ss:$0 sm:$0xff] }
   0x7   :  { %234 = vmatpush3.bf16.msra.mxu0 %v252_v1 }
   0x8   :  { %235 = vmatprep.subr.bf16.mxu0 %v253_v2 }
   0xb   :  { %236 = vmatpush3.bf16.msra.mxu0 %v253_v2 }
   0xc   :  { %237 = vmatprep.subr.bf16.mxu0 %v254_v3 }
   0xf   :  { %238 = vmatpush3.bf16.msra.mxu0 %v254_v3 }
  0x10   :  { %239 = vmatprep.subr.bf16.mxu0 %v255_v5 }
  0x13   :  { %240 = vmatpush3.bf16.msra.mxu0 %v255_v5 }
  0x14   :  { %241 = vmatprep.subr.bf16.mxu0 %v256_v6 }
  0x17   :  { %242 = vmatpush3.bf16.msra.mxu0 %v256_v6 }
  0x18   :  { %243 = vmatprep.subr.bf16.mxu0 %v257_v7 }
  0x1b   :  { %244 = vmatpush3.bf16.msra.mxu0 %v257_v7 }
  0x1c   :  { %245 = vmatprep.subr.bf16.mxu0 %v258_v8 }
  0x1f   :  { %246 = vmatpush3.bf16.msra.mxu0 %v258_v8 }
  0x22   :  { %248 = vmatmul.mubr.bf16.vlgmr.msra.gmra.mrb[0].mxu0 %v260_v9 }
  0xf5   :  { %v249_v11 = vpop.f32.mrb[0].mxu0 }
  0xf6   :  { %v180_v12 = vadd.f32 %v249_v11, %v220_v10  ;;  %v141_v13 = vpop.f32.mrb[1].mxu0 }
  0xf7   :  { %v178_v14 = vadd.f32 %v220_v10, %v141_v13  ;;  %v250_v15 = vpop.f32.mrb[2].mxu0 }
  0xf8   :  { %v184_v16 = vmul.f32 0.5, %v180_v12  ;;  %v181_v17 = vadd.f32 %v250_v15, %v220_v10  ;;  %v144_v18 = vpop.f32.mrb[3].mxu0 }
  0xf9   :  { %v182_v19 = vmul.f32 0.5, %v178_v14  ;;  %v179_v20 = vadd.f32 %v220_v10, %v144_v18 }
  0xfa   :  { %261 = vtanh.f32 %v184_v16  ;;  %v185_v21 = vmul.f32 0.5, %v181_v17 }
  0xfb   :  { %263 = vtanh.f32 %v182_v19  ;;  %v183_v22 = vmul.f32 0.5, %v179_v20 }
  0xfc   :  { %265 = vtanh.f32 %v185_v21 }
  0xfd   :  { %267 = vtanh.f32 %v183_v22 }
 0x104   :  { %v262_v23 = vpop.eup %261 }
 0x105   :  { %v264_v24 = vpop.eup %263  ;;  %v192_v25 = vadd.f32 1.0, %v262_v23 }
 0x106   :  { %v266_v26 = vpop.eup %265  ;;  %v190_v27 = vadd.f32 1.0, %v264_v24 }
 0x107   :  { %v268_v28 = vpop.eup %267  ;;  %v196_v29 = vmul.f32 0.5, %v192_v25  ;;  %v193_v30 = vadd.f32 1.0, %v266_v26 }
 0x108   :  { %v194_v31 = vmul.f32 0.5, %v190_v27  ;;  %v191_v32 = vadd.f32 1.0, %v268_v28 }
 0x109   :  { %v200_v33 = vmul.f32 %v196_v29, %v180_v12  ;;  %v197_v34 = vmul.f32 0.5, %v193_v30 }
 0x10a   :  { %v198_v35 = vmul.f32 %v194_v31, %v178_v14  ;;  %v195_v36 = vmul.f32 0.5, %v191_v32 }
 0x10b   :  { %204 = vst [vmem:[%s337_s3 + $0x10] sm:$0xff] %v200_v33  ;;  %v201_v37 = vmul.f32 %v197_v34, %v181_v17 }
 0x10c   :  { %202 = vst [vmem:[%s337_s3] sm:$0xff] %v198_v35  ;;  %v199_v38 = vmul.f32 %v195_v36, %v179_v20 }
 0x10d   :  { %205 = vst [vmem:[%s337_s3 + $0x18] sm:$0xff] %v201_v37 }
 0x10e   :  { %203 = vst [vmem:[%s337_s3 + $0x8] sm:$0xff] %v199_v38 }

// kernel: _lambda_.56
= control target key start
LH: loop header
LB: loop body
LE: loop exit
PB: predicated region body
PF: predicated region fallthrough
CT: control target
= control target key end

     0   :  { %vm377_vm0 = vcmask 523264   ;;  %s939_s1 = inlined_call_operand.vmem [shape: bf16[576,128], index: 1, kind: input, shape index: {}]   ;;  %s940_s0 = inlined_call_operand.vmem [shape: bf16[32,576], index: 0, kind: input, shape index: {}]   ;;  %s941_s2 = inlined_call_operand.vmem [shape: f32[1,128], index: 2, kind: input, shape index: {}]   ;;  %s942_s3 = inlined_call_operand.vmem [shape: f32[32,128], index: 3, kind: output, shape index: {}]  }
   0x1   :  { %v708_v0 = vld [vmem:[%s939_s1 + $0x40] sm:$0xff]   ;;  %v712_v4 = vld [vmem:[%s939_s1 + $0x48] sm:$0xff]   ;;  %v716_v8 = vld [vmem:[%s939_s1 + $0x50] sm:$0xff]  }
   0x2   :  { %v709_v1 = vld [vmem:[%s939_s1 + $0xc0] sm:$0xff]   ;;  %634 = vmatprep.subr.bf16.mxu0 %v708_v0  ;;  %v713_v5 = vld [vmem:[%s939_s1 + $0xc8] sm:$0xff]   ;;  %v717_v9 = vld [vmem:[%s939_s1 + $0xd0] sm:$0xff]  }
   0x3   :  { %v710_v2 = vld [vmem:[%s939_s1] sm:$0xff]   ;;  %662 = vmatprep.subr.bf16.mxu1 %v709_v1  ;;  %v714_v6 = vld [vmem:[%s939_s1 + $0x8] sm:$0xff]   ;;  %v718_v10 = vld [vmem:[%s939_s1 + $0x10] sm:$0xff]  }
   0x4   :  { %v711_v3 = vld [vmem:[%s939_s1 + $0x80] sm:$0xff]   ;;  %635 = vmatpush3.bf16.msra.mxu0 %v710_v2  ;;  %v715_v7 = vld [vmem:[%s939_s1 + $0x88] sm:$0xff]   ;;  %v719_v11 = vld [vmem:[%s939_s1 + $0x90] sm:$0xff]  }
   0x5   :  { %663 = vmatpush3.bf16.msra.mxu1 %v711_v3  ;;  %636 = vmatprep.subr.bf16.mxu0 %v712_v4  ;;  %v720_v12 = vld [vmem:[%s939_s1 + $0x58] sm:$0xff]   ;;  %v724_v16 = vld [vmem:[%s939_s1 + $0x60] sm:$0xff]   ;;  %v728_v20 = vld [vmem:[%s939_s1 + $0x68] sm:$0xff]  }
   0x6   :  { %664 = vmatprep.subr.bf16.mxu1 %v713_v5  ;;  %v721_v13 = vld [vmem:[%s939_s1 + $0xd8] sm:$0xff]   ;;  %v725_v17 = vld [vmem:[%s939_s1 + $0xe0] sm:$0xff]   ;;  %v729_v21 = vld [vmem:[%s939_s1 + $0xe8] sm:$0xff]  }
   0x7   :  { %v722_v14 = vld [vmem:[%s939_s1 + $0x18] sm:$0xff]   ;;  %v726_v18 = vld [vmem:[%s939_s1 + $0x20] sm:$0xff]   ;;  %v730_v22 = vld [vmem:[%s939_s1 + $0x28] sm:$0xff]  }
   0x8   :  { %637 = vmatpush3.bf16.msra.mxu0 %v714_v6  ;;  %v723_v15 = vld [vmem:[%s939_s1 + $0x98] sm:$0xff]   ;;  %v727_v19 = vld [vmem:[%s939_s1 + $0xa0] sm:$0xff]   ;;  %v731_v23 = vld [vmem:[%s939_s1 + $0xa8] sm:$0xff]  }
   0x9   :  { %665 = vmatpush3.bf16.msra.mxu1 %v715_v7  ;;  %638 = vmatprep.subr.bf16.mxu0 %v716_v8  ;;  %v732_v24 = vld [vmem:[%s939_s1 + $0x70] sm:$0xff]   ;;  %v736_v28 = vld [vmem:[%s939_s1 + $0x78] sm:$0xff]   ;;  %v745_v35 = vld [vmem:[%s940_s0 + $0xc] ss:$20 sps:$4 sm:$0xff]  }
   0xa   :  { %666 = vmatprep.subr.bf16.mxu1 %v717_v9  ;;  %v733_v25 = vld [vmem:[%s939_s1 + $0xf0] sm:$0xff]   ;;  %v737_v29 = vld [vmem:[%s939_s1 + $0xf8] sm:$0xff]   ;;  %v746_v36 = vld [vmem:[%s939_s1 + $0x100] sm:$0xff]   ;;  %465 = vmatprep.mubr.bf16.mxu1 %v745_v35 }
   0xb   :  { %v734_v26 = vld [vmem:[%s939_s1 + $0x30] sm:$0xff]   ;;  %v738_v30 = vld [vmem:[%s939_s1 + $0x38] sm:$0xff]   ;;  %v747_v37 = vld [vmem:[%s939_s1 + $0x108] sm:$0xff]  }
   0xc   :  { %639 = vmatpush3.bf16.msra.mxu0 %v718_v10  ;;  %v735_v27 = vld [vmem:[%s939_s1 + $0xb0] sm:$0xff]   ;;  %v739_v31 = vld [vmem:[%s939_s1 + $0xb8] sm:$0xff]   ;;  %v748_v38 = vld [vmem:[%s940_s0 + $0x2c] ss:$20 sps:$4 sm:$0xff]  }
   0xd   :  { %667 = vmatpush3.bf16.msra.mxu1 %v719_v11  ;;  %640 = vmatprep.subr.bf16.mxu0 %v720_v12  ;;  %v740_v32 = vld [vmem:[%s940_s0] ss:$20 sps:$4 sm:$0xff]   ;;  %v742_v33 = vld [vmem:[%s940_s0 + $0x4] ss:$20 sps:$4 sm:$0xff]   ;;  %v743_v34 = vld [vmem:[%s940_s0 + $0x8] ss:$20 sps:$4 sm:$0xff]  }
   0xe   :  { %668 = vmatprep.subr.bf16.mxu1 %v721_v13  ;;  %416 = vmatprep.mubr.bf16.mxu0 %v742_v33  ;;  %v750_v39 = vld [vmem:[%s940_s0 + $0x34] ss:$20 sps:$4 sm:$0xff]   ;;  %v753_v42 = vld [vmem:[%s940_s0 + $0x30] ss:$20 sps:$4 sm:$0xff]   ;;  %v755_v44 = vld [vmem:[%s939_s1 + $0x118] sm:$0xff]  }
   0xf   :  { %v752_v40 = vld [vmem:[%s940_s0 + $0x28] ss:$20 sps:$4 sm:$0xff]   ;;  %v754_v41 = vld [vmem:[%s939_s1 + $0x110] sm:$0xff]   ;;  %v757_v45 = vld [vmem:[%s940_s0 + $0x38] ss:$20 sps:$4 sm:$0xff]  }
  0x10   :  { %641 = vmatpush3.bf16.msra.mxu0 %v722_v14  ;;  %v756_v43 = vld [vmem:[%s940_s0 + $0x10] ss:$20 sps:$4 sm:$0xff]   ;;  %v633_v11 = vld [vmem:[%s941_s2] ss:$0 sm:$0xff] }
  0x11   :  { %669 = vmatpush3.bf16.msra.mxu1 %v723_v15  ;;  %642 = vmatprep.subr.bf16.mxu0 %v724_v16 }
  0x12   :  { %670 = vmatprep.subr.bf16.mxu1 %v725_v17 }
  0x14   :  { %643 = vmatpush3.bf16.msra.mxu0 %v726_v18 }
  0x15   :  { %671 = vmatpush3.bf16.msra.mxu1 %v727_v19  ;;  %644 = vmatprep.subr.bf16.mxu0 %v728_v20 }
  0x16   :  { %672 = vmatprep.subr.bf16.mxu1 %v729_v21 }
  0x18   :  { %645 = vmatpush3.bf16.msra.mxu0 %v730_v22 }
  0x19   :  { %673 = vmatpush3.bf16.msra.mxu1 %v731_v23  ;;  %646 = vmatprep.subr.bf16.mxu0 %v732_v24 }
  0x1a   :  { %674 = vmatprep.subr.bf16.mxu1 %v733_v25 }
  0x1c   :  { %647 = vmatpush3.bf16.msra.mxu0 %v734_v26 }
  0x1d   :  { %675 = vmatpush3.bf16.msra.mxu1 %v735_v27  ;;  %648 = vmatprep.subr.bf16.mxu0 %v736_v28 }
  0x1e   :  { %676 = vmatprep.subr.bf16.mxu1 %v737_v29 }
  0x20   :  { %649 = vmatpush3.bf16.msra.mxu0 %v738_v30 }
  0x21   :  { %677 = vmatpush3.bf16.msra.mxu1 %v739_v31  ;;  %696 = vmatprep.subr.bf16.mxu0 %v746_v36 }
  0x23   :  { %417 = vmatmul.mubr.bf16.vlgmr.msra.gmra.mrb[0].mxu0 %v740_v32 }
  0x24   :  { %466 = vmatmul.mubr.bf16.vlgmr.msra.gmra.mrb[0].mxu1 %v743_v34  ;;  %697 = vmatpush3.bf16.msra.mxu0 %v746_v36 }
  0x25   :  { %698 = vmatprep.subr.bf16.mxu0 %v747_v37  ;;  %424 = vmatprep.mubr.bf16.mxu0 %v748_v38 }
  0x26   :  { %473 = vmatprep.mubr.bf16.mxu1 %v750_v39 }
  0x28   :  { %699 = vmatpush3.bf16.msra.mxu0 %v747_v37 }
  0x29   :  { %700 = vmatprep.subr.bf16.mxu0 %v754_v41 }
  0x2b   :  { %425 = vmatmul.mubr.bf16.gmra.mrb[4].mxu0 %v752_v40 }
  0x2c   :  { %474 = vmatmul.mubr.bf16.gmra.mrb[4].mxu1 %v753_v42  ;;  %704 = vmatprep.mubr.msk.bf16.mxu0 %vm377_vm0, %v756_v43 }
  0x2d   :  { %701 = vmatpush3.bf16.msra.mxu0 %v754_v41 }
  0x2e   :  { %702 = vmatprep.subr.bf16.mxu0 %v755_v44 }
  0x31   :  { %703 = vmatpush3.bf16.msra.mxu0 %v755_v44 }
  0x34   :  { %705 = vmatmul.mubr.msk.bf16.vlgmr.msra.gmra.mrb[8].mxu0 %vm377_vm0, %v757_v45 }
  0xf6   :  { %v650_v46 = vpop.f32.mrb[0].mxu0 }
  0xf7   :  { %v678_v47 = vpop.f32.mrb[0].mxu1  ;;  %v651_v48 = vpop.f32.mrb[1].mxu0 }
  0xf8   :  { %v652_v49 = vadd.f32 %v651_v48, %v650_v46  ;;  %v679_v50 = vpop.f32.mrb[1].mxu1  ;;  %v653_v51 = vpop.f32.mrb[2].mxu0 }
  0xf9   :  { %v680_v52 = vadd.f32 %v679_v50, %v678_v47  ;;  %v681_v53 = vpop.f32.mrb[2].mxu1  ;;  %v654_v54 = vpop.f32.mrb[3].mxu0 }
  0xfa   :  { %v655_v55 = vadd.f32 %v654_v54, %v653_v51  ;;  %v682_v56 = vpop.f32.mrb[3].mxu1 }
  0xfb   :  { %v683_v57 = vadd.f32 %v682_v56, %v681_v53  ;;  %v468_v58 = vadd.f32 %v680_v52, %v652_v49 }
  0xfd   :  { %v471_v59 = vadd.f32 %v683_v57, %v655_v55 }
  0xfe   :  { %v656_v60 = vpop.f32.mrb[4].mxu0 }
  0xff   :  { %v684_v61 = vpop.f32.mrb[4].mxu1  ;;  %v657_v62 = vpop.f32.mrb[5].mxu0 }
 0x100   :  { %v658_v63 = vadd.f32 %v657_v62, %v656_v60  ;;  %v685_v0 = vpop.f32.mrb[5].mxu1  ;;  %v659_v1 = vpop.f32.mrb[6].mxu0 }
 0x101   :  { %v686_v2 = vadd.f32 %v685_v0, %v684_v61  ;;  %v687_v3 = vpop.f32.mrb[6].mxu1  ;;  %v660_v4 = vpop.f32.mrb[7].mxu0 }
 0x102   :  { %v661_v5 = vadd.f32 %v660_v4, %v659_v1  ;;  %v688_v6 = vpop.f32.mrb[7].mxu1 }
 0x103   :  { %v689_v7 = vadd.f32 %v688_v6, %v687_v3  ;;  %v476_v8 = vadd.f32 %v686_v2, %v658_v63 }
 0x105   :  { %v479_v9 = vadd.f32 %v689_v7, %v661_v5 }
 0x107   :  { %v706_v10 = vpop.f32.mrb[8].mxu0 }
 0x108   :  { %v525_v12 = vadd.f32 %v706_v10, %v476_v8  ;;  %v516_v13 = vpop.f32.mrb[9].mxu0 }
 0x109   :  { %v517_v14 = vadd.f32 %v516_v13, %v468_v58  ;;  %v707_v15 = vpop.f32.mrb[10].mxu0 }
 0x10a   :  { %v555_v16 = vadd.f32 %v633_v11, %v525_v12  ;;  %v528_v17 = vadd.f32 %v707_v15, %v479_v9  ;;  %v519_v18 = vpop.f32.mrb[11].mxu0 }
 0x10b   :  { %v553_v19 = vadd.f32 %v633_v11, %v517_v14  ;;  %v520_v20 = vadd.f32 %v519_v18, %v471_v59 }
 0x10c   :  { %v559_v21 = vmul.f32 0.5, %v555_v16  ;;  %v556_v22 = vadd.f32 %v633_v11, %v528_v17 }
 0x10d   :  { %v557_v23 = vmul.f32 0.5, %v553_v19  ;;  %v554_v24 = vadd.f32 %v633_v11, %v520_v20 }
 0x10e   :  { %758 = vtanh.f32 %v559_v21  ;;  %v560_v25 = vmul.f32 0.5, %v556_v22 }
 0x10f   :  { %760 = vtanh.f32 %v557_v23  ;;  %v558_v26 = vmul.f32 0.5, %v554_v24 }
 0x110   :  { %762 = vtanh.f32 %v560_v25 }
 0x111   :  { %764 = vtanh.f32 %v558_v26 }
 0x118   :  { %v759_v27 = vpop.eup %758 }
 0x119   :  { %v761_v28 = vpop.eup %760  ;;  %v567_v29 = vadd.f32 1.0, %v759_v27 }
 0x11a   :  { %v763_v30 = vpop.eup %762  ;;  %v565_v31 = vadd.f32 1.0, %v761_v28 }
 0x11b   :  { %v765_v32 = vpop.eup %764  ;;  %v571_v33 = vmul.f32 0.5, %v567_v29  ;;  %v568_v34 = vadd.f32 1.0, %v763_v30 }
 0x11c   :  { %v569_v35 = vmul.f32 0.5, %v565_v31  ;;  %v566_v36 = vadd.f32 1.0, %v765_v32 }
 0x11d   :  { %v575_v37 = vmul.f32 %v571_v33, %v555_v16  ;;  %v572_v38 = vmul.f32 0.5, %v568_v34 }
 0x11e   :  { %v573_v39 = vmul.f32 %v569_v35, %v553_v19  ;;  %v570_v40 = vmul.f32 0.5, %v566_v36 }
 0x11f   :  { %579 = vst [vmem:[%s942_s3 + $0x10] sm:$0xff] %v575_v37  ;;  %v576_v41 = vmul.f32 %v572_v38, %v556_v22 }
 0x120   :  { %577 = vst [vmem:[%s942_s3] sm:$0xff] %v573_v39  ;;  %v574_v42 = vmul.f32 %v570_v40, %v554_v24 }
 0x121   :  { %580 = vst [vmem:[%s942_s3 + $0x18] sm:$0xff] %v576_v41 }
 0x122   :  { %578 = vst [vmem:[%s942_s3 + $0x8] sm:$0xff] %v574_v42 }

// kernel: _lambda_.59
= control target key start
LH: loop header
LB: loop body
LE: loop exit
PB: predicated region body
PF: predicated region fallthrough
CT: control target
= control target key end

     0   :  { %vm73_vm0 = vcmask 523264   ;;  %s277_s1 = inlined_call_operand.vmem [shape: bf16[64,128], index: 1, kind: input, shape index: {}]   ;;  %s278_s0 = inlined_call_operand.vmem [shape: bf16[32,64], index: 0, kind: input, shape index: {}]   ;;  %s279_s2 = inlined_call_operand.vmem [shape: f32[1,128], index: 2, kind: input, shape index: {}]   ;;  %s280_s3 = inlined_call_operand.vmem [shape: f32[32,128], index: 3, kind: output, shape index: {}]  }
   0x1   :  { %v210_v0 = vld [vmem:[%s277_s1] sm:$0xff]   ;;  %v211_v1 = vld [vmem:[%s277_s1 + $0x8] sm:$0xff]   ;;  %v212_v2 = vld [vmem:[%s277_s1 + $0x10] sm:$0xff]  }
   0x2   :  { %198 = vmatprep.subr.bf16.mxu0 %v210_v0  ;;  %v214_v3 = vld [vmem:[%s278_s0] sm:$0xff]   ;;  %v213_v4 = vld [vmem:[%s277_s1 + $0x18] sm:$0xff]   ;;  %v215_v5 = vld [vmem:[%s278_s0 + $0x8] sm:$0xff]  }
   0x3   :  { %199 = vmatpush3.bf16.msra.mxu0 %v210_v0  ;;  %206 = vmatprep.mubr.msk.bf16.mxu0 %vm73_vm0, %v214_v3  ;;  %v191_v6 = vld [vmem:[%s279_s2] ss:$0 sm:$0xff] }
   0x4   :  { %200 = vmatprep.subr.bf16.mxu0 %v211_v1 }
   0x7   :  { %201 = vmatpush3.bf16.msra.mxu0 %v211_v1 }
   0x8   :  { %202 = vmatprep.subr.bf16.mxu0 %v212_v2 }
   0xb   :  { %203 = vmatpush3.bf16.msra.mxu0 %v212_v2 }
   0xc   :  { %204 = vmatprep.subr.bf16.mxu0 %v213_v4 }
   0xf   :  { %205 = vmatpush3.bf16.msra.mxu0 %v213_v4 }
  0x12   :  { %207 = vmatmul.mubr.msk.bf16.vlgmr.msra.gmra.mrb[0].mxu0 %vm73_vm0, %v215_v5 }
  0xe5   :  { %v208_v7 = vpop.f32.mrb[0].mxu0 }
  0xe6   :  { %v153_v8 = vadd.f32 %v208_v7, %v191_v6  ;;  %v114_v9 = vpop.f32.mrb[1].mxu0 }
  0xe7   :  { %v151_v10 = vadd.f32 %v191_v6, %v114_v9  ;;  %v209_v11 = vpop.f32.mrb[2].mxu0 }
  0xe8   :  { %v157_v12 = vmul.f32 0.5, %v153_v8  ;;  %v154_v13 = vadd.f32 %v209_v11, %v191_v6  ;;  %v117_v14 = vpop.f32.mrb[3].mxu0 }
  0xe9   :  { %v155_v15 = vmul.f32 0.5, %v151_v10  ;;  %v152_v16 = vadd.f32 %v191_v6, %v117_v14 }
  0xea   :  { %216 = vtanh.f32 %v157_v12  ;;  %v158_v17 = vmul.f32 0.5, %v154_v13 }
  0xeb   :  { %218 = vtanh.f32 %v155_v15  ;;  %v156_v18 = vmul.f32 0.5, %v152_v16 }
  0xec   :  { %220 = vtanh.f32 %v158_v17 }
  0xed   :  { %222 = vtanh.f32 %v156_v18 }
  0xf4   :  { %v217_v19 = vpop.eup %216 }
  0xf5   :  { %v219_v20 = vpop.eup %218  ;;  %v165_v21 = vadd.f32 1.0, %v217_v19 }
  0xf6   :  { %v221_v22 = vpop.eup %220  ;;  %v163_v23 = vadd.f32 1.0, %v219_v20 }
  0xf7   :  { %v223_v24 = vpop.eup %222  ;;  %v169_v25 = vmul.f32 0.5, %v165_v21  ;;  %v166_v26 = vadd.f32 1.0, %v221_v22 }
  0xf8   :  { %v167_v27 = vmul.f32 0.5, %v163_v23  ;;  %v164_v28 = vadd.f32 1.0, %v223_v24 }
  0xf9   :  { %v173_v29 = vmul.f32 %v169_v25, %v153_v8  ;;  %v170_v30 = vmul.f32 0.5, %v166_v26 }
  0xfa   :  { %v171_v31 = vmul.f32 %v167_v27, %v151_v10  ;;  %v168_v32 = vmul.f32 0.5, %v164_v28 }
  0xfb   :  { %177 = vst [vmem:[%s280_s3 + $0x10] sm:$0xff] %v173_v29  ;;  %v174_v33 = vmul.f32 %v170_v30, %v154_v13 }
  0xfc   :  { %175 = vst [vmem:[%s280_s3] sm:$0xff] %v171_v31  ;;  %v172_v34 = vmul.f32 %v168_v32, %v152_v16 }
  0xfd   :  { %178 = vst [vmem:[%s280_s3 + $0x18] sm:$0xff] %v174_v33 }
  0xfe   :  { %176 = vst [vmem:[%s280_s3 + $0x8] sm:$0xff] %v172_v34 }

// kernel: _lambda_.66
= control target key start
LH: loop header
LB: loop body
LE: loop exit
PB: predicated region body
PF: predicated region fallthrough
CT: control target
= control target key end

     0   :  { %s1637_s0 = inlined_call_operand.vmem [shape: bf16[16,1152], index: 0, kind: input, shape index: {}]   ;;  %s1638_s1 = inlined_call_operand.vmem [shape: bf16[1152,256], index: 1, kind: input, shape index: {}]   ;;  %s1639_s2 = inlined_call_operand.vmem [shape: f32[1,256], index: 2, kind: input, shape index: {}]   ;;  %s1640_s3 = inlined_call_operand.vmem [shape: f32[16,256], index: 3, kind: output, shape index: {}]  }
   0x1   :  { %1642 = sst [smem:[#allocation7_spill]] %s1637_s0 }
   0x2   :  { %1643 = sst [smem:[#allocation8_spill]] %s1638_s1 }
   0x3   :  { %s1327_s12 = smov 0   ;;  %s1329_s13 = smov 0  }
   0x4   :  { %s1331_s14 = smov 0   ;;  %s1333_s15 = smov 0  }
   0x5   :  { %s1335_s16 = smov 0   ;;  %s1337_s17 = smov 0  }
   0x6   :  { %s1339_s18 = smov 0   ;;  %s1341_s19 = smov 0  }
   0x7   :  { %s1343_s20 = smov 0   ;;  %s1345_s21 = smov 0  }
   0x8   :  { %s1347_s22 = smov 0  }
   0x9 LB: > { %s989_s23 = sadd.s32 4294967295, %s1302_s22   ;;  %s25_s24 = sadd.s32 1, %s1294_s20  ;;  %s1302_s22 = sphi %s1347_s22, %s13_s22   ;;  %s1298_s21 = sphi %s1345_s21, %s1660_s21   ;;  %s1294_s20 = sphi %s1343_s20, %s1659_s20   ;;  %s1290_s19 = sphi %s1341_s19, %s1658_s19   ;;  %s1286_s18 = sphi %s1339_s18, %s1657_s18   ;;  %s1282_s17 = sphi %s1337_s17, %s1656_s17   ;;  %s1278_s16 = sphi %s1335_s16, %s1655_s16   ;;  %s1274_s15 = sphi %s1333_s15, %s1654_s15   ;;  %s1270_s14 = sphi %s1331_s14, %s1653_s14   ;;  %s1266_s13 = sphi %s1329_s13, %s1652_s13   ;;  %s1262_s12 = sphi %s1327_s12, %s1651_s12  }
   0xa   : > { %p26_p0 = scmp.ge.s32.totalorder %s25_s24, 3  ;;  %s28_s25 = sadd.s32 1, %s1298_s21 }
   0xb   : > { %s41_s26 = sadd.s32 1, %s1282_s17  ;;  %p48_p1 = scmp.ne.s32.totalorder %s1282_s17, %s1278_s16 }
   0xc   : > { %s1662_s24 = smov (%p26_p0, %s25_s24), 0  ;;  %s1664_s25 = smov (!%p26_p0, %s28_s25), %s1298_s21 }
   0xd   : > { %s37_s27 = ssub.s32 %s1294_s20, %s1662_s24  ;;  %p49_p2 = scmp.eq.s32.totalorder %s1302_s22, 0 }
   0xe   : > { %p30_p3 = scmp.ge.s32.totalorder %s1664_s25, 2  ;;  %p39_p4 = scmp.eq.s32.totalorder %s37_s27, 0 }
   0xf   : > { %p1394_p5 = por %p49_p2, %p48_p1  ;;  %s69_s29 = sadd.s32 1, %s1274_s15 }
  0x10   : > { %s1666_s25 = smov (%p30_p3, %s1664_s25), 0  ;;  %p76_p6 = scmp.ne.s32.totalorder %s1274_s15, %s1270_s14 }
  0x11   : > { %1645 = sst [smem:[#allocation6_spill]] %s1666_s25  ;;  %s65_s4 = ssub.s32 %s1298_s21, %s1666_s25 }
  0x12   : > { %s1402_s30 = scalar_select %p39_p4, %s1282_s17, %s41_s26  }
  0x13   : > { %s66_s5 = sor.u32 %s65_s4, %s37_s27  ;;  %p121_p7 = scmp.eq.s32.totalorder %s65_s4, 0 }
  0x14   : > { %p67_p8 = scmp.eq.s32.totalorder %s66_s5, 0  ;;  %p1408_p9 = por %p76_p6, %p49_p2 }
  0x15   : > { %s123_s7 = sadd.s32 1, %s1266_s13  ;;  %p133_p10 = scmp.ne.s32.totalorder %s1266_s13, %s1262_s12 }
  0x16   : > { %s1416_s8 = scalar_select %p67_p8, %s1274_s15, %s69_s29  }
  0x17   : > { %s1419_s9 = scalar_select %p121_p7, %s1266_s13, %s123_s7  }
  0x18   : > { %p134_p11 = scmp.eq.s32.totalorder %s989_s23, 5  ;;  %p992_p13 = scmp.ge.s32.totalorder %s1302_s22, 6 }
  0x1a   : > { %p1421_p12 = por %p134_p11, %p133_p10  ;;  %156 = sbr.rel (%p992_p13) target bundleno = 85 (0x55), region = 16 }
  0x21   : > { %159 = sbr.rel (!%p1394_p5) target bundleno = 44 (0x2c), region = 20  ;;  %s161_s11 = sand.u32 (%p1394_p5), 1, %s1282_s17  }
  0x22   : > { %s1036_s26 = smul.u32 (%p1394_p5), 12, %s1294_s20  ;;  %s1648_s0 = sld [smem:[#allocation7_spill]] (%p1394_p5) }
  0x23   : > { %s1089_s27 = smul.u32 (%p1394_p5), 24, %s161_s11 }
  0x25   : > { %s163_s23 = scalar_lea.vmem (%p1394_p5), [#allocation3], %s1089_s27 }
  0x28   : > { %s169_s5 = scalar_lea.vmem %s1648_s0, %s1036_s26 }
  0x29   : > { %v184_v0 = vld [vmem:[%s169_s5] sm:$0xff]  ;;  %v994_v2 = vld [vmem:[%s169_s5 + $0x8] sm:$0xf]  ;;  %v996_v3 = vld [vmem:[%s169_s5 + $0x2c] sm:$0xf] }
  0x2a   : > { %v186_v1 = vld [vmem:[%s169_s5 + $0x24] sm:$0xff]  ;;  %185 = vst [vmem:[%s163_s23] sm:$0xff] %v184_v0  ;;  %995 = vst [vmem:[%s163_s23 + $0x8] sm:$0xf] %v994_v2 }
  0x2b   : > { %187 = vst [vmem:[%s163_s23 + $0xc] sm:$0xff] %v186_v1  ;;  %997 = vst [vmem:[%s163_s23 + $0x14] sm:$0xf] %v996_v3 }
  0x2c PF: > { %204 = sbr.rel (!%p1408_p9) target bundleno = 85 (0x55), region = 46  ;;  %s206_s28 = sand.u32 (%p1408_p9), 1, %s1274_s15  }
  0x2d   : > { %s1037_s7 = smul.u32 (%p1408_p9), 96, %s1294_s20  ;;  %s1649_s1 = sld [smem:[#allocation8_spill]] (%p1408_p9) }
  0x2e   : > { %s1090_s11 = smul.u32 (%p1408_p9), 192, %s206_s28 }
  0x2f   : > { %s211_s26 = sadd.s32 (%p1408_p9), %s1298_s21, %s1037_s7 }
  0x30   : > { %s999_s29 = sshll.u32 (%p1408_p9), %s211_s26, 2  ;;  %s1446_s6 = scalar_lea.vmem (%p1408_p9), [#allocation4], %s1090_s11 }
  0x33   : > { %s1441_s27 = scalar_lea.vmem %s1649_s1, %s999_s29 }
  0x34   : > { %v229_v4 = vld [vmem:[%s1441_s27] sm:$0xf]  ;;  %v231_v5 = vld [vmem:[%s1441_s27 + $0x8] sm:$0xf]  ;;  %v233_v6 = vld [vmem:[%s1441_s27 + $0x10] sm:$0xf] }
  0x35   : > { %230 = vst [vmem:[%s1446_s6] sm:$0xf] %v229_v4  ;;  %232 = vst [vmem:[%s1446_s6 + $0x4] sm:$0xf] %v231_v5  ;;  %v235_v7 = vld [vmem:[%s1441_s27 + $0x18] sm:$0xf] }
  0x36   : > { %234 = vst [vmem:[%s1446_s6 + $0x8] sm:$0xf] %v233_v6  ;;  %v237_v8 = vld [vmem:[%s1441_s27 + $0x20] sm:$0xf]  ;;  %v239_v9 = vld [vmem:[%s1441_s27 + $0x28] sm:$0xf] }
  0x37   : > { %236 = vst [vmem:[%s1446_s6 + $0xc] sm:$0xf] %v235_v7  ;;  %238 = vst [vmem:[%s1446_s6 + $0x10] sm:$0xf] %v237_v8  ;;  %v241_v10 = vld [vmem:[%s1441_s27 + $0x30] sm:$0xf] }
  0x38   : > { %240 = vst [vmem:[%s1446_s6 + $0x14] sm:$0xf] %v239_v9  ;;  %v243_v11 = vld [vmem:[%s1441_s27 + $0x38] sm:$0xf]  ;;  %v245_v12 = vld [vmem:[%s1441_s27 + $0x40] sm:$0xf] }
  0x39   : > { %242 = vst [vmem:[%s1446_s6 + $0x18] sm:$0xf] %v241_v10  ;;  %244 = vst [vmem:[%s1446_s6 + $0x1c] sm:$0xf] %v243_v11  ;;  %v247_v13 = vld [vmem:[%s1441_s27 + $0x48] sm:$0xf] }
  0x3a   : > { %246 = vst [vmem:[%s1446_s6 + $0x20] sm:$0xf] %v245_v12  ;;  %v249_v14 = vld [vmem:[%s1441_s27 + $0x50] sm:$0xf]  ;;  %v251_v15 = vld [vmem:[%s1441_s27 + $0x58] sm:$0xf] }
  0x3b   : > { %248 = vst [vmem:[%s1446_s6 + $0x24] sm:$0xf] %v247_v13  ;;  %250 = vst [vmem:[%s1446_s6 + $0x28] sm:$0xf] %v249_v14  ;;  %v253_v16 = vld [vmem:[%s1441_s27 + $0x60] sm:$0xf] }
  0x3c   : > { %252 = vst [vmem:[%s1446_s6 + $0x2c] sm:$0xf] %v251_v15  ;;  %v255_v17 = vld [vmem:[%s1441_s27 + $0x68] sm:$0xf]  ;;  %v257_v18 = vld [vmem:[%s1441_s27 + $0x70] sm:$0xf] }
  0x3d   : > { %254 = vst [vmem:[%s1446_s6 + $0x30] sm:$0xf] %v253_v16  ;;  %256 = vst [vmem:[%s1446_s6 + $0x34] sm:$0xf] %v255_v17  ;;  %v259_v19 = vld [vmem:[%s1441_s27 + $0x78] sm:$0xf] }
  0x3e   : > { %258 = vst [vmem:[%s1446_s6 + $0x38] sm:$0xf] %v257_v18  ;;  %v261_v20 = vld [vmem:[%s1441_s27 + $0x80] sm:$0xf]  ;;  %v263_v21 = vld [vmem:[%s1441_s27 + $0x88] sm:$0xf] }
  0x3f   : > { %260 = vst [vmem:[%s1446_s6 + $0x3c] sm:$0xf] %v259_v19  ;;  %262 = vst [vmem:[%s1446_s6 + $0x40] sm:$0xf] %v261_v20  ;;  %v265_v22 = vld [vmem:[%s1441_s27 + $0x90] sm:$0xf] }
  0x40   : > { %264 = vst [vmem:[%s1446_s6 + $0x44] sm:$0xf] %v263_v21  ;;  %v267_v23 = vld [vmem:[%s1441_s27 + $0x98] sm:$0xf]  ;;  %v269_v24 = vld [vmem:[%s1441_s27 + $0xa0] sm:$0xf] }
  0x41   : > { %266 = vst [vmem:[%s1446_s6 + $0x48] sm:$0xf] %v265_v22  ;;  %268 = vst [vmem:[%s1446_s6 + $0x4c] sm:$0xf] %v267_v23  ;;  %v271_v25 = vld [vmem:[%s1441_s27 + $0xa8] sm:$0xf] }
  0x42   : > { %270 = vst [vmem:[%s1446_s6 + $0x50] sm:$0xf] %v269_v24  ;;  %v273_v26 = vld [vmem:[%s1441_s27 + $0xb0] sm:$0xf]  ;;  %v275_v27 = vld [vmem:[%s1441_s27 + $0xb8] sm:$0xf] }
  0x43   : > { %272 = vst [vmem:[%s1446_s6 + $0x54] sm:$0xf] %v271_v25  ;;  %274 = vst [vmem:[%s1446_s6 + $0x58] sm:$0xf] %v273_v26  ;;  %v277_v28 = vld [vmem:[%s1441_s27 + $0xc0] sm:$0xf] }
  0x44   : > { %276 = vst [vmem:[%s1446_s6 + $0x5c] sm:$0xf] %v275_v27  ;;  %v279_v29 = vld [vmem:[%s1441_s27 + $0xc8] sm:$0xf]  ;;  %v281_v30 = vld [vmem:[%s1441_s27 + $0xd0] sm:$0xf] }
  0x45   : > { %278 = vst [vmem:[%s1446_s6 + $0x60] sm:$0xf] %v277_v28  ;;  %280 = vst [vmem:[%s1446_s6 + $0x64] sm:$0xf] %v279_v29  ;;  %v283_v31 = vld [vmem:[%s1441_s27 + $0xd8] sm:$0xf] }
  0x46   : > { %282 = vst [vmem:[%s1446_s6 + $0x68] sm:$0xf] %v281_v30  ;;  %v285_v32 = vld [vmem:[%s1441_s27 + $0xe0] sm:$0xf]  ;;  %v287_v33 = vld [vmem:[%s1441_s27 + $0xe8] sm:$0xf] }
  0x47   : > { %284 = vst [vmem:[%s1446_s6 + $0x6c] sm:$0xf] %v283_v31  ;;  %286 = vst [vmem:[%s1446_s6 + $0x70] sm:$0xf] %v285_v32  ;;  %v289_v34 = vld [vmem:[%s1441_s27 + $0xf0] sm:$0xf] }
  0x48   : > { %288 = vst [vmem:[%s1446_s6 + $0x74] sm:$0xf] %v287_v33  ;;  %v291_v35 = vld [vmem:[%s1441_s27 + $0xf8] sm:$0xf]  ;;  %v293_v36 = vld [vmem:[%s1441_s27 + $0x100] sm:$0xf] }
  0x49   : > { %290 = vst [vmem:[%s1446_s6 + $0x78] sm:$0xf] %v289_v34  ;;  %292 = vst [vmem:[%s1446_s6 + $0x7c] sm:$0xf] %v291_v35  ;;  %v295_v37 = vld [vmem:[%s1441_s27 + $0x108] sm:$0xf] }
  0x4a   : > { %294 = vst [vmem:[%s1446_s6 + $0x80] sm:$0xf] %v293_v36  ;;  %v297_v38 = vld [vmem:[%s1441_s27 + $0x110] sm:$0xf]  ;;  %v299_v39 = vld [vmem:[%s1441_s27 + $0x118] sm:$0xf] }
  0x4b   : > { %296 = vst [vmem:[%s1446_s6 + $0x84] sm:$0xf] %v295_v37  ;;  %298 = vst [vmem:[%s1446_s6 + $0x88] sm:$0xf] %v297_v38  ;;  %v301_v40 = vld [vmem:[%s1441_s27 + $0x120] sm:$0xf] }
  0x4c   : > { %300 = vst [vmem:[%s1446_s6 + $0x8c] sm:$0xf] %v299_v39  ;;  %v303_v41 = vld [vmem:[%s1441_s27 + $0x128] sm:$0xf]  ;;  %v305_v42 = vld [vmem:[%s1441_s27 + $0x130] sm:$0xf] }
  0x4d   : > { %302 = vst [vmem:[%s1446_s6 + $0x90] sm:$0xf] %v301_v40  ;;  %304 = vst [vmem:[%s1446_s6 + $0x94] sm:$0xf] %v303_v41  ;;  %v307_v43 = vld [vmem:[%s1441_s27 + $0x138] sm:$0xf] }
  0x4e   : > { %306 = vst [vmem:[%s1446_s6 + $0x98] sm:$0xf] %v305_v42  ;;  %v309_v44 = vld [vmem:[%s1441_s27 + $0x140] sm:$0xf]  ;;  %v311_v45 = vld [vmem:[%s1441_s27 + $0x148] sm:$0xf] }
  0x4f   : > { %308 = vst [vmem:[%s1446_s6 + $0x9c] sm:$0xf] %v307_v43  ;;  %310 = vst [vmem:[%s1446_s6 + $0xa0] sm:$0xf] %v309_v44  ;;  %v313_v46 = vld [vmem:[%s1441_s27 + $0x150] sm:$0xf] }
  0x50   : > { %312 = vst [vmem:[%s1446_s6 + $0xa4] sm:$0xf] %v311_v45  ;;  %v315_v47 = vld [vmem:[%s1441_s27 + $0x158] sm:$0xf]  ;;  %v317_v48 = vld [vmem:[%s1441_s27 + $0x160] sm:$0xf] }
  0x51   : > { %314 = vst [vmem:[%s1446_s6 + $0xa8] sm:$0xf] %v313_v46  ;;  %316 = vst [vmem:[%s1446_s6 + $0xac] sm:$0xf] %v315_v47  ;;  %v319_v49 = vld [vmem:[%s1441_s27 + $0x168] sm:$0xf] }
  0x52   : > { %318 = vst [vmem:[%s1446_s6 + $0xb0] sm:$0xf] %v317_v48  ;;  %v321_v50 = vld [vmem:[%s1441_s27 + $0x170] sm:$0xf]  ;;  %v323_v51 = vld [vmem:[%s1441_s27 + $0x178] sm:$0xf] }
  0x53   : > { %320 = vst [vmem:[%s1446_s6 + $0xb4] sm:$0xf] %v319_v49  ;;  %322 = vst [vmem:[%s1446_s6 + $0xb8] sm:$0xf] %v321_v50 }
  0x54   : > { %324 = vst [vmem:[%s1446_s6 + $0xbc] sm:$0xf] %v323_v51 }
  0x55 PF: > { %p1000_p0 = scmp.ge.s32.totalorder %s1302_s22, 1  ;;  %p448_p1 = scmp.lt.s32.totalorder %s1302_s22, 7 }
  0x57   : > { %p449_p2 = pnand %p1000_p0, %p448_p1 }
  0x58   : > { %s455_s0 = sand.u32 (!%p449_p2), 1, %s1278_s16   ;;  %s462_s5 = sand.u32 (!%p449_p2), 1, %s1270_s14  }
  0x59   : > { %452 = sbr.rel (%p449_p2) target bundleno = 396 (0x18c), region = 91  ;;  %s488_s28 = sand.u32 (!%p449_p2), 1, %s1262_s12  }
  0x5a   : > { %s1091_s23 = smul.u32 (!%p449_p2), 24, %s455_s0  ;;  %s1001_s11 = sshll.u32 (!%p449_p2), %s488_s28, 4 }
  0x5b   : > { %s1092_s7 = smul.u32 (!%p449_p2), 192, %s462_s5  ;;  %p494_p3 = scmp.lt.s32.totalorder (!%p449_p2), %s1290_s19, 1 }
  0x5c   : > { %s1554_s6 = scalar_lea.vmem (!%p449_p2), [#allocation3], %s1091_s23  ;;  %s1558_s25 = scalar_lea.vmem (!%p449_p2), [#allocation5], %s1001_s11 }
  0x5d   : > { %s1556_s1 = scalar_lea.vmem (!%p449_p2), [#allocation4], %s1092_s7  ;;  %p1002_p4 = scmp.ne.s32.totalorder (!%p449_p2), %s1286_s18, 0 }
  0x60   : > { %s1548_s26 = scalar_select %p494_p3, %s1290_s19, 1 }
  0x61   : > { %502 = sbr.rel (%p1002_p4) target bundleno = 104 (0x68), region = 103  ;;  %v1304_v52 = vmov (!%p1002_p4), 0.0  }
  0x62   : > { %s496_s27 = scalar_lea.vmem %s1639_s2, %s1548_s26  ;;  %503 = vst [vmem:[#allocation2] sm:$0xff] (!%p1002_p4), %v1304_v52  ;;  %504 = vst [vmem:[#allocation2 + $0x8] sm:$0xff] (!%p1002_p4), %v1304_v52 }
  0x68 PF: > { %v1184_v53 = vld [vmem:[%s1556_s1 + $0x40] sm:$0xff]   ;;  %v1305_v54 = vmov 0.0   ;;  %vm1306_vm0 = vmmov 0   ;;  %v1187_v57 = vld [vmem:[%s1556_s1 + $0x48] sm:$0xff]   ;;  %v1190_v60 = vld [vmem:[%s1556_s1 + $0x50] sm:$0xff]   ;;  %p1030_p5 = scmp.ne.s32.totalorder %s1286_s18, 2 }
  0x69   : > { %1069 = vmatprep.subr.bf16.mxu1 %v1305_v54  ;;  %v1185_v55 = vld [vmem:[%s1556_s1] sm:$0xff]   ;;  %1038 = vmatprep.subr.bf16.mxu0 %v1184_v53  ;;  %v1188_v58 = vld [vmem:[%s1556_s1 + $0x8] sm:$0xff]   ;;  %v1191_v61 = vld [vmem:[%s1556_s1 + $0x10] sm:$0xff]  }
  0x6a   : > { %v1186_v56 = vld [vmem:[%s1556_s1 + $0x80] sm:$0xff]   ;;  %1085 = vmatprep.mubr.msk.bf16.mxu1 %vm1306_vm0, %v1305_v54  ;;  %1039 = vmatpush3.bf16.msra.mxu0 %v1185_v55  ;;  %v1189_v59 = vld [vmem:[%s1556_s1 + $0x88] sm:$0xff]   ;;  %v1192_v62 = vld [vmem:[%s1556_s1 + $0x90] sm:$0xff]  }
  0x6b   : > { %1070 = vmatpush3.bf16.msra.mxu1 %v1186_v56  ;;  %1040 = vmatprep.subr.bf16.mxu0 %v1187_v57  ;;  %v1193_v63 = vld [vmem:[%s1556_s1 + $0x58] sm:$0xff]   ;;  %v1196_v2 = vld [vmem:[%s1556_s1 + $0x60] sm:$0xff]   ;;  %v1199_v5 = vld [vmem:[%s1556_s1 + $0x68] sm:$0xff]  }
  0x6c   : > { %1071 = vmatprep.subr.bf16.mxu1 %v1305_v54  ;;  %v1194_v0 = vld [vmem:[%s1556_s1 + $0x18] sm:$0xff]   ;;  %v1197_v3 = vld [vmem:[%s1556_s1 + $0x20] sm:$0xff]   ;;  %v1200_v6 = vld [vmem:[%s1556_s1 + $0x28] sm:$0xff]  }
  0x6d   : > { %v1195_v1 = vld [vmem:[%s1556_s1 + $0x98] sm:$0xff]   ;;  %v1198_v4 = vld [vmem:[%s1556_s1 + $0xa0] sm:$0xff]   ;;  %v1201_v7 = vld [vmem:[%s1556_s1 + $0xa8] sm:$0xff]  }
  0x6e   : > { %1041 = vmatpush3.bf16.msra.mxu0 %v1188_v58  ;;  %v1202_v8 = vld [vmem:[%s1556_s1 + $0x70] sm:$0xff]   ;;  %v1205_v11 = vld [vmem:[%s1556_s1 + $0x78] sm:$0xff]   ;;  %v505_v23 = vld [vmem:[#allocation2] sm:$0xff] }
  0x6f   : > { %1072 = vmatpush3.bf16.msra.mxu1 %v1189_v59  ;;  %1042 = vmatprep.subr.bf16.mxu0 %v1190_v60  ;;  %v1203_v9 = vld [vmem:[%s1556_s1 + $0x30] sm:$0xff]   ;;  %v1206_v13 = vld [vmem:[%s1556_s1 + $0x38] sm:$0xff]   ;;  %v506_v29 = vld [vmem:[#allocation2 + $0x8] sm:$0xff] }
  0x70   : > { %1073 = vmatprep.subr.bf16.mxu1 %v1305_v54  ;;  %v1204_v10 = vld [vmem:[%s1556_s1 + $0xb0] sm:$0xff]   ;;  %v1207_v14 = vld [vmem:[%s1556_s1 + $0xb8] sm:$0xff]   ;;  %v1031_v34 = vld [vmem:[%s496_s27] ss:$0 sm:$0xff] (!%p1030_p5) }
  0x71   : > { %v1210_v12 = vld [vmem:[%s1554_s6 + $0x4] ss:$12 sps:$4 sm:$0xff]   ;;  %v1208_v15 = vld [vmem:[%s1554_s6] ss:$12 sps:$4 sm:$0xff]   ;;  %v1211_v16 = vld [vmem:[%s1554_s6 + $0x8] ss:$12 sps:$4 sm:$0xff]  }
  0x72   : > { %1043 = vmatpush3.bf16.msra.mxu0 %v1191_v61  ;;  %751 = vmatprep.mubr.bf16.mxu0 %v1210_v12 }
  0x73   : > { %1074 = vmatpush3.bf16.msra.mxu1 %v1192_v62  ;;  %1044 = vmatprep.subr.bf16.mxu0 %v1193_v63 }
  0x74   : > { %1075 = vmatprep.subr.bf16.mxu1 %v1305_v54 }
  0x76   : > { %1045 = vmatpush3.bf16.msra.mxu0 %v1194_v0 }
  0x77   : > { %1076 = vmatpush3.bf16.msra.mxu1 %v1195_v1  ;;  %1046 = vmatprep.subr.bf16.mxu0 %v1196_v2 }
  0x78   : > { %1077 = vmatprep.subr.bf16.mxu1 %v1305_v54 }
  0x7a   : > { %1047 = vmatpush3.bf16.msra.mxu0 %v1197_v3 }
  0x7b   : > { %1078 = vmatpush3.bf16.msra.mxu1 %v1198_v4  ;;  %1048 = vmatprep.subr.bf16.mxu0 %v1199_v5 }
  0x7c   : > { %1079 = vmatprep.subr.bf16.mxu1 %v1305_v54 }
  0x7e   : > { %1049 = vmatpush3.bf16.msra.mxu0 %v1200_v6 }
  0x7f   : > { %1080 = vmatpush3.bf16.msra.mxu1 %v1201_v7  ;;  %1050 = vmatprep.subr.bf16.mxu0 %v1202_v8 }
  0x80   : > { %1081 = vmatprep.subr.bf16.mxu1 %v1305_v54 }
  0x82   : > { %1051 = vmatpush3.bf16.msra.mxu0 %v1203_v9 }
  0x83   : > { %1082 = vmatpush3.bf16.msra.mxu1 %v1204_v10  ;;  %1052 = vmatprep.subr.bf16.mxu0 %v1205_v11 }
  0x84   : > { %1083 = vmatprep.subr.bf16.mxu1 %v1305_v54 }
  0x86   : > { %1053 = vmatpush3.bf16.msra.mxu0 %v1206_v13 }
  0x87   : > { %1084 = vmatpush3.bf16.msra.mxu1 %v1207_v14 }
  0x89   : > { %752 = vmatmul.mubr.bf16.vlgmr.msra.gmra.mrb[0].mxu0 %v1208_v15 }
  0x8a   : > { %1086 = vmatmul.mubr.bf16.vlgmr.msra.gmra.mrb[0].mxu1 %v1211_v16 }
 0x15c   : > { %v1054_v17 = vpop.f32.mrb[0].mxu0 }
 0x15d   : > { %v794_v18 = vpop.f32.mrb[0].mxu1  ;;  %v1055_v19 = vpop.f32.mrb[1].mxu0 }
 0x15e   : > { %v1056_v20 = vadd.f32 %v1055_v19, %v1054_v17  ;;  %v1087_v21 = vpop.f32.mrb[1].mxu1  ;;  %v1057_v22 = vpop.f32.mrb[2].mxu0 }
 0x15f   : > { %v797_v24 = vpop.f32.mrb[2].mxu1  ;;  %v1058_v25 = vpop.f32.mrb[3].mxu0 }
 0x160   : > { %v795_v26 = vadd.f32 %v1056_v20, %v794_v18  ;;  %v1059_v27 = vadd.f32 %v1058_v25, %v1057_v22  ;;  %v1088_v28 = vpop.f32.mrb[3].mxu1  ;;  %808 = sbr.rel (%p1030_p5) target bundleno = 388 (0x184), region = 107 }
 0x162   : > { %v801_v30 = vadd.f32 %v795_v26, %v505_v23  ;;  %v798_v31 = vadd.f32 %v1059_v27, %v797_v24 }
 0x164   : > { %803 = vst [vmem:[#allocation2] sm:$0xff] %v801_v30  ;;  %v802_v32 = vadd.f32 %v798_v31, %v506_v29 }
 0x166   : > { %804 = vst [vmem:[#allocation2 + $0x8] sm:$0xff] %v802_v32 }
 0x16b   : > { %v809_v33 = vld [vmem:[#allocation2] sm:$0xff] }
 0x16c   : > { %v818_v36 = vadd.f32 %v1031_v34, %v809_v33 }
 0x16d   : > { %v810_v35 = vld [vmem:[#allocation2 + $0x8] sm:$0xff] }
 0x16e   : > { %v819_v37 = vadd.f32 %v1031_v34, %v810_v35  ;;  %v820_v38 = vmul.f32 0.5, %v818_v36 }
 0x170   : > { %v821_v39 = vmul.f32 0.5, %v819_v37  ;;  %1212 = vtanh.f32 %v820_v38 }
 0x172   : > { %1214 = vtanh.f32 %v821_v39 }
 0x17a   : > { %v1213_v40 = vpop.eup %1212 }
 0x17b   : > { %v824_v42 = vadd.f32 1.0, %v1213_v40 }
 0x17c   : > { %v1215_v41 = vpop.eup %1214 }
 0x17d   : > { %v825_v43 = vadd.f32 1.0, %v1215_v41  ;;  %v826_v44 = vmul.f32 0.5, %v824_v42 }
 0x17f   : > { %v827_v45 = vmul.f32 0.5, %v825_v43  ;;  %v828_v46 = vmul.f32 %v826_v44, %v818_v36 }
 0x181   : > { %v829_v47 = vmul.f32 %v827_v45, %v819_v37  ;;  %830 = vst [vmem:[%s1558_s25] sm:$0xff] %v828_v46 }
 0x183   : > { %831 = vst [vmem:[%s1558_s25 + $0x8] sm:$0xff] %v829_v47 }
 0x184 PF: > { %838 = sbr.rel (!%p1421_p12) target bundleno = 396 (0x18c), region = 111  ;;  %s1033_s14 = sshll.u32 (%p1421_p12), %s1290_s19, 3 }
 0x185   : > { %s843_s0 = scalar_lea.vmem (%p1421_p12), %s1640_s3, %s1033_s14 }
 0x188   : > { %v873_v48 = vld [vmem:[%s1558_s25] sm:$0xff] (%p1421_p12) }
 0x189   : > { %874 = vst [vmem:[%s843_s0] sm:$0xff] (%p1421_p12), %v873_v48 }
 0x18a   : > { %v875_v49 = vld [vmem:[%s1558_s25 + $0x8] sm:$0xff] (%p1421_p12) }
 0x18b   : > { %876 = vst [vmem:[%s843_s0 + $0x10] sm:$0xff] %v875_v49 }
 0x18c PF: > { %s13_s22 = sadd.s32 1, %s1302_s22   ;;  %s1650_s25 = sld [smem:[#allocation6_spill]] }
 0x18d   : > { %p10_p6 = scmp.ge.s32.totalorder %s13_s22, 8   ;;  %s1651_s12 = smov %s1266_s13 }
 0x18e   : > { %s1652_s13 = smov %s1419_s9  ;;  %s1653_s14 = smov %s1274_s15 }
 0x18f   : > { %s1654_s15 = smov %s1416_s8  ;;  %s1655_s16 = smov %s1282_s17 }
 0x190   : > { %s1656_s17 = smov %s1402_s30  ;;  %s1657_s18 = smov %s1294_s20 }
 0x191   : > { %s1658_s19 = smov %s1298_s21  ;;  %s1659_s20 = smov %s1662_s24 }
 0x192   : > { %s1660_s21 = smov %s1650_s25  ;;  %12 = sbr.rel (!%p10_p6) target bundleno = 9 (0x9), region = 197 }

// kernel: _lambda_.60
= control target key start
LH: loop header
LB: loop body
LE: loop exit
PB: predicated region body
PF: predicated region fallthrough
CT: control target
= control target key end

     0   :  { %vm380_vm0 = vcmask 523264   ;;  %s967_s1 = inlined_call_operand.vmem [shape: bf16[576,128], index: 1, kind: input, shape index: {}]   ;;  %s968_s0 = inlined_call_operand.vmem [shape: bf16[32,576], index: 0, kind: input, shape index: {}]   ;;  %s969_s2 = inlined_call_operand.vmem [shape: f32[1,128], index: 2, kind: input, shape index: {}]   ;;  %s970_s3 = inlined_call_operand.vmem [shape: f32[32,128], index: 3, kind: input, shape index: {}]   ;;  %s971_s4 = inlined_call_operand.vmem [shape: f32[32,128], index: 4, kind: output, shape index: {}]  }
   0x1   :  { %v719_v0 = vld [vmem:[%s967_s1 + $0x40] sm:$0xff]   ;;  %v723_v4 = vld [vmem:[%s967_s1 + $0x48] sm:$0xff]   ;;  %v727_v8 = vld [vmem:[%s967_s1 + $0x50] sm:$0xff]  }
   0x2   :  { %v720_v1 = vld [vmem:[%s967_s1 + $0xc0] sm:$0xff]   ;;  %645 = vmatprep.subr.bf16.mxu0 %v719_v0  ;;  %v724_v5 = vld [vmem:[%s967_s1 + $0xc8] sm:$0xff]   ;;  %v728_v9 = vld [vmem:[%s967_s1 + $0xd0] sm:$0xff]  }
   0x3   :  { %v721_v2 = vld [vmem:[%s967_s1] sm:$0xff]   ;;  %673 = vmatprep.subr.bf16.mxu1 %v720_v1  ;;  %v725_v6 = vld [vmem:[%s967_s1 + $0x8] sm:$0xff]   ;;  %v729_v10 = vld [vmem:[%s967_s1 + $0x10] sm:$0xff]  }
   0x4   :  { %v722_v3 = vld [vmem:[%s967_s1 + $0x80] sm:$0xff]   ;;  %646 = vmatpush3.bf16.msra.mxu0 %v721_v2  ;;  %v726_v7 = vld [vmem:[%s967_s1 + $0x88] sm:$0xff]   ;;  %v730_v11 = vld [vmem:[%s967_s1 + $0x90] sm:$0xff]  }
   0x5   :  { %674 = vmatpush3.bf16.msra.mxu1 %v722_v3  ;;  %647 = vmatprep.subr.bf16.mxu0 %v723_v4  ;;  %v731_v12 = vld [vmem:[%s967_s1 + $0x58] sm:$0xff]   ;;  %v735_v16 = vld [vmem:[%s967_s1 + $0x60] sm:$0xff]   ;;  %v739_v20 = vld [vmem:[%s967_s1 + $0x68] sm:$0xff]  }
   0x6   :  { %675 = vmatprep.subr.bf16.mxu1 %v724_v5  ;;  %v732_v13 = vld [vmem:[%s967_s1 + $0xd8] sm:$0xff]   ;;  %v736_v17 = vld [vmem:[%s967_s1 + $0xe0] sm:$0xff]   ;;  %v740_v21 = vld [vmem:[%s967_s1 + $0xe8] sm:$0xff]  }
   0x7   :  { %v733_v14 = vld [vmem:[%s967_s1 + $0x18] sm:$0xff]   ;;  %v737_v18 = vld [vmem:[%s967_s1 + $0x20] sm:$0xff]   ;;  %v741_v22 = vld [vmem:[%s967_s1 + $0x28] sm:$0xff]  }
   0x8   :  { %648 = vmatpush3.bf16.msra.mxu0 %v725_v6  ;;  %v734_v15 = vld [vmem:[%s967_s1 + $0x98] sm:$0xff]   ;;  %v738_v19 = vld [vmem:[%s967_s1 + $0xa0] sm:$0xff]   ;;  %v742_v23 = vld [vmem:[%s967_s1 + $0xa8] sm:$0xff]  }
   0x9   :  { %676 = vmatpush3.bf16.msra.mxu1 %v726_v7  ;;  %649 = vmatprep.subr.bf16.mxu0 %v727_v8  ;;  %v743_v24 = vld [vmem:[%s967_s1 + $0x70] sm:$0xff]   ;;  %v747_v28 = vld [vmem:[%s967_s1 + $0x78] sm:$0xff]   ;;  %v756_v35 = vld [vmem:[%s968_s0 + $0xc] ss:$20 sps:$4 sm:$0xff]  }
   0xa   :  { %677 = vmatprep.subr.bf16.mxu1 %v728_v9  ;;  %v744_v25 = vld [vmem:[%s967_s1 + $0xf0] sm:$0xff]   ;;  %v748_v29 = vld [vmem:[%s967_s1 + $0xf8] sm:$0xff]   ;;  %v757_v36 = vld [vmem:[%s967_s1 + $0x100] sm:$0xff]   ;;  %468 = vmatprep.mubr.bf16.mxu1 %v756_v35 }
   0xb   :  { %v745_v26 = vld [vmem:[%s967_s1 + $0x30] sm:$0xff]   ;;  %v749_v30 = vld [vmem:[%s967_s1 + $0x38] sm:$0xff]   ;;  %v758_v37 = vld [vmem:[%s967_s1 + $0x108] sm:$0xff]  }
   0xc   :  { %650 = vmatpush3.bf16.msra.mxu0 %v729_v10  ;;  %v746_v27 = vld [vmem:[%s967_s1 + $0xb0] sm:$0xff]   ;;  %v750_v31 = vld [vmem:[%s967_s1 + $0xb8] sm:$0xff]   ;;  %v759_v38 = vld [vmem:[%s968_s0 + $0x2c] ss:$20 sps:$4 sm:$0xff]  }
   0xd   :  { %678 = vmatpush3.bf16.msra.mxu1 %v730_v11  ;;  %651 = vmatprep.subr.bf16.mxu0 %v731_v12  ;;  %v751_v32 = vld [vmem:[%s968_s0] ss:$20 sps:$4 sm:$0xff]   ;;  %v753_v33 = vld [vmem:[%s968_s0 + $0x4] ss:$20 sps:$4 sm:$0xff]   ;;  %v754_v34 = vld [vmem:[%s968_s0 + $0x8] ss:$20 sps:$4 sm:$0xff]  }
   0xe   :  { %679 = vmatprep.subr.bf16.mxu1 %v732_v13  ;;  %419 = vmatprep.mubr.bf16.mxu0 %v753_v33  ;;  %v761_v39 = vld [vmem:[%s968_s0 + $0x34] ss:$20 sps:$4 sm:$0xff]   ;;  %v764_v42 = vld [vmem:[%s968_s0 + $0x30] ss:$20 sps:$4 sm:$0xff]   ;;  %v766_v44 = vld [vmem:[%s967_s1 + $0x118] sm:$0xff]  }
   0xf   :  { %v763_v40 = vld [vmem:[%s968_s0 + $0x28] ss:$20 sps:$4 sm:$0xff]   ;;  %v765_v41 = vld [vmem:[%s967_s1 + $0x110] sm:$0xff]   ;;  %v768_v45 = vld [vmem:[%s968_s0 + $0x38] ss:$20 sps:$4 sm:$0xff]  }
  0x10   :  { %652 = vmatpush3.bf16.msra.mxu0 %v733_v14  ;;  %v767_v43 = vld [vmem:[%s968_s0 + $0x10] ss:$20 sps:$4 sm:$0xff]   ;;  %v644_v11 = vld [vmem:[%s969_s2] ss:$0 sm:$0xff] }
  0x11   :  { %680 = vmatpush3.bf16.msra.mxu1 %v734_v15  ;;  %653 = vmatprep.subr.bf16.mxu0 %v735_v16  ;;  %v582_v35 = vld [vmem:[%s970_s3 + $0x10] sm:$0xff] }
  0x12   :  { %681 = vmatprep.subr.bf16.mxu1 %v736_v17 }
  0x14   :  { %654 = vmatpush3.bf16.msra.mxu0 %v737_v18 }
  0x15   :  { %682 = vmatpush3.bf16.msra.mxu1 %v738_v19  ;;  %655 = vmatprep.subr.bf16.mxu0 %v739_v20 }
  0x16   :  { %683 = vmatprep.subr.bf16.mxu1 %v740_v21 }
  0x18   :  { %656 = vmatpush3.bf16.msra.mxu0 %v741_v22 }
  0x19   :  { %684 = vmatpush3.bf16.msra.mxu1 %v742_v23  ;;  %657 = vmatprep.subr.bf16.mxu0 %v743_v24 }
  0x1a   :  { %685 = vmatprep.subr.bf16.mxu1 %v744_v25 }
  0x1c   :  { %658 = vmatpush3.bf16.msra.mxu0 %v745_v26 }
  0x1d   :  { %686 = vmatpush3.bf16.msra.mxu1 %v746_v27  ;;  %659 = vmatprep.subr.bf16.mxu0 %v747_v28 }
  0x1e   :  { %687 = vmatprep.subr.bf16.mxu1 %v748_v29 }
  0x20   :  { %660 = vmatpush3.bf16.msra.mxu0 %v749_v30 }
  0x21   :  { %688 = vmatpush3.bf16.msra.mxu1 %v750_v31  ;;  %707 = vmatprep.subr.bf16.mxu0 %v757_v36 }
  0x23   :  { %420 = vmatmul.mubr.bf16.vlgmr.msra.gmra.mrb[0].mxu0 %v751_v32 }
  0x24   :  { %469 = vmatmul.mubr.bf16.vlgmr.msra.gmra.mrb[0].mxu1 %v754_v34  ;;  %708 = vmatpush3.bf16.msra.mxu0 %v757_v36 }
  0x25   :  { %709 = vmatprep.subr.bf16.mxu0 %v758_v37  ;;  %427 = vmatprep.mubr.bf16.mxu0 %v759_v38 }
  0x26   :  { %476 = vmatprep.mubr.bf16.mxu1 %v761_v39  ;;  %v580_v39 = vld [vmem:[%s970_s3] sm:$0xff] }
  0x28   :  { %710 = vmatpush3.bf16.msra.mxu0 %v758_v37 }
  0x29   :  { %711 = vmatprep.subr.bf16.mxu0 %v765_v41 }
  0x2b   :  { %428 = vmatmul.mubr.bf16.gmra.mrb[4].mxu0 %v763_v40 }
  0x2c   :  { %477 = vmatmul.mubr.bf16.gmra.mrb[4].mxu1 %v764_v42  ;;  %715 = vmatprep.mubr.msk.bf16.mxu0 %vm380_vm0, %v767_v43  ;;  %v583_v42 = vld [vmem:[%s970_s3 + $0x18] sm:$0xff] }
  0x2d   :  { %712 = vmatpush3.bf16.msra.mxu0 %v765_v41 }
  0x2e   :  { %713 = vmatprep.subr.bf16.mxu0 %v766_v44 }
  0x31   :  { %714 = vmatpush3.bf16.msra.mxu0 %v766_v44 }
  0x34   :  { %716 = vmatmul.mubr.msk.bf16.vlgmr.msra.gmra.mrb[8].mxu0 %vm380_vm0, %v768_v45 }
  0xf6   :  { %v661_v46 = vpop.f32.mrb[0].mxu0 }
  0xf7   :  { %v689_v47 = vpop.f32.mrb[0].mxu1  ;;  %v662_v48 = vpop.f32.mrb[1].mxu0 }
  0xf8   :  { %v663_v49 = vadd.f32 %v662_v48, %v661_v46  ;;  %v690_v50 = vpop.f32.mrb[1].mxu1  ;;  %v664_v51 = vpop.f32.mrb[2].mxu0  ;;  %v581_v46 = vld [vmem:[%s970_s3 + $0x8] sm:$0xff] }
  0xf9   :  { %v691_v52 = vadd.f32 %v690_v50, %v689_v47  ;;  %v692_v53 = vpop.f32.mrb[2].mxu1  ;;  %v665_v54 = vpop.f32.mrb[3].mxu0 }
  0xfa   :  { %v666_v55 = vadd.f32 %v665_v54, %v664_v51  ;;  %v693_v56 = vpop.f32.mrb[3].mxu1 }
  0xfb   :  { %v694_v57 = vadd.f32 %v693_v56, %v692_v53  ;;  %v471_v58 = vadd.f32 %v691_v52, %v663_v49 }
  0xfd   :  { %v474_v59 = vadd.f32 %v694_v57, %v666_v55 }
  0xfe   :  { %v667_v60 = vpop.f32.mrb[4].mxu0 }
  0xff   :  { %v695_v61 = vpop.f32.mrb[4].mxu1  ;;  %v668_v62 = vpop.f32.mrb[5].mxu0 }
 0x100   :  { %v669_v63 = vadd.f32 %v668_v62, %v667_v60  ;;  %v696_v0 = vpop.f32.mrb[5].mxu1  ;;  %v670_v1 = vpop.f32.mrb[6].mxu0 }
 0x101   :  { %v697_v2 = vadd.f32 %v696_v0, %v695_v61  ;;  %v698_v3 = vpop.f32.mrb[6].mxu1  ;;  %v671_v4 = vpop.f32.mrb[7].mxu0 }
 0x102   :  { %v672_v5 = vadd.f32 %v671_v4, %v670_v1  ;;  %v699_v6 = vpop.f32.mrb[7].mxu1 }
 0x103   :  { %v700_v7 = vadd.f32 %v699_v6, %v698_v3  ;;  %v479_v8 = vadd.f32 %v697_v2, %v669_v63 }
 0x105   :  { %v482_v9 = vadd.f32 %v700_v7, %v672_v5 }
 0x107   :  { %v717_v10 = vpop.f32.mrb[8].mxu0 }
 0x108   :  { %v528_v12 = vadd.f32 %v717_v10, %v479_v8  ;;  %v519_v13 = vpop.f32.mrb[9].mxu0 }
 0x109   :  { %v520_v14 = vadd.f32 %v519_v13, %v471_v58  ;;  %v718_v15 = vpop.f32.mrb[10].mxu0 }
 0x10a   :  { %v558_v16 = vadd.f32 %v644_v11, %v528_v12  ;;  %v531_v17 = vadd.f32 %v718_v15, %v482_v9  ;;  %v522_v18 = vpop.f32.mrb[11].mxu0 }
 0x10b   :  { %v556_v19 = vadd.f32 %v644_v11, %v520_v14  ;;  %v523_v20 = vadd.f32 %v522_v18, %v474_v59 }
 0x10c   :  { %v562_v21 = vmul.f32 0.5, %v558_v16  ;;  %v559_v22 = vadd.f32 %v644_v11, %v531_v17 }
 0x10d   :  { %v560_v23 = vmul.f32 0.5, %v556_v19  ;;  %v557_v24 = vadd.f32 %v644_v11, %v523_v20 }
 0x10e   :  { %769 = vtanh.f32 %v562_v21  ;;  %v563_v25 = vmul.f32 0.5, %v559_v22 }
 0x10f   :  { %771 = vtanh.f32 %v560_v23  ;;  %v561_v26 = vmul.f32 0.5, %v557_v24 }
 0x110   :  { %773 = vtanh.f32 %v563_v25 }
 0x111   :  { %775 = vtanh.f32 %v561_v26 }
 0x118   :  { %v770_v27 = vpop.eup %769 }
 0x119   :  { %v772_v28 = vpop.eup %771  ;;  %v570_v29 = vadd.f32 1.0, %v770_v27 }
 0x11a   :  { %v774_v30 = vpop.eup %773  ;;  %v568_v31 = vadd.f32 1.0, %v772_v28 }
 0x11b   :  { %v776_v32 = vpop.eup %775  ;;  %v574_v33 = vmul.f32 0.5, %v570_v29  ;;  %v571_v34 = vadd.f32 1.0, %v774_v30 }
 0x11c   :  { %v572_v36 = vmul.f32 0.5, %v568_v31  ;;  %v569_v37 = vadd.f32 1.0, %v776_v32 }
 0x11d   :  { %v578_v38 = vmul.f32 %v574_v33, %v558_v16  ;;  %v575_v40 = vmul.f32 0.5, %v571_v34 }
 0x11e   :  { %v576_v41 = vmul.f32 %v572_v36, %v556_v19  ;;  %v573_v43 = vmul.f32 0.5, %v569_v37 }
 0x11f   :  { %v586_v44 = vadd.f32 %v582_v35, %v578_v38  ;;  %v579_v45 = vmul.f32 %v575_v40, %v559_v22 }
 0x120   :  { %v584_v47 = vadd.f32 %v580_v39, %v576_v41  ;;  %v577_v48 = vmul.f32 %v573_v43, %v557_v24 }
 0x121   :  { %590 = vst [vmem:[%s971_s4 + $0x10] sm:$0xff] %v586_v44  ;;  %v587_v49 = vadd.f32 %v583_v42, %v579_v45 }
 0x122   :  { %588 = vst [vmem:[%s971_s4] sm:$0xff] %v584_v47  ;;  %v585_v50 = vadd.f32 %v581_v46, %v577_v48 }
 0x123   :  { %591 = vst [vmem:[%s971_s4 + $0x18] sm:$0xff] %v587_v49 }
 0x124   :  { %589 = vst [vmem:[%s971_s4 + $0x8] sm:$0xff] %v585_v50 }

// kernel: _lambda_.67
= control target key start
LH: loop header
LB: loop body
LE: loop exit
PB: predicated region body
PF: predicated region fallthrough
CT: control target
= control target key end

     0   :  { %s385_s1 = inlined_call_operand.vmem [shape: bf16[256,128], index: 1, kind: input, shape index: {}]   ;;  %s386_s0 = inlined_call_operand.vmem [shape: bf16[16,256], index: 0, kind: input, shape index: {}]   ;;  %s387_s2 = inlined_call_operand.vmem [shape: f32[1,128], index: 2, kind: input, shape index: {}]   ;;  %s388_s3 = inlined_call_operand.vmem [shape: f32[16,128], index: 3, kind: output, shape index: {}]  }
   0x1   :  { %v279_v0 = vld [vmem:[%s385_s1 + $0x40] sm:$0xff]   ;;  %v281_v2 = vld [vmem:[%s385_s1 + $0x48] sm:$0xff]   ;;  %v283_v4 = vld [vmem:[%s385_s1 + $0x50] sm:$0xff]  }
   0x2   :  { %v280_v1 = vld [vmem:[%s385_s1] sm:$0xff]   ;;  %257 = vmatprep.subr.bf16.mxu0 %v279_v0  ;;  %v282_v3 = vld [vmem:[%s385_s1 + $0x8] sm:$0xff]   ;;  %v284_v5 = vld [vmem:[%s385_s1 + $0x10] sm:$0xff]  }
   0x3   :  { %258 = vmatpush3.bf16.msra.mxu0 %v280_v1  ;;  %v285_v6 = vld [vmem:[%s385_s1 + $0x58] sm:$0xff]   ;;  %v287_v8 = vld [vmem:[%s385_s1 + $0x60] sm:$0xff]   ;;  %v289_v10 = vld [vmem:[%s385_s1 + $0x68] sm:$0xff]  }
   0x4   :  { %259 = vmatprep.subr.bf16.mxu0 %v281_v2  ;;  %v286_v7 = vld [vmem:[%s385_s1 + $0x18] sm:$0xff]   ;;  %v288_v9 = vld [vmem:[%s385_s1 + $0x20] sm:$0xff]   ;;  %v290_v12 = vld [vmem:[%s385_s1 + $0x28] sm:$0xff]  }
   0x5   :  { %v297_v11 = vld [vmem:[%s386_s0 + $0x4] ss:$8 sps:$4 sm:$0xff]   ;;  %v291_v13 = vld [vmem:[%s385_s1 + $0x70] sm:$0xff]   ;;  %v293_v15 = vld [vmem:[%s385_s1 + $0x78] sm:$0xff]  }
   0x6   :  { %195 = vmatprep.mubr.bf16.mxu0 %v297_v11  ;;  %v292_v14 = vld [vmem:[%s385_s1 + $0x30] sm:$0xff]   ;;  %v294_v16 = vld [vmem:[%s385_s1 + $0x38] sm:$0xff]   ;;  %v295_v17 = vld [vmem:[%s386_s0] ss:$8 sps:$4 sm:$0xff]  }
   0x7   :  { %260 = vmatpush3.bf16.msra.mxu0 %v282_v3  ;;  %v256_v20 = vld [vmem:[%s387_s2] ss:$0 sm:$0xff] }
   0x8   :  { %261 = vmatprep.subr.bf16.mxu0 %v283_v4 }
   0xb   :  { %262 = vmatpush3.bf16.msra.mxu0 %v284_v5 }
   0xc   :  { %263 = vmatprep.subr.bf16.mxu0 %v285_v6 }
   0xf   :  { %264 = vmatpush3.bf16.msra.mxu0 %v286_v7 }
  0x10   :  { %265 = vmatprep.subr.bf16.mxu0 %v287_v8 }
  0x13   :  { %266 = vmatpush3.bf16.msra.mxu0 %v288_v9 }
  0x14   :  { %267 = vmatprep.subr.bf16.mxu0 %v289_v10 }
  0x17   :  { %268 = vmatpush3.bf16.msra.mxu0 %v290_v12 }
  0x18   :  { %269 = vmatprep.subr.bf16.mxu0 %v291_v13 }
  0x1b   :  { %270 = vmatpush3.bf16.msra.mxu0 %v292_v14 }
  0x1c   :  { %271 = vmatprep.subr.bf16.mxu0 %v293_v15 }
  0x1f   :  { %272 = vmatpush3.bf16.msra.mxu0 %v294_v16 }
  0x22   :  { %196 = vmatmul.mubr.bf16.vlgmr.msra.gmra.mrb[0].mxu0 %v295_v17 }
  0xf5   :  { %v273_v18 = vpop.f32.mrb[0].mxu0 }
  0xf6   :  { %v274_v19 = vpop.f32.mrb[1].mxu0 }
  0xf7   :  { %v275_v21 = vadd.f32 %v274_v19, %v273_v18  ;;  %v276_v22 = vpop.f32.mrb[2].mxu0 }
  0xf8   :  { %v277_v23 = vpop.f32.mrb[3].mxu0 }
  0xf9   :  { %v220_v24 = vadd.f32 %v275_v21, %v256_v20  ;;  %v278_v25 = vadd.f32 %v277_v23, %v276_v22 }
  0xfb   :  { %v222_v26 = vmul.f32 0.5, %v220_v24  ;;  %v221_v27 = vadd.f32 %v278_v25, %v256_v20 }
  0xfd   :  { %298 = vtanh.f32 %v222_v26  ;;  %v223_v28 = vmul.f32 0.5, %v221_v27 }
  0xff   :  { %300 = vtanh.f32 %v223_v28 }
 0x107   :  { %v299_v29 = vpop.eup %298 }
 0x108   :  { %v226_v30 = vadd.f32 1.0, %v299_v29 }
 0x109   :  { %v301_v31 = vpop.eup %300 }
 0x10a   :  { %v228_v32 = vmul.f32 0.5, %v226_v30  ;;  %v227_v33 = vadd.f32 1.0, %v301_v31 }
 0x10c   :  { %v230_v34 = vmul.f32 %v228_v32, %v220_v24  ;;  %v229_v35 = vmul.f32 0.5, %v227_v33 }
 0x10e   :  { %232 = vst [vmem:[%s388_s3] sm:$0xff] %v230_v34  ;;  %v231_v36 = vmul.f32 %v229_v35, %v221_v27 }
 0x110   :  { %233 = vst [vmem:[%s388_s3 + $0x8] sm:$0xff] %v231_v36 }

// kernel: _lambda_.68
= control target key start
LH: loop header
LB: loop body
LE: loop exit
PB: predicated region body
PF: predicated region fallthrough
CT: control target
= control target key end

     0   :  { %s1329_s12 = smov 0   ;;  %s1331_s13 = smov 0   ;;  %s1588_s0 = inlined_call_operand.vmem [shape: bf16[16,512], index: 0, kind: input, shape index: {}]   ;;  %s1589_s1 = inlined_call_operand.vmem [shape: bf16[512,256], index: 1, kind: input, shape index: {}]   ;;  %s1590_s2 = inlined_call_operand.vmem [shape: f32[1,256], index: 2, kind: input, shape index: {}]   ;;  %s1591_s3 = inlined_call_operand.vmem [shape: f32[16,256], index: 3, kind: output, shape index: {}]  }
   0x1   :  { %s1333_s14 = smov 0   ;;  %s1335_s15 = smov 0  }
   0x2   :  { %s1337_s16 = smov 0  }
   0x3 LB: > { %s28_s17 = sadd.s32 1, %s1303_s15  ;;  %s1092_s18 = sadd.s32 4294967295, %s1307_s16   ;;  %s1307_s16 = sphi %s1337_s16, %s13_s16   ;;  %s1303_s15 = sphi %s1335_s15, %s1596_s15   ;;  %s1299_s14 = sphi %s1333_s14, %s1595_s14   ;;  %s1295_s13 = sphi %s1331_s13, %s1594_s13   ;;  %s1291_s12 = sphi %s1329_s12, %s1593_s12  }
   0x4   : > { %p30_p0 = scmp.ge.s32.totalorder %s28_s17, 2  ;;  %p76_p1 = scmp.ne.s32.totalorder %s1295_s13, %s1291_s12 }
   0x5   : > { %p77_p2 = scmp.eq.s32.totalorder %s1307_s16, 0  ;;  %p134_p4 = scmp.eq.s32.totalorder %s1092_s18, 1 }
   0x6   : > { %s1598_s17 = smov (%p30_p0, %s28_s17), 0  ;;  %s69_s20 = sadd.s32 1, %s1295_s13 }
   0x7   : > { %p78_p3 = por %p77_p2, %p76_p1  ;;  %s65_s19 = ssub.s32 %s1303_s15, %s1598_s17 }
   0x8   : > { %p67_p5 = scmp.eq.s32.totalorder %s65_s19, 0  ;;  %p1364_p6 = por %p134_p4, %p76_p1 }
   0x9   : > { %p1096_p7 = scmp.ge.s32.totalorder %s1307_s16, 2 }
   0xa   : > { %s1369_s22 = scalar_select %p67_p5, %s1295_s13, %s69_s20  }
   0xb   : > { %171 = sbr.rel (%p1096_p7) target bundleno = 64 (0x40), region = 20 }
  0x12   : > { %174 = sbr.rel (!%p78_p3) target bundleno = 64 (0x40), region = 24  ;;  %s176_s23 = sand.u32 (%p78_p3), 1, %s1295_s13  }
  0x13   : > { %s1098_s24 = sshll.u32 (%p78_p3), %s1303_s15, 2  ;;  %s1097_s25 = sshll.u32 (%p78_p3), %s176_s23, 8 }
  0x14   : > { %s1377_s28 = scalar_lea.vmem (%p78_p3), %s1589_s1, %s1098_s24  ;;  %s1381_s29 = scalar_lea.vmem (%p78_p3), [#allocation3], %s1097_s25 }
  0x15   : > { %v199_v0 = vld [vmem:[%s1377_s28] sm:$0xf] (%p78_p3)  ;;  %v201_v1 = vld [vmem:[%s1377_s28 + $0x8] sm:$0xf] (%p78_p3)  ;;  %v203_v2 = vld [vmem:[%s1377_s28 + $0x10] sm:$0xf] (%p78_p3) }
  0x16   : > { %200 = vst [vmem:[%s1381_s29] sm:$0xf] (%p78_p3), %v199_v0  ;;  %202 = vst [vmem:[%s1381_s29 + $0x4] sm:$0xf] (%p78_p3), %v201_v1  ;;  %v205_v3 = vld [vmem:[%s1377_s28 + $0x18] sm:$0xf] (%p78_p3) }
  0x17   : > { %v207_v4 = vld [vmem:[%s1377_s28 + $0x20] sm:$0xf] (%p78_p3)  ;;  %204 = vst [vmem:[%s1381_s29 + $0x8] sm:$0xf] (%p78_p3), %v203_v2  ;;  %206 = vst [vmem:[%s1381_s29 + $0xc] sm:$0xf] (%p78_p3), %v205_v3 }
  0x18   : > { %208 = vst [vmem:[%s1381_s29 + $0x10] sm:$0xf] (%p78_p3), %v207_v4  ;;  %v209_v5 = vld [vmem:[%s1377_s28 + $0x28] sm:$0xf] (%p78_p3)  ;;  %v211_v6 = vld [vmem:[%s1377_s28 + $0x30] sm:$0xf] (%p78_p3) }
  0x19   : > { %v213_v7 = vld [vmem:[%s1377_s28 + $0x38] sm:$0xf]  ;;  %210 = vst [vmem:[%s1381_s29 + $0x14] sm:$0xf] %v209_v5  ;;  %212 = vst [vmem:[%s1381_s29 + $0x18] sm:$0xf] %v211_v6 }
  0x1a   : > { %214 = vst [vmem:[%s1381_s29 + $0x1c] sm:$0xf] %v213_v7  ;;  %v215_v8 = vld [vmem:[%s1377_s28 + $0x40] sm:$0xf]  ;;  %v217_v9 = vld [vmem:[%s1377_s28 + $0x48] sm:$0xf] }
  0x1b   : > { %v219_v10 = vld [vmem:[%s1377_s28 + $0x50] sm:$0xf]  ;;  %216 = vst [vmem:[%s1381_s29 + $0x20] sm:$0xf] %v215_v8  ;;  %218 = vst [vmem:[%s1381_s29 + $0x24] sm:$0xf] %v217_v9 }
  0x1c   : > { %220 = vst [vmem:[%s1381_s29 + $0x28] sm:$0xf] %v219_v10  ;;  %v221_v11 = vld [vmem:[%s1377_s28 + $0x58] sm:$0xf]  ;;  %v223_v12 = vld [vmem:[%s1377_s28 + $0x60] sm:$0xf] }
  0x1d   : > { %v225_v13 = vld [vmem:[%s1377_s28 + $0x68] sm:$0xf]  ;;  %222 = vst [vmem:[%s1381_s29 + $0x2c] sm:$0xf] %v221_v11  ;;  %224 = vst [vmem:[%s1381_s29 + $0x30] sm:$0xf] %v223_v12 }
  0x1e   : > { %226 = vst [vmem:[%s1381_s29 + $0x34] sm:$0xf] %v225_v13  ;;  %v227_v14 = vld [vmem:[%s1377_s28 + $0x70] sm:$0xf]  ;;  %v229_v15 = vld [vmem:[%s1377_s28 + $0x78] sm:$0xf] }
  0x1f   : > { %v231_v16 = vld [vmem:[%s1377_s28 + $0x80] sm:$0xf]  ;;  %228 = vst [vmem:[%s1381_s29 + $0x38] sm:$0xf] %v227_v14  ;;  %230 = vst [vmem:[%s1381_s29 + $0x3c] sm:$0xf] %v229_v15 }
  0x20   : > { %232 = vst [vmem:[%s1381_s29 + $0x40] sm:$0xf] %v231_v16  ;;  %v233_v17 = vld [vmem:[%s1377_s28 + $0x88] sm:$0xf]  ;;  %v235_v18 = vld [vmem:[%s1377_s28 + $0x90] sm:$0xf] }
  0x21   : > { %v237_v19 = vld [vmem:[%s1377_s28 + $0x98] sm:$0xf]  ;;  %234 = vst [vmem:[%s1381_s29 + $0x44] sm:$0xf] %v233_v17  ;;  %236 = vst [vmem:[%s1381_s29 + $0x48] sm:$0xf] %v235_v18 }
  0x22   : > { %238 = vst [vmem:[%s1381_s29 + $0x4c] sm:$0xf] %v237_v19  ;;  %v239_v20 = vld [vmem:[%s1377_s28 + $0xa0] sm:$0xf]  ;;  %v241_v21 = vld [vmem:[%s1377_s28 + $0xa8] sm:$0xf] }
  0x23   : > { %v243_v22 = vld [vmem:[%s1377_s28 + $0xb0] sm:$0xf]  ;;  %240 = vst [vmem:[%s1381_s29 + $0x50] sm:$0xf] %v239_v20  ;;  %242 = vst [vmem:[%s1381_s29 + $0x54] sm:$0xf] %v241_v21 }
  0x24   : > { %244 = vst [vmem:[%s1381_s29 + $0x58] sm:$0xf] %v243_v22  ;;  %v245_v23 = vld [vmem:[%s1377_s28 + $0xb8] sm:$0xf]  ;;  %v247_v24 = vld [vmem:[%s1377_s28 + $0xc0] sm:$0xf] }
  0x25   : > { %v249_v25 = vld [vmem:[%s1377_s28 + $0xc8] sm:$0xf]  ;;  %246 = vst [vmem:[%s1381_s29 + $0x5c] sm:$0xf] %v245_v23  ;;  %248 = vst [vmem:[%s1381_s29 + $0x60] sm:$0xf] %v247_v24 }
  0x26   : > { %250 = vst [vmem:[%s1381_s29 + $0x64] sm:$0xf] %v249_v25  ;;  %v251_v26 = vld [vmem:[%s1377_s28 + $0xd0] sm:$0xf]  ;;  %v253_v27 = vld [vmem:[%s1377_s28 + $0xd8] sm:$0xf] }
  0x27   : > { %v255_v28 = vld [vmem:[%s1377_s28 + $0xe0] sm:$0xf]  ;;  %252 = vst [vmem:[%s1381_s29 + $0x68] sm:$0xf] %v251_v26  ;;  %254 = vst [vmem:[%s1381_s29 + $0x6c] sm:$0xf] %v253_v27 }
  0x28   : > { %256 = vst [vmem:[%s1381_s29 + $0x70] sm:$0xf] %v255_v28  ;;  %v257_v29 = vld [vmem:[%s1377_s28 + $0xe8] sm:$0xf]  ;;  %v259_v30 = vld [vmem:[%s1377_s28 + $0xf0] sm:$0xf] }
  0x29   : > { %v261_v31 = vld [vmem:[%s1377_s28 + $0xf8] sm:$0xf]  ;;  %258 = vst [vmem:[%s1381_s29 + $0x74] sm:$0xf] %v257_v29  ;;  %260 = vst [vmem:[%s1381_s29 + $0x78] sm:$0xf] %v259_v30 }
  0x2a   : > { %262 = vst [vmem:[%s1381_s29 + $0x7c] sm:$0xf] %v261_v31  ;;  %v263_v32 = vld [vmem:[%s1377_s28 + $0x100] sm:$0xf]  ;;  %v265_v33 = vld [vmem:[%s1377_s28 + $0x108] sm:$0xf] }
  0x2b   : > { %v267_v34 = vld [vmem:[%s1377_s28 + $0x110] sm:$0xf]  ;;  %264 = vst [vmem:[%s1381_s29 + $0x80] sm:$0xf] %v263_v32  ;;  %266 = vst [vmem:[%s1381_s29 + $0x84] sm:$0xf] %v265_v33 }
  0x2c   : > { %268 = vst [vmem:[%s1381_s29 + $0x88] sm:$0xf] %v267_v34  ;;  %v269_v35 = vld [vmem:[%s1377_s28 + $0x118] sm:$0xf]  ;;  %v271_v36 = vld [vmem:[%s1377_s28 + $0x120] sm:$0xf] }
  0x2d   : > { %v273_v37 = vld [vmem:[%s1377_s28 + $0x128] sm:$0xf]  ;;  %270 = vst [vmem:[%s1381_s29 + $0x8c] sm:$0xf] %v269_v35  ;;  %272 = vst [vmem:[%s1381_s29 + $0x90] sm:$0xf] %v271_v36 }
  0x2e   : > { %274 = vst [vmem:[%s1381_s29 + $0x94] sm:$0xf] %v273_v37  ;;  %v275_v38 = vld [vmem:[%s1377_s28 + $0x130] sm:$0xf]  ;;  %v277_v39 = vld [vmem:[%s1377_s28 + $0x138] sm:$0xf] }
  0x2f   : > { %v279_v40 = vld [vmem:[%s1377_s28 + $0x140] sm:$0xf]  ;;  %276 = vst [vmem:[%s1381_s29 + $0x98] sm:$0xf] %v275_v38  ;;  %278 = vst [vmem:[%s1381_s29 + $0x9c] sm:$0xf] %v277_v39 }
  0x30   : > { %280 = vst [vmem:[%s1381_s29 + $0xa0] sm:$0xf] %v279_v40  ;;  %v281_v41 = vld [vmem:[%s1377_s28 + $0x148] sm:$0xf]  ;;  %v283_v42 = vld [vmem:[%s1377_s28 + $0x150] sm:$0xf] }
  0x31   : > { %v285_v43 = vld [vmem:[%s1377_s28 + $0x158] sm:$0xf]  ;;  %282 = vst [vmem:[%s1381_s29 + $0xa4] sm:$0xf] %v281_v41  ;;  %284 = vst [vmem:[%s1381_s29 + $0xa8] sm:$0xf] %v283_v42 }
  0x32   : > { %286 = vst [vmem:[%s1381_s29 + $0xac] sm:$0xf] %v285_v43  ;;  %v287_v44 = vld [vmem:[%s1377_s28 + $0x160] sm:$0xf]  ;;  %v289_v45 = vld [vmem:[%s1377_s28 + $0x168] sm:$0xf] }
  0x33   : > { %v291_v46 = vld [vmem:[%s1377_s28 + $0x170] sm:$0xf]  ;;  %288 = vst [vmem:[%s1381_s29 + $0xb0] sm:$0xf] %v287_v44  ;;  %290 = vst [vmem:[%s1381_s29 + $0xb4] sm:$0xf] %v289_v45 }
  0x34   : > { %292 = vst [vmem:[%s1381_s29 + $0xb8] sm:$0xf] %v291_v46  ;;  %v293_v47 = vld [vmem:[%s1377_s28 + $0x178] sm:$0xf]  ;;  %v295_v48 = vld [vmem:[%s1377_s28 + $0x180] sm:$0xf] }
  0x35   : > { %v297_v49 = vld [vmem:[%s1377_s28 + $0x188] sm:$0xf]  ;;  %294 = vst [vmem:[%s1381_s29 + $0xbc] sm:$0xf] %v293_v47  ;;  %296 = vst [vmem:[%s1381_s29 + $0xc0] sm:$0xf] %v295_v48 }
  0x36   : > { %298 = vst [vmem:[%s1381_s29 + $0xc4] sm:$0xf] %v297_v49  ;;  %v299_v50 = vld [vmem:[%s1377_s28 + $0x190] sm:$0xf]  ;;  %v301_v51 = vld [vmem:[%s1377_s28 + $0x198] sm:$0xf] }
  0x37   : > { %v303_v52 = vld [vmem:[%s1377_s28 + $0x1a0] sm:$0xf]  ;;  %300 = vst [vmem:[%s1381_s29 + $0xc8] sm:$0xf] %v299_v50  ;;  %302 = vst [vmem:[%s1381_s29 + $0xcc] sm:$0xf] %v301_v51 }
  0x38   : > { %304 = vst [vmem:[%s1381_s29 + $0xd0] sm:$0xf] %v303_v52  ;;  %v305_v53 = vld [vmem:[%s1377_s28 + $0x1a8] sm:$0xf]  ;;  %v307_v54 = vld [vmem:[%s1377_s28 + $0x1b0] sm:$0xf] }
  0x39   : > { %v309_v55 = vld [vmem:[%s1377_s28 + $0x1b8] sm:$0xf]  ;;  %306 = vst [vmem:[%s1381_s29 + $0xd4] sm:$0xf] %v305_v53  ;;  %308 = vst [vmem:[%s1381_s29 + $0xd8] sm:$0xf] %v307_v54 }
  0x3a   : > { %310 = vst [vmem:[%s1381_s29 + $0xdc] sm:$0xf] %v309_v55  ;;  %v311_v56 = vld [vmem:[%s1377_s28 + $0x1c0] sm:$0xf]  ;;  %v313_v57 = vld [vmem:[%s1377_s28 + $0x1c8] sm:$0xf] }
  0x3b   : > { %v315_v58 = vld [vmem:[%s1377_s28 + $0x1d0] sm:$0xf]  ;;  %312 = vst [vmem:[%s1381_s29 + $0xe0] sm:$0xf] %v311_v56  ;;  %314 = vst [vmem:[%s1381_s29 + $0xe4] sm:$0xf] %v313_v57 }
  0x3c   : > { %316 = vst [vmem:[%s1381_s29 + $0xe8] sm:$0xf] %v315_v58  ;;  %v317_v59 = vld [vmem:[%s1377_s28 + $0x1d8] sm:$0xf]  ;;  %v319_v60 = vld [vmem:[%s1377_s28 + $0x1e0] sm:$0xf] }
  0x3d   : > { %v321_v61 = vld [vmem:[%s1377_s28 + $0x1e8] sm:$0xf]  ;;  %318 = vst [vmem:[%s1381_s29 + $0xec] sm:$0xf] %v317_v59  ;;  %320 = vst [vmem:[%s1381_s29 + $0xf0] sm:$0xf] %v319_v60 }
  0x3e   : > { %322 = vst [vmem:[%s1381_s29 + $0xf4] sm:$0xf] %v321_v61  ;;  %v323_v62 = vld [vmem:[%s1377_s28 + $0x1f0] sm:$0xf]  ;;  %v325_v63 = vld [vmem:[%s1377_s28 + $0x1f8] sm:$0xf] }
  0x3f   : > { %324 = vst [vmem:[%s1381_s29 + $0xf8] sm:$0xf] %v323_v62  ;;  %326 = vst [vmem:[%s1381_s29 + $0xfc] sm:$0xf] %v325_v63 }
  0x40 PF: > { %p1099_p8 = scmp.ge.s32.totalorder %s1307_s16, 1  ;;  %p482_p9 = scmp.lt.s32.totalorder %s1307_s16, 3 }
  0x42   : > { %p483_p10 = pnand %p1099_p8, %p482_p9 }
  0x43   : > { %s489_s30 = sand.u32 (!%p483_p10), 1, %s1291_s12   ;;  %v1261_v0 = vld [vmem:[%s1588_s0 + $0x4] ss:$16 sps:$4 sm:$0xff] (!%p483_p10)   ;;  %v1264_v1 = vld [vmem:[%s1588_s0 + $0xc] ss:$16 sps:$4 sm:$0xff] (!%p483_p10)   ;;  %p537_p11 = scmp.lt.s32.totalorder (!%p483_p10), %s1299_s14, 1 }
  0x44   : > { %486 = sbr.rel (%p483_p10) target bundleno = 354 (0x162), region = 69  ;;  %s1100_s4 = sshll.u32 (!%p483_p10), %s489_s30, 8  ;;  %862 = vmatprep.mubr.bf16.mxu0 (!%p483_p10), %v1261_v0  ;;  %903 = vmatprep.mubr.bf16.mxu1 (!%p483_p10), %v1264_v1  ;;  %v1259_v32 = vld [vmem:[%s1588_s0] ss:$16 sps:$4 sm:$0xff] (!%p483_p10)   ;;  %v1262_v35 = vld [vmem:[%s1588_s0 + $0x8] ss:$16 sps:$4 sm:$0xff] (!%p483_p10)  }
  0x45   : > { %s1520_s9 = scalar_lea.vmem (!%p483_p10), [#allocation3], %s1100_s4  ;;  %s1101_s26 = sshll.u32 (!%p483_p10), %s489_s30, 4 }
  0x46   : > { %v1227_v2 = vld [vmem:[%s1520_s9 + $0x40] sm:$0xff] (!%p483_p10)   ;;  %v1231_v6 = vld [vmem:[%s1520_s9 + $0x48] sm:$0xff] (!%p483_p10)   ;;  %v1235_v10 = vld [vmem:[%s1520_s9 + $0x50] sm:$0xff] (!%p483_p10)   ;;  %s523_s27 = scalar_lea.vmem (!%p483_p10), [#allocation4], %s1101_s26 }
  0x47   : > { %v1228_v3 = vld [vmem:[%s1520_s9 + $0xc0] sm:$0xff] (!%p483_p10)   ;;  %1143 = vmatprep.subr.bf16.mxu0 (!%p483_p10), %v1227_v2  ;;  %v1232_v7 = vld [vmem:[%s1520_s9 + $0xc8] sm:$0xff] (!%p483_p10)   ;;  %v1236_v11 = vld [vmem:[%s1520_s9 + $0xd0] sm:$0xff] (!%p483_p10)  }
  0x48   : > { %v1229_v4 = vld [vmem:[%s1520_s9] sm:$0xff] (!%p483_p10)   ;;  %1165 = vmatprep.subr.bf16.mxu1 (!%p483_p10), %v1228_v3  ;;  %v1233_v8 = vld [vmem:[%s1520_s9 + $0x8] sm:$0xff] (!%p483_p10)   ;;  %v1237_v12 = vld [vmem:[%s1520_s9 + $0x10] sm:$0xff] (!%p483_p10)  }
  0x49   : > { %v1230_v5 = vld [vmem:[%s1520_s9 + $0x80] sm:$0xff] (!%p483_p10)   ;;  %1144 = vmatpush3.bf16.msra.mxu0 (!%p483_p10), %v1229_v4  ;;  %v1234_v9 = vld [vmem:[%s1520_s9 + $0x88] sm:$0xff] (!%p483_p10)   ;;  %v1238_v13 = vld [vmem:[%s1520_s9 + $0x90] sm:$0xff] (!%p483_p10)  }
  0x4a   : > { %1166 = vmatpush3.bf16.msra.mxu1 (!%p483_p10), %v1230_v5  ;;  %1145 = vmatprep.subr.bf16.mxu0 (!%p483_p10), %v1231_v6  ;;  %v1239_v14 = vld [vmem:[%s1520_s9 + $0x58] sm:$0xff] (!%p483_p10)   ;;  %v1243_v18 = vld [vmem:[%s1520_s9 + $0x60] sm:$0xff] (!%p483_p10)   ;;  %v1247_v22 = vld [vmem:[%s1520_s9 + $0x68] sm:$0xff] (!%p483_p10)  }
  0x4b   : > { %1167 = vmatprep.subr.bf16.mxu1 %v1232_v7  ;;  %v1240_v15 = vld [vmem:[%s1520_s9 + $0xd8] sm:$0xff]   ;;  %v1244_v19 = vld [vmem:[%s1520_s9 + $0xe0] sm:$0xff]   ;;  %v1248_v23 = vld [vmem:[%s1520_s9 + $0xe8] sm:$0xff]   ;;  %s538_s20 = scalar_select %p537_p11, %s1299_s14, 1 }
  0x4c   : > { %v1241_v16 = vld [vmem:[%s1520_s9 + $0x18] sm:$0xff]   ;;  %v1245_v20 = vld [vmem:[%s1520_s9 + $0x20] sm:$0xff]   ;;  %v1249_v24 = vld [vmem:[%s1520_s9 + $0x28] sm:$0xff]   ;;  %s1140_s28 = sshll.u32 (%p1364_p6), %s1299_s14, 3 }
  0x4d   : > { %1146 = vmatpush3.bf16.msra.mxu0 %v1233_v8  ;;  %v1242_v17 = vld [vmem:[%s1520_s9 + $0x98] sm:$0xff]   ;;  %v1246_v21 = vld [vmem:[%s1520_s9 + $0xa0] sm:$0xff]   ;;  %v1250_v25 = vld [vmem:[%s1520_s9 + $0xa8] sm:$0xff]   ;;  %s539_s25 = scalar_lea.vmem %s1590_s2, %s538_s20  ;;  %s953_s30 = scalar_lea.vmem (%p1364_p6), %s1591_s3, %s1140_s28 }
  0x4e   : > { %1168 = vmatpush3.bf16.msra.mxu1 %v1234_v9  ;;  %1147 = vmatprep.subr.bf16.mxu0 %v1235_v10  ;;  %v1251_v26 = vld [vmem:[%s1520_s9 + $0x70] sm:$0xff]   ;;  %v1255_v30 = vld [vmem:[%s1520_s9 + $0x78] sm:$0xff]   ;;  %v1138_v45 = vld [vmem:[%s539_s25] ss:$0 sm:$0xff] }
  0x4f   : > { %1169 = vmatprep.subr.bf16.mxu1 %v1236_v11  ;;  %v1252_v27 = vld [vmem:[%s1520_s9 + $0xf0] sm:$0xff]   ;;  %v1256_v31 = vld [vmem:[%s1520_s9 + $0xf8] sm:$0xff]  }
  0x50   : > { %v1253_v28 = vld [vmem:[%s1520_s9 + $0x30] sm:$0xff]   ;;  %v1257_v33 = vld [vmem:[%s1520_s9 + $0x38] sm:$0xff]  }
  0x51   : > { %1148 = vmatpush3.bf16.msra.mxu0 %v1237_v12  ;;  %v1254_v29 = vld [vmem:[%s1520_s9 + $0xb0] sm:$0xff]   ;;  %v1258_v34 = vld [vmem:[%s1520_s9 + $0xb8] sm:$0xff]  }
  0x52   : > { %1170 = vmatpush3.bf16.msra.mxu1 %v1238_v13  ;;  %1149 = vmatprep.subr.bf16.mxu0 %v1239_v14 }
  0x53   : > { %1171 = vmatprep.subr.bf16.mxu1 %v1240_v15 }
  0x55   : > { %1150 = vmatpush3.bf16.msra.mxu0 %v1241_v16 }
  0x56   : > { %1172 = vmatpush3.bf16.msra.mxu1 %v1242_v17  ;;  %1151 = vmatprep.subr.bf16.mxu0 %v1243_v18 }
  0x57   : > { %1173 = vmatprep.subr.bf16.mxu1 %v1244_v19 }
  0x59   : > { %1152 = vmatpush3.bf16.msra.mxu0 %v1245_v20 }
  0x5a   : > { %1174 = vmatpush3.bf16.msra.mxu1 %v1246_v21  ;;  %1153 = vmatprep.subr.bf16.mxu0 %v1247_v22 }
  0x5b   : > { %1175 = vmatprep.subr.bf16.mxu1 %v1248_v23 }
  0x5d   : > { %1154 = vmatpush3.bf16.msra.mxu0 %v1249_v24 }
  0x5e   : > { %1176 = vmatpush3.bf16.msra.mxu1 %v1250_v25  ;;  %1155 = vmatprep.subr.bf16.mxu0 %v1251_v26 }
  0x5f   : > { %1177 = vmatprep.subr.bf16.mxu1 %v1252_v27 }
  0x61   : > { %1156 = vmatpush3.bf16.msra.mxu0 %v1253_v28 }
  0x62   : > { %1178 = vmatpush3.bf16.msra.mxu1 %v1254_v29  ;;  %1157 = vmatprep.subr.bf16.mxu0 %v1255_v30 }
  0x63   : > { %1179 = vmatprep.subr.bf16.mxu1 %v1256_v31 }
  0x65   : > { %1158 = vmatpush3.bf16.msra.mxu0 %v1257_v33 }
  0x66   : > { %1180 = vmatpush3.bf16.msra.mxu1 %v1258_v34 }
  0x68   : > { %863 = vmatmul.mubr.bf16.vlgmr.msra.gmra.mrb[0].mxu0 %v1259_v32 }
  0x69   : > { %904 = vmatmul.mubr.bf16.vlgmr.msra.gmra.mrb[0].mxu1 %v1262_v35 }
 0x13b   : > { %v1159_v36 = vpop.f32.mrb[0].mxu0 }
 0x13c   : > { %v1181_v37 = vpop.f32.mrb[0].mxu1  ;;  %v1160_v38 = vpop.f32.mrb[1].mxu0 }
 0x13d   : > { %v1161_v39 = vadd.f32 %v1160_v38, %v1159_v36  ;;  %v1182_v40 = vpop.f32.mrb[1].mxu1  ;;  %v1162_v41 = vpop.f32.mrb[2].mxu0 }
 0x13e   : > { %v1183_v42 = vadd.f32 %v1182_v40, %v1181_v37  ;;  %v1184_v43 = vpop.f32.mrb[2].mxu1  ;;  %v1163_v44 = vpop.f32.mrb[3].mxu0 }
 0x13f   : > { %v1164_v46 = vadd.f32 %v1163_v44, %v1162_v41  ;;  %v1185_v47 = vpop.f32.mrb[3].mxu1 }
 0x140   : > { %v906_v48 = vadd.f32 %v1183_v42, %v1161_v39  ;;  %v1186_v49 = vadd.f32 %v1185_v47, %v1184_v43 }
 0x142   : > { %v928_v50 = vadd.f32 %v1138_v45, %v906_v48  ;;  %v909_v51 = vadd.f32 %v1186_v49, %v1164_v46 }
 0x144   : > { %v930_v52 = vmul.f32 0.5, %v928_v50  ;;  %v929_v53 = vadd.f32 %v1138_v45, %v909_v51 }
 0x146   : > { %1265 = vtanh.f32 %v930_v52  ;;  %v931_v54 = vmul.f32 0.5, %v929_v53 }
 0x148   : > { %1267 = vtanh.f32 %v931_v54 }
 0x150   : > { %v1266_v55 = vpop.eup %1265 }
 0x151   : > { %v934_v56 = vadd.f32 1.0, %v1266_v55 }
 0x152   : > { %v1268_v57 = vpop.eup %1267 }
 0x153   : > { %v936_v58 = vmul.f32 0.5, %v934_v56  ;;  %v935_v59 = vadd.f32 1.0, %v1268_v57  ;;  %948 = sbr.rel (!%p1364_p6) target bundleno = 354 (0x162), region = 85 }
 0x155   : > { %v938_v60 = vmul.f32 %v936_v58, %v928_v50  ;;  %v937_v61 = vmul.f32 0.5, %v935_v59 }
 0x157   : > { %940 = vst [vmem:[%s523_s27] sm:$0xff] %v938_v60  ;;  %v939_v62 = vmul.f32 %v937_v61, %v929_v53 }
 0x159   : > { %941 = vst [vmem:[%s523_s27 + $0x8] sm:$0xff] %v939_v62 }
 0x15e   : > { %v983_v63 = vld [vmem:[%s523_s27] sm:$0xff] }
 0x15f   : > { %984 = vst [vmem:[%s953_s30] sm:$0xff] %v983_v63 }
 0x160   : > { %v985_v0 = vld [vmem:[%s523_s27 + $0x8] sm:$0xff] }
 0x161   : > { %986 = vst [vmem:[%s953_s30 + $0x10] sm:$0xff] %v985_v0 }
 0x162 PF: > { %s13_s16 = sadd.s32 1, %s1307_s16   ;;  %s1593_s12 = smov %s1295_s13 }
 0x163   : > { %p10_p12 = scmp.ge.s32.totalorder %s13_s16, 4   ;;  %s1594_s13 = smov %s1369_s22 }
 0x164   : > { %s1595_s14 = smov %s1303_s15  ;;  %s1596_s15 = smov %s1598_s17 }
 0x165   :  { %12 = sbr.rel (!%p10_p12) target bundleno = 3 (0x3), region = 160 }

// kernel: _lambda_.71
= control target key start
LH: loop header
LB: loop body
LE: loop exit
PB: predicated region body
PF: predicated region fallthrough
CT: control target
= control target key end

     0   :  { %v224_v0 = vmov 0.0   ;;  %vm225_vm0 = vmmov 0   ;;  %s282_s1 = inlined_call_operand.vmem [shape: bf16[128,128], index: 1, kind: input, shape index: {}]   ;;  %s283_s0 = inlined_call_operand.vmem [shape: bf16[16,128], index: 0, kind: input, shape index: {}]   ;;  %s284_s2 = inlined_call_operand.vmem [shape: f32[1,128], index: 2, kind: input, shape index: {}]   ;;  %s285_s3 = inlined_call_operand.vmem [shape: f32[16,128], index: 3, kind: output, shape index: {}]  }
   0x1   :  { %189 = vmatprep.subr.bf16.mxu0 %v224_v0  ;;  %v211_v1 = vld [vmem:[%s282_s1] sm:$0xff]   ;;  %205 = vmatprep.mubr.msk.bf16.mxu0 %vm225_vm0, %v224_v0  ;;  %v212_v2 = vld [vmem:[%s282_s1 + $0x8] sm:$0xff]   ;;  %v213_v3 = vld [vmem:[%s282_s1 + $0x10] sm:$0xff]  }
   0x2   :  { %190 = vmatpush3.bf16.msra.mxu0 %v211_v1  ;;  %v214_v4 = vld [vmem:[%s282_s1 + $0x18] sm:$0xff]   ;;  %v215_v5 = vld [vmem:[%s282_s1 + $0x20] sm:$0xff]   ;;  %v216_v6 = vld [vmem:[%s282_s1 + $0x28] sm:$0xff]  }
   0x3   :  { %191 = vmatprep.subr.bf16.mxu0 %v224_v0  ;;  %v217_v7 = vld [vmem:[%s282_s1 + $0x30] sm:$0xff]   ;;  %v218_v8 = vld [vmem:[%s282_s1 + $0x38] sm:$0xff]   ;;  %v219_v9 = vld [vmem:[%s283_s0] sm:$0xff]  }
   0x4   :  { %v179_v10 = vld [vmem:[%s284_s2] ss:$0 sm:$0xff] }
   0x6   :  { %192 = vmatpush3.bf16.msra.mxu0 %v212_v2 }
   0x7   :  { %193 = vmatprep.subr.bf16.mxu0 %v224_v0 }
   0xa   :  { %194 = vmatpush3.bf16.msra.mxu0 %v213_v3 }
   0xb   :  { %195 = vmatprep.subr.bf16.mxu0 %v224_v0 }
   0xe   :  { %196 = vmatpush3.bf16.msra.mxu0 %v214_v4 }
   0xf   :  { %197 = vmatprep.subr.bf16.mxu0 %v224_v0 }
  0x12   :  { %198 = vmatpush3.bf16.msra.mxu0 %v215_v5 }
  0x13   :  { %199 = vmatprep.subr.bf16.mxu0 %v224_v0 }
  0x16   :  { %200 = vmatpush3.bf16.msra.mxu0 %v216_v6 }
  0x17   :  { %201 = vmatprep.subr.bf16.mxu0 %v224_v0 }
  0x1a   :  { %202 = vmatpush3.bf16.msra.mxu0 %v217_v7 }
  0x1b   :  { %203 = vmatprep.subr.bf16.mxu0 %v224_v0 }
  0x1e   :  { %204 = vmatpush3.bf16.msra.mxu0 %v218_v8 }
  0x21   :  { %206 = vmatmul.mubr.bf16.vlgmr.msra.gmra.mrb[0].mxu0 %v219_v9 }
  0xf4   :  { %v129_v11 = vpop.f32.mrb[0].mxu0 }
  0xf5   :  { %v152_v12 = vadd.f32 %v179_v10, %v129_v11  ;;  %v207_v13 = vpop.f32.mrb[1].mxu0 }
  0xf6   :  { %v132_v14 = vpop.f32.mrb[2].mxu0 }
  0xf7   :  { %v154_v15 = vmul.f32 0.5, %v152_v12  ;;  %v153_v16 = vadd.f32 %v179_v10, %v132_v14  ;;  %v208_v17 = vpop.f32.mrb[3].mxu0 }
  0xf9   :  { %220 = vtanh.f32 %v154_v15  ;;  %v155_v18 = vmul.f32 0.5, %v153_v16 }
  0xfb   :  { %222 = vtanh.f32 %v155_v18 }
 0x103   :  { %v221_v19 = vpop.eup %220 }
 0x104   :  { %v158_v20 = vadd.f32 1.0, %v221_v19 }
 0x105   :  { %v223_v21 = vpop.eup %222 }
 0x106   :  { %v160_v22 = vmul.f32 0.5, %v158_v20  ;;  %v159_v23 = vadd.f32 1.0, %v223_v21 }
 0x108   :  { %v162_v24 = vmul.f32 %v160_v22, %v152_v12  ;;  %v161_v25 = vmul.f32 0.5, %v159_v23 }
 0x10a   :  { %164 = vst [vmem:[%s285_s3] sm:$0xff] %v162_v24  ;;  %v163_v26 = vmul.f32 %v161_v25, %v153_v16 }
 0x10c   :  { %165 = vst [vmem:[%s285_s3 + $0x8] sm:$0xff] %v163_v26 }

// kernel: _lambda_.72
= control target key start
LH: loop header
LB: loop body
LE: loop exit
PB: predicated region body
PF: predicated region fallthrough
CT: control target
= control target key end

     0   :  { %s974_s12 = smov 0   ;;  %s976_s13 = smov 0   ;;  %s1081_s0 = inlined_call_operand.vmem [shape: bf16[16,1152], index: 0, kind: input, shape index: {}]   ;;  %s1082_s1 = inlined_call_operand.vmem [shape: bf16[1152,128], index: 1, kind: input, shape index: {}]   ;;  %s1083_s2 = inlined_call_operand.vmem [shape: f32[1,128], index: 2, kind: input, shape index: {}]   ;;  %s1084_s3 = inlined_call_operand.vmem [shape: f32[16,128], index: 3, kind: output, shape index: {}]  }
   0x1   :  { %s978_s14 = smov 0   ;;  %s980_s15 = smov 0  }
   0x2   :  { %s982_s16 = smov 0  }
   0x3 LB: > { %s25_s17 = sadd.s32 1, %s945_s15  ;;  %p48_p1 = scmp.ne.s32.totalorder %s937_s13, %s933_s12  ;;  %s949_s16 = sphi %s982_s16, %s13_s16   ;;  %s945_s15 = sphi %s980_s15, %s1088_s15   ;;  %s941_s14 = sphi %s978_s14, %s1087_s14   ;;  %s937_s13 = sphi %s976_s13, %s1086_s13   ;;  %s933_s12 = sphi %s974_s12, %s1085_s12  }
   0x4   : > { %p26_p0 = scmp.ge.s32.totalorder %s25_s17, 3  ;;  %p49_p2 = scmp.eq.s32.totalorder %s949_s16, 0 }
   0x5   : > { %s41_s19 = sadd.s32 1, %s937_s13  ;;  %p740_p5 = scmp.ge.s32.totalorder %s949_s16, 3 }
   0x6   : > { %s1090_s17 = smov (%p26_p0, %s25_s17), 0  ;;  %p50_p3 = por %p49_p2, %p48_p1 }
   0x7   : > { %s37_s18 = ssub.s32 %s945_s15, %s1090_s17  ;;  %162 = sbr.rel (%p740_p5) target bundleno = 21 (0x15), region = 20 }
   0x8   : > { %p39_p4 = scmp.eq.s32.totalorder %s37_s18, 0 }
   0xa   : > { %s1009_s20 = scalar_select %p39_p4, %s937_s13, %s41_s19  }
   0xe   : > { %165 = sbr.rel (!%p50_p3) target bundleno = 21 (0x15), region = 24  ;;  %s167_s21 = sand.u32 (%p50_p3), 1, %s937_s13  }
   0xf   : > { %s782_s22 = smul.u32 (%p50_p3), 12, %s945_s15 }
  0x10   : > { %s834_s23 = smul.u32 (%p50_p3), 24, %s167_s21 }
  0x11   : > { %s175_s26 = scalar_lea.vmem (%p50_p3), %s1081_s0, %s782_s22 }
  0x12   : > { %v190_v0 = vld [vmem:[%s175_s26] sm:$0xff] (%p50_p3)  ;;  %v742_v2 = vld [vmem:[%s175_s26 + $0x8] sm:$0xf] (%p50_p3)  ;;  %s169_s27 = scalar_lea.vmem (%p50_p3), [#allocation3], %s834_s23  ;;  %v744_v3 = vld [vmem:[%s175_s26 + $0x2c] sm:$0xf] (%p50_p3) }
  0x13   : > { %v192_v1 = vld [vmem:[%s175_s26 + $0x24] sm:$0xff] (%p50_p3)  ;;  %191 = vst [vmem:[%s169_s27] sm:$0xff] (%p50_p3), %v190_v0  ;;  %743 = vst [vmem:[%s169_s27 + $0x8] sm:$0xf] (%p50_p3), %v742_v2 }
  0x14   : > { %193 = vst [vmem:[%s169_s27 + $0xc] sm:$0xff] (%p50_p3), %v192_v1  ;;  %745 = vst [vmem:[%s169_s27 + $0x14] sm:$0xf] (%p50_p3), %v744_v3 }
  0x15 PF: > { %p746_p6 = scmp.ge.s32.totalorder %s949_s16, 1  ;;  %p221_p7 = scmp.lt.s32.totalorder %s949_s16, 4 }
  0x17   : > { %p222_p8 = pnand %p746_p6, %p221_p7 }
  0x18   : > { %s228_s28 = sand.u32 (!%p222_p8), 1, %s933_s12   ;;  %s267_s29 = smul.u32 (!%p222_p8), 48, %s941_s14 }
  0x19   : > { %225 = sbr.rel (%p222_p8) target bundleno = 323 (0x143), region = 54  ;;  %p748_p10 = scmp.ne.s32.totalorder (!%p222_p8), %s941_s14, 0 }
  0x1a   : > { %s835_s30 = smul.u32 (!%p222_p8), 24, %s228_s28  ;;  %p268_p9 = scmp.lt.s32.totalorder (!%p222_p8), %s267_s29, 143 }
  0x1c   : > { %s1026_s8 = scalar_lea.vmem (!%p222_p8), [#allocation3], %s835_s30 }
  0x20   : > { %s1092_s29 = smov (!%p268_p9, %s267_s29), 143  ;;  %292 = sbr.rel (%p748_p10) target bundleno = 39 (0x27), region = 62 }
  0x21   : > { %s747_s4 = sshll.u32 %s1092_s29, 2  ;;  %v951_v4 = vmov (!%p748_p10), 0.0  }
  0x22   : > { %s1024_s7 = scalar_lea.vmem %s1082_s1, %s747_s4  ;;  %293 = vst [vmem:[#allocation2] sm:$0xff] (!%p748_p10), %v951_v4  ;;  %294 = vst [vmem:[#allocation2 + $0x8] sm:$0xff] (!%p748_p10), %v951_v4 }
  0x27 PF: > { %v879_v5 = vld [vmem:[%s1024_s7 + $0x40] sm:$0xff]   ;;  %v952_v6 = vmov 0.0   ;;  %vm953_vm0 = vmmov 0   ;;  %v882_v9 = vld [vmem:[%s1024_s7 + $0x48] sm:$0xff]   ;;  %v885_v12 = vld [vmem:[%s1024_s7 + $0x50] sm:$0xff]   ;;  %p776_p11 = scmp.ne.s32.totalorder %s941_s14, 2 }
  0x28   : > { %814 = vmatprep.subr.bf16.mxu1 %v952_v6  ;;  %v880_v7 = vld [vmem:[%s1024_s7] sm:$0xff]   ;;  %783 = vmatprep.subr.bf16.mxu0 %v879_v5  ;;  %v883_v10 = vld [vmem:[%s1024_s7 + $0x8] sm:$0xff]   ;;  %v886_v13 = vld [vmem:[%s1024_s7 + $0x10] sm:$0xff]  }
  0x29   : > { %v881_v8 = vld [vmem:[%s1024_s7 + $0x80] sm:$0xff]   ;;  %830 = vmatprep.mubr.msk.bf16.mxu1 %vm953_vm0, %v952_v6  ;;  %784 = vmatpush3.bf16.msra.mxu0 %v880_v7  ;;  %v884_v11 = vld [vmem:[%s1024_s7 + $0x88] sm:$0xff]   ;;  %v887_v14 = vld [vmem:[%s1024_s7 + $0x90] sm:$0xff]  }
  0x2a   : > { %815 = vmatpush3.bf16.msra.mxu1 %v881_v8  ;;  %785 = vmatprep.subr.bf16.mxu0 %v882_v9  ;;  %v888_v15 = vld [vmem:[%s1024_s7 + $0x58] sm:$0xff]   ;;  %v891_v18 = vld [vmem:[%s1024_s7 + $0x60] sm:$0xff]   ;;  %v894_v21 = vld [vmem:[%s1024_s7 + $0x68] sm:$0xff]  }
  0x2b   : > { %816 = vmatprep.subr.bf16.mxu1 %v952_v6  ;;  %v889_v16 = vld [vmem:[%s1024_s7 + $0x18] sm:$0xff]   ;;  %v892_v19 = vld [vmem:[%s1024_s7 + $0x20] sm:$0xff]   ;;  %v895_v22 = vld [vmem:[%s1024_s7 + $0x28] sm:$0xff]  }
  0x2c   : > { %v890_v17 = vld [vmem:[%s1024_s7 + $0x98] sm:$0xff]   ;;  %v893_v20 = vld [vmem:[%s1024_s7 + $0xa0] sm:$0xff]   ;;  %v896_v23 = vld [vmem:[%s1024_s7 + $0xa8] sm:$0xff]  }
  0x2d   : > { %786 = vmatpush3.bf16.msra.mxu0 %v883_v10  ;;  %v897_v24 = vld [vmem:[%s1024_s7 + $0x70] sm:$0xff]   ;;  %v900_v27 = vld [vmem:[%s1024_s7 + $0x78] sm:$0xff]   ;;  %v295_v39 = vld [vmem:[#allocation2] sm:$0xff] }
  0x2e   : > { %817 = vmatpush3.bf16.msra.mxu1 %v884_v11  ;;  %787 = vmatprep.subr.bf16.mxu0 %v885_v12  ;;  %v898_v25 = vld [vmem:[%s1024_s7 + $0x30] sm:$0xff]   ;;  %v901_v29 = vld [vmem:[%s1024_s7 + $0x38] sm:$0xff]   ;;  %v296_v45 = vld [vmem:[#allocation2 + $0x8] sm:$0xff] }
  0x2f   : > { %818 = vmatprep.subr.bf16.mxu1 %v952_v6  ;;  %v899_v26 = vld [vmem:[%s1024_s7 + $0xb0] sm:$0xff]   ;;  %v902_v30 = vld [vmem:[%s1024_s7 + $0xb8] sm:$0xff]   ;;  %v777_v50 = vld [vmem:[%s1083_s2] ss:$0 sm:$0xff] (!%p776_p11) }
  0x30   : > { %v905_v28 = vld [vmem:[%s1026_s8 + $0x4] ss:$12 sps:$4 sm:$0xff]   ;;  %v903_v31 = vld [vmem:[%s1026_s8] ss:$12 sps:$4 sm:$0xff]   ;;  %v906_v32 = vld [vmem:[%s1026_s8 + $0x8] ss:$12 sps:$4 sm:$0xff]  }
  0x31   : > { %788 = vmatpush3.bf16.msra.mxu0 %v886_v13  ;;  %541 = vmatprep.mubr.bf16.mxu0 %v905_v28 }
  0x32   : > { %819 = vmatpush3.bf16.msra.mxu1 %v887_v14  ;;  %789 = vmatprep.subr.bf16.mxu0 %v888_v15 }
  0x33   : > { %820 = vmatprep.subr.bf16.mxu1 %v952_v6 }
  0x35   : > { %790 = vmatpush3.bf16.msra.mxu0 %v889_v16 }
  0x36   : > { %821 = vmatpush3.bf16.msra.mxu1 %v890_v17  ;;  %791 = vmatprep.subr.bf16.mxu0 %v891_v18 }
  0x37   : > { %822 = vmatprep.subr.bf16.mxu1 %v952_v6 }
  0x39   : > { %792 = vmatpush3.bf16.msra.mxu0 %v892_v19 }
  0x3a   : > { %823 = vmatpush3.bf16.msra.mxu1 %v893_v20  ;;  %793 = vmatprep.subr.bf16.mxu0 %v894_v21 }
  0x3b   : > { %824 = vmatprep.subr.bf16.mxu1 %v952_v6 }
  0x3d   : > { %794 = vmatpush3.bf16.msra.mxu0 %v895_v22 }
  0x3e   : > { %825 = vmatpush3.bf16.msra.mxu1 %v896_v23  ;;  %795 = vmatprep.subr.bf16.mxu0 %v897_v24 }
  0x3f   : > { %826 = vmatprep.subr.bf16.mxu1 %v952_v6 }
  0x41   : > { %796 = vmatpush3.bf16.msra.mxu0 %v898_v25 }
  0x42   : > { %827 = vmatpush3.bf16.msra.mxu1 %v899_v26  ;;  %797 = vmatprep.subr.bf16.mxu0 %v900_v27 }
  0x43   : > { %828 = vmatprep.subr.bf16.mxu1 %v952_v6 }
  0x45   : > { %798 = vmatpush3.bf16.msra.mxu0 %v901_v29 }
  0x46   : > { %829 = vmatpush3.bf16.msra.mxu1 %v902_v30 }
  0x48   : > { %542 = vmatmul.mubr.bf16.vlgmr.msra.gmra.mrb[0].mxu0 %v903_v31 }
  0x49   : > { %831 = vmatmul.mubr.bf16.vlgmr.msra.gmra.mrb[0].mxu1 %v906_v32 }
 0x11b   : > { %v799_v33 = vpop.f32.mrb[0].mxu0 }
 0x11c   : > { %v584_v34 = vpop.f32.mrb[0].mxu1  ;;  %v800_v35 = vpop.f32.mrb[1].mxu0 }
 0x11d   : > { %v801_v36 = vadd.f32 %v800_v35, %v799_v33  ;;  %v832_v37 = vpop.f32.mrb[1].mxu1  ;;  %v802_v38 = vpop.f32.mrb[2].mxu0 }
 0x11e   : > { %v587_v40 = vpop.f32.mrb[2].mxu1  ;;  %v803_v41 = vpop.f32.mrb[3].mxu0 }
 0x11f   : > { %v585_v42 = vadd.f32 %v801_v36, %v584_v34  ;;  %v804_v43 = vadd.f32 %v803_v41, %v802_v38  ;;  %v833_v44 = vpop.f32.mrb[3].mxu1  ;;  %598 = sbr.rel (%p776_p11) target bundleno = 323 (0x143), region = 66 }
 0x121   : > { %v591_v46 = vadd.f32 %v585_v42, %v295_v39  ;;  %v588_v47 = vadd.f32 %v804_v43, %v587_v40 }
 0x123   : > { %593 = vst [vmem:[#allocation2] sm:$0xff] %v591_v46  ;;  %v592_v48 = vadd.f32 %v588_v47, %v296_v45 }
 0x125   : > { %594 = vst [vmem:[#allocation2 + $0x8] sm:$0xff] %v592_v48 }
 0x12a   : > { %v599_v49 = vld [vmem:[#allocation2] sm:$0xff] }
 0x12b   : > { %v608_v52 = vadd.f32 %v777_v50, %v599_v49 }
 0x12c   : > { %v600_v51 = vld [vmem:[#allocation2 + $0x8] sm:$0xff] }
 0x12d   : > { %v609_v53 = vadd.f32 %v777_v50, %v600_v51  ;;  %v610_v54 = vmul.f32 0.5, %v608_v52 }
 0x12f   : > { %v611_v55 = vmul.f32 0.5, %v609_v53  ;;  %907 = vtanh.f32 %v610_v54 }
 0x131   : > { %909 = vtanh.f32 %v611_v55 }
 0x139   : > { %v908_v56 = vpop.eup %907 }
 0x13a   : > { %v614_v58 = vadd.f32 1.0, %v908_v56 }
 0x13b   : > { %v910_v57 = vpop.eup %909 }
 0x13c   : > { %v615_v59 = vadd.f32 1.0, %v910_v57  ;;  %v616_v60 = vmul.f32 0.5, %v614_v58 }
 0x13e   : > { %v617_v61 = vmul.f32 0.5, %v615_v59  ;;  %v618_v62 = vmul.f32 %v616_v60, %v608_v52 }
 0x140   : > { %v619_v63 = vmul.f32 %v617_v61, %v609_v53  ;;  %620 = vst [vmem:[%s1084_s3] sm:$0xff] %v618_v62 }
 0x142   : > { %621 = vst [vmem:[%s1084_s3 + $0x8] sm:$0xff] %v619_v63 }
 0x143 PF: > { %s13_s16 = sadd.s32 1, %s949_s16   ;;  %s1085_s12 = smov %s937_s13 }
 0x144   : > { %p10_p12 = scmp.ge.s32.totalorder %s13_s16, 5   ;;  %s1086_s13 = smov %s1009_s20 }
 0x145   : > { %s1087_s14 = smov %s945_s15  ;;  %s1088_s15 = smov %s1090_s17 }
 0x146   :  { %12 = sbr.rel (!%p10_p12) target bundleno = 3 (0x3), region = 113 }

// kernel: _lambda_.73
= control target key start
LH: loop header
LB: loop body
LE: loop exit
PB: predicated region body
PF: predicated region fallthrough
CT: control target
= control target key end

     0   :  { %s961_s12 = smov 0   ;;  %s963_s13 = smov 0   ;;  %s1134_s0 = inlined_call_operand.vmem [shape: bf16[16,256], index: 0, kind: input, shape index: {}]   ;;  %s1135_s1 = inlined_call_operand.vmem [shape: bf16[256,256], index: 1, kind: input, shape index: {}]   ;;  %s1136_s2 = inlined_call_operand.vmem [shape: f32[1,256], index: 2, kind: input, shape index: {}]   ;;  %s1137_s3 = inlined_call_operand.vmem [shape: f32[16,256], index: 3, kind: output, shape index: {}]  }
   0x1   :  { %s965_s14 = smov 0   ;;  %s967_s15 = smov 0  }
   0x2   :  { %s969_s16 = smov 0  }
   0x3 LB: > { %s28_s17 = sadd.s32 1, %s935_s15  ;;  %s783_s18 = sadd.s32 4294967295, %s939_s16   ;;  %s939_s16 = sphi %s969_s16, %s13_s16   ;;  %s935_s15 = sphi %s967_s15, %s1142_s15   ;;  %s931_s14 = sphi %s965_s14, %s1141_s14   ;;  %s927_s13 = sphi %s963_s13, %s1140_s13   ;;  %s923_s12 = sphi %s961_s12, %s1139_s12  }
   0x4   : > { %p30_p0 = scmp.ge.s32.totalorder %s28_s17, 2  ;;  %p76_p1 = scmp.ne.s32.totalorder %s927_s13, %s923_s12 }
   0x5   : > { %p77_p2 = scmp.eq.s32.totalorder %s939_s16, 0  ;;  %p134_p4 = scmp.eq.s32.totalorder %s783_s18, 1 }
   0x6   : > { %s1144_s17 = smov (%p30_p0, %s28_s17), 0  ;;  %s69_s20 = sadd.s32 1, %s927_s13 }
   0x7   : > { %p78_p3 = por %p77_p2, %p76_p1  ;;  %s65_s19 = ssub.s32 %s935_s15, %s1144_s17 }
   0x8   : > { %p67_p5 = scmp.eq.s32.totalorder %s65_s19, 0  ;;  %p996_p6 = por %p134_p4, %p76_p1 }
   0x9   : > { %p787_p7 = scmp.ge.s32.totalorder %s939_s16, 2 }
   0xa   : > { %s1001_s22 = scalar_select %p67_p5, %s927_s13, %s69_s20  }
   0xb   : > { %171 = sbr.rel (%p787_p7) target bundleno = 43 (0x2b), region = 20 }
  0x12   : > { %174 = sbr.rel (!%p78_p3) target bundleno = 43 (0x2b), region = 24  ;;  %s176_s23 = sand.u32 (%p78_p3), 1, %s927_s13  }
  0x13   : > { %s789_s24 = sshll.u32 (%p78_p3), %s935_s15, 2  ;;  %s788_s25 = sshll.u32 (%p78_p3), %s176_s23, 7 }
  0x14   : > { %s1009_s28 = scalar_lea.vmem (%p78_p3), %s1135_s1, %s789_s24  ;;  %s1013_s29 = scalar_lea.vmem (%p78_p3), [#allocation3], %s788_s25 }
  0x15   : > { %v199_v0 = vld [vmem:[%s1009_s28] sm:$0xf] (%p78_p3)  ;;  %v201_v1 = vld [vmem:[%s1009_s28 + $0x8] sm:$0xf] (%p78_p3)  ;;  %v203_v2 = vld [vmem:[%s1009_s28 + $0x10] sm:$0xf] (%p78_p3) }
  0x16   : > { %200 = vst [vmem:[%s1013_s29] sm:$0xf] (%p78_p3), %v199_v0  ;;  %202 = vst [vmem:[%s1013_s29 + $0x4] sm:$0xf] (%p78_p3), %v201_v1  ;;  %v205_v3 = vld [vmem:[%s1009_s28 + $0x18] sm:$0xf] (%p78_p3) }
  0x17   : > { %v207_v4 = vld [vmem:[%s1009_s28 + $0x20] sm:$0xf] (%p78_p3)  ;;  %204 = vst [vmem:[%s1013_s29 + $0x8] sm:$0xf] (%p78_p3), %v203_v2  ;;  %206 = vst [vmem:[%s1013_s29 + $0xc] sm:$0xf] (%p78_p3), %v205_v3 }
  0x18   : > { %208 = vst [vmem:[%s1013_s29 + $0x10] sm:$0xf] (%p78_p3), %v207_v4  ;;  %v209_v5 = vld [vmem:[%s1009_s28 + $0x28] sm:$0xf] (%p78_p3)  ;;  %v211_v6 = vld [vmem:[%s1009_s28 + $0x30] sm:$0xf] (%p78_p3) }
  0x19   : > { %v213_v7 = vld [vmem:[%s1009_s28 + $0x38] sm:$0xf]  ;;  %210 = vst [vmem:[%s1013_s29 + $0x14] sm:$0xf] %v209_v5  ;;  %212 = vst [vmem:[%s1013_s29 + $0x18] sm:$0xf] %v211_v6 }
  0x1a   : > { %214 = vst [vmem:[%s1013_s29 + $0x1c] sm:$0xf] %v213_v7  ;;  %v215_v8 = vld [vmem:[%s1009_s28 + $0x40] sm:$0xf]  ;;  %v217_v9 = vld [vmem:[%s1009_s28 + $0x48] sm:$0xf] }
  0x1b   : > { %v219_v10 = vld [vmem:[%s1009_s28 + $0x50] sm:$0xf]  ;;  %216 = vst [vmem:[%s1013_s29 + $0x20] sm:$0xf] %v215_v8  ;;  %218 = vst [vmem:[%s1013_s29 + $0x24] sm:$0xf] %v217_v9 }
  0x1c   : > { %220 = vst [vmem:[%s1013_s29 + $0x28] sm:$0xf] %v219_v10  ;;  %v221_v11 = vld [vmem:[%s1009_s28 + $0x58] sm:$0xf]  ;;  %v223_v12 = vld [vmem:[%s1009_s28 + $0x60] sm:$0xf] }
  0x1d   : > { %v225_v13 = vld [vmem:[%s1009_s28 + $0x68] sm:$0xf]  ;;  %222 = vst [vmem:[%s1013_s29 + $0x2c] sm:$0xf] %v221_v11  ;;  %224 = vst [vmem:[%s1013_s29 + $0x30] sm:$0xf] %v223_v12 }
  0x1e   : > { %226 = vst [vmem:[%s1013_s29 + $0x34] sm:$0xf] %v225_v13  ;;  %v227_v14 = vld [vmem:[%s1009_s28 + $0x70] sm:$0xf]  ;;  %v229_v15 = vld [vmem:[%s1009_s28 + $0x78] sm:$0xf] }
  0x1f   : > { %v231_v16 = vld [vmem:[%s1009_s28 + $0x80] sm:$0xf]  ;;  %228 = vst [vmem:[%s1013_s29 + $0x38] sm:$0xf] %v227_v14  ;;  %230 = vst [vmem:[%s1013_s29 + $0x3c] sm:$0xf] %v229_v15 }
  0x20   : > { %232 = vst [vmem:[%s1013_s29 + $0x40] sm:$0xf] %v231_v16  ;;  %v233_v17 = vld [vmem:[%s1009_s28 + $0x88] sm:$0xf]  ;;  %v235_v18 = vld [vmem:[%s1009_s28 + $0x90] sm:$0xf] }
  0x21   : > { %v237_v19 = vld [vmem:[%s1009_s28 + $0x98] sm:$0xf]  ;;  %234 = vst [vmem:[%s1013_s29 + $0x44] sm:$0xf] %v233_v17  ;;  %236 = vst [vmem:[%s1013_s29 + $0x48] sm:$0xf] %v235_v18 }
  0x22   : > { %238 = vst [vmem:[%s1013_s29 + $0x4c] sm:$0xf] %v237_v19  ;;  %v239_v20 = vld [vmem:[%s1009_s28 + $0xa0] sm:$0xf]  ;;  %v241_v21 = vld [vmem:[%s1009_s28 + $0xa8] sm:$0xf] }
  0x23   : > { %v243_v22 = vld [vmem:[%s1009_s28 + $0xb0] sm:$0xf]  ;;  %240 = vst [vmem:[%s1013_s29 + $0x50] sm:$0xf] %v239_v20  ;;  %242 = vst [vmem:[%s1013_s29 + $0x54] sm:$0xf] %v241_v21 }
  0x24   : > { %244 = vst [vmem:[%s1013_s29 + $0x58] sm:$0xf] %v243_v22  ;;  %v245_v23 = vld [vmem:[%s1009_s28 + $0xb8] sm:$0xf]  ;;  %v247_v24 = vld [vmem:[%s1009_s28 + $0xc0] sm:$0xf] }
  0x25   : > { %v249_v25 = vld [vmem:[%s1009_s28 + $0xc8] sm:$0xf]  ;;  %246 = vst [vmem:[%s1013_s29 + $0x5c] sm:$0xf] %v245_v23  ;;  %248 = vst [vmem:[%s1013_s29 + $0x60] sm:$0xf] %v247_v24 }
  0x26   : > { %250 = vst [vmem:[%s1013_s29 + $0x64] sm:$0xf] %v249_v25  ;;  %v251_v26 = vld [vmem:[%s1009_s28 + $0xd0] sm:$0xf]  ;;  %v253_v27 = vld [vmem:[%s1009_s28 + $0xd8] sm:$0xf] }
  0x27   : > { %v255_v28 = vld [vmem:[%s1009_s28 + $0xe0] sm:$0xf]  ;;  %252 = vst [vmem:[%s1013_s29 + $0x68] sm:$0xf] %v251_v26  ;;  %254 = vst [vmem:[%s1013_s29 + $0x6c] sm:$0xf] %v253_v27 }
  0x28   : > { %256 = vst [vmem:[%s1013_s29 + $0x70] sm:$0xf] %v255_v28  ;;  %v257_v29 = vld [vmem:[%s1009_s28 + $0xe8] sm:$0xf]  ;;  %v259_v30 = vld [vmem:[%s1009_s28 + $0xf0] sm:$0xf] }
  0x29   : > { %v261_v31 = vld [vmem:[%s1009_s28 + $0xf8] sm:$0xf]  ;;  %258 = vst [vmem:[%s1013_s29 + $0x74] sm:$0xf] %v257_v29  ;;  %260 = vst [vmem:[%s1013_s29 + $0x78] sm:$0xf] %v259_v30 }
  0x2a   : > { %262 = vst [vmem:[%s1013_s29 + $0x7c] sm:$0xf] %v261_v31 }
  0x2b PF: > { %p790_p8 = scmp.ge.s32.totalorder %s939_s16, 1  ;;  %p354_p9 = scmp.lt.s32.totalorder %s939_s16, 3 }
  0x2d   : > { %p355_p10 = pnand %p790_p8, %p354_p9 }
  0x2e   : > { %s361_s30 = sand.u32 (!%p355_p10), 1, %s923_s12   ;;  %v896_v32 = vld [vmem:[%s1134_s0 + $0x4] ss:$8 sps:$4 sm:$0xff] (!%p355_p10)   ;;  %v894_v49 = vld [vmem:[%s1134_s0] ss:$8 sps:$4 sm:$0xff] (!%p355_p10)   ;;  %p409_p11 = scmp.lt.s32.totalorder (!%p355_p10), %s931_s14, 1 }
  0x2f   : > { %358 = sbr.rel (%p355_p10) target bundleno = 329 (0x149), region = 69  ;;  %s791_s4 = sshll.u32 (!%p355_p10), %s361_s30, 7  ;;  %594 = vmatprep.mubr.bf16.mxu0 (!%p355_p10), %v896_v32 }
  0x30   : > { %s1085_s7 = scalar_lea.vmem (!%p355_p10), [#allocation3], %s791_s4  ;;  %s792_s20 = sshll.u32 (!%p355_p10), %s361_s30, 4 }
  0x31   : > { %v878_v33 = vld [vmem:[%s1085_s7 + $0x40] sm:$0xff] (!%p355_p10)   ;;  %v880_v35 = vld [vmem:[%s1085_s7 + $0x48] sm:$0xff] (!%p355_p10)   ;;  %v882_v37 = vld [vmem:[%s1085_s7 + $0x50] sm:$0xff] (!%p355_p10)   ;;  %s395_s23 = scalar_lea.vmem (!%p355_p10), [#allocation4], %s792_s20 }
  0x32   : > { %v879_v34 = vld [vmem:[%s1085_s7] sm:$0xff] (!%p355_p10)   ;;  %816 = vmatprep.subr.bf16.mxu0 (!%p355_p10), %v878_v33  ;;  %v881_v36 = vld [vmem:[%s1085_s7 + $0x8] sm:$0xff] (!%p355_p10)   ;;  %v883_v38 = vld [vmem:[%s1085_s7 + $0x10] sm:$0xff] (!%p355_p10)  }
  0x33   : > { %817 = vmatpush3.bf16.msra.mxu0 (!%p355_p10), %v879_v34  ;;  %v884_v39 = vld [vmem:[%s1085_s7 + $0x58] sm:$0xff] (!%p355_p10)   ;;  %v886_v41 = vld [vmem:[%s1085_s7 + $0x60] sm:$0xff] (!%p355_p10)   ;;  %v888_v43 = vld [vmem:[%s1085_s7 + $0x68] sm:$0xff] (!%p355_p10)  }
  0x34   : > { %818 = vmatprep.subr.bf16.mxu0 (!%p355_p10), %v880_v35  ;;  %v885_v40 = vld [vmem:[%s1085_s7 + $0x18] sm:$0xff] (!%p355_p10)   ;;  %v887_v42 = vld [vmem:[%s1085_s7 + $0x20] sm:$0xff] (!%p355_p10)   ;;  %v889_v44 = vld [vmem:[%s1085_s7 + $0x28] sm:$0xff] (!%p355_p10)  }
  0x35   : > { %v890_v45 = vld [vmem:[%s1085_s7 + $0x70] sm:$0xff] (!%p355_p10)   ;;  %v892_v47 = vld [vmem:[%s1085_s7 + $0x78] sm:$0xff] (!%p355_p10)  }
  0x36   : > { %v891_v46 = vld [vmem:[%s1085_s7 + $0x30] sm:$0xff]   ;;  %v893_v48 = vld [vmem:[%s1085_s7 + $0x38] sm:$0xff]   ;;  %s410_s10 = scalar_select %p409_p11, %s931_s14, 1 }
  0x37   : > { %819 = vmatpush3.bf16.msra.mxu0 %v881_v36  ;;  %s813_s24 = sshll.u32 (%p996_p6), %s931_s14, 3 }
  0x38   : > { %820 = vmatprep.subr.bf16.mxu0 %v882_v37  ;;  %s411_s19 = scalar_lea.vmem %s1136_s2, %s410_s10  ;;  %s644_s26 = scalar_lea.vmem (%p996_p6), %s1137_s3, %s813_s24 }
  0x39   : > { %v811_v52 = vld [vmem:[%s411_s19] ss:$0 sm:$0xff] }
  0x3b   : > { %821 = vmatpush3.bf16.msra.mxu0 %v883_v38 }
  0x3c   : > { %822 = vmatprep.subr.bf16.mxu0 %v884_v39 }
  0x3f   : > { %823 = vmatpush3.bf16.msra.mxu0 %v885_v40 }
  0x40   : > { %824 = vmatprep.subr.bf16.mxu0 %v886_v41 }
  0x43   : > { %825 = vmatpush3.bf16.msra.mxu0 %v887_v42 }
  0x44   : > { %826 = vmatprep.subr.bf16.mxu0 %v888_v43 }
  0x47   : > { %827 = vmatpush3.bf16.msra.mxu0 %v889_v44 }
  0x48   : > { %828 = vmatprep.subr.bf16.mxu0 %v890_v45 }
  0x4b   : > { %829 = vmatpush3.bf16.msra.mxu0 %v891_v46 }
  0x4c   : > { %830 = vmatprep.subr.bf16.mxu0 %v892_v47 }
  0x4f   : > { %831 = vmatpush3.bf16.msra.mxu0 %v893_v48 }
  0x52   : > { %595 = vmatmul.mubr.bf16.vlgmr.msra.gmra.mrb[0].mxu0 %v894_v49 }
 0x125   : > { %v832_v50 = vpop.f32.mrb[0].mxu0 }
 0x126   : > { %v833_v51 = vpop.f32.mrb[1].mxu0 }
 0x127   : > { %v834_v53 = vadd.f32 %v833_v51, %v832_v50  ;;  %v835_v54 = vpop.f32.mrb[2].mxu0 }
 0x128   : > { %v836_v55 = vpop.f32.mrb[3].mxu0 }
 0x129   : > { %v619_v56 = vadd.f32 %v834_v53, %v811_v52  ;;  %v837_v57 = vadd.f32 %v836_v55, %v835_v54 }
 0x12b   : > { %v621_v58 = vmul.f32 0.5, %v619_v56  ;;  %v620_v59 = vadd.f32 %v837_v57, %v811_v52 }
 0x12d   : > { %897 = vtanh.f32 %v621_v58  ;;  %v622_v60 = vmul.f32 0.5, %v620_v59 }
 0x12f   : > { %899 = vtanh.f32 %v622_v60 }
 0x137   : > { %v898_v61 = vpop.eup %897 }
 0x138   : > { %v625_v62 = vadd.f32 1.0, %v898_v61 }
 0x139   : > { %v900_v63 = vpop.eup %899 }
 0x13a   : > { %v627_v0 = vmul.f32 0.5, %v625_v62  ;;  %v626_v1 = vadd.f32 1.0, %v900_v63  ;;  %639 = sbr.rel (!%p996_p6) target bundleno = 329 (0x149), region = 85 }
 0x13c   : > { %v629_v2 = vmul.f32 %v627_v0, %v619_v56  ;;  %v628_v3 = vmul.f32 0.5, %v626_v1 }
 0x13e   : > { %631 = vst [vmem:[%s395_s23] sm:$0xff] %v629_v2  ;;  %v630_v4 = vmul.f32 %v628_v3, %v620_v59 }
 0x140   : > { %632 = vst [vmem:[%s395_s23 + $0x8] sm:$0xff] %v630_v4 }
 0x145   : > { %v674_v5 = vld [vmem:[%s395_s23] sm:$0xff] }
 0x146   : > { %675 = vst [vmem:[%s644_s26] sm:$0xff] %v674_v5 }
 0x147   : > { %v676_v6 = vld [vmem:[%s395_s23 + $0x8] sm:$0xff] }
 0x148   : > { %677 = vst [vmem:[%s644_s26 + $0x10] sm:$0xff] %v676_v6 }
 0x149 PF: > { %s13_s16 = sadd.s32 1, %s939_s16   ;;  %s1139_s12 = smov %s927_s13 }
 0x14a   : > { %p10_p12 = scmp.ge.s32.totalorder %s13_s16, 4   ;;  %s1140_s13 = smov %s1001_s22 }
 0x14b   : > { %s1141_s14 = smov %s935_s15  ;;  %s1142_s15 = smov %s1144_s17 }
 0x14c   :  { %12 = sbr.rel (!%p10_p12) target bundleno = 3 (0x3), region = 160 }

</bundles_post_ra>
